<compile_context>
chip_gen: v7x
topology: tpu7x:2x2x1
jax: 0.10.0
libtpu: 0.0.40
codegen_flags: <defaults>
</compile_context>

<pallas_src>
import numpy as np

import jax
import jax.numpy as jnp
from jax import lax
from jax.experimental import pallas as pl
from jax.experimental.pallas import tpu as pltpu

EPS = 1e-5  # PyTorch BatchNorm1d default


def _vmem_full(shape):
    nd = len(shape)
    return pl.BlockSpec(shape, lambda *_: (0,) * nd)


# ----------------------------------------------------------------------------
# one-time weight packing (hoisted out of the jitted forward)
# ----------------------------------------------------------------------------
def _pack_banded_weight(w, padding, P):
    """Block-banded polyphase weight for a stride-2 ConvTranspose1d.

    Input activation layout: (B*16, P*Cin), row r = b*16 + i holds positions
    i*P .. i*P+P-1 (position-major).  Slab = [prev | x | next] of width (P+2)*Cin,
    slab block u holds position i*P + (u-1).  Output layout: (B*16, 2*P*Cout),
    column block (2q+ph) holds position 2*(i*P+q)+ph.

    ConvTranspose1d: y[2m+ph] += w[:, :, k] x[m+off] with k = ph + padding - 2*off.
    """
    w = np.asarray(w, np.float32)
    cin, cout, K = w.shape
    Wp = np.zeros(((P + 2) * cin, 2 * P * cout), np.float32)
    for q in range(P):
        for ph in range(2):
            col = (2 * q + ph) * cout
            for off in (-1, 0, 1):
                k = ph + padding - 2 * off
                if 0 <= k < K:
                    u = q + off + 1
                    Wp[u * cin:(u + 1) * cin, col:col + cout] = w[:, :, k]
    return jnp.asarray(Wp, jnp.bfloat16)


def prepare_params(params):
    """Pack module weights into kernel-ready layouts (run once, outside forward)."""
    w1 = np.asarray(params[0]["w"], np.float32)          # (nz, ngf, K1)
    nz, ngf, K1 = w1.shape
    prepped = [
        # W1p[ci*K1 + i, c] = w1[ci, c, i]   (used on the VPU, keep f32)
        jnp.asarray(np.transpose(w1, (0, 2, 1)).reshape(nz * K1, ngf), jnp.float32),
        jnp.asarray(params[0]["gamma"], jnp.float32).reshape(1, ngf),
        jnp.asarray(params[0]["beta"], jnp.float32).reshape(1, ngf),
    ]
    P = 1
    for p in params[1:-1]:
        w = np.asarray(p["w"], np.float32)
        cin, cout, K = w.shape
        assert cin == ngf and cout == ngf, "middle layers must be ngf -> ngf"
        assert K in (4, 6), "3-tap stride-2 polyphase packing assumes K in {4, 6}"
        prepped.append(_pack_banded_weight(w, (K - 2) // 2, P))
        prepped.append(jnp.asarray(p["gamma"], jnp.float32).reshape(1, ngf))
        prepped.append(jnp.asarray(p["beta"], jnp.float32).reshape(1, ngf))
        P *= 2
    wl = np.asarray(params[-1]["w"], np.float32)
    cin, nc, K = wl.shape
    assert cin == ngf and K in (4, 6)
    prepped.append(_pack_banded_weight(wl, (K - 2) // 2, P))
    return prepped


# ----------------------------------------------------------------------------
# fused kernel
# ----------------------------------------------------------------------------
def _make_fused_kernel(B, nz, K1, ngf, nc, n_mid):
    C = ngf
    R = B * K1  # fixed row count for all layers

    def kernel(*refs):
        x_ref = refs[0]          # SMEM (B, nz) f32
        o_ref = refs[-1]
        pr = refs[1:-1]          # packed weights / BN params

        # batch-boundary row masks (first / last position-row of each batch)
        row_idx = lax.broadcasted_iota(jnp.int32, (R, C), 0)
        first_mask = row_idx == 0
        last_mask = row_idx == (K1 - 1)
        for b in range(1, B):
            first_mask = jnp.logical_or(first_mask, row_idx == b * K1)
            last_mask = jnp.logical_or(last_mask, row_idx == (b * K1 + K1 - 1))
        zrow = jnp.zeros((1, C), jnp.float32)

        def bn_relu(acc, g_ref, bt_ref, n_stat):
            """BatchNorm1d (training batch stats) + ReLU on a position-major f32 acc."""
            W = acc.shape[1]
            s1 = jnp.sum(acc, axis=0, keepdims=True)            # (1, W)
            s2 = jnp.sum(acc * acc, axis=0, keepdims=True)      # (1, W)
            w = W
            while w > C:                                        # fold position groups
                w //= 2
                s1 = s1[:, :w] + s1[:, w:]
                s2 = s2[:, :w] + s2[:, w:]
            inv_n = 1.0 / n_stat
            mean = s1 * inv_n                                   # (1, C)
            var = jnp.maximum(s2 * inv_n - mean * mean, 0.0)    # clamp: no rsqrt(neg)
            scale = g_ref[...] * lax.rsqrt(var + EPS)
            shift = bt_ref[...] - mean * scale
            while scale.shape[1] < W:                           # tile back to (1, W)
                scale = jnp.concatenate([scale, scale], axis=1)
                shift = jnp.concatenate([shift, shift], axis=1)
            return jnp.maximum(acc * scale + shift, 0.0)

        def slab_of(h, P):
            """[prev-position | h | next-position] with zero at sequence ends."""
            last_col = h[:, (P - 1) * C:P * C]                  # (R, C)
            first_col = h[:, 0:C]                               # (R, C)
            prev_c = jnp.concatenate([zrow, last_col[:R - 1, :]], axis=0)  # row shift +1
            next_c = jnp.concatenate([first_col[1:R, :], zrow], axis=0)    # row shift -1
            prev_c = jnp.where(first_mask, 0.0, prev_c)
            next_c = jnp.where(last_mask, 0.0, next_c)
            return jnp.concatenate([prev_c, h, next_c], axis=1)  # (R, (P+2)*C)

        # ---- layer 1: length-1 latent -> dense per output position (pure VPU) ----
        w1, g1, b1 = pr[0], pr[1], pr[2]
        parts = []
        for b in range(B):
            hb = x_ref[b, 0] * w1[0:K1, :]
            for ci in range(1, nz):
                hb = hb + x_ref[b, ci] * w1[ci * K1:(ci + 1) * K1, :]
            parts.append(hb)                                     # (K1, C) f32
        acc = parts[0] if B == 1 else jnp.concatenate(parts, axis=0)   # (R, C)
        h = bn_relu(acc, g1, b1, float(R))

        # ---- layers 2..6: stride-2 ConvTranspose1d as one banded matmul + BN + ReLU ----
        P = 1
        for li in range(n_mid):
            w_ref = pr[3 + 3 * li]
            g_ref = pr[4 + 3 * li]
            bt_ref = pr[5 + 3 * li]
            slab = slab_of(h, P).astype(jnp.bfloat16)
            acc = jnp.dot(slab, w_ref[...], preferred_element_type=jnp.float32)
            P *= 2
            h = bn_relu(acc, g_ref, bt_ref, float(R * P))        # (R, P*C)

        # ---- final layer: conv + tanh, packed lane-dense for the store ----
        wl_ref = pr[3 + 3 * n_mid]
        slab = slab_of(h, P).astype(jnp.bfloat16)
        acc = jnp.dot(slab, wl_ref[...], preferred_element_type=jnp.float32)
        y = jnp.tanh(acc)                                        # (R, 2*P*nc)

        if nc == 1:
            # row b*K1+i holds output positions i*(2P) .. i*(2P)+2P-1:
            # concatenating the K1 rows of a batch along lanes yields the full
            # length-(K1*2P) sequence -> one lane-dense (B, L_out) store.
            rows = []
            for b in range(B):
                pieces = [y[b * K1 + i:b * K1 + i + 1, :] for i in range(K1)]
                rows.append(jnp.concatenate(pieces, axis=1))     # (1, L_out)
            o_ref[...] = rows[0] if B == 1 else jnp.concatenate(rows, axis=0)
        else:
            # TODO(synk): for nc > 1 the channel de-interleave is done by one tiny
            # XLA transpose in the wrapper instead of a strided in-kernel gather.
            o_ref[...] = y

    return kernel


# ----------------------------------------------------------------------------
# forward
# ----------------------------------------------------------------------------
def dcgan_straight_forward(prepped, x_ncl):
    """x_ncl: (B, nz, 1) -> (B, nc, 1024); matches the PyTorch forward()."""
    B, nz, Lin = x_ncl.shape
    assert Lin == 1, "DCGAN_Straight is used with a length-1 latent code"

    K1 = prepped[0].shape[0] // nz
    ngf = prepped[0].shape[1]
    n_mid = (len(prepped) - 4) // 3
    P_last = 2 ** n_mid
    nc = prepped[-1].shape[1] // (2 * P_last)
    L_out = K1 * (2 ** (n_mid + 1))
    R = B * K1

    x2d = x_ncl.reshape(B, nz).astype(jnp.float32)

    out_shape = (B, L_out) if nc == 1 else (R, 2 * P_last * nc)

    kernel = _make_fused_kernel(B, nz, K1, ngf, nc, n_mid)

    in_specs = [pl.BlockSpec(memory_space=pltpu.MemorySpace.SMEM)]
    in_specs += [_vmem_full(a.shape) for a in prepped]

    out = pl.pallas_call(
        kernel,
        out_shape=jax.ShapeDtypeStruct(out_shape, jnp.float32),
        grid=(1,),
        in_specs=in_specs,
        out_specs=_vmem_full(out_shape),
        compiler_params=pltpu.CompilerParams(
            dimension_semantics=("arbitrary",)),
    )(x2d, *prepped)

    if nc == 1:
        return out.reshape(B, 1, L_out)
    y = out.reshape(B, K1, 2 * P_last, nc)
    return jnp.transpose(y, (0, 3, 1, 2)).reshape(B, nc, L_out)


# ----------------------------------------------------------------------------
# model parameters
# ----------------------------------------------------------------------------
def layer_specs(nz, ngf, nc):
    # (Cin, Cout, K, has_bn); stride/padding: layer0=(1,0), others=(2,(K-2)//2)
    return [(nz, ngf, 16, True)] + [(ngf, ngf, 6, True)] * 5 + [(ngf, nc, 4, False)]


def init_params(key, nz, ngf, nc):
    params = []
    for (cin, cout, k, has_bn) in layer_specs(nz, ngf, nc):
        key, kw, kg, kb = jax.random.split(key, 4)
        w = 0.02 * jax.random.normal(kw, (cin, cout, k), jnp.float32)
        g = 1.0 + 0.1 * jax.random.normal(kg, (cout,), jnp.float32) if has_bn else None
        b = 0.1 * jax.random.normal(kb, (cout,), jnp.float32) if has_bn else None
        params.append({"w": w, "gamma": g, "beta": b})
    return params


# ----------------------------------------------------------------------------
# pure-JAX reference (for correctness check)
# ----------------------------------------------------------------------------
def _ref_convt(x_ncl, w, stride, padding):
    K = w.shape[2]
    rhs = jnp.transpose(jnp.flip(w, axis=2), (1, 0, 2))  # (Cout, Cin, K)
    return lax.conv_general_dilated(
        x_ncl, rhs, window_strides=(1,),
        padding=[(K - 1 - padding, K - 1 - padding)],
        lhs_dilation=(stride,), rhs_dilation=(1,),
        dimension_numbers=("NCH", "OIH", "NCH"))


def _ref_bn_relu(x_ncl, gamma, beta):
    mean = jnp.mean(x_ncl, axis=(0, 2), keepdims=True)
    var = jnp.mean((x_ncl - mean) ** 2, axis=(0, 2), keepdims=True)
    y = (x_ncl - mean) / jnp.sqrt(var + EPS)
    return jnp.maximum(y * gamma[None, :, None] + beta[None, :, None], 0.0)


def reference_forward(params, x_ncl):
    x = x_ncl.astype(jnp.float32)
    for i, p in enumerate(params):
        K = p["w"].shape[2]
        stride, padding = (1, 0) if i == 0 else (2, (K - 2) // 2)
        x = _ref_convt(x, p["w"], stride, padding)
        if p["gamma"] is not None:
            x = _ref_bn_relu(x, p["gamma"], p["beta"])
        else:
            x = jnp.tanh(x)
    return x


# ----------------------------------------------------------------------------
if __name__ == "__main__":
    # small config: nz=8, ngf=32, nc=1, batch=2, latent length=1 (standard DCGAN input)
    nz, ngf, nc, B = 8, 32, 1, 2
    key = jax.random.PRNGKey(0)
    key, kx = jax.random.split(key)
    x = jax.random.normal(kx, (B, nz, 1), jnp.float32)   # PyTorch-style (N, C, L)

    params = init_params(key, nz, ngf, nc)
    prepped = prepare_params(params)                     # one-time weight packing

    fwd = jax.jit(dcgan_straight_forward)
    out = jax.block_until_ready(fwd(prepped, x))
    assert out.shape == (B, nc, 1024), out.shape

    ref = jax.block_until_ready(reference_forward(params, x))
    err = float(jnp.max(jnp.abs(out.astype(jnp.float32) - ref)))
    # bf16 MXU operands (f32 accumulation) leave a small numerical gap vs the f32 reference.
    assert err < 5e-2, f"mismatch vs reference: max abs err {err}"

    # TODO(synk): measurements()/self.fc (nn.Linear) is not part of forward() and is not implemented.
    print("KERNEL_OK")
</pallas_src>

<mosaic_0001>
module attributes {stable_mosaic.version = 11 : i64} {
  func.func @kernel(%arg0: i32, %arg1: memref<2x8xf32, #tpu.memory_space<smem>>, %arg2: memref<128x32xf32, #tpu.memory_space<vmem>>, %arg3: memref<1x32xf32, #tpu.memory_space<vmem>>, %arg4: memref<1x32xf32, #tpu.memory_space<vmem>>, %arg5: memref<96x64xbf16, #tpu.memory_space<vmem>>, %arg6: memref<1x32xf32, #tpu.memory_space<vmem>>, %arg7: memref<1x32xf32, #tpu.memory_space<vmem>>, %arg8: memref<128x128xbf16, #tpu.memory_space<vmem>>, %arg9: memref<1x32xf32, #tpu.memory_space<vmem>>, %arg10: memref<1x32xf32, #tpu.memory_space<vmem>>, %arg11: memref<192x256xbf16, #tpu.memory_space<vmem>>, %arg12: memref<1x32xf32, #tpu.memory_space<vmem>>, %arg13: memref<1x32xf32, #tpu.memory_space<vmem>>, %arg14: memref<320x512xbf16, #tpu.memory_space<vmem>>, %arg15: memref<1x32xf32, #tpu.memory_space<vmem>>, %arg16: memref<1x32xf32, #tpu.memory_space<vmem>>, %arg17: memref<576x1024xbf16, #tpu.memory_space<vmem>>, %arg18: memref<1x32xf32, #tpu.memory_space<vmem>>, %arg19: memref<1x32xf32, #tpu.memory_space<vmem>>, %arg20: memref<1088x64xbf16, #tpu.memory_space<vmem>>, %arg21: memref<2x1024xf32, #tpu.memory_space<vmem>>) attributes {dimension_semantics = [#tpu.dimension_semantics<arbitrary>], iteration_bounds = array<i64: 1>, scalar_prefetch = 0 : i64, scratch_operands = 0 : i64, tpu.core_type = #tpu.core_type<tc>, window_params = [{transform_indices = @transform_0, window_bounds = array<i64: 2, 8>}, {pipeline_mode = #tpu.pipeline_mode<synchronous>, transform_indices = @transform_1, window_bounds = array<i64: 128, 32>}, {pipeline_mode = #tpu.pipeline_mode<synchronous>, transform_indices = @transform_2, window_bounds = array<i64: 1, 32>}, {pipeline_mode = #tpu.pipeline_mode<synchronous>, transform_indices = @transform_3, window_bounds = array<i64: 1, 32>}, {pipeline_mode = #tpu.pipeline_mode<synchronous>, transform_indices = @transform_4, window_bounds = array<i64: 96, 64>}, {pipeline_mode = #tpu.pipeline_mode<synchronous>, transform_indices = @transform_5, window_bounds = array<i64: 1, 32>}, {pipeline_mode = #tpu.pipeline_mode<synchronous>, transform_indices = @transform_6, window_bounds = array<i64: 1, 32>}, {pipeline_mode = #tpu.pipeline_mode<synchronous>, transform_indices = @transform_7, window_bounds = array<i64: 128, 128>}, {pipeline_mode = #tpu.pipeline_mode<synchronous>, transform_indices = @transform_8, window_bounds = array<i64: 1, 32>}, {pipeline_mode = #tpu.pipeline_mode<synchronous>, transform_indices = @transform_9, window_bounds = array<i64: 1, 32>}, {pipeline_mode = #tpu.pipeline_mode<synchronous>, transform_indices = @transform_10, window_bounds = array<i64: 192, 256>}, {pipeline_mode = #tpu.pipeline_mode<synchronous>, transform_indices = @transform_11, window_bounds = array<i64: 1, 32>}, {pipeline_mode = #tpu.pipeline_mode<synchronous>, transform_indices = @transform_12, window_bounds = array<i64: 1, 32>}, {pipeline_mode = #tpu.pipeline_mode<synchronous>, transform_indices = @transform_13, window_bounds = array<i64: 320, 512>}, {pipeline_mode = #tpu.pipeline_mode<synchronous>, transform_indices = @transform_14, window_bounds = array<i64: 1, 32>}, {pipeline_mode = #tpu.pipeline_mode<synchronous>, transform_indices = @transform_15, window_bounds = array<i64: 1, 32>}, {pipeline_mode = #tpu.pipeline_mode<synchronous>, transform_indices = @transform_16, window_bounds = array<i64: 576, 1024>}, {pipeline_mode = #tpu.pipeline_mode<synchronous>, transform_indices = @transform_17, window_bounds = array<i64: 1, 32>}, {pipeline_mode = #tpu.pipeline_mode<synchronous>, transform_indices = @transform_18, window_bounds = array<i64: 1, 32>}, {pipeline_mode = #tpu.pipeline_mode<synchronous>, transform_indices = @transform_19, window_bounds = array<i64: 1088, 64>}, {pipeline_mode = #tpu.pipeline_mode<synchronous>, transform_indices = @transform_20, window_bounds = array<i64: 2, 1024>}]} {
    %0 = tpu.iota {dimensions = array<i32: 0>} : vector<32x32xi32>
    %c0_i32 = arith.constant 0 : i32
    %1 = vector.broadcast %c0_i32 : i32 to vector<32x32xi32>
    %2 = arith.cmpi eq, %0, %1 : vector<32x32xi32>
    %c15_i32 = arith.constant 15 : i32
    %3 = vector.broadcast %c15_i32 : i32 to vector<32x32xi32>
    %4 = arith.cmpi eq, %0, %3 : vector<32x32xi32>
    %c16_i32 = arith.constant 16 : i32
    %5 = vector.broadcast %c16_i32 : i32 to vector<32x32xi32>
    %6 = arith.cmpi eq, %0, %5 : vector<32x32xi32>
    %7 = arith.ori %2, %6 : vector<32x32xi1>
    %c31_i32 = arith.constant 31 : i32
    %8 = vector.broadcast %c31_i32 : i32 to vector<32x32xi32>
    %9 = arith.cmpi eq, %0, %8 : vector<32x32xi32>
    %10 = arith.ori %4, %9 : vector<32x32xi1>
    %cst = arith.constant 0.000000e+00 : f32
    %11 = vector.broadcast %cst : f32 to vector<1x32xf32>
    %c0 = arith.constant 0 : index
    %c0_0 = arith.constant 0 : index
    %12 = memref.load %arg1[%c0, %c0_0] : memref<2x8xf32, #tpu.memory_space<smem>>
    %c0_1 = arith.constant 0 : index
    %c0_2 = arith.constant 0 : index
    %13 = vector.load %arg2[%c0_1, %c0_2] : memref<128x32xf32, #tpu.memory_space<vmem>>, vector<16x32xf32>
    %14 = vector.broadcast %12 : f32 to vector<16x32xf32>
    %15 = arith.mulf %14, %13 : vector<16x32xf32>
    %c0_3 = arith.constant 0 : index
    %c1 = arith.constant 1 : index
    %16 = memref.load %arg1[%c0_3, %c1] : memref<2x8xf32, #tpu.memory_space<smem>>
    %c16 = arith.constant 16 : index
    %c0_4 = arith.constant 0 : index
    %17 = vector.load %arg2[%c16, %c0_4] : memref<128x32xf32, #tpu.memory_space<vmem>>, vector<16x32xf32>
    %18 = vector.broadcast %16 : f32 to vector<16x32xf32>
    %19 = arith.mulf %18, %17 : vector<16x32xf32>
    %20 = arith.addf %15, %19 : vector<16x32xf32>
    %c0_5 = arith.constant 0 : index
    %c2 = arith.constant 2 : index
    %21 = memref.load %arg1[%c0_5, %c2] : memref<2x8xf32, #tpu.memory_space<smem>>
    %c32 = arith.constant 32 : index
    %c0_6 = arith.constant 0 : index
    %22 = vector.load %arg2[%c32, %c0_6] : memref<128x32xf32, #tpu.memory_space<vmem>>, vector<16x32xf32>
    %23 = vector.broadcast %21 : f32 to vector<16x32xf32>
    %24 = arith.mulf %23, %22 : vector<16x32xf32>
    %25 = arith.addf %20, %24 : vector<16x32xf32>
    %c0_7 = arith.constant 0 : index
    %c3 = arith.constant 3 : index
    %26 = memref.load %arg1[%c0_7, %c3] : memref<2x8xf32, #tpu.memory_space<smem>>
    %c48 = arith.constant 48 : index
    %c0_8 = arith.constant 0 : index
    %27 = vector.load %arg2[%c48, %c0_8] : memref<128x32xf32, #tpu.memory_space<vmem>>, vector<16x32xf32>
    %28 = vector.broadcast %26 : f32 to vector<16x32xf32>
    %29 = arith.mulf %28, %27 : vector<16x32xf32>
    %30 = arith.addf %25, %29 : vector<16x32xf32>
    %c0_9 = arith.constant 0 : index
    %c4 = arith.constant 4 : index
    %31 = memref.load %arg1[%c0_9, %c4] : memref<2x8xf32, #tpu.memory_space<smem>>
    %c64 = arith.constant 64 : index
    %c0_10 = arith.constant 0 : index
    %32 = vector.load %arg2[%c64, %c0_10] : memref<128x32xf32, #tpu.memory_space<vmem>>, vector<16x32xf32>
    %33 = vector.broadcast %31 : f32 to vector<16x32xf32>
    %34 = arith.mulf %33, %32 : vector<16x32xf32>
    %35 = arith.addf %30, %34 : vector<16x32xf32>
    %c0_11 = arith.constant 0 : index
    %c5 = arith.constant 5 : index
    %36 = memref.load %arg1[%c0_11, %c5] : memref<2x8xf32, #tpu.memory_space<smem>>
    %c80 = arith.constant 80 : index
    %c0_12 = arith.constant 0 : index
    %37 = vector.load %arg2[%c80, %c0_12] : memref<128x32xf32, #tpu.memory_space<vmem>>, vector<16x32xf32>
    %38 = vector.broadcast %36 : f32 to vector<16x32xf32>
    %39 = arith.mulf %38, %37 : vector<16x32xf32>
    %40 = arith.addf %35, %39 : vector<16x32xf32>
    %c0_13 = arith.constant 0 : index
    %c6 = arith.constant 6 : index
    %41 = memref.load %arg1[%c0_13, %c6] : memref<2x8xf32, #tpu.memory_space<smem>>
    %c96 = arith.constant 96 : index
    %c0_14 = arith.constant 0 : index
    %42 = vector.load %arg2[%c96, %c0_14] : memref<128x32xf32, #tpu.memory_space<vmem>>, vector<16x32xf32>
    %43 = vector.broadcast %41 : f32 to vector<16x32xf32>
    %44 = arith.mulf %43, %42 : vector<16x32xf32>
    %45 = arith.addf %40, %44 : vector<16x32xf32>
    %c0_15 = arith.constant 0 : index
    %c7 = arith.constant 7 : index
    %46 = memref.load %arg1[%c0_15, %c7] : memref<2x8xf32, #tpu.memory_space<smem>>
    %c112 = arith.constant 112 : index
    %c0_16 = arith.constant 0 : index
    %47 = vector.load %arg2[%c112, %c0_16] : memref<128x32xf32, #tpu.memory_space<vmem>>, vector<16x32xf32>
    %48 = vector.broadcast %46 : f32 to vector<16x32xf32>
    %49 = arith.mulf %48, %47 : vector<16x32xf32>
    %50 = arith.addf %45, %49 : vector<16x32xf32>
    %c1_17 = arith.constant 1 : index
    %c0_18 = arith.constant 0 : index
    %51 = memref.load %arg1[%c1_17, %c0_18] : memref<2x8xf32, #tpu.memory_space<smem>>
    %c0_19 = arith.constant 0 : index
    %c0_20 = arith.constant 0 : index
    %52 = vector.load %arg2[%c0_19, %c0_20] : memref<128x32xf32, #tpu.memory_space<vmem>>, vector<16x32xf32>
    %53 = vector.broadcast %51 : f32 to vector<16x32xf32>
    %54 = arith.mulf %53, %52 : vector<16x32xf32>
    %c1_21 = arith.constant 1 : index
    %c1_22 = arith.constant 1 : index
    %55 = memref.load %arg1[%c1_21, %c1_22] : memref<2x8xf32, #tpu.memory_space<smem>>
    %c16_23 = arith.constant 16 : index
    %c0_24 = arith.constant 0 : index
    %56 = vector.load %arg2[%c16_23, %c0_24] : memref<128x32xf32, #tpu.memory_space<vmem>>, vector<16x32xf32>
    %57 = vector.broadcast %55 : f32 to vector<16x32xf32>
    %58 = arith.mulf %57, %56 : vector<16x32xf32>
    %59 = arith.addf %54, %58 : vector<16x32xf32>
    %c1_25 = arith.constant 1 : index
    %c2_26 = arith.constant 2 : index
    %60 = memref.load %arg1[%c1_25, %c2_26] : memref<2x8xf32, #tpu.memory_space<smem>>
    %c32_27 = arith.constant 32 : index
    %c0_28 = arith.constant 0 : index
    %61 = vector.load %arg2[%c32_27, %c0_28] : memref<128x32xf32, #tpu.memory_space<vmem>>, vector<16x32xf32>
    %62 = vector.broadcast %60 : f32 to vector<16x32xf32>
    %63 = arith.mulf %62, %61 : vector<16x32xf32>
    %64 = arith.addf %59, %63 : vector<16x32xf32>
    %c1_29 = arith.constant 1 : index
    %c3_30 = arith.constant 3 : index
    %65 = memref.load %arg1[%c1_29, %c3_30] : memref<2x8xf32, #tpu.memory_space<smem>>
    %c48_31 = arith.constant 48 : index
    %c0_32 = arith.constant 0 : index
    %66 = vector.load %arg2[%c48_31, %c0_32] : memref<128x32xf32, #tpu.memory_space<vmem>>, vector<16x32xf32>
    %67 = vector.broadcast %65 : f32 to vector<16x32xf32>
    %68 = arith.mulf %67, %66 : vector<16x32xf32>
    %69 = arith.addf %64, %68 : vector<16x32xf32>
    %c1_33 = arith.constant 1 : index
    %c4_34 = arith.constant 4 : index
    %70 = memref.load %arg1[%c1_33, %c4_34] : memref<2x8xf32, #tpu.memory_space<smem>>
    %c64_35 = arith.constant 64 : index
    %c0_36 = arith.constant 0 : index
    %71 = vector.load %arg2[%c64_35, %c0_36] : memref<128x32xf32, #tpu.memory_space<vmem>>, vector<16x32xf32>
    %72 = vector.broadcast %70 : f32 to vector<16x32xf32>
    %73 = arith.mulf %72, %71 : vector<16x32xf32>
    %74 = arith.addf %69, %73 : vector<16x32xf32>
    %c1_37 = arith.constant 1 : index
    %c5_38 = arith.constant 5 : index
    %75 = memref.load %arg1[%c1_37, %c5_38] : memref<2x8xf32, #tpu.memory_space<smem>>
    %c80_39 = arith.constant 80 : index
    %c0_40 = arith.constant 0 : index
    %76 = vector.load %arg2[%c80_39, %c0_40] : memref<128x32xf32, #tpu.memory_space<vmem>>, vector<16x32xf32>
    %77 = vector.broadcast %75 : f32 to vector<16x32xf32>
    %78 = arith.mulf %77, %76 : vector<16x32xf32>
    %79 = arith.addf %74, %78 : vector<16x32xf32>
    %c1_41 = arith.constant 1 : index
    %c6_42 = arith.constant 6 : index
    %80 = memref.load %arg1[%c1_41, %c6_42] : memref<2x8xf32, #tpu.memory_space<smem>>
    %c96_43 = arith.constant 96 : index
    %c0_44 = arith.constant 0 : index
    %81 = vector.load %arg2[%c96_43, %c0_44] : memref<128x32xf32, #tpu.memory_space<vmem>>, vector<16x32xf32>
    %82 = vector.broadcast %80 : f32 to vector<16x32xf32>
    %83 = arith.mulf %82, %81 : vector<16x32xf32>
    %84 = arith.addf %79, %83 : vector<16x32xf32>
    %c1_45 = arith.constant 1 : index
    %c7_46 = arith.constant 7 : index
    %85 = memref.load %arg1[%c1_45, %c7_46] : memref<2x8xf32, #tpu.memory_space<smem>>
    %c112_47 = arith.constant 112 : index
    %c0_48 = arith.constant 0 : index
    %86 = vector.load %arg2[%c112_47, %c0_48] : memref<128x32xf32, #tpu.memory_space<vmem>>, vector<16x32xf32>
    %87 = vector.broadcast %85 : f32 to vector<16x32xf32>
    %88 = arith.mulf %87, %86 : vector<16x32xf32>
    %89 = arith.addf %84, %88 : vector<16x32xf32>
    %90 = tpu.concatenate %50, %89 in 0 : vector<16x32xf32>, vector<16x32xf32> -> vector<32x32xf32>
    %cst_49 = arith.constant dense<0.000000e+00> : vector<32xf32>
    %91 = vector.multi_reduction <add>, %90, %cst_49 [0] : vector<32x32xf32> to vector<32xf32>
    %92 = vector.shape_cast %91 : vector<32xf32> to vector<1x32xf32>
    %93 = arith.mulf %90, %90 : vector<32x32xf32>
    %cst_50 = arith.constant dense<0.000000e+00> : vector<32xf32>
    %94 = vector.multi_reduction <add>, %93, %cst_50 [0] : vector<32x32xf32> to vector<32xf32>
    %95 = vector.shape_cast %94 : vector<32xf32> to vector<1x32xf32>
    %cst_51 = arith.constant 3.125000e-02 : f32
    %96 = vector.broadcast %cst_51 : f32 to vector<1x32xf32>
    %97 = arith.mulf %92, %96 : vector<1x32xf32>
    %cst_52 = arith.constant 3.125000e-02 : f32
    %98 = vector.broadcast %cst_52 : f32 to vector<1x32xf32>
    %99 = arith.mulf %95, %98 : vector<1x32xf32>
    %100 = arith.mulf %97, %97 : vector<1x32xf32>
    %101 = arith.subf %99, %100 : vector<1x32xf32>
    %cst_53 = arith.constant 0.000000e+00 : f32
    %102 = vector.broadcast %cst_53 : f32 to vector<1x32xf32>
    %103 = arith.maximumf %101, %102 : vector<1x32xf32>
    %c0_54 = arith.constant 0 : index
    %c0_55 = arith.constant 0 : index
    %104 = vector.load %arg3[%c0_54, %c0_55] : memref<1x32xf32, #tpu.memory_space<vmem>>, vector<1x32xf32>
    %cst_56 = arith.constant 9.99999974E-6 : f32
    %105 = vector.broadcast %cst_56 : f32 to vector<1x32xf32>
    %106 = arith.addf %103, %105 : vector<1x32xf32>
    %107 = math.rsqrt %106 : vector<1x32xf32>
    %108 = arith.mulf %104, %107 : vector<1x32xf32>
    %c0_57 = arith.constant 0 : index
    %c0_58 = arith.constant 0 : index
    %109 = vector.load %arg4[%c0_57, %c0_58] : memref<1x32xf32, #tpu.memory_space<vmem>>, vector<1x32xf32>
    %110 = arith.mulf %97, %108 : vector<1x32xf32>
    %111 = arith.subf %109, %110 : vector<1x32xf32>
    %112 = vector.broadcast %108 : vector<1x32xf32> to vector<32x32xf32>
    %113 = arith.mulf %90, %112 : vector<32x32xf32>
    %114 = vector.broadcast %111 : vector<1x32xf32> to vector<32x32xf32>
    %115 = arith.addf %113, %114 : vector<32x32xf32>
    %cst_59 = arith.constant 0.000000e+00 : f32
    %116 = vector.broadcast %cst_59 : f32 to vector<32x32xf32>
    %117 = arith.maximumf %115, %116 : vector<32x32xf32>
    %118 = vector.extract_strided_slice %117 {offsets = [0, 0], sizes = [31, 32], strides = [1, 1]} : vector<32x32xf32> to vector<31x32xf32>
    %119 = tpu.concatenate %11, %118 in 0 : vector<1x32xf32>, vector<31x32xf32> -> vector<32x32xf32>
    %120 = vector.extract_strided_slice %117 {offsets = [1, 0], sizes = [31, 32], strides = [1, 1]} : vector<32x32xf32> to vector<31x32xf32>
    %121 = tpu.concatenate %120, %11 in 0 : vector<31x32xf32>, vector<1x32xf32> -> vector<32x32xf32>
    %cst_60 = arith.constant 0.000000e+00 : f32
    %122 = vector.broadcast %cst_60 : f32 to vector<32x32xf32>
    %123 = arith.select %7, %122, %119 : vector<32x32xi1>, vector<32x32xf32>
    %cst_61 = arith.constant 0.000000e+00 : f32
    %124 = vector.broadcast %cst_61 : f32 to vector<32x32xf32>
    %125 = arith.select %10, %124, %121 : vector<32x32xi1>, vector<32x32xf32>
    %126 = tpu.concatenate %123, %117, %125 in 1 : vector<32x32xf32>, vector<32x32xf32>, vector<32x32xf32> -> vector<32x96xf32>
    %127 = arith.truncf %126 : vector<32x96xf32> to vector<32x96xbf16>
    %c0_62 = arith.constant 0 : index
    %c0_63 = arith.constant 0 : index
    %128 = vector.load %arg5[%c0_62, %c0_63] : memref<96x64xbf16, #tpu.memory_space<vmem>>, vector<96x64xbf16>
    %cst_64 = arith.constant dense<0.000000e+00> : vector<32x64xf32>
    %129 = tpu.matmul %127, %128, %cst_64 {dimension_numbers = #tpu.dot_dimension_numbers<[1], [0], [0], [1], [0, 0, 1, 1], [], []>} : vector<32x96xbf16>, vector<96x64xbf16>, vector<32x64xf32> -> vector<32x64xf32>
    %cst_65 = arith.constant dense<0.000000e+00> : vector<64xf32>
    %130 = vector.multi_reduction <add>, %129, %cst_65 [0] : vector<32x64xf32> to vector<64xf32>
    %131 = vector.shape_cast %130 : vector<64xf32> to vector<1x64xf32>
    %132 = arith.mulf %129, %129 : vector<32x64xf32>
    %cst_66 = arith.constant dense<0.000000e+00> : vector<64xf32>
    %133 = vector.multi_reduction <add>, %132, %cst_66 [0] : vector<32x64xf32> to vector<64xf32>
    %134 = vector.shape_cast %133 : vector<64xf32> to vector<1x64xf32>
    %135 = vector.extract_strided_slice %131 {offsets = [0, 0], sizes = [1, 32], strides = [1, 1]} : vector<1x64xf32> to vector<1x32xf32>
    %136 = vector.extract_strided_slice %131 {offsets = [0, 32], sizes = [1, 32], strides = [1, 1]} : vector<1x64xf32> to vector<1x32xf32>
    %137 = arith.addf %135, %136 : vector<1x32xf32>
    %138 = vector.extract_strided_slice %134 {offsets = [0, 0], sizes = [1, 32], strides = [1, 1]} : vector<1x64xf32> to vector<1x32xf32>
    %139 = vector.extract_strided_slice %134 {offsets = [0, 32], sizes = [1, 32], strides = [1, 1]} : vector<1x64xf32> to vector<1x32xf32>
    %140 = arith.addf %138, %139 : vector<1x32xf32>
    %cst_67 = arith.constant 1.562500e-02 : f32
    %141 = vector.broadcast %cst_67 : f32 to vector<1x32xf32>
    %142 = arith.mulf %137, %141 : vector<1x32xf32>
    %cst_68 = arith.constant 1.562500e-02 : f32
    %143 = vector.broadcast %cst_68 : f32 to vector<1x32xf32>
    %144 = arith.mulf %140, %143 : vector<1x32xf32>
    %145 = arith.mulf %142, %142 : vector<1x32xf32>
    %146 = arith.subf %144, %145 : vector<1x32xf32>
    %cst_69 = arith.constant 0.000000e+00 : f32
    %147 = vector.broadcast %cst_69 : f32 to vector<1x32xf32>
    %148 = arith.maximumf %146, %147 : vector<1x32xf32>
    %c0_70 = arith.constant 0 : index
    %c0_71 = arith.constant 0 : index
    %149 = vector.load %arg6[%c0_70, %c0_71] : memref<1x32xf32, #tpu.memory_space<vmem>>, vector<1x32xf32>
    %cst_72 = arith.constant 9.99999974E-6 : f32
    %150 = vector.broadcast %cst_72 : f32 to vector<1x32xf32>
    %151 = arith.addf %148, %150 : vector<1x32xf32>
    %152 = math.rsqrt %151 : vector<1x32xf32>
    %153 = arith.mulf %149, %152 : vector<1x32xf32>
    %c0_73 = arith.constant 0 : index
    %c0_74 = arith.constant 0 : index
    %154 = vector.load %arg7[%c0_73, %c0_74] : memref<1x32xf32, #tpu.memory_space<vmem>>, vector<1x32xf32>
    %155 = arith.mulf %142, %153 : vector<1x32xf32>
    %156 = arith.subf %154, %155 : vector<1x32xf32>
    %157 = tpu.concatenate %153, %153 in 1 : vector<1x32xf32>, vector<1x32xf32> -> vector<1x64xf32>
    %158 = tpu.concatenate %156, %156 in 1 : vector<1x32xf32>, vector<1x32xf32> -> vector<1x64xf32>
    %159 = vector.broadcast %157 : vector<1x64xf32> to vector<32x64xf32>
    %160 = arith.mulf %129, %159 : vector<32x64xf32>
    %161 = vector.broadcast %158 : vector<1x64xf32> to vector<32x64xf32>
    %162 = arith.addf %160, %161 : vector<32x64xf32>
    %cst_75 = arith.constant 0.000000e+00 : f32
    %163 = vector.broadcast %cst_75 : f32 to vector<32x64xf32>
    %164 = arith.maximumf %162, %163 : vector<32x64xf32>
    %165 = vector.extract_strided_slice %164 {offsets = [0, 32], sizes = [32, 32], strides = [1, 1]} : vector<32x64xf32> to vector<32x32xf32>
    %166 = vector.extract_strided_slice %164 {offsets = [0, 0], sizes = [32, 32], strides = [1, 1]} : vector<32x64xf32> to vector<32x32xf32>
    %167 = vector.extract_strided_slice %165 {offsets = [0, 0], sizes = [31, 32], strides = [1, 1]} : vector<32x32xf32> to vector<31x32xf32>
    %168 = tpu.concatenate %11, %167 in 0 : vector<1x32xf32>, vector<31x32xf32> -> vector<32x32xf32>
    %169 = vector.extract_strided_slice %166 {offsets = [1, 0], sizes = [31, 32], strides = [1, 1]} : vector<32x32xf32> to vector<31x32xf32>
    %170 = tpu.concatenate %169, %11 in 0 : vector<31x32xf32>, vector<1x32xf32> -> vector<32x32xf32>
    %cst_76 = arith.constant 0.000000e+00 : f32
    %171 = vector.broadcast %cst_76 : f32 to vector<32x32xf32>
    %172 = arith.select %7, %171, %168 : vector<32x32xi1>, vector<32x32xf32>
    %cst_77 = arith.constant 0.000000e+00 : f32
    %173 = vector.broadcast %cst_77 : f32 to vector<32x32xf32>
    %174 = arith.select %10, %173, %170 : vector<32x32xi1>, vector<32x32xf32>
    %175 = tpu.concatenate %172, %164, %174 in 1 : vector<32x32xf32>, vector<32x64xf32>, vector<32x32xf32> -> vector<32x128xf32>
    %176 = arith.truncf %175 : vector<32x128xf32> to vector<32x128xbf16>
    %c0_78 = arith.constant 0 : index
    %c0_79 = arith.constant 0 : index
    %177 = vector.load %arg8[%c0_78, %c0_79] : memref<128x128xbf16, #tpu.memory_space<vmem>>, vector<128x128xbf16>
    %cst_80 = arith.constant dense<0.000000e+00> : vector<32x128xf32>
    %178 = tpu.matmul %176, %177, %cst_80 {dimension_numbers = #tpu.dot_dimension_numbers<[1], [0], [0], [1], [0, 0, 1, 1], [], []>} : vector<32x128xbf16>, vector<128x128xbf16>, vector<32x128xf32> -> vector<32x128xf32>
    %cst_81 = arith.constant dense<0.000000e+00> : vector<128xf32>
    %179 = vector.multi_reduction <add>, %178, %cst_81 [0] : vector<32x128xf32> to vector<128xf32>
    %180 = vector.shape_cast %179 : vector<128xf32> to vector<1x128xf32>
    %181 = arith.mulf %178, %178 : vector<32x128xf32>
    %cst_82 = arith.constant dense<0.000000e+00> : vector<128xf32>
    %182 = vector.multi_reduction <add>, %181, %cst_82 [0] : vector<32x128xf32> to vector<128xf32>
    %183 = vector.shape_cast %182 : vector<128xf32> to vector<1x128xf32>
    %184 = vector.extract_strided_slice %180 {offsets = [0, 0], sizes = [1, 64], strides = [1, 1]} : vector<1x128xf32> to vector<1x64xf32>
    %185 = vector.extract_strided_slice %180 {offsets = [0, 64], sizes = [1, 64], strides = [1, 1]} : vector<1x128xf32> to vector<1x64xf32>
    %186 = arith.addf %184, %185 : vector<1x64xf32>
    %187 = vector.extract_strided_slice %183 {offsets = [0, 0], sizes = [1, 64], strides = [1, 1]} : vector<1x128xf32> to vector<1x64xf32>
    %188 = vector.extract_strided_slice %183 {offsets = [0, 64], sizes = [1, 64], strides = [1, 1]} : vector<1x128xf32> to vector<1x64xf32>
    %189 = arith.addf %187, %188 : vector<1x64xf32>
    %190 = vector.extract_strided_slice %186 {offsets = [0, 0], sizes = [1, 32], strides = [1, 1]} : vector<1x64xf32> to vector<1x32xf32>
    %191 = vector.extract_strided_slice %186 {offsets = [0, 32], sizes = [1, 32], strides = [1, 1]} : vector<1x64xf32> to vector<1x32xf32>
    %192 = arith.addf %190, %191 : vector<1x32xf32>
    %193 = vector.extract_strided_slice %189 {offsets = [0, 0], sizes = [1, 32], strides = [1, 1]} : vector<1x64xf32> to vector<1x32xf32>
    %194 = vector.extract_strided_slice %189 {offsets = [0, 32], sizes = [1, 32], strides = [1, 1]} : vector<1x64xf32> to vector<1x32xf32>
    %195 = arith.addf %193, %194 : vector<1x32xf32>
    %cst_83 = arith.constant 7.812500e-03 : f32
    %196 = vector.broadcast %cst_83 : f32 to vector<1x32xf32>
    %197 = arith.mulf %192, %196 : vector<1x32xf32>
    %cst_84 = arith.constant 7.812500e-03 : f32
    %198 = vector.broadcast %cst_84 : f32 to vector<1x32xf32>
    %199 = arith.mulf %195, %198 : vector<1x32xf32>
    %200 = arith.mulf %197, %197 : vector<1x32xf32>
    %201 = arith.subf %199, %200 : vector<1x32xf32>
    %cst_85 = arith.constant 0.000000e+00 : f32
    %202 = vector.broadcast %cst_85 : f32 to vector<1x32xf32>
    %203 = arith.maximumf %201, %202 : vector<1x32xf32>
    %c0_86 = arith.constant 0 : index
    %c0_87 = arith.constant 0 : index
    %204 = vector.load %arg9[%c0_86, %c0_87] : memref<1x32xf32, #tpu.memory_space<vmem>>, vector<1x32xf32>
    %cst_88 = arith.constant 9.99999974E-6 : f32
    %205 = vector.broadcast %cst_88 : f32 to vector<1x32xf32>
    %206 = arith.addf %203, %205 : vector<1x32xf32>
    %207 = math.rsqrt %206 : vector<1x32xf32>
    %208 = arith.mulf %204, %207 : vector<1x32xf32>
    %c0_89 = arith.constant 0 : index
    %c0_90 = arith.constant 0 : index
    %209 = vector.load %arg10[%c0_89, %c0_90] : memref<1x32xf32, #tpu.memory_space<vmem>>, vector<1x32xf32>
    %210 = arith.mulf %197, %208 : vector<1x32xf32>
    %211 = arith.subf %209, %210 : vector<1x32xf32>
    %212 = tpu.concatenate %208, %208 in 1 : vector<1x32xf32>, vector<1x32xf32> -> vector<1x64xf32>
    %213 = tpu.concatenate %211, %211 in 1 : vector<1x32xf32>, vector<1x32xf32> -> vector<1x64xf32>
    %214 = tpu.concatenate %212, %212 in 1 : vector<1x64xf32>, vector<1x64xf32> -> vector<1x128xf32>
    %215 = tpu.concatenate %213, %213 in 1 : vector<1x64xf32>, vector<1x64xf32> -> vector<1x128xf32>
    %216 = vector.broadcast %214 : vector<1x128xf32> to vector<32x128xf32>
    %217 = arith.mulf %178, %216 : vector<32x128xf32>
    %218 = vector.broadcast %215 : vector<1x128xf32> to vector<32x128xf32>
    %219 = arith.addf %217, %218 : vector<32x128xf32>
    %cst_91 = arith.constant 0.000000e+00 : f32
    %220 = vector.broadcast %cst_91 : f32 to vector<32x128xf32>
    %221 = arith.maximumf %219, %220 : vector<32x128xf32>
    %222 = vector.extract_strided_slice %221 {offsets = [0, 96], sizes = [32, 32], strides = [1, 1]} : vector<32x128xf32> to vector<32x32xf32>
    %223 = vector.extract_strided_slice %221 {offsets = [0, 0], sizes = [32, 32], strides = [1, 1]} : vector<32x128xf32> to vector<32x32xf32>
    %224 = vector.extract_strided_slice %222 {offsets = [0, 0], sizes = [31, 32], strides = [1, 1]} : vector<32x32xf32> to vector<31x32xf32>
    %225 = tpu.concatenate %11, %224 in 0 : vector<1x32xf32>, vector<31x32xf32> -> vector<32x32xf32>
    %226 = vector.extract_strided_slice %223 {offsets = [1, 0], sizes = [31, 32], strides = [1, 1]} : vector<32x32xf32> to vector<31x32xf32>
    %227 = tpu.concatenate %226, %11 in 0 : vector<31x32xf32>, vector<1x32xf32> -> vector<32x32xf32>
    %cst_92 = arith.constant 0.000000e+00 : f32
    %228 = vector.broadcast %cst_92 : f32 to vector<32x32xf32>
    %229 = arith.select %7, %228, %225 : vector<32x32xi1>, vector<32x32xf32>
    %cst_93 = arith.constant 0.000000e+00 : f32
    %230 = vector.broadcast %cst_93 : f32 to vector<32x32xf32>
    %231 = arith.select %10, %230, %227 : vector<32x32xi1>, vector<32x32xf32>
    %232 = tpu.concatenate %229, %221, %231 in 1 : vector<32x32xf32>, vector<32x128xf32>, vector<32x32xf32> -> vector<32x192xf32>
    %233 = arith.truncf %232 : vector<32x192xf32> to vector<32x192xbf16>
    %c0_94 = arith.constant 0 : index
    %c0_95 = arith.constant 0 : index
    %234 = vector.load %arg11[%c0_94, %c0_95] : memref<192x256xbf16, #tpu.memory_space<vmem>>, vector<192x256xbf16>
    %cst_96 = arith.constant dense<0.000000e+00> : vector<32x256xf32>
    %235 = tpu.matmul %233, %234, %cst_96 {dimension_numbers = #tpu.dot_dimension_numbers<[1], [0], [0], [1], [0, 0, 1, 1], [], []>} : vector<32x192xbf16>, vector<192x256xbf16>, vector<32x256xf32> -> vector<32x256xf32>
    %cst_97 = arith.constant dense<0.000000e+00> : vector<256xf32>
    %236 = vector.multi_reduction <add>, %235, %cst_97 [0] : vector<32x256xf32> to vector<256xf32>
    %237 = vector.shape_cast %236 : vector<256xf32> to vector<1x256xf32>
    %238 = arith.mulf %235, %235 : vector<32x256xf32>
    %cst_98 = arith.constant dense<0.000000e+00> : vector<256xf32>
    %239 = vector.multi_reduction <add>, %238, %cst_98 [0] : vector<32x256xf32> to vector<256xf32>
    %240 = vector.shape_cast %239 : vector<256xf32> to vector<1x256xf32>
    %241 = vector.extract_strided_slice %237 {offsets = [0, 0], sizes = [1, 128], strides = [1, 1]} : vector<1x256xf32> to vector<1x128xf32>
    %242 = vector.extract_strided_slice %237 {offsets = [0, 128], sizes = [1, 128], strides = [1, 1]} : vector<1x256xf32> to vector<1x128xf32>
    %243 = arith.addf %241, %242 : vector<1x128xf32>
    %244 = vector.extract_strided_slice %240 {offsets = [0, 0], sizes = [1, 128], strides = [1, 1]} : vector<1x256xf32> to vector<1x128xf32>
    %245 = vector.extract_strided_slice %240 {offsets = [0, 128], sizes = [1, 128], strides = [1, 1]} : vector<1x256xf32> to vector<1x128xf32>
    %246 = arith.addf %244, %245 : vector<1x128xf32>
    %247 = vector.extract_strided_slice %243 {offsets = [0, 0], sizes = [1, 64], strides = [1, 1]} : vector<1x128xf32> to vector<1x64xf32>
    %248 = vector.extract_strided_slice %243 {offsets = [0, 64], sizes = [1, 64], strides = [1, 1]} : vector<1x128xf32> to vector<1x64xf32>
    %249 = arith.addf %247, %248 : vector<1x64xf32>
    %250 = vector.extract_strided_slice %246 {offsets = [0, 0], sizes = [1, 64], strides = [1, 1]} : vector<1x128xf32> to vector<1x64xf32>
    %251 = vector.extract_strided_slice %246 {offsets = [0, 64], sizes = [1, 64], strides = [1, 1]} : vector<1x128xf32> to vector<1x64xf32>
    %252 = arith.addf %250, %251 : vector<1x64xf32>
    %253 = vector.extract_strided_slice %249 {offsets = [0, 0], sizes = [1, 32], strides = [1, 1]} : vector<1x64xf32> to vector<1x32xf32>
    %254 = vector.extract_strided_slice %249 {offsets = [0, 32], sizes = [1, 32], strides = [1, 1]} : vector<1x64xf32> to vector<1x32xf32>
    %255 = arith.addf %253, %254 : vector<1x32xf32>
    %256 = vector.extract_strided_slice %252 {offsets = [0, 0], sizes = [1, 32], strides = [1, 1]} : vector<1x64xf32> to vector<1x32xf32>
    %257 = vector.extract_strided_slice %252 {offsets = [0, 32], sizes = [1, 32], strides = [1, 1]} : vector<1x64xf32> to vector<1x32xf32>
    %258 = arith.addf %256, %257 : vector<1x32xf32>
    %cst_99 = arith.constant 3.906250e-03 : f32
    %259 = vector.broadcast %cst_99 : f32 to vector<1x32xf32>
    %260 = arith.mulf %255, %259 : vector<1x32xf32>
    %cst_100 = arith.constant 3.906250e-03 : f32
    %261 = vector.broadcast %cst_100 : f32 to vector<1x32xf32>
    %262 = arith.mulf %258, %261 : vector<1x32xf32>
    %263 = arith.mulf %260, %260 : vector<1x32xf32>
    %264 = arith.subf %262, %263 : vector<1x32xf32>
    %cst_101 = arith.constant 0.000000e+00 : f32
    %265 = vector.broadcast %cst_101 : f32 to vector<1x32xf32>
    %266 = arith.maximumf %264, %265 : vector<1x32xf32>
    %c0_102 = arith.constant 0 : index
    %c0_103 = arith.constant 0 : index
    %267 = vector.load %arg12[%c0_102, %c0_103] : memref<1x32xf32, #tpu.memory_space<vmem>>, vector<1x32xf32>
    %cst_104 = arith.constant 9.99999974E-6 : f32
    %268 = vector.broadcast %cst_104 : f32 to vector<1x32xf32>
    %269 = arith.addf %266, %268 : vector<1x32xf32>
    %270 = math.rsqrt %269 : vector<1x32xf32>
    %271 = arith.mulf %267, %270 : vector<1x32xf32>
    %c0_105 = arith.constant 0 : index
    %c0_106 = arith.constant 0 : index
    %272 = vector.load %arg13[%c0_105, %c0_106] : memref<1x32xf32, #tpu.memory_space<vmem>>, vector<1x32xf32>
    %273 = arith.mulf %260, %271 : vector<1x32xf32>
    %274 = arith.subf %272, %273 : vector<1x32xf32>
    %275 = tpu.concatenate %271, %271 in 1 : vector<1x32xf32>, vector<1x32xf32> -> vector<1x64xf32>
    %276 = tpu.concatenate %274, %274 in 1 : vector<1x32xf32>, vector<1x32xf32> -> vector<1x64xf32>
    %277 = tpu.concatenate %275, %275 in 1 : vector<1x64xf32>, vector<1x64xf32> -> vector<1x128xf32>
    %278 = tpu.concatenate %276, %276 in 1 : vector<1x64xf32>, vector<1x64xf32> -> vector<1x128xf32>
    %279 = tpu.concatenate %277, %277 in 1 : vector<1x128xf32>, vector<1x128xf32> -> vector<1x256xf32>
    %280 = tpu.concatenate %278, %278 in 1 : vector<1x128xf32>, vector<1x128xf32> -> vector<1x256xf32>
    %281 = vector.broadcast %279 : vector<1x256xf32> to vector<32x256xf32>
    %282 = arith.mulf %235, %281 : vector<32x256xf32>
    %283 = vector.broadcast %280 : vector<1x256xf32> to vector<32x256xf32>
    %284 = arith.addf %282, %283 : vector<32x256xf32>
    %cst_107 = arith.constant 0.000000e+00 : f32
    %285 = vector.broadcast %cst_107 : f32 to vector<32x256xf32>
    %286 = arith.maximumf %284, %285 : vector<32x256xf32>
    %287 = vector.extract_strided_slice %286 {offsets = [0, 224], sizes = [32, 32], strides = [1, 1]} : vector<32x256xf32> to vector<32x32xf32>
    %288 = vector.extract_strided_slice %286 {offsets = [0, 0], sizes = [32, 32], strides = [1, 1]} : vector<32x256xf32> to vector<32x32xf32>
    %289 = vector.extract_strided_slice %287 {offsets = [0, 0], sizes = [31, 32], strides = [1, 1]} : vector<32x32xf32> to vector<31x32xf32>
    %290 = tpu.concatenate %11, %289 in 0 : vector<1x32xf32>, vector<31x32xf32> -> vector<32x32xf32>
    %291 = vector.extract_strided_slice %288 {offsets = [1, 0], sizes = [31, 32], strides = [1, 1]} : vector<32x32xf32> to vector<31x32xf32>
    %292 = tpu.concatenate %291, %11 in 0 : vector<31x32xf32>, vector<1x32xf32> -> vector<32x32xf32>
    %cst_108 = arith.constant 0.000000e+00 : f32
    %293 = vector.broadcast %cst_108 : f32 to vector<32x32xf32>
    %294 = arith.select %7, %293, %290 : vector<32x32xi1>, vector<32x32xf32>
    %cst_109 = arith.constant 0.000000e+00 : f32
    %295 = vector.broadcast %cst_109 : f32 to vector<32x32xf32>
    %296 = arith.select %10, %295, %292 : vector<32x32xi1>, vector<32x32xf32>
    %297 = tpu.concatenate %294, %286, %296 in 1 : vector<32x32xf32>, vector<32x256xf32>, vector<32x32xf32> -> vector<32x320xf32>
    %298 = arith.truncf %297 : vector<32x320xf32> to vector<32x320xbf16>
    %c0_110 = arith.constant 0 : index
    %c0_111 = arith.constant 0 : index
    %299 = vector.load %arg14[%c0_110, %c0_111] : memref<320x512xbf16, #tpu.memory_space<vmem>>, vector<320x512xbf16>
    %cst_112 = arith.constant dense<0.000000e+00> : vector<32x512xf32>
    %300 = tpu.matmul %298, %299, %cst_112 {dimension_numbers = #tpu.dot_dimension_numbers<[1], [0], [0], [1], [0, 0, 1, 1], [], []>} : vector<32x320xbf16>, vector<320x512xbf16>, vector<32x512xf32> -> vector<32x512xf32>
    %cst_113 = arith.constant dense<0.000000e+00> : vector<512xf32>
    %301 = vector.multi_reduction <add>, %300, %cst_113 [0] : vector<32x512xf32> to vector<512xf32>
    %302 = vector.shape_cast %301 : vector<512xf32> to vector<1x512xf32>
    %303 = arith.mulf %300, %300 : vector<32x512xf32>
    %cst_114 = arith.constant dense<0.000000e+00> : vector<512xf32>
    %304 = vector.multi_reduction <add>, %303, %cst_114 [0] : vector<32x512xf32> to vector<512xf32>
    %305 = vector.shape_cast %304 : vector<512xf32> to vector<1x512xf32>
    %306 = vector.extract_strided_slice %302 {offsets = [0, 0], sizes = [1, 256], strides = [1, 1]} : vector<1x512xf32> to vector<1x256xf32>
    %307 = vector.extract_strided_slice %302 {offsets = [0, 256], sizes = [1, 256], strides = [1, 1]} : vector<1x512xf32> to vector<1x256xf32>
    %308 = arith.addf %306, %307 : vector<1x256xf32>
    %309 = vector.extract_strided_slice %305 {offsets = [0, 0], sizes = [1, 256], strides = [1, 1]} : vector<1x512xf32> to vector<1x256xf32>
    %310 = vector.extract_strided_slice %305 {offsets = [0, 256], sizes = [1, 256], strides = [1, 1]} : vector<1x512xf32> to vector<1x256xf32>
    %311 = arith.addf %309, %310 : vector<1x256xf32>
    %312 = vector.extract_strided_slice %308 {offsets = [0, 0], sizes = [1, 128], strides = [1, 1]} : vector<1x256xf32> to vector<1x128xf32>
    %313 = vector.extract_strided_slice %308 {offsets = [0, 128], sizes = [1, 128], strides = [1, 1]} : vector<1x256xf32> to vector<1x128xf32>
    %314 = arith.addf %312, %313 : vector<1x128xf32>
    %315 = vector.extract_strided_slice %311 {offsets = [0, 0], sizes = [1, 128], strides = [1, 1]} : vector<1x256xf32> to vector<1x128xf32>
    %316 = vector.extract_strided_slice %311 {offsets = [0, 128], sizes = [1, 128], strides = [1, 1]} : vector<1x256xf32> to vector<1x128xf32>
    %317 = arith.addf %315, %316 : vector<1x128xf32>
    %318 = vector.extract_strided_slice %314 {offsets = [0, 0], sizes = [1, 64], strides = [1, 1]} : vector<1x128xf32> to vector<1x64xf32>
    %319 = vector.extract_strided_slice %314 {offsets = [0, 64], sizes = [1, 64], strides = [1, 1]} : vector<1x128xf32> to vector<1x64xf32>
    %320 = arith.addf %318, %319 : vector<1x64xf32>
    %321 = vector.extract_strided_slice %317 {offsets = [0, 0], sizes = [1, 64], strides = [1, 1]} : vector<1x128xf32> to vector<1x64xf32>
    %322 = vector.extract_strided_slice %317 {offsets = [0, 64], sizes = [1, 64], strides = [1, 1]} : vector<1x128xf32> to vector<1x64xf32>
    %323 = arith.addf %321, %322 : vector<1x64xf32>
    %324 = vector.extract_strided_slice %320 {offsets = [0, 0], sizes = [1, 32], strides = [1, 1]} : vector<1x64xf32> to vector<1x32xf32>
    %325 = vector.extract_strided_slice %320 {offsets = [0, 32], sizes = [1, 32], strides = [1, 1]} : vector<1x64xf32> to vector<1x32xf32>
    %326 = arith.addf %324, %325 : vector<1x32xf32>
    %327 = vector.extract_strided_slice %323 {offsets = [0, 0], sizes = [1, 32], strides = [1, 1]} : vector<1x64xf32> to vector<1x32xf32>
    %328 = vector.extract_strided_slice %323 {offsets = [0, 32], sizes = [1, 32], strides = [1, 1]} : vector<1x64xf32> to vector<1x32xf32>
    %329 = arith.addf %327, %328 : vector<1x32xf32>
    %cst_115 = arith.constant 0.001953125 : f32
    %330 = vector.broadcast %cst_115 : f32 to vector<1x32xf32>
    %331 = arith.mulf %326, %330 : vector<1x32xf32>
    %cst_116 = arith.constant 0.001953125 : f32
    %332 = vector.broadcast %cst_116 : f32 to vector<1x32xf32>
    %333 = arith.mulf %329, %332 : vector<1x32xf32>
    %334 = arith.mulf %331, %331 : vector<1x32xf32>
    %335 = arith.subf %333, %334 : vector<1x32xf32>
    %cst_117 = arith.constant 0.000000e+00 : f32
    %336 = vector.broadcast %cst_117 : f32 to vector<1x32xf32>
    %337 = arith.maximumf %335, %336 : vector<1x32xf32>
    %c0_118 = arith.constant 0 : index
    %c0_119 = arith.constant 0 : index
    %338 = vector.load %arg15[%c0_118, %c0_119] : memref<1x32xf32, #tpu.memory_space<vmem>>, vector<1x32xf32>
    %cst_120 = arith.constant 9.99999974E-6 : f32
    %339 = vector.broadcast %cst_120 : f32 to vector<1x32xf32>
    %340 = arith.addf %337, %339 : vector<1x32xf32>
    %341 = math.rsqrt %340 : vector<1x32xf32>
    %342 = arith.mulf %338, %341 : vector<1x32xf32>
    %c0_121 = arith.constant 0 : index
    %c0_122 = arith.constant 0 : index
    %343 = vector.load %arg16[%c0_121, %c0_122] : memref<1x32xf32, #tpu.memory_space<vmem>>, vector<1x32xf32>
    %344 = arith.mulf %331, %342 : vector<1x32xf32>
    %345 = arith.subf %343, %344 : vector<1x32xf32>
    %346 = tpu.concatenate %342, %342 in 1 : vector<1x32xf32>, vector<1x32xf32> -> vector<1x64xf32>
    %347 = tpu.concatenate %345, %345 in 1 : vector<1x32xf32>, vector<1x32xf32> -> vector<1x64xf32>
    %348 = tpu.concatenate %346, %346 in 1 : vector<1x64xf32>, vector<1x64xf32> -> vector<1x128xf32>
    %349 = tpu.concatenate %347, %347 in 1 : vector<1x64xf32>, vector<1x64xf32> -> vector<1x128xf32>
    %350 = tpu.concatenate %348, %348 in 1 : vector<1x128xf32>, vector<1x128xf32> -> vector<1x256xf32>
    %351 = tpu.concatenate %349, %349 in 1 : vector<1x128xf32>, vector<1x128xf32> -> vector<1x256xf32>
    %352 = tpu.concatenate %350, %350 in 1 : vector<1x256xf32>, vector<1x256xf32> -> vector<1x512xf32>
    %353 = tpu.concatenate %351, %351 in 1 : vector<1x256xf32>, vector<1x256xf32> -> vector<1x512xf32>
    %354 = vector.broadcast %352 : vector<1x512xf32> to vector<32x512xf32>
    %355 = arith.mulf %300, %354 : vector<32x512xf32>
    %356 = vector.broadcast %353 : vector<1x512xf32> to vector<32x512xf32>
    %357 = arith.addf %355, %356 : vector<32x512xf32>
    %cst_123 = arith.constant 0.000000e+00 : f32
    %358 = vector.broadcast %cst_123 : f32 to vector<32x512xf32>
    %359 = arith.maximumf %357, %358 : vector<32x512xf32>
    %360 = vector.extract_strided_slice %359 {offsets = [0, 480], sizes = [32, 32], strides = [1, 1]} : vector<32x512xf32> to vector<32x32xf32>
    %361 = vector.extract_strided_slice %359 {offsets = [0, 0], sizes = [32, 32], strides = [1, 1]} : vector<32x512xf32> to vector<32x32xf32>
    %362 = vector.extract_strided_slice %360 {offsets = [0, 0], sizes = [31, 32], strides = [1, 1]} : vector<32x32xf32> to vector<31x32xf32>
    %363 = tpu.concatenate %11, %362 in 0 : vector<1x32xf32>, vector<31x32xf32> -> vector<32x32xf32>
    %364 = vector.extract_strided_slice %361 {offsets = [1, 0], sizes = [31, 32], strides = [1, 1]} : vector<32x32xf32> to vector<31x32xf32>
    %365 = tpu.concatenate %364, %11 in 0 : vector<31x32xf32>, vector<1x32xf32> -> vector<32x32xf32>
    %cst_124 = arith.constant 0.000000e+00 : f32
    %366 = vector.broadcast %cst_124 : f32 to vector<32x32xf32>
    %367 = arith.select %7, %366, %363 : vector<32x32xi1>, vector<32x32xf32>
    %cst_125 = arith.constant 0.000000e+00 : f32
    %368 = vector.broadcast %cst_125 : f32 to vector<32x32xf32>
    %369 = arith.select %10, %368, %365 : vector<32x32xi1>, vector<32x32xf32>
    %370 = tpu.concatenate %367, %359, %369 in 1 : vector<32x32xf32>, vector<32x512xf32>, vector<32x32xf32> -> vector<32x576xf32>
    %371 = arith.truncf %370 : vector<32x576xf32> to vector<32x576xbf16>
    %c0_126 = arith.constant 0 : index
    %c0_127 = arith.constant 0 : index
    %372 = vector.load %arg17[%c0_126, %c0_127] : memref<576x1024xbf16, #tpu.memory_space<vmem>>, vector<576x1024xbf16>
    %cst_128 = arith.constant dense<0.000000e+00> : vector<32x1024xf32>
    %373 = tpu.matmul %371, %372, %cst_128 {dimension_numbers = #tpu.dot_dimension_numbers<[1], [0], [0], [1], [0, 0, 1, 1], [], []>} : vector<32x576xbf16>, vector<576x1024xbf16>, vector<32x1024xf32> -> vector<32x1024xf32>
    %cst_129 = arith.constant dense<0.000000e+00> : vector<1024xf32>
    %374 = vector.multi_reduction <add>, %373, %cst_129 [0] : vector<32x1024xf32> to vector<1024xf32>
    %375 = vector.shape_cast %374 : vector<1024xf32> to vector<1x1024xf32>
    %376 = arith.mulf %373, %373 : vector<32x1024xf32>
    %cst_130 = arith.constant dense<0.000000e+00> : vector<1024xf32>
    %377 = vector.multi_reduction <add>, %376, %cst_130 [0] : vector<32x1024xf32> to vector<1024xf32>
    %378 = vector.shape_cast %377 : vector<1024xf32> to vector<1x1024xf32>
    %379 = vector.extract_strided_slice %375 {offsets = [0, 0], sizes = [1, 512], strides = [1, 1]} : vector<1x1024xf32> to vector<1x512xf32>
    %380 = vector.extract_strided_slice %375 {offsets = [0, 512], sizes = [1, 512], strides = [1, 1]} : vector<1x1024xf32> to vector<1x512xf32>
    %381 = arith.addf %379, %380 : vector<1x512xf32>
    %382 = vector.extract_strided_slice %378 {offsets = [0, 0], sizes = [1, 512], strides = [1, 1]} : vector<1x1024xf32> to vector<1x512xf32>
    %383 = vector.extract_strided_slice %378 {offsets = [0, 512], sizes = [1, 512], strides = [1, 1]} : vector<1x1024xf32> to vector<1x512xf32>
    %384 = arith.addf %382, %383 : vector<1x512xf32>
    %385 = vector.extract_strided_slice %381 {offsets = [0, 0], sizes = [1, 256], strides = [1, 1]} : vector<1x512xf32> to vector<1x256xf32>
    %386 = vector.extract_strided_slice %381 {offsets = [0, 256], sizes = [1, 256], strides = [1, 1]} : vector<1x512xf32> to vector<1x256xf32>
    %387 = arith.addf %385, %386 : vector<1x256xf32>
    %388 = vector.extract_strided_slice %384 {offsets = [0, 0], sizes = [1, 256], strides = [1, 1]} : vector<1x512xf32> to vector<1x256xf32>
    %389 = vector.extract_strided_slice %384 {offsets = [0, 256], sizes = [1, 256], strides = [1, 1]} : vector<1x512xf32> to vector<1x256xf32>
    %390 = arith.addf %388, %389 : vector<1x256xf32>
    %391 = vector.extract_strided_slice %387 {offsets = [0, 0], sizes = [1, 128], strides = [1, 1]} : vector<1x256xf32> to vector<1x128xf32>
    %392 = vector.extract_strided_slice %387 {offsets = [0, 128], sizes = [1, 128], strides = [1, 1]} : vector<1x256xf32> to vector<1x128xf32>
    %393 = arith.addf %391, %392 : vector<1x128xf32>
    %394 = vector.extract_strided_slice %390 {offsets = [0, 0], sizes = [1, 128], strides = [1, 1]} : vector<1x256xf32> to vector<1x128xf32>
    %395 = vector.extract_strided_slice %390 {offsets = [0, 128], sizes = [1, 128], strides = [1, 1]} : vector<1x256xf32> to vector<1x128xf32>
    %396 = arith.addf %394, %395 : vector<1x128xf32>
    %397 = vector.extract_strided_slice %393 {offsets = [0, 0], sizes = [1, 64], strides = [1, 1]} : vector<1x128xf32> to vector<1x64xf32>
    %398 = vector.extract_strided_slice %393 {offsets = [0, 64], sizes = [1, 64], strides = [1, 1]} : vector<1x128xf32> to vector<1x64xf32>
    %399 = arith.addf %397, %398 : vector<1x64xf32>
    %400 = vector.extract_strided_slice %396 {offsets = [0, 0], sizes = [1, 64], strides = [1, 1]} : vector<1x128xf32> to vector<1x64xf32>
    %401 = vector.extract_strided_slice %396 {offsets = [0, 64], sizes = [1, 64], strides = [1, 1]} : vector<1x128xf32> to vector<1x64xf32>
    %402 = arith.addf %400, %401 : vector<1x64xf32>
    %403 = vector.extract_strided_slice %399 {offsets = [0, 0], sizes = [1, 32], strides = [1, 1]} : vector<1x64xf32> to vector<1x32xf32>
    %404 = vector.extract_strided_slice %399 {offsets = [0, 32], sizes = [1, 32], strides = [1, 1]} : vector<1x64xf32> to vector<1x32xf32>
    %405 = arith.addf %403, %404 : vector<1x32xf32>
    %406 = vector.extract_strided_slice %402 {offsets = [0, 0], sizes = [1, 32], strides = [1, 1]} : vector<1x64xf32> to vector<1x32xf32>
    %407 = vector.extract_strided_slice %402 {offsets = [0, 32], sizes = [1, 32], strides = [1, 1]} : vector<1x64xf32> to vector<1x32xf32>
    %408 = arith.addf %406, %407 : vector<1x32xf32>
    %cst_131 = arith.constant 9.765625E-4 : f32
    %409 = vector.broadcast %cst_131 : f32 to vector<1x32xf32>
    %410 = arith.mulf %405, %409 : vector<1x32xf32>
    %cst_132 = arith.constant 9.765625E-4 : f32
    %411 = vector.broadcast %cst_132 : f32 to vector<1x32xf32>
    %412 = arith.mulf %408, %411 : vector<1x32xf32>
    %413 = arith.mulf %410, %410 : vector<1x32xf32>
    %414 = arith.subf %412, %413 : vector<1x32xf32>
    %cst_133 = arith.constant 0.000000e+00 : f32
    %415 = vector.broadcast %cst_133 : f32 to vector<1x32xf32>
    %416 = arith.maximumf %414, %415 : vector<1x32xf32>
    %c0_134 = arith.constant 0 : index
    %c0_135 = arith.constant 0 : index
    %417 = vector.load %arg18[%c0_134, %c0_135] : memref<1x32xf32, #tpu.memory_space<vmem>>, vector<1x32xf32>
    %cst_136 = arith.constant 9.99999974E-6 : f32
    %418 = vector.broadcast %cst_136 : f32 to vector<1x32xf32>
    %419 = arith.addf %416, %418 : vector<1x32xf32>
    %420 = math.rsqrt %419 : vector<1x32xf32>
    %421 = arith.mulf %417, %420 : vector<1x32xf32>
    %c0_137 = arith.constant 0 : index
    %c0_138 = arith.constant 0 : index
    %422 = vector.load %arg19[%c0_137, %c0_138] : memref<1x32xf32, #tpu.memory_space<vmem>>, vector<1x32xf32>
    %423 = arith.mulf %410, %421 : vector<1x32xf32>
    %424 = arith.subf %422, %423 : vector<1x32xf32>
    %425 = tpu.concatenate %421, %421 in 1 : vector<1x32xf32>, vector<1x32xf32> -> vector<1x64xf32>
    %426 = tpu.concatenate %424, %424 in 1 : vector<1x32xf32>, vector<1x32xf32> -> vector<1x64xf32>
    %427 = tpu.concatenate %425, %425 in 1 : vector<1x64xf32>, vector<1x64xf32> -> vector<1x128xf32>
    %428 = tpu.concatenate %426, %426 in 1 : vector<1x64xf32>, vector<1x64xf32> -> vector<1x128xf32>
    %429 = tpu.concatenate %427, %427 in 1 : vector<1x128xf32>, vector<1x128xf32> -> vector<1x256xf32>
    %430 = tpu.concatenate %428, %428 in 1 : vector<1x128xf32>, vector<1x128xf32> -> vector<1x256xf32>
    %431 = tpu.concatenate %429, %429 in 1 : vector<1x256xf32>, vector<1x256xf32> -> vector<1x512xf32>
    %432 = tpu.concatenate %430, %430 in 1 : vector<1x256xf32>, vector<1x256xf32> -> vector<1x512xf32>
    %433 = tpu.concatenate %431, %431 in 1 : vector<1x512xf32>, vector<1x512xf32> -> vector<1x1024xf32>
    %434 = tpu.concatenate %432, %432 in 1 : vector<1x512xf32>, vector<1x512xf32> -> vector<1x1024xf32>
    %435 = vector.broadcast %433 : vector<1x1024xf32> to vector<32x1024xf32>
    %436 = arith.mulf %373, %435 : vector<32x1024xf32>
    %437 = vector.broadcast %434 : vector<1x1024xf32> to vector<32x1024xf32>
    %438 = arith.addf %436, %437 : vector<32x1024xf32>
    %cst_139 = arith.constant 0.000000e+00 : f32
    %439 = vector.broadcast %cst_139 : f32 to vector<32x1024xf32>
    %440 = arith.maximumf %438, %439 : vector<32x1024xf32>
    %441 = vector.extract_strided_slice %440 {offsets = [0, 992], sizes = [32, 32], strides = [1, 1]} : vector<32x1024xf32> to vector<32x32xf32>
    %442 = vector.extract_strided_slice %440 {offsets = [0, 0], sizes = [32, 32], strides = [1, 1]} : vector<32x1024xf32> to vector<32x32xf32>
    %443 = vector.extract_strided_slice %441 {offsets = [0, 0], sizes = [31, 32], strides = [1, 1]} : vector<32x32xf32> to vector<31x32xf32>
    %444 = tpu.concatenate %11, %443 in 0 : vector<1x32xf32>, vector<31x32xf32> -> vector<32x32xf32>
    %445 = vector.extract_strided_slice %442 {offsets = [1, 0], sizes = [31, 32], strides = [1, 1]} : vector<32x32xf32> to vector<31x32xf32>
    %446 = tpu.concatenate %445, %11 in 0 : vector<31x32xf32>, vector<1x32xf32> -> vector<32x32xf32>
    %cst_140 = arith.constant 0.000000e+00 : f32
    %447 = vector.broadcast %cst_140 : f32 to vector<32x32xf32>
    %448 = arith.select %7, %447, %444 : vector<32x32xi1>, vector<32x32xf32>
    %cst_141 = arith.constant 0.000000e+00 : f32
    %449 = vector.broadcast %cst_141 : f32 to vector<32x32xf32>
    %450 = arith.select %10, %449, %446 : vector<32x32xi1>, vector<32x32xf32>
    %451 = tpu.concatenate %448, %440, %450 in 1 : vector<32x32xf32>, vector<32x1024xf32>, vector<32x32xf32> -> vector<32x1088xf32>
    %452 = arith.truncf %451 : vector<32x1088xf32> to vector<32x1088xbf16>
    %c0_142 = arith.constant 0 : index
    %c0_143 = arith.constant 0 : index
    %453 = vector.load %arg20[%c0_142, %c0_143] : memref<1088x64xbf16, #tpu.memory_space<vmem>>, vector<1088x64xbf16>
    %cst_144 = arith.constant dense<0.000000e+00> : vector<32x64xf32>
    %454 = tpu.matmul %452, %453, %cst_144 {dimension_numbers = #tpu.dot_dimension_numbers<[1], [0], [0], [1], [0, 0, 1, 1], [], []>} : vector<32x1088xbf16>, vector<1088x64xbf16>, vector<32x64xf32> -> vector<32x64xf32>
    %455 = math.tanh %454 : vector<32x64xf32>
    %456 = vector.extract_strided_slice %455 {offsets = [0, 0], sizes = [1, 64], strides = [1, 1]} : vector<32x64xf32> to vector<1x64xf32>
    %457 = vector.extract_strided_slice %455 {offsets = [1, 0], sizes = [1, 64], strides = [1, 1]} : vector<32x64xf32> to vector<1x64xf32>
    %458 = vector.extract_strided_slice %455 {offsets = [2, 0], sizes = [1, 64], strides = [1, 1]} : vector<32x64xf32> to vector<1x64xf32>
    %459 = vector.extract_strided_slice %455 {offsets = [3, 0], sizes = [1, 64], strides = [1, 1]} : vector<32x64xf32> to vector<1x64xf32>
    %460 = vector.extract_strided_slice %455 {offsets = [4, 0], sizes = [1, 64], strides = [1, 1]} : vector<32x64xf32> to vector<1x64xf32>
    %461 = vector.extract_strided_slice %455 {offsets = [5, 0], sizes = [1, 64], strides = [1, 1]} : vector<32x64xf32> to vector<1x64xf32>
    %462 = vector.extract_strided_slice %455 {offsets = [6, 0], sizes = [1, 64], strides = [1, 1]} : vector<32x64xf32> to vector<1x64xf32>
    %463 = vector.extract_strided_slice %455 {offsets = [7, 0], sizes = [1, 64], strides = [1, 1]} : vector<32x64xf32> to vector<1x64xf32>
    %464 = vector.extract_strided_slice %455 {offsets = [8, 0], sizes = [1, 64], strides = [1, 1]} : vector<32x64xf32> to vector<1x64xf32>
    %465 = vector.extract_strided_slice %455 {offsets = [9, 0], sizes = [1, 64], strides = [1, 1]} : vector<32x64xf32> to vector<1x64xf32>
    %466 = vector.extract_strided_slice %455 {offsets = [10, 0], sizes = [1, 64], strides = [1, 1]} : vector<32x64xf32> to vector<1x64xf32>
    %467 = vector.extract_strided_slice %455 {offsets = [11, 0], sizes = [1, 64], strides = [1, 1]} : vector<32x64xf32> to vector<1x64xf32>
    %468 = vector.extract_strided_slice %455 {offsets = [12, 0], sizes = [1, 64], strides = [1, 1]} : vector<32x64xf32> to vector<1x64xf32>
    %469 = vector.extract_strided_slice %455 {offsets = [13, 0], sizes = [1, 64], strides = [1, 1]} : vector<32x64xf32> to vector<1x64xf32>
    %470 = vector.extract_strided_slice %455 {offsets = [14, 0], sizes = [1, 64], strides = [1, 1]} : vector<32x64xf32> to vector<1x64xf32>
    %471 = vector.extract_strided_slice %455 {offsets = [15, 0], sizes = [1, 64], strides = [1, 1]} : vector<32x64xf32> to vector<1x64xf32>
    %472 = tpu.concatenate %456, %457, %458, %459, %460, %461, %462, %463, %464, %465, %466, %467, %468, %469, %470, %471 in 1 : vector<1x64xf32>, vector<1x64xf32>, vector<1x64xf32>, vector<1x64xf32>, vector<1x64xf32>, vector<1x64xf32>, vector<1x64xf32>, vector<1x64xf32>, vector<1x64xf32>, vector<1x64xf32>, vector<1x64xf32>, vector<1x64xf32>, vector<1x64xf32>, vector<1x64xf32>, vector<1x64xf32>, vector<1x64xf32> -> vector<1x1024xf32>
    %473 = vector.extract_strided_slice %455 {offsets = [16, 0], sizes = [1, 64], strides = [1, 1]} : vector<32x64xf32> to vector<1x64xf32>
    %474 = vector.extract_strided_slice %455 {offsets = [17, 0], sizes = [1, 64], strides = [1, 1]} : vector<32x64xf32> to vector<1x64xf32>
    %475 = vector.extract_strided_slice %455 {offsets = [18, 0], sizes = [1, 64], strides = [1, 1]} : vector<32x64xf32> to vector<1x64xf32>
    %476 = vector.extract_strided_slice %455 {offsets = [19, 0], sizes = [1, 64], strides = [1, 1]} : vector<32x64xf32> to vector<1x64xf32>
    %477 = vector.extract_strided_slice %455 {offsets = [20, 0], sizes = [1, 64], strides = [1, 1]} : vector<32x64xf32> to vector<1x64xf32>
    %478 = vector.extract_strided_slice %455 {offsets = [21, 0], sizes = [1, 64], strides = [1, 1]} : vector<32x64xf32> to vector<1x64xf32>
    %479 = vector.extract_strided_slice %455 {offsets = [22, 0], sizes = [1, 64], strides = [1, 1]} : vector<32x64xf32> to vector<1x64xf32>
    %480 = vector.extract_strided_slice %455 {offsets = [23, 0], sizes = [1, 64], strides = [1, 1]} : vector<32x64xf32> to vector<1x64xf32>
    %481 = vector.extract_strided_slice %455 {offsets = [24, 0], sizes = [1, 64], strides = [1, 1]} : vector<32x64xf32> to vector<1x64xf32>
    %482 = vector.extract_strided_slice %455 {offsets = [25, 0], sizes = [1, 64], strides = [1, 1]} : vector<32x64xf32> to vector<1x64xf32>
    %483 = vector.extract_strided_slice %455 {offsets = [26, 0], sizes = [1, 64], strides = [1, 1]} : vector<32x64xf32> to vector<1x64xf32>
    %484 = vector.extract_strided_slice %455 {offsets = [27, 0], sizes = [1, 64], strides = [1, 1]} : vector<32x64xf32> to vector<1x64xf32>
    %485 = vector.extract_strided_slice %455 {offsets = [28, 0], sizes = [1, 64], strides = [1, 1]} : vector<32x64xf32> to vector<1x64xf32>
    %486 = vector.extract_strided_slice %455 {offsets = [29, 0], sizes = [1, 64], strides = [1, 1]} : vector<32x64xf32> to vector<1x64xf32>
    %487 = vector.extract_strided_slice %455 {offsets = [30, 0], sizes = [1, 64], strides = [1, 1]} : vector<32x64xf32> to vector<1x64xf32>
    %488 = vector.extract_strided_slice %455 {offsets = [31, 0], sizes = [1, 64], strides = [1, 1]} : vector<32x64xf32> to vector<1x64xf32>
    %489 = tpu.concatenate %473, %474, %475, %476, %477, %478, %479, %480, %481, %482, %483, %484, %485, %486, %487, %488 in 1 : vector<1x64xf32>, vector<1x64xf32>, vector<1x64xf32>, vector<1x64xf32>, vector<1x64xf32>, vector<1x64xf32>, vector<1x64xf32>, vector<1x64xf32>, vector<1x64xf32>, vector<1x64xf32>, vector<1x64xf32>, vector<1x64xf32>, vector<1x64xf32>, vector<1x64xf32>, vector<1x64xf32>, vector<1x64xf32> -> vector<1x1024xf32>
    %490 = tpu.concatenate %472, %489 in 0 : vector<1x1024xf32>, vector<1x1024xf32> -> vector<2x1024xf32>
    %c0_145 = arith.constant 0 : index
    %c0_146 = arith.constant 0 : index
    %491 = vector.load %arg21[%c0_145, %c0_146] : memref<2x1024xf32, #tpu.memory_space<vmem>>, vector<2x1024xf32>
    tpu.vector_store %arg21[%c0_145, %c0_146], %490 {strides = array<i32>} : memref<2x1024xf32, #tpu.memory_space<vmem>>, vector<2x1024xf32>,
    return
  }
  func.func @transform_0(%arg0: i32) -> (i32, i32) {
    %c0_i32 = arith.constant 0 : i32
    %c0_i32_0 = arith.constant 0 : i32
    %c0_i32_1 = arith.constant 0 : i32
    return %c0_i32, %c0_i32_0 : i32, i32
  }
  func.func @transform_1(%arg0: i32) -> (i32, i32) {
    %c0_i32 = arith.constant 0 : i32
    %c0_i32_0 = arith.constant 0 : i32
    %c0_i32_1 = arith.constant 0 : i32
    return %c0_i32, %c0_i32_0 : i32, i32
  }
  func.func @transform_2(%arg0: i32) -> (i32, i32) {
    %c0_i32 = arith.constant 0 : i32
    %c0_i32_0 = arith.constant 0 : i32
    %c0_i32_1 = arith.constant 0 : i32
    return %c0_i32, %c0_i32_0 : i32, i32
  }
  func.func @transform_3(%arg0: i32) -> (i32, i32) {
    %c0_i32 = arith.constant 0 : i32
    %c0_i32_0 = arith.constant 0 : i32
    %c0_i32_1 = arith.constant 0 : i32
    return %c0_i32, %c0_i32_0 : i32, i32
  }
  func.func @transform_4(%arg0: i32) -> (i32, i32) {
    %c0_i32 = arith.constant 0 : i32
    %c0_i32_0 = arith.constant 0 : i32
    %c0_i32_1 = arith.constant 0 : i32
    return %c0_i32, %c0_i32_0 : i32, i32
  }
  func.func @transform_5(%arg0: i32) -> (i32, i32) {
    %c0_i32 = arith.constant 0 : i32
    %c0_i32_0 = arith.constant 0 : i32
    %c0_i32_1 = arith.constant 0 : i32
    return %c0_i32, %c0_i32_0 : i32, i32
  }
  func.func @transform_6(%arg0: i32) -> (i32, i32) {
    %c0_i32 = arith.constant 0 : i32
    %c0_i32_0 = arith.constant 0 : i32
    %c0_i32_1 = arith.constant 0 : i32
    return %c0_i32, %c0_i32_0 : i32, i32
  }
  func.func @transform_7(%arg0: i32) -> (i32, i32) {
    %c0_i32 = arith.constant 0 : i32
    %c0_i32_0 = arith.constant 0 : i32
    %c0_i32_1 = arith.constant 0 : i32
    return %c0_i32, %c0_i32_0 : i32, i32
  }
  func.func @transform_8(%arg0: i32) -> (i32, i32) {
    %c0_i32 = arith.constant 0 : i32
    %c0_i32_0 = arith.constant 0 : i32
    %c0_i32_1 = arith.constant 0 : i32
    return %c0_i32, %c0_i32_0 : i32, i32
  }
  func.func @transform_9(%arg0: i32) -> (i32, i32) {
    %c0_i32 = arith.constant 0 : i32
    %c0_i32_0 = arith.constant 0 : i32
    %c0_i32_1 = arith.constant 0 : i32
    return %c0_i32, %c0_i32_0 : i32, i32
  }
  func.func @transform_10(%arg0: i32) -> (i32, i32) {
    %c0_i32 = arith.constant 0 : i32
    %c0_i32_0 = arith.constant 0 : i32
    %c0_i32_1 = arith.constant 0 : i32
    return %c0_i32, %c0_i32_0 : i32, i32
  }
  func.func @transform_11(%arg0: i32) -> (i32, i32) {
    %c0_i32 = arith.constant 0 : i32
    %c0_i32_0 = arith.constant 0 : i32
    %c0_i32_1 = arith.constant 0 : i32
    return %c0_i32, %c0_i32_0 : i32, i32
  }
  func.func @transform_12(%arg0: i32) -> (i32, i32) {
    %c0_i32 = arith.constant 0 : i32
    %c0_i32_0 = arith.constant 0 : i32
    %c0_i32_1 = arith.constant 0 : i32
    return %c0_i32, %c0_i32_0 : i32, i32
  }
  func.func @transform_13(%arg0: i32) -> (i32, i32) {
    %c0_i32 = arith.constant 0 : i32
    %c0_i32_0 = arith.constant 0 : i32
    %c0_i32_1 = arith.constant 0 : i32
    return %c0_i32, %c0_i32_0 : i32, i32
  }
  func.func @transform_14(%arg0: i32) -> (i32, i32) {
    %c0_i32 = arith.constant 0 : i32
    %c0_i32_0 = arith.constant 0 : i32
    %c0_i32_1 = arith.constant 0 : i32
    return %c0_i32, %c0_i32_0 : i32, i32
  }
  func.func @transform_15(%arg0: i32) -> (i32, i32) {
    %c0_i32 = arith.constant 0 : i32
    %c0_i32_0 = arith.constant 0 : i32
    %c0_i32_1 = arith.constant 0 : i32
    return %c0_i32, %c0_i32_0 : i32, i32
  }
  func.func @transform_16(%arg0: i32) -> (i32, i32) {
    %c0_i32 = arith.constant 0 : i32
    %c0_i32_0 = arith.constant 0 : i32
    %c0_i32_1 = arith.constant 0 : i32
    return %c0_i32, %c0_i32_0 : i32, i32
  }
  func.func @transform_17(%arg0: i32) -> (i32, i32) {
    %c0_i32 = arith.constant 0 : i32
    %c0_i32_0 = arith.constant 0 : i32
    %c0_i32_1 = arith.constant 0 : i32
    return %c0_i32, %c0_i32_0 : i32, i32
  }
  func.func @transform_18(%arg0: i32) -> (i32, i32) {
    %c0_i32 = arith.constant 0 : i32
    %c0_i32_0 = arith.constant 0 : i32
    %c0_i32_1 = arith.constant 0 : i32
    return %c0_i32, %c0_i32_0 : i32, i32
  }
  func.func @transform_19(%arg0: i32) -> (i32, i32) {
    %c0_i32 = arith.constant 0 : i32
    %c0_i32_0 = arith.constant 0 : i32
    %c0_i32_1 = arith.constant 0 : i32
    return %c0_i32, %c0_i32_0 : i32, i32
  }
  func.func @transform_20(%arg0: i32) -> (i32, i32) {
    %c0_i32 = arith.constant 0 : i32
    %c0_i32_0 = arith.constant 0 : i32
    %c0_i32_1 = arith.constant 0 : i32
    return %c0_i32, %c0_i32_0 : i32, i32
  }
}

</mosaic_0001>

<bundles_post_ra>
// kernel: dcgan_straight_forward.1
= control target key start
LH: loop header
LB: loop body
LE: loop exit
PB: predicated region body
PF: predicated region fallthrough
CT: control target
= control target key end

     0   :  { %s10408_s0 = inlined_call_operand.hbm [shape: f32[2,8], index: 0, kind: input, shape index: {}]   ;;  %s10409_s1 = inlined_call_operand.vmem [shape: f32[128,32], index: 1, kind: input, shape index: {}]   ;;  %s10410_s2 = inlined_call_operand.hbm [shape: f32[1,32], index: 2, kind: input, shape index: {}]   ;;  %s10411_s3 = inlined_call_operand.hbm [shape: f32[1,32], index: 3, kind: input, shape index: {}]   ;;  %s10412_s4 = inlined_call_operand.vmem [shape: bf16[96,64], index: 4, kind: input, shape index: {}]   ;;  %s10413_s5 = inlined_call_operand.hbm [shape: f32[1,32], index: 5, kind: input, shape index: {}]   ;;  %s10414_s6 = inlined_call_operand.hbm [shape: f32[1,32], index: 6, kind: input, shape index: {}]   ;;  %s10415_s7 = inlined_call_operand.hbm [shape: bf16[128,128], index: 7, kind: input, shape index: {}]   ;;  %s10416_s8 = inlined_call_operand.hbm [shape: f32[1,32], index: 8, kind: input, shape index: {}]   ;;  %s10417_s9 = inlined_call_operand.hbm [shape: f32[1,32], index: 9, kind: input, shape index: {}]   ;;  %s10418_s10 = inlined_call_operand.hbm [shape: bf16[192,256], index: 10, kind: input, shape index: {}]   ;;  %s10419_s11 = inlined_call_operand.hbm [shape: f32[1,32], index: 11, kind: input, shape index: {}]   ;;  %s10420_s12 = inlined_call_operand.hbm [shape: f32[1,32], index: 12, kind: input, shape index: {}]   ;;  %s10421_s13 = inlined_call_operand.hbm [shape: bf16[320,512], index: 13, kind: input, shape index: {}]   ;;  %s10422_s14 = inlined_call_operand.hbm [shape: f32[1,32], index: 14, kind: input, shape index: {}]   ;;  %s10423_s15 = inlined_call_operand.hbm [shape: f32[1,32], index: 15, kind: input, shape index: {}]   ;;  %s10424_s16 = inlined_call_operand.hbm [shape: bf16[576,1024], index: 16, kind: input, shape index: {}]   ;;  %s10425_s17 = inlined_call_operand.hbm [shape: f32[1,32], index: 17, kind: input, shape index: {}]   ;;  %s10426_s18 = inlined_call_operand.hbm [shape: f32[1,32], index: 18, kind: input, shape index: {}]   ;;  %s10427_s19 = inlined_call_operand.vmem [shape: bf16[1088,64], index: 19, kind: input, shape index: {}]   ;;  %s10428_s20 = inlined_call_operand.vmem [shape: f32[2,1024], index: 20, kind: output, shape index: {}]  }
   0x1   :  { %10450 = sst [smem:[#allocation54_spill]] %s10408_s0 }
   0x2   :  { %10451 = sst [smem:[#allocation55_spill]] %s10409_s1 }
   0x3   :  { %10452 = sst [smem:[#allocation56_spill]] %s10410_s2 }
   0x4   :  { %10453 = sst [smem:[#allocation57_spill]] %s10411_s3 }
   0x5   :  { %10454 = sst [smem:[#allocation58_spill]] %s10412_s4 }
   0x6   :  { %25 = vsyncpa [#allocation4], 0 }
   0x7   :  { %26 = vsyncpa [#allocation3], 0 }
   0x8   :  { %27 = vsyncpa [#allocation7], 0 }
   0x9   :  { %28 = vsyncpa [#allocation10], 0 }
   0xa   :  { %29 = vsyncpa [#allocation13], 0 }
   0xb   :  { %30 = vsyncpa [#allocation16], 0 }
   0xc   :  { %31 = vsyncpa [#allocation19], 0 }
   0xd   :  { %32 = vsyncpa [#allocation22], 0 }
   0xe   :  { %33 = vsyncpa [#allocation25], 0 }
   0xf   :  { %34 = vsyncpa [#allocation28], 0  ;;  %s8323_s1 = smov [#allocation6]   ;;  %s8324_s23 = smov [#allocation9]  }
  0x10   :  { %s61_s22 = sshll.u32 %s8323_s1, 4  ;;  %s83_s24 = sshll.u32 %s8324_s23, 4  ;;  %s62_s22 = int_to_ptr.vmem [resolvable:$true] %s61_s22  ;;  %s84_s24 = int_to_ptr.vmem [resolvable:$true] %s83_s24 }
  0x11   :  { %s10455_s3 = sld [smem:[#allocation57_spill]] }
  0x17   :  { %s7941_s26 = scalar_lea.hbm %s10455_s3, 16 }
  0x18   :  { %p7942_p0 = scmp.ne.s32.totalorder %s10455_s3, %s7941_s26  ;;  %p7945_p1 = scmp.lt.u32.totalorder %s7941_s26, %s10455_s3 }
  0x1a   :  { %p7947_p2 = pnand %p7945_p1, %p7942_p0 }
  0x1c   :  { %7950 = shalt.err (!%p7947_p2)
}
  0x1d   :  { %s7951_s30 = scalar_lea.vmem %s62_s22, 16  ;;  %s7955_s0 = scalar_lea.vmem %s62_s22, 32 }
  0x1e   :  { %p7952_p3 = scmp.ne.s32.totalorder %s62_s22, %s7951_s30  ;;  %p7956_p4 = scmp.lt.s32.totalorder %s62_s22, %s62_s22 }
  0x1f   :  { %p7957_p5 = scmp.lt.s32.totalorder %s7955_s0, %s7951_s30 }
  0x21   :  { %p7958_p6 = por %p7957_p5, %p7956_p4 }
  0x23   :  { %p7959_p7 = pnand %p7958_p6, %p7952_p3 }
  0x25   :  { %7962 = shalt.err (!%p7959_p7)
}
  0x26   :  { %64 = dma.hbm_to_vmem [thread:$0]  %s10455_s3, 16, %s62_s22, [#allocation7]  }
  0x27   :  { %s7963_s25 = scalar_lea.hbm %s10414_s6, 16 }
  0x28   :  { %p7964_p8 = scmp.ne.s32.totalorder %s10414_s6, %s7963_s25  ;;  %p7967_p9 = scmp.lt.u32.totalorder %s7963_s25, %s10414_s6 }
  0x2a   :  { %p7969_p10 = pnand %p7967_p9, %p7964_p8 }
  0x2c   :  { %7972 = shalt.err (!%p7969_p10)
}
  0x2d   :  { %s7973_s29 = scalar_lea.vmem %s84_s24, 16  ;;  %s7977_s30 = scalar_lea.vmem %s84_s24, 32 }
  0x2e   :  { %p7974_p11 = scmp.ne.s32.totalorder %s84_s24, %s7973_s29  ;;  %p7978_p12 = scmp.lt.s32.totalorder %s84_s24, %s84_s24 }
  0x2f   :  { %p7979_p13 = scmp.lt.s32.totalorder %s7977_s30, %s7973_s29 }
  0x31   :  { %p7980_p0 = por %p7979_p13, %p7978_p12 }
  0x33   :  { %p7981_p1 = pnand %p7980_p0, %p7974_p11 }
  0x35   :  { %7984 = shalt.err (!%p7981_p1)
}
  0x36   :  { %86 = dma.hbm_to_vmem [thread:$0]  %s10414_s6, 16, %s84_s24, [#allocation10]  }
  0x37   :  { %s8325_s0 = smov [#allocation12]   ;;  %s8326_s1 = smov [#allocation15]  }
  0x38   :  { %s105_s21 = sshll.u32 %s8325_s0, 4  ;;  %s124_s23 = sshll.u32 %s8326_s1, 4  ;;  %s106_s21 = int_to_ptr.vmem [resolvable:$true] %s105_s21  ;;  %s8480_s23 = int_to_ptr.vmem [resolvable:$true] %s124_s23 }
  0x39   :  { %s7985_s27 = scalar_lea.hbm %s10416_s8, 16 }
  0x3a   :  { %p7986_p2 = scmp.ne.s32.totalorder %s10416_s8, %s7985_s27  ;;  %p7989_p3 = scmp.lt.u32.totalorder %s7985_s27, %s10416_s8 }
  0x3c   :  { %p7991_p4 = pnand %p7989_p3, %p7986_p2 }
  0x3e   :  { %7994 = shalt.err (!%p7991_p4)
}
  0x3f   :  { %s7995_s6 = scalar_lea.vmem %s106_s21, 16  ;;  %s7999_s24 = scalar_lea.vmem %s106_s21, 32 }
  0x40   :  { %p7996_p5 = scmp.ne.s32.totalorder %s106_s21, %s7995_s6  ;;  %p8000_p6 = scmp.lt.s32.totalorder %s106_s21, %s106_s21 }
  0x41   :  { %p8001_p7 = scmp.lt.s32.totalorder %s7999_s24, %s7995_s6 }
  0x43   :  { %p8002_p8 = por %p8001_p7, %p8000_p6 }
  0x45   :  { %p8003_p9 = pnand %p8002_p8, %p7996_p5 }
  0x47   :  { %8006 = shalt.err (!%p8003_p9)
}
  0x48   :  { %108 = dma.hbm_to_vmem [thread:$0]  %s10416_s8, 16, %s106_s21, [#allocation13]  }
  0x49   :  { %s8007_s1 = scalar_lea.hbm %s10418_s10, 3072 }
  0x4a   :  { %p8008_p10 = scmp.ne.s32.totalorder %s10418_s10, %s8007_s1  ;;  %p8011_p11 = scmp.lt.u32.totalorder %s8007_s1, %s10418_s10 }
  0x4c   :  { %p8013_p12 = pnand %p8011_p11, %p8008_p10 }
  0x4e   :  { %8016 = shalt.err (!%p8013_p12)
}
  0x4f   :  { %s8017_s28 = scalar_lea.vmem %s8480_s23, 3072  ;;  %p8022_p0 = scmp.lt.s32.totalorder %s8480_s23, %s8480_s23 }
  0x50   :  { %p8018_p13 = scmp.ne.s32.totalorder %s8480_s23, %s8017_s28  ;;  %p8023_p1 = scmp.lt.s32.totalorder %s8017_s28, %s8017_s28 }
  0x52   :  { %p8024_p2 = por %p8023_p1, %p8022_p0 }
  0x54   :  { %p8025_p3 = pnand %p8024_p2, %p8018_p13 }
  0x56   :  { %8028 = shalt.err (!%p8025_p3)
}
  0x57   :  { %s8327_s8 = smov 128   ;;  %s8328_s21 = smov 8  }
  0x58   :  { %130 = dma.hbm_to_vmem [thread:$0]  %s10418_s10, 3072, %s8480_s23, [#allocation16], %s8327_s8, %s8327_s8, %s8328_s21  }
  0x59   :  { %s8329_s6 = smov [#allocation18]   ;;  %s8330_s30 = smov [#allocation21]  }
  0x5a   :  { %s147_s24 = sshll.u32 %s8329_s6, 4  ;;  %s169_s22 = sshll.u32 %s8330_s30, 4  ;;  %s148_s24 = int_to_ptr.vmem [resolvable:$true] %s147_s24  ;;  %s170_s22 = int_to_ptr.vmem [resolvable:$true] %s169_s22 }
  0x5b   :  { %s8029_s1 = scalar_lea.hbm %s10420_s12, 16 }
  0x5c   :  { %p8030_p4 = scmp.ne.s32.totalorder %s10420_s12, %s8029_s1  ;;  %p8033_p5 = scmp.lt.u32.totalorder %s8029_s1, %s10420_s12 }
  0x5e   :  { %p8035_p6 = pnand %p8033_p5, %p8030_p4 }
  0x60   :  { %8038 = shalt.err (!%p8035_p6)
}
  0x61   :  { %s8039_s10 = scalar_lea.vmem %s148_s24, 16  ;;  %s8043_s23 = scalar_lea.vmem %s148_s24, 32 }
  0x62   :  { %p8040_p7 = scmp.ne.s32.totalorder %s148_s24, %s8039_s10  ;;  %p8044_p8 = scmp.lt.s32.totalorder %s148_s24, %s148_s24 }
  0x63   :  { %p8045_p9 = scmp.lt.s32.totalorder %s8043_s23, %s8039_s10 }
  0x65   :  { %p8046_p10 = por %p8045_p9, %p8044_p8 }
  0x67   :  { %p8047_p11 = pnand %p8046_p10, %p8040_p7 }
  0x69   :  { %8050 = shalt.err (!%p8047_p11)
}
  0x6a   :  { %150 = dma.hbm_to_vmem [thread:$0]  %s10420_s12, 16, %s148_s24, [#allocation19]  }
  0x6b   :  { %s8051_s29 = scalar_lea.hbm %s10422_s14, 16 }
  0x6c   :  { %p8052_p12 = scmp.ne.s32.totalorder %s10422_s14, %s8051_s29  ;;  %p8055_p13 = scmp.lt.u32.totalorder %s8051_s29, %s10422_s14 }
  0x6e   :  { %p8057_p0 = pnand %p8055_p13, %p8052_p12 }
  0x70   :  { %8060 = shalt.err (!%p8057_p0)
}
  0x71   :  { %s8061_s1 = scalar_lea.vmem %s170_s22, 16  ;;  %s8065_s2 = scalar_lea.vmem %s170_s22, 32 }
  0x72   :  { %p8062_p1 = scmp.ne.s32.totalorder %s170_s22, %s8061_s1  ;;  %p8066_p2 = scmp.lt.s32.totalorder %s170_s22, %s170_s22 }
  0x73   :  { %p8067_p3 = scmp.lt.s32.totalorder %s8065_s2, %s8061_s1 }
  0x75   :  { %p8068_p4 = por %p8067_p3, %p8066_p2 }
  0x77   :  { %p8069_p5 = pnand %p8068_p4, %p8062_p1 }
  0x79   :  { %8072 = shalt.err (!%p8069_p5)
}
  0x7a   :  { %172 = dma.hbm_to_vmem [thread:$0]  %s10422_s14, 16, %s170_s22, [#allocation22]  }
  0x7b   :  { %s8331_s25 = smov [#allocation24]   ;;  %s8073_s23 = scalar_lea.hbm %s10424_s16, 36864 }
  0x7c   :  { %s188_s27 = sshll.u32 %s8331_s25, 4  ;;  %p8074_p6 = scmp.ne.s32.totalorder %s10424_s16, %s8073_s23  ;;  %s189_s27 = int_to_ptr.vmem [resolvable:$true] %s188_s27 }
  0x7d   :  { %p8077_p7 = scmp.lt.u32.totalorder %s8073_s23, %s10424_s16 }
  0x7f   :  { %p8079_p8 = pnand %p8077_p7, %p8074_p6 }
  0x81   :  { %8082 = shalt.err (!%p8079_p8)
}
  0x82   :  { %s8083_s29 = scalar_lea.vmem %s189_s27, 36864  ;;  %p8088_p10 = scmp.lt.s32.totalorder %s189_s27, %s189_s27 }
  0x83   :  { %p8084_p9 = scmp.ne.s32.totalorder %s189_s27, %s8083_s29  ;;  %p8089_p11 = scmp.lt.s32.totalorder %s8083_s29, %s8083_s29 }
  0x85   :  { %p8090_p12 = por %p8089_p11, %p8088_p10 }
  0x87   :  { %p8091_p13 = pnand %p8090_p12, %p8084_p9 }
  0x89   :  { %8094 = shalt.err (!%p8091_p13)
}
  0x8a   :  { %s8332_s14 = smov 512   ;;  %s8333_s22 = smov 32  }
  0x8b   :  { %194 = dma.hbm_to_vmem [thread:$0]  %s10424_s16, 36864, %s189_s27, [#allocation25], %s8332_s14, %s8332_s14, %s8333_s22  }
  0x8c   :  { %s10456_s1 = sld [smem:[#allocation54_spill]] }
  0x92   :  { %s8095_s2 = scalar_lea.hbm %s10456_s1, 32 }
  0x93   :  { %p8096_p0 = scmp.ne.s32.totalorder %s10456_s1, %s8095_s2  ;;  %p8099_p1 = scmp.lt.u32.totalorder %s8095_s2, %s10456_s1 }
  0x95   :  { %p8101_p2 = pnand %p8099_p1, %p8096_p0 }
  0x97   :  { %8104 = shalt.err (!%p8101_p2)
}
  0x98   :  { %s8334_s10 = smov [#allocation2]   ;;  %s8335_s16 = smov [#allocation5]  }
  0x99   :  { %42 = dma.hbm_to_smem %s10456_s1, 32, %s8334_s10, [#allocation4]  }
  0x9a   :  { %s51_s27 = sshll.u32 %s8335_s16, 4  ;;  %s8336_s8 = smov [#allocation8]   ;;  %s52_s27 = int_to_ptr.vmem [resolvable:$true] %s51_s27 }
  0x9b   :  { %s73_s21 = sshll.u32 %s8336_s8, 4  ;;  %s10457_s14 = sld [smem:[#allocation56_spill]]  ;;  %s74_s21 = int_to_ptr.vmem [resolvable:$true] %s73_s21 }
  0xa1   :  { %s8105_s6 = scalar_lea.hbm %s10457_s14, 16 }
  0xa2   :  { %p8106_p3 = scmp.ne.s32.totalorder %s10457_s14, %s8105_s6  ;;  %p8109_p4 = scmp.lt.u32.totalorder %s8105_s6, %s10457_s14 }
  0xa4   :  { %p8111_p5 = pnand %p8109_p4, %p8106_p3 }
  0xa6   :  { %8114 = shalt.err (!%p8111_p5)
}
  0xa7   :  { %s8115_s1 = scalar_lea.vmem %s52_s27, 16  ;;  %s8119_s12 = scalar_lea.vmem %s52_s27, 32 }
  0xa8   :  { %p8116_p6 = scmp.ne.s32.totalorder %s52_s27, %s8115_s1  ;;  %p8120_p7 = scmp.lt.s32.totalorder %s52_s27, %s52_s27 }
  0xa9   :  { %p8121_p8 = scmp.lt.s32.totalorder %s8119_s12, %s8115_s1 }
  0xab   :  { %p8122_p9 = por %p8121_p8, %p8120_p7 }
  0xad   :  { %p8123_p10 = pnand %p8122_p9, %p8116_p6 }
  0xaf   :  { %8126 = shalt.err (!%p8123_p10)
}
  0xb0   :  { %54 = dma.hbm_to_vmem [thread:$0]  %s10457_s14, 16, %s52_s27, [#allocation3]  }
  0xb1   :  { %s8127_s23 = scalar_lea.hbm %s10413_s5, 16 }
  0xb2   :  { %p8128_p11 = scmp.ne.s32.totalorder %s10413_s5, %s8127_s23  ;;  %p8131_p12 = scmp.lt.u32.totalorder %s8127_s23, %s10413_s5 }
  0xb4   :  { %p8133_p13 = pnand %p8131_p12, %p8128_p11 }
  0xb6   :  { %8136 = shalt.err (!%p8133_p13)
}
  0xb7   :  { %s8137_s29 = scalar_lea.vmem %s74_s21, 16  ;;  %s8141_s6 = scalar_lea.vmem %s74_s21, 32 }
  0xb8   :  { %p8138_p0 = scmp.ne.s32.totalorder %s74_s21, %s8137_s29  ;;  %p8142_p1 = scmp.lt.s32.totalorder %s74_s21, %s74_s21 }
  0xb9   :  { %p8143_p2 = scmp.lt.s32.totalorder %s8141_s6, %s8137_s29 }
  0xbb   :  { %p8144_p3 = por %p8143_p2, %p8142_p1 }
  0xbd   :  { %p8145_p4 = pnand %p8144_p3, %p8138_p0 }
  0xbf   :  { %8148 = shalt.err (!%p8145_p4)
}
  0xc0   :  { %76 = dma.hbm_to_vmem [thread:$0]  %s10413_s5, 16, %s74_s21, [#allocation7]  }
  0xc1   :  { %s8337_s30 = smov [#allocation11]   ;;  %s8149_s1 = scalar_lea.hbm %s10415_s7, 1024 }
  0xc2   :  { %s92_s3 = sshll.u32 %s8337_s30, 4  ;;  %p8150_p5 = scmp.ne.s32.totalorder %s10415_s7, %s8149_s1  ;;  %s93_s3 = int_to_ptr.vmem [resolvable:$true] %s92_s3 }
  0xc3   :  { %p8153_p6 = scmp.lt.u32.totalorder %s8149_s1, %s10415_s7 }
  0xc5   :  { %p8155_p7 = pnand %p8153_p6, %p8150_p5 }
  0xc7   :  { %8158 = shalt.err (!%p8155_p7)
}
  0xc8   :  { %s8159_s10 = scalar_lea.vmem %s93_s3, 1024  ;;  %p8164_p9 = scmp.lt.s32.totalorder %s93_s3, %s93_s3 }
  0xc9   :  { %p8160_p8 = scmp.ne.s32.totalorder %s93_s3, %s8159_s10  ;;  %p8165_p10 = scmp.lt.s32.totalorder %s8159_s10, %s8159_s10 }
  0xcb   :  { %p8166_p11 = por %p8165_p10, %p8164_p9 }
  0xcd   :  { %p8167_p12 = pnand %p8166_p11, %p8160_p8 }
  0xcf   :  { %8170 = shalt.err (!%p8167_p12)
}
  0xd0   :  { %s8338_s5 = smov 64   ;;  %s8339_s21 = smov 4  }
  0xd1   :  { %98 = dma.hbm_to_vmem [thread:$0]  %s10415_s7, 1024, %s93_s3, [#allocation10], %s8338_s5, %s8338_s5, %s8339_s21  }
  0xd2   :  { %s8340_s16 = smov [#allocation14]   ;;  %s8341_s4 = smov [#allocation17]  }
  0xd3   :  { %s115_s8 = sshll.u32 %s8340_s16, 4  ;;  %s137_s29 = sshll.u32 %s8341_s4, 4  ;;  %s116_s8 = int_to_ptr.vmem [resolvable:$true] %s115_s8  ;;  %s138_s29 = int_to_ptr.vmem [resolvable:$true] %s137_s29 }
  0xd4   :  { %s8171_s14 = scalar_lea.hbm %s10417_s9, 16 }
  0xd5   :  { %p8172_p13 = scmp.ne.s32.totalorder %s10417_s9, %s8171_s14  ;;  %p8175_p0 = scmp.lt.u32.totalorder %s8171_s14, %s10417_s9 }
  0xd7   :  { %p8177_p1 = pnand %p8175_p0, %p8172_p13 }
  0xd9   :  { %8180 = shalt.err (!%p8177_p1)
}
  0xda   :  { %s8181_s7 = scalar_lea.vmem %s116_s8, 16  ;;  %s8185_s3 = scalar_lea.vmem %s116_s8, 32 }
  0xdb   :  { %p8182_p2 = scmp.ne.s32.totalorder %s116_s8, %s8181_s7  ;;  %p8186_p3 = scmp.lt.s32.totalorder %s116_s8, %s116_s8 }
  0xdc   :  { %p8187_p4 = scmp.lt.s32.totalorder %s8185_s3, %s8181_s7 }
  0xde   :  { %p8188_p5 = por %p8187_p4, %p8186_p3 }
  0xe0   :  { %p8189_p6 = pnand %p8188_p5, %p8182_p2 }
  0xe2   :  { %8192 = shalt.err (!%p8189_p6)
}
  0xe3   :  { %118 = dma.hbm_to_vmem [thread:$0]  %s10417_s9, 16, %s116_s8, [#allocation13]  }
  0xe4   :  { %s8193_s10 = scalar_lea.hbm %s10419_s11, 16 }
  0xe5   :  { %p8194_p7 = scmp.ne.s32.totalorder %s10419_s11, %s8193_s10  ;;  %p8197_p8 = scmp.lt.u32.totalorder %s8193_s10, %s10419_s11 }
  0xe7   :  { %p8199_p9 = pnand %p8197_p8, %p8194_p7 }
  0xe9   :  { %8202 = shalt.err (!%p8199_p9)
}
  0xea   :  { %s8203_s4 = scalar_lea.vmem %s138_s29, 16  ;;  %s8207_s6 = scalar_lea.vmem %s138_s29, 32 }
  0xeb   :  { %p8204_p10 = scmp.ne.s32.totalorder %s138_s29, %s8203_s4  ;;  %p8208_p11 = scmp.lt.s32.totalorder %s138_s29, %s138_s29 }
  0xec   :  { %p8209_p12 = scmp.lt.s32.totalorder %s8207_s6, %s8203_s4 }
  0xee   :  { %p8210_p13 = por %p8209_p12, %p8208_p11 }
  0xf0   :  { %p8211_p0 = pnand %p8210_p13, %p8204_p10 }
  0xf2   :  { %8214 = shalt.err (!%p8211_p0)
}
  0xf3   :  { %140 = dma.hbm_to_vmem [thread:$0]  %s10419_s11, 16, %s138_s29, [#allocation16]  }
  0xf4   :  { %s8342_s27 = smov [#allocation20]   ;;  %s8215_s2 = scalar_lea.hbm %s10421_s13, 10240 }
  0xf5   :  { %s156_s14 = sshll.u32 %s8342_s27, 4  ;;  %p8216_p1 = scmp.ne.s32.totalorder %s10421_s13, %s8215_s2  ;;  %s157_s14 = int_to_ptr.vmem [resolvable:$true] %s156_s14 }
  0xf6   :  { %p8219_p2 = scmp.lt.u32.totalorder %s8215_s2, %s10421_s13 }
  0xf8   :  { %p8221_p3 = pnand %p8219_p2, %p8216_p1 }
  0xfa   :  { %8224 = shalt.err (!%p8221_p3)
}
  0xfb   :  { %s8225_s24 = scalar_lea.vmem %s157_s14, 10240  ;;  %p8230_p5 = scmp.lt.s32.totalorder %s157_s14, %s157_s14 }
  0xfc   :  { %p8226_p4 = scmp.ne.s32.totalorder %s157_s14, %s8225_s24  ;;  %p8231_p6 = scmp.lt.s32.totalorder %s8225_s24, %s8225_s24 }
  0xfe   :  { %p8232_p7 = por %p8231_p6, %p8230_p5 }
 0x100   :  { %p8233_p8 = pnand %p8232_p7, %p8226_p4 }
 0x102   :  { %8236 = shalt.err (!%p8233_p8)
}
 0x103   :  { %s8343_s11 = smov 256   ;;  %s8344_s29 = smov 16  }
 0x104   :  { %162 = dma.hbm_to_vmem [thread:$0]  %s10421_s13, 10240, %s157_s14, [#allocation19], %s8343_s11, %s8343_s11, %s8344_s29  }
 0x105   :  { %s8345_s10 = smov [#allocation23]   ;;  %s8346_s23 = smov [#allocation26]  }
 0x106   :  { %s179_s21 = sshll.u32 %s8345_s10, 4  ;;  %s201_s28 = sshll.u32 %s8346_s23, 4  ;;  %s180_s21 = int_to_ptr.vmem [resolvable:$true] %s179_s21  ;;  %s202_s28 = int_to_ptr.vmem [resolvable:$true] %s201_s28 }
 0x107   :  { %s8237_s6 = scalar_lea.hbm %s10423_s15, 16 }
 0x108   :  { %p8238_p9 = scmp.ne.s32.totalorder %s10423_s15, %s8237_s6  ;;  %p8241_p10 = scmp.lt.u32.totalorder %s8237_s6, %s10423_s15 }
 0x10a   :  { %p8243_p11 = pnand %p8241_p10, %p8238_p9 }
 0x10c   :  { %8246 = shalt.err (!%p8243_p11)
}
 0x10d   :  { %s8247_s13 = scalar_lea.vmem %s180_s21, 16  ;;  %s8251_s14 = scalar_lea.vmem %s180_s21, 32 }
 0x10e   :  { %p8248_p12 = scmp.ne.s32.totalorder %s180_s21, %s8247_s13  ;;  %p8252_p13 = scmp.lt.s32.totalorder %s180_s21, %s180_s21 }
 0x10f   :  { %p8253_p0 = scmp.lt.s32.totalorder %s8251_s14, %s8247_s13 }
 0x111   :  { %p8254_p1 = por %p8253_p0, %p8252_p13 }
 0x113   :  { %p8255_p2 = pnand %p8254_p1, %p8248_p12 }
 0x115   :  { %8258 = shalt.err (!%p8255_p2)
}
 0x116   :  { %182 = dma.hbm_to_vmem [thread:$0]  %s10423_s15, 16, %s180_s21, [#allocation22]  }
 0x117   :  { %s8259_s3 = scalar_lea.hbm %s10425_s17, 16 }
 0x118   :  { %p8260_p3 = scmp.ne.s32.totalorder %s10425_s17, %s8259_s3  ;;  %p8263_p4 = scmp.lt.u32.totalorder %s8259_s3, %s10425_s17 }
 0x11a   :  { %p8265_p5 = pnand %p8263_p4, %p8260_p3 }
 0x11c   :  { %8268 = shalt.err (!%p8265_p5)
}
 0x11d   :  { %s8269_s25 = scalar_lea.vmem %s202_s28, 16  ;;  %s8273_s26 = scalar_lea.vmem %s202_s28, 32 }
 0x11e   :  { %p8270_p6 = scmp.ne.s32.totalorder %s202_s28, %s8269_s25  ;;  %p8274_p7 = scmp.lt.s32.totalorder %s202_s28, %s202_s28 }
 0x11f   :  { %p8275_p8 = scmp.lt.s32.totalorder %s8273_s26, %s8269_s25 }
 0x121   :  { %p8276_p9 = por %p8275_p8, %p8274_p7 }
 0x123   :  { %p8277_p10 = pnand %p8276_p9, %p8270_p6 }
 0x125   :  { %8280 = shalt.err (!%p8277_p10)
}
 0x126   :  { %204 = dma.hbm_to_vmem [thread:$0]  %s10425_s17, 16, %s202_s28, [#allocation25]  }
 0x127   :  { %s8347_s21 = smov [#allocation27]   ;;  %s8281_s6 = scalar_lea.hbm %s10426_s18, 16 }
 0x128   :  { %s211_s23 = sshll.u32 %s8347_s21, 4  ;;  %p8282_p11 = scmp.ne.s32.totalorder %s10426_s18, %s8281_s6  ;;  %s212_s23 = int_to_ptr.vmem [resolvable:$true] %s211_s23 }
 0x129   :  { %p8285_p12 = scmp.lt.u32.totalorder %s8281_s6, %s10426_s18 }
 0x12b   :  { %p8287_p13 = pnand %p8285_p12, %p8282_p11 }
 0x12d   :  { %8290 = shalt.err (!%p8287_p13)
}
 0x12e   :  { %s8291_s13 = scalar_lea.vmem %s212_s23, 16  ;;  %s8295_s17 = scalar_lea.vmem %s212_s23, 32 }
 0x12f   :  { %p8292_p0 = scmp.ne.s32.totalorder %s212_s23, %s8291_s13  ;;  %p8296_p1 = scmp.lt.s32.totalorder %s212_s23, %s212_s23 }
 0x130   :  { %p8297_p2 = scmp.lt.s32.totalorder %s8295_s17, %s8291_s13 }
 0x132   :  { %p8298_p3 = por %p8297_p2, %p8296_p1 }
 0x134   :  { %p8299_p4 = pnand %p8298_p3, %p8292_p0 }
 0x136   :  { %8302 = shalt.err (!%p8299_p4)
}
 0x137   :  { %214 = dma.hbm_to_vmem [thread:$0]  %s10426_s18, 16, %s212_s23, [#allocation28]  }
 0x138   :  { %8303 = dma.done.wait [#allocation4], 32  }
 0x139   :  { %8304 = vsyncadd [#allocation4], 4294967264 }
 0x13a   :  { %8305 = dma.done.wait [#allocation3], 16  }
 0x13b   :  { %8306 = vsyncadd [#allocation3], 4294967280 }
 0x13c   :  { %8307 = dma.done.wait [#allocation7], 32  }
 0x13d   :  { %8308 = vsyncadd [#allocation7], 4294967264 }
 0x13e   :  { %8309 = dma.done.wait [#allocation10], 1040  }
 0x13f   :  { %8310 = vsyncadd [#allocation10], 4294966256 }
 0x140   :  { %8311 = dma.done.wait [#allocation13], 32  }
 0x141   :  { %8312 = vsyncadd [#allocation13], 4294967264 }
 0x142   :  { %8313 = dma.done.wait [#allocation16], 3088  }
 0x143   :  { %8314 = vsyncadd [#allocation16], 4294964208 }
 0x144   :  { %8315 = dma.done.wait [#allocation19], 10256  }
 0x145   :  { %8316 = vsyncadd [#allocation19], 4294957040 }
 0x146   :  { %8317 = dma.done.wait [#allocation22], 32  }
 0x147   :  { %8318 = vsyncadd [#allocation22], 4294967264 }
 0x148   :  { %8319 = dma.done.wait [#allocation25], 36880  }
 0x149   :  { %8320 = vsyncadd [#allocation25], 4294930416 }
 0x14a   :  { %8321 = dma.done.wait [#allocation28], 16  }
 0x14b   :  { %8322 = vsyncadd [#allocation28], 4294967280 }
 0x14c   :  { %268 = sfence }
 0x14d   :  { %s299_s18 = sld [smem:[#allocation2]]  ;;  %s6604_s0 = sld [smem:[#allocation2 + $0x1]]  ;;  %vm407_vm0 = vcmask 261120   ;;  %vm491_vm2 = vcmask 1046528   ;;  %vm478_vm3 = vcmask 1040384   ;;  %vm544_vm7 = vcmask 523264  }
 0x14e   :  { %s8670_s2 = sld [smem:[#allocation2 + $0x2]]  ;;  %s8672_s1 = sld [smem:[#allocation2 + $0x3]]  ;;  %vm599_vm8 = vcmask 785408  }
 0x14f   :  { %s10458_s12 = sld [smem:[#allocation55_spill]]  ;;  %s8681_s11 = sld [smem:[#allocation2 + $0x5]] }
 0x150   :  { %s8679_s24 = sld [smem:[#allocation2 + $0x4]]  ;;  %s8698_s23 = sld [smem:[#allocation2 + $0x6]] }
 0x151   :  { %s8715_s30 = sld [smem:[#allocation2 + $0x7]]  ;;  %s8727_s7 = sld [smem:[#allocation2 + $0x80]] }
 0x152   :  { %s8729_s3 = sld [smem:[#allocation2 + $0x81]]  ;;  %s8750_s10 = sld [smem:[#allocation2 + $0x82]] }
 0x153   :  { %v302_v7 = vstv %s299_s18  ;;  %v308_v8 = vstv %s6604_s0  ;;  %s8764_s9 = sld [smem:[#allocation2 + $0x83]]  ;;  %s8766_s8 = sld [smem:[#allocation2 + $0x84]] }
 0x154   :  { %v316_v18 = vstv %s8670_s2  ;;  %v324_v19 = vstv %s8672_s1  ;;  %s8780_s17 = sld [smem:[#allocation2 + $0x85]]  ;;  %s8782_s28 = sld [smem:[#allocation2 + $0x86]] }
 0x155   :  { %v8677_v0 = vld [vmem:[%s10458_s12] sm:$0xff]  ;;  %v8686_v1 = vld [vmem:[%s10458_s12 + $0x8] sm:$0xff]  ;;  %v8691_v2 = vld [vmem:[%s10458_s12 + $0x10] sm:$0xff]  ;;  %v340_v31 = vstv %s8681_s11  ;;  %s10459_s0 = sld [smem:[#allocation58_spill]] }
 0x156   :  { %v8696_v3 = vld [vmem:[%s10458_s12 + $0x18] sm:$0xff]  ;;  %v8703_v4 = vld [vmem:[%s10458_s12 + $0x20] sm:$0xff]  ;;  %v8708_v5 = vld [vmem:[%s10458_s12 + $0x28] sm:$0xff]  ;;  %v303_v11 = vmul.f32 %v302_v7, %v8677_v0  ;;  %v304_v12 = vmul.f32 %v302_v7, %v8686_v1  ;;  %v309_v13 = vmul.f32 %v308_v8, %v8691_v2  ;;  %v332_v30 = vstv %s8679_s24  ;;  %s8802_s24 = sld [smem:[#allocation2 + $0x87]] }
 0x157   :  { %v8713_v6 = vld [vmem:[%s10458_s12 + $0x30] sm:$0xff]  ;;  %v8720_v9 = vld [vmem:[%s10458_s12 + $0x38] sm:$0xff]  ;;  %v8725_v10 = vld [vmem:[%s10458_s12 + $0x40] sm:$0xff]  ;;  %v310_v14 = vmul.f32 %v308_v8, %v8696_v3  ;;  %v317_v24 = vmul.f32 %v316_v18, %v8703_v4  ;;  %v318_v25 = vmul.f32 %v316_v18, %v8708_v5  ;;  %v348_v40 = vstv %s8698_s23 }
 0x158   :  { %v8738_v15 = vld [vmem:[%s10458_s12 + $0x48] sm:$0xff]  ;;  %v8743_v16 = vld [vmem:[%s10458_s12 + $0x50] sm:$0xff]  ;;  %v8748_v17 = vld [vmem:[%s10458_s12 + $0x58] sm:$0xff]  ;;  %v311_v22 = vadd.f32 %v309_v13, %v303_v11  ;;  %v325_v28 = vmul.f32 %v324_v19, %v8713_v6  ;;  %v326_v29 = vmul.f32 %v324_v19, %v8720_v9  ;;  %v333_v35 = vmul.f32 %v332_v30, %v8725_v10 }
 0x159   :  { %v8757_v20 = vld [vmem:[%s10458_s12 + $0x60] sm:$0xff]  ;;  %v8762_v21 = vld [vmem:[%s10458_s12 + $0x68] sm:$0xff]  ;;  %v312_v23 = vadd.f32 %v310_v14, %v304_v12  ;;  %v8773_v26 = vld [vmem:[%s10458_s12 + $0x70] sm:$0xff]  ;;  %v334_v36 = vmul.f32 %v332_v30, %v8738_v15  ;;  %v341_v38 = vmul.f32 %v340_v31, %v8743_v16  ;;  %v342_v39 = vmul.f32 %v340_v31, %v8748_v17 }
 0x15a   :  { %v8778_v27 = vld [vmem:[%s10458_s12 + $0x78] sm:$0xff]  ;;  %v319_v33 = vadd.f32 %v317_v24, %v311_v22  ;;  %v356_v41 = vstv %s8715_s30  ;;  %v349_v44 = vmul.f32 %v348_v40, %v8757_v20  ;;  %v350_v45 = vmul.f32 %v348_v40, %v8762_v21 }
 0x15b   :  { %v7683_v32 = vld [vmem:[%s10459_s0] sm:$0xff]   ;;  %v320_v34 = vadd.f32 %v318_v25, %v312_v23  ;;  %v7684_v37 = vld [vmem:[%s10459_s0 + $0x8] sm:$0xff]   ;;  %v357_v46 = vmul.f32 %v356_v41, %v8773_v26  ;;  %v358_v47 = vmul.f32 %v356_v41, %v8778_v27  ;;  %v362_v48 = vstv %s8727_s7  ;;  %v7685_v50 = vld [vmem:[%s10459_s0 + $0x10] sm:$0xff]  }
 0x15c   :  { %7247 = vmatprep.subr.bf16.mxu0 %v7683_v32  ;;  %v327_v42 = vadd.f32 %v325_v28, %v319_v33  ;;  %v366_v49 = vstv %s8729_s3  ;;  %v363_v53 = vmul.f32 %v362_v48, %v8677_v0  ;;  %v364_v54 = vmul.f32 %v362_v48, %v8686_v1  ;;  %v7686_v59 = vld [vmem:[%s10459_s0 + $0x18] sm:$0xff]  }
 0x15d   :  { %v328_v43 = vadd.f32 %v326_v29, %v320_v34  ;;  %7248 = vmatpush3.bf16.msra.mxu0 %v7683_v32  ;;  %v367_v55 = vmul.f32 %v366_v49, %v8691_v2  ;;  %v368_v56 = vmul.f32 %v366_v49, %v8696_v3  ;;  %v372_v57 = vstv %s8750_s10  ;;  %s8348_s10 = smov 96  }
 0x15e   :  { %7249 = vmatprep.subr.bf16.mxu0 %v7684_v37  ;;  %v335_v51 = vadd.f32 %v333_v35, %v327_v42  ;;  %v378_v58 = vstv %s8764_s9  ;;  %v373_v62 = vmul.f32 %v372_v57, %v8703_v4  ;;  %v374_v63 = vmul.f32 %v372_v57, %v8708_v5 }
 0x15f   :  { %v336_v52 = vadd.f32 %v334_v36, %v328_v43  ;;  %v369_v0 = vadd.f32 %v367_v55, %v363_v53  ;;  %v370_v1 = vadd.f32 %v368_v56, %v364_v54  ;;  %v379_v2 = vmul.f32 %v378_v58, %v8713_v6 }
 0x160   :  { %v343_v60 = vadd.f32 %v341_v38, %v335_v51  ;;  %v380_v3 = vmul.f32 %v378_v58, %v8720_v9  ;;  %v384_v11 = vstv %s8766_s8  ;;  %v390_v12 = vstv %s8780_s17 }
 0x161   :  { %v344_v61 = vadd.f32 %v342_v39, %v336_v52  ;;  %7250 = vmatpush3.bf16.msra.mxu0 %v7684_v37  ;;  %v375_v13 = vadd.f32 %v373_v62, %v369_v0  ;;  %v376_v14 = vadd.f32 %v374_v63, %v370_v1  ;;  %v385_v4 = vmul.f32 %v384_v11, %v8725_v10 }
 0x162   :  { %7251 = vmatprep.subr.bf16.mxu0 %v7685_v50  ;;  %v351_v7 = vadd.f32 %v349_v44, %v343_v60  ;;  %v386_v5 = vmul.f32 %v384_v11, %v8738_v15  ;;  %v391_v6 = vmul.f32 %v390_v12, %v8743_v16  ;;  %v392_v9 = vmul.f32 %v390_v12, %v8748_v17 }
 0x163   :  { %v352_v8 = vadd.f32 %v350_v45, %v344_v61  ;;  %v381_v22 = vadd.f32 %v379_v2, %v375_v13  ;;  %v382_v23 = vadd.f32 %v380_v3, %v376_v14  ;;  %v396_v24 = vstv %s8782_s28  ;;  %v443_v13 = vld [vmem:[#allocation5] sm:$0x1] }
 0x164   :  { %v8828_v18 = vadd.f32 %v357_v46, %v351_v7  ;;  %v402_v25 = vstv %s8802_s24  ;;  %v397_v10 = vmul.f32 %v396_v24, %v8757_v20  ;;  %v398_v15 = vmul.f32 %v396_v24, %v8762_v21 }
 0x165   :  { %v8830_v19 = vadd.f32 %v358_v47, %v352_v8  ;;  %7252 = vmatpush3.bf16.msra.mxu0 %v7685_v50  ;;  %v387_v28 = vadd.f32 %v385_v4, %v381_v22  ;;  %v388_v29 = vadd.f32 %v386_v5, %v382_v23  ;;  %v403_v30 = vmul.f32 %v402_v25, %v8773_v26  ;;  %v447_v4 = vld [vmem:[#allocation6] sm:$0x1] }
 0x166   :  { %7253 = vmatprep.subr.bf16.mxu0 %v7686_v59  ;;  %v404_v31 = vmul.f32 %v402_v25, %v8778_v27  ;;  %v421_v16 = vmul.f32 %v8828_v18, %v8828_v18  ;;  %v408_v34 = vsel %vm407_vm0, %v8828_v18, 0.0 }
 0x167   :  { %v422_v17 = vmul.f32 %v8830_v19, %v8830_v19  ;;  %v393_v32 = vadd.f32 %v391_v6, %v387_v28  ;;  %v394_v33 = vadd.f32 %v392_v9, %v388_v29  ;;  %v409_v20 = vsel %vm407_vm0, %v8830_v19, 0.0  ;;  %v7687_v29 = vld [vmem:[%s10459_s0 + $0x20] sm:$0xff]  }
 0x168   :  { %v425_v26 = vsel %vm407_vm0, %v421_v16, 0.0  ;;  %v410_v36 = vadd.f32 %v409_v20, %v408_v34 }
 0x169   :  { %7254 = vmatpush3.bf16.msra.mxu0 %v7686_v59  ;;  %v399_v21 = vadd.f32 %v397_v10, %v393_v32  ;;  %v400_v35 = vadd.f32 %v398_v15, %v394_v33  ;;  %v426_v27 = vsel %vm407_vm0, %v422_v17, 0.0  ;;  %v270_v59 = vlaneseq }
 0x16a   :  { %v427_v39 = vadd.f32 %v426_v27, %v425_v26  ;;  %7255 = vmatprep.subr.bf16.mxu0 %v7687_v29 }
 0x16b   :  { %v405_v37 = vadd.f32 %v403_v30, %v399_v21  ;;  %v406_v38 = vadd.f32 %v404_v31, %v400_v35  ;;  %v8854_v0 = vshrl.u32 %v270_v59, 7 }
 0x16d   :  { %v411_v40 = vsel %vm407_vm0, %v405_v37, 0.0  ;;  %v413_v41 = vsel %vm407_vm0, %v406_v38, 0.0  ;;  %v423_v42 = vmul.f32 %v405_v37, %v405_v37  ;;  %v424_v43 = vmul.f32 %v406_v38, %v406_v38  ;;  %10460 = vst [vmem:[#allocation39_spill] sm:$0xff] %v8854_v0  ;;  %7256 = vmatpush3.bf16.msra.mxu0 %v7687_v29 }
 0x16e   :  { %v412_v44 = vadd.f32 %v411_v40, %v410_v36  ;;  %v8857_v7 = vsub.s32 0, %v8854_v0  ;;  %v8860_v11 = vadd.s32 8, %v8854_v0  ;;  %vm275_vm5 = vcmp.eq.s32.totalorder %v8854_v0, 0 }
 0x16f   :  { %v428_v45 = vsel %vm407_vm0, %v423_v42, 0.0  ;;  %v430_v46 = vsel %vm407_vm0, %v424_v43, 0.0 }
 0x170   :  { %v414_v47 = vadd.f32 %v413_v41, %v412_v44  ;;  %v429_v48 = vadd.f32 %v428_v45, %v427_v39  ;;  %10461 = vst [vmem:[#allocation40_spill] sm:$0xff] %v8860_v11  ;;  %vm280_vm1 = vcmp.eq.s32.totalorder %v8860_v11, 15 }
 0x172   :  { %v415_v49 = vrot.slane %v414_v47, 4  ;;  %v431_v50 = vadd.f32 %v430_v46, %v429_v48 }
 0x174   :  { %v416_v51 = vadd.f32 %v415_v49, %v414_v47  ;;  %v432_v52 = vrot.slane %v431_v50, 4 }
 0x176   :  { %v417_v53 = vrot.slane %v416_v51, 2  ;;  %v433_v54 = vadd.f32 %v432_v52, %v431_v50  ;;  %v8893_v52 = vadd.s32 16, %v8854_v0 }
 0x178   :  { %v418_v55 = vadd.f32 %v417_v53, %v416_v51  ;;  %v434_v56 = vrot.slane %v433_v54, 2  ;;  %10463 = vst [vmem:[#allocation42_spill] sm:$0xff] %v8893_v52  ;;  %vm285_vm6 = vcmp.eq.s32.totalorder %v8893_v52, 16 }
 0x17a   :  { %v419_v57 = vrot.slane %v418_v55, 1  ;;  %v435_v58 = vadd.f32 %v434_v56, %v433_v54 }
 0x17c   :  { %v420_v60 = vadd.f32 %v419_v57, %v418_v55  ;;  %v436_v61 = vrot.slane %v435_v58, 1 }
 0x17e   :  { %v437_v62 = vadd.f32 %v436_v61, %v435_v58  ;;  %v438_v63 = vmul.f32 0.03125, %v420_v60 }
 0x180   :  { %v439_v1 = vmul.f32 0.03125, %v437_v62  ;;  %v440_v2 = vmul.f32 %v438_v63, %v438_v63 }
 0x182   :  { %v441_v3 = vsub.f32 %v439_v1, %v440_v2 }
 0x184   :  { %v442_v8 = vmax.f32 %v441_v3, 0.0 }
 0x186   :  { %v444_v12 = vadd.f32 1e-05, %v442_v8 }
 0x188   :  { %7921 = vrsqrt.f32 %v444_v12 }
 0x192   :  { %v7922_v14 = vpop.eup %7921 }
 0x193   :  { %v446_v5 = vmul.f32 %v7922_v14, %v443_v13 }
 0x195   :  { %v448_v6 = vmul.f32 %v446_v5, %v438_v63  ;;  %v454_v9 = vrot.slane %v446_v5, %v8857_v7 }
 0x197   :  { %v449_v22 = vsub.f32 %v447_v4, %v448_v6  ;;  %v456_v23 = vmul.f32 %v454_v9, %v8828_v18  ;;  %v457_v24 = vmul.f32 %v454_v9, %v8830_v19  ;;  %v458_v25 = vmul.f32 %v454_v9, %v405_v37  ;;  %v7688_v19 = vld [vmem:[%s10459_s0 + $0x28] sm:$0xff]  }
 0x198   :  { %v459_v28 = vmul.f32 %v454_v9, %v406_v38  ;;  %v8871_v18 = vadd.s32 24, %v8854_v0  ;;  %7257 = vmatprep.subr.bf16.mxu0 %v7688_v19 }
 0x199   :  { %v464_v10 = vrot.slane %v449_v22, %v8857_v7  ;;  %7258 = vmatpush3.bf16.msra.mxu0 %v7688_v19 }
 0x19a   :  { %10462 = vst [vmem:[#allocation41_spill] sm:$0xff] %v8871_v18  ;;  %vm294_vm4 = vcmp.eq.s32.totalorder %v8871_v18, 31 }
 0x19b   :  { %v466_v15 = vadd.f32 %v464_v10, %v456_v23  ;;  %v467_v30 = vadd.f32 %v464_v10, %v457_v24  ;;  %v468_v31 = vadd.f32 %v464_v10, %v458_v25  ;;  %v469_v16 = vadd.f32 %v464_v10, %v459_v28 }
 0x19d   :  { %v470_v17 = vmax.f32 %v466_v15, 0.0  ;;  %v471_v32 = vmax.f32 %v467_v30, 0.0  ;;  %v472_v33 = vmax.f32 %v468_v31, 0.0  ;;  %v473_v34 = vmax.f32 %v469_v16, 0.0 }
 0x19f   :  { %v480_v20 = vrot.slane %v471_v32, 7  ;;  %v7403_v21 = vpack.i.bf16 %v471_v32, %v470_v17  ;;  %v479_v35 = vrot.slane %v470_v17, 7  ;;  %v492_v26 = vrot.slane %v470_v17, 1 }
 0x1a0   :  { %v493_v27 = vrot.slane %v471_v32, 1  ;;  %v495_v36 = vrot.slane %v472_v33, 1  ;;  %v484_v37 = vrot.slane %v473_v34, 7  ;;  %v7408_v38 = vpack.i.bf16 %v473_v34, %v472_v33 }
 0x1a1   :  { %7404 = vrot.lane.b32.xlu0 %v7403_v21, %s8333_s22  ;;  %v497_v39 = vrot.slane %v473_v34, 1  ;;  %v482_v40 = vrot.slane %v472_v33, 7  ;;  %v481_v41 = vsel %vm478_vm3, %v479_v35, %v480_v20  ;;  %v490_v53 = vsel %vm478_vm3, 0.0, %v479_v35 }
 0x1a2   :  { %v494_v42 = vsel %vm491_vm2, %v492_v26, %v493_v27  ;;  %v496_v43 = vsel %vm491_vm2, %v493_v27, %v495_v36  ;;  %v504_v57 = vsel %vm275_vm5, 0.0, %v490_v53 }
 0x1a3   :  { %v509_v44 = vsel %vm280_vm1, 0.0, %v496_v43  ;;  %v498_v45 = vsel %vm491_vm2, %v495_v36, %v497_v39  ;;  %v503_v46 = vsel %vm491_vm2, %v497_v39, 0.0  ;;  %v483_v47 = vsel %vm478_vm3, %v480_v20, %v482_v40 }
 0x1a4   :  { %v7413_v48 = vpack.i.bf16 %v509_v44, %v494_v42  ;;  %v511_v49 = vsel %vm294_vm4, 0.0, %v503_v46  ;;  %v485_v50 = vsel %vm478_vm3, %v482_v40, %v484_v37  ;;  %v506_v3 = vsel %vm285_vm6, 0.0, %v483_v47 }
 0x1a5   :  { %7409 = vrot.lane.b32.xlu0 %v7408_v38, %s8333_s22  ;;  %v7418_v51 = vpack.i.bf16 %v511_v49, %v498_v45 }
 0x1a6   :  { %7414 = vrot.lane.b32.xlu1 %v7413_v48, %s8338_s5 }
 0x1aa   :  { %7419 = vrot.lane.b32.xlu1 %v7418_v51, %s8338_s5 }
 0x213   :  { %v7405_v54 = vpop.permute.xlu0 %7404 }
 0x214   :  { %v7407_v55 = vunpack.i.h.bf16 %v7405_v54  ;;  %v7406_v56 = vunpack.i.l.bf16 %v7405_v54 }
 0x216   :  { %v540_v62 = vsel %vm407_vm0, %v504_v57, %v7406_v56  ;;  %v541_v63 = vsel %vm407_vm0, %v481_v41, %v7407_v55 }
 0x217   :  { %v7410_v58 = vpop.permute.xlu0 %7409 }
 0x218   :  { %v7415_v59 = vpop.permute.xlu1 %7414  ;;  %v7412_v60 = vunpack.i.h.bf16 %v7410_v58  ;;  %v7411_v61 = vunpack.i.l.bf16 %v7410_v58 }
 0x219   :  { %v7417_v1 = vunpack.i.h.bf16 %v7415_v59  ;;  %v7416_v2 = vunpack.i.l.bf16 %v7415_v59 }
 0x21a   :  { %v543_v13 = vsel %vm407_vm0, %v485_v50, %v7412_v60  ;;  %v542_v14 = vsel %vm407_vm0, %v506_v3, %v7411_v61  ;;  %v704_v3 = vld [vmem:[#allocation9] sm:$0x1] }
 0x21b   :  { %v545_v8 = vsel %vm544_vm7, %v540_v62, %v7416_v2  ;;  %v546_v12 = vsel %vm544_vm7, %v541_v63, %v7417_v1  ;;  %v700_v63 = vld [vmem:[#allocation8] sm:$0x1] }
 0x21c   :  { %v7420_v4 = vpop.permute.xlu1 %7419  ;;  %v549_v5 = vpack.c.bf16 %v546_v12, %v545_v8 }
 0x21d   :  { %v7422_v6 = vunpack.i.h.bf16 %v7420_v4  ;;  %v7421_v9 = vunpack.i.l.bf16 %v7420_v4  ;;  %v7689_v4 = vld [vmem:[#allocation11] sm:$0xff]  }
 0x21e   :  { %7259 = vmatprep.mubr.msk.bf16.mxu0 %vm599_vm8, %v549_v5  ;;  %v7690_v5 = vld [vmem:[#allocation11 + $0x8] sm:$0xff]   ;;  %7263 = vmatprep.subr.bf16.mxu1 %v7689_v4 }
 0x21f   :  { %v548_v22 = vsel %vm544_vm7, %v543_v13, %v7422_v6  ;;  %v547_v23 = vsel %vm544_vm7, %v542_v14, %v7421_v9  ;;  %7264 = vmatpush3.bf16.msra.mxu1 %v7689_v4  ;;  %v7691_v6 = vld [vmem:[#allocation11 + $0x10] sm:$0xff]   ;;  %v7692_v9 = vld [vmem:[#allocation11 + $0x18] sm:$0xff]  }
 0x220   :  { %v550_v24 = vpack.c.bf16 %v548_v22, %v547_v23  ;;  %7265 = vmatprep.subr.bf16.mxu1 %v7690_v5  ;;  %v7693_v22 = vld [vmem:[#allocation11 + $0x20] sm:$0xff]  }
 0x222   :  { %7260 = vmatmul.mubr.msk.bf16.vlgmr.msra.gmra.mrb[0].mxu0 %vm599_vm8, %v550_v24 }
 0x223   :  { %7266 = vmatpush3.bf16.msra.mxu1 %v7690_v5 }
 0x224   :  { %7267 = vmatprep.subr.bf16.mxu1 %v7691_v6 }
 0x227   :  { %7268 = vmatpush3.bf16.msra.mxu1 %v7691_v6 }
 0x228   :  { %7269 = vmatprep.subr.bf16.mxu1 %v7692_v9 }
 0x22b   :  { %7270 = vmatpush3.bf16.msra.mxu1 %v7692_v9 }
 0x22c   :  { %7271 = vmatprep.subr.bf16.mxu1 %v7693_v22 }
 0x22f   :  { %7272 = vmatpush3.bf16.msra.mxu1 %v7693_v22 }
 0x2f5   :  { %v8912_v25 = vpop.f32.mrb[0].mxu0 }
 0x2f6   :  { %v8914_v28 = vpop.f32.mrb[1].mxu0  ;;  %v670_v30 = vmul.f32 %v8912_v25, %v8912_v25  ;;  %v658_v32 = vsel %vm544_vm7, %v8912_v25, 0.0 }
 0x2f7   :  { %v668_v29 = vmul.f32 %v8914_v28, %v8914_v28  ;;  %v8918_v10 = vpop.f32.mrb[2].mxu0  ;;  %v655_v31 = vsel %vm544_vm7, %v8914_v28, 0.0 }
 0x2f8   :  { %v8920_v15 = vpop.f32.mrb[3].mxu0  ;;  %v671_v34 = vmul.f32 %v8918_v10, %v8918_v10  ;;  %v675_v26 = vsel %vm544_vm7, %v670_v30, 0.0  ;;  %v660_v27 = vsel %vm544_vm7, %v8918_v10, 0.0 }
 0x2f9   :  { %v656_v16 = vsel %vm544_vm7, %v8920_v15, 0.0  ;;  %v669_v19 = vmul.f32 %v8920_v15, %v8920_v15  ;;  %v672_v33 = vsel %vm544_vm7, %v668_v29, 0.0  ;;  %v7694_v29 = vld [vmem:[#allocation11 + $0x28] sm:$0xff]  }
 0x2fa   :  { %v657_v17 = vadd.f32 %v656_v16, %v655_v31  ;;  %v677_v38 = vsel %vm544_vm7, %v671_v34, 0.0  ;;  %7273 = vmatprep.subr.bf16.mxu1 %v7694_v29 }
 0x2fb   :  { %v673_v20 = vsel %vm544_vm7, %v669_v19, 0.0  ;;  %7274 = vmatpush3.bf16.msra.mxu1 %v7694_v29 }
 0x2fc   :  { %v659_v21 = vadd.f32 %v658_v32, %v657_v17  ;;  %v674_v35 = vadd.f32 %v673_v20, %v672_v33 }
 0x2fe   :  { %v661_v36 = vadd.f32 %v660_v27, %v659_v21  ;;  %v676_v37 = vadd.f32 %v675_v26, %v674_v35  ;;  %v7695_v27 = vld [vmem:[#allocation11 + $0x30] sm:$0xff]  }
 0x2ff   :  { %7275 = vmatprep.subr.bf16.mxu1 %v7695_v27 }
 0x300   :  { %v662_v39 = vrot.slane %v661_v36, 4  ;;  %v678_v40 = vadd.f32 %v677_v38, %v676_v37  ;;  %7276 = vmatpush3.bf16.msra.mxu1 %v7695_v27 }
 0x302   :  { %v663_v41 = vadd.f32 %v662_v39, %v661_v36  ;;  %v679_v42 = vrot.slane %v678_v40, 4  ;;  %v7696_v36 = vld [vmem:[#allocation11 + $0x38] sm:$0xff]  }
 0x303   :  { %7277 = vmatprep.subr.bf16.mxu1 %v7696_v36 }
 0x304   :  { %v664_v43 = vrot.slane %v663_v41, 2  ;;  %v680_v44 = vadd.f32 %v679_v42, %v678_v40  ;;  %7278 = vmatpush3.bf16.msra.mxu1 %v7696_v36 }
 0x306   :  { %v665_v45 = vadd.f32 %v664_v43, %v663_v41  ;;  %v681_v46 = vrot.slane %v680_v44, 2 }
 0x308   :  { %v666_v47 = vrot.slane %v665_v45, 1  ;;  %v682_v48 = vadd.f32 %v681_v46, %v680_v44 }
 0x30a   :  { %v667_v49 = vadd.f32 %v666_v47, %v665_v45  ;;  %v683_v50 = vrot.slane %v682_v48, 1 }
 0x30c   :  { %686 = vrot.lane.b32.xlu0 %v667_v49, %s8348_s10  ;;  %v684_v51 = vadd.f32 %v683_v50, %v682_v48 }
 0x30e   :  { %691 = vrot.lane.b32.xlu1 %v684_v51, %s8348_s10 }
 0x37e   :  { %v687_v53 = vpop.permute.xlu0 %686 }
 0x37f   :  { %v689_v54 = vadd.f32 %v687_v53, %v667_v49 }
 0x380   :  { %v692_v55 = vpop.permute.xlu1 %691 }
 0x381   :  { %v695_v56 = vmul.f32 0.015625, %v689_v54  ;;  %v694_v57 = vadd.f32 %v692_v55, %v684_v51 }
 0x383   :  { %v697_v58 = vmul.f32 %v695_v56, %v695_v56  ;;  %v696_v59 = vmul.f32 0.015625, %v694_v57 }
 0x385   :  { %v698_v60 = vsub.f32 %v696_v59, %v697_v58 }
 0x387   :  { %v699_v61 = vmax.f32 %v698_v60, 0.0 }
 0x389   :  { %v701_v62 = vadd.f32 1e-05, %v699_v61 }
 0x38b   :  { %7923 = vrsqrt.f32 %v701_v62 }
 0x395   :  { %v7924_v1 = vpop.eup %7923 }
 0x396   :  { %v703_v2 = vmul.f32 %v7924_v1, %v700_v63 }
 0x398   :  { %v711_v8 = vrot.slane %v703_v2, %v8857_v7  ;;  %v705_v12 = vmul.f32 %v703_v2, %v695_v56 }
 0x39a   :  { %712 = vrot.lane.b32.xlu0 %v711_v8, %s8333_s22  ;;  %v706_v13 = vsub.f32 %v704_v3, %v705_v12 }
 0x39c   :  { %v720_v14 = vrot.slane %v706_v13, %v8857_v7 }
 0x39e   :  { %721 = vrot.lane.b32.xlu1 %v720_v14, %s8333_s22 }
 0x40c   :  { %v713_v23 = vpop.permute.xlu0 %712 }
 0x40d   :  { %v715_v24 = vsel %vm407_vm0, %v703_v2, %v713_v23 }
 0x40e   :  { %v728_v30 = vrot.slane %v715_v24, %v8857_v7 }
 0x410   :  { %v722_v31 = vpop.permute.xlu1 %721  ;;  %v731_v19 = vmul.f32 %v8912_v25, %v728_v30  ;;  %v732_v32 = vmul.f32 %v8918_v10, %v728_v30  ;;  %v729_v33 = vmul.f32 %v728_v30, %v8914_v28  ;;  %v730_v34 = vmul.f32 %v728_v30, %v8920_v15 }
 0x411   :  { %v724_v16 = vsel %vm407_vm0, %v706_v13, %v722_v31 }
 0x412   :  { %v736_v17 = vrot.slane %v724_v16, %v8857_v7 }
 0x414   :  { %v739_v20 = vadd.f32 %v736_v17, %v731_v19  ;;  %v740_v21 = vadd.f32 %v736_v17, %v732_v32  ;;  %v737_v35 = vadd.f32 %v736_v17, %v729_v33  ;;  %v738_v26 = vadd.f32 %v736_v17, %v730_v34 }
 0x416   :  { %v743_v37 = vmax.f32 %v739_v20, 0.0  ;;  %v744_v38 = vmax.f32 %v740_v21, 0.0  ;;  %v741_v39 = vmax.f32 %v737_v35, 0.0  ;;  %v742_v40 = vmax.f32 %v738_v26, 0.0 }
 0x418   :  { %v7428_v25 = vpack.i.bf16 %v744_v38, %v743_v37  ;;  %v7423_v41 = vpack.i.bf16 %v742_v40, %v741_v39  ;;  %v750_v42 = vrot.slane %v742_v40, 7  ;;  %v752_v10 = vrot.slane %v743_v37, 7 }
 0x419   :  { %v754_v28 = vrot.slane %v744_v38, 7  ;;  %v749_v43 = vrot.slane %v741_v39, 7  ;;  %v772_v15 = vrot.slane %v743_v37, 1  ;;  %v774_v44 = vrot.slane %v744_v38, 1 }
 0x41a   :  { %7429 = vrot.lane.b32.xlu1 %v7428_v25, %s8333_s22  ;;  %7424 = vrot.lane.b32.xlu0 %v7423_v41, %s8333_s22  ;;  %v753_v45 = vsel %vm478_vm3, %v750_v42, %v752_v10  ;;  %v769_v46 = vrot.slane %v741_v39, 1  ;;  %v770_v47 = vrot.slane %v742_v40, 1 }
 0x41b   :  { %v755_v48 = vsel %vm478_vm3, %v752_v10, %v754_v28  ;;  %v751_v49 = vsel %vm478_vm3, %v749_v43, %v750_v42  ;;  %v775_v50 = vsel %vm491_vm2, %v772_v15, %v774_v44  ;;  %v780_v51 = vsel %vm491_vm2, %v774_v44, 0.0 }
 0x41c   :  { %v7438_v53 = vpack.i.bf16 %v755_v48, %v753_v45  ;;  %v7433_v54 = vpack.i.bf16 %v751_v49, %v749_v43  ;;  %v788_v55 = vsel %vm294_vm4, 0.0, %v780_v51  ;;  %v771_v56 = vsel %vm491_vm2, %v769_v46, %v770_v47 }
 0x41d   :  { %v7448_v57 = vpack.i.bf16 %v788_v55, %v775_v50  ;;  %v773_v58 = vsel %vm491_vm2, %v770_v47, %v772_v15 }
 0x41e   :  { %7439 = vrot.lane.b32.xlu1 %v7438_v53, %s8348_s10  ;;  %7434 = vrot.lane.b32.xlu0 %v7433_v54, %s8348_s10  ;;  %v786_v59 = vsel %vm280_vm1, 0.0, %v773_v58 }
 0x41f   :  { %v7443_v60 = vpack.i.bf16 %v786_v59, %v771_v56 }
 0x422   :  { %7449 = vrot.lane.b32.xlu1 %v7448_v57, %s8348_s10  ;;  %7444 = vrot.lane.b32.xlu0 %v7443_v60, %s8348_s10 }
 0x48c   :  { %v7430_v61 = vpop.permute.xlu1 %7429  ;;  %v7425_v62 = vpop.permute.xlu0 %7424 }
 0x48d   :  { %v7432_v13 = vunpack.i.h.bf16 %v7430_v61  ;;  %v7431_v5 = vunpack.i.l.bf16 %v7430_v61  ;;  %v7427_v6 = vunpack.i.h.bf16 %v7425_v62  ;;  %v7426_v9 = vunpack.i.l.bf16 %v7425_v62 }
 0x490   :  { %v7440_v63 = vpop.permute.xlu1 %7439  ;;  %v7435_v1 = vpop.permute.xlu0 %7434 }
 0x491   :  { %v7441_v2 = vunpack.i.l.bf16 %v7440_v63  ;;  %v7436_v3 = vunpack.i.l.bf16 %v7435_v1  ;;  %v7442_v8 = vunpack.i.h.bf16 %v7440_v63  ;;  %v7437_v12 = vunpack.i.h.bf16 %v7435_v1 }
 0x493   :  { %v783_v14 = vsel %vm285_vm6, 0.0, %v7441_v2  ;;  %v768_v4 = vsel %vm478_vm3, 0.0, %v7436_v3  ;;  %v820_v19 = vsel %vm407_vm0, %v7442_v8, %v7432_v13  ;;  %v818_v33 = vsel %vm407_vm0, %v7437_v12, %v7427_v6  ;;  %v987_v6 = vld [vmem:[#allocation12] sm:$0x1] }
 0x494   :  { %v781_v22 = vsel %vm275_vm5, 0.0, %v768_v4  ;;  %v7450_v23 = vpop.permute.xlu1 %7449  ;;  %v7445_v24 = vpop.permute.xlu0 %7444  ;;  %v819_v17 = vsel %vm407_vm0, %v783_v14, %v7431_v5 }
 0x495   :  { %v7452_v29 = vunpack.i.h.bf16 %v7450_v23  ;;  %v7451_v30 = vunpack.i.l.bf16 %v7450_v23  ;;  %v7447_v31 = vunpack.i.h.bf16 %v7445_v24  ;;  %v7446_v16 = vunpack.i.l.bf16 %v7445_v24  ;;  %v991_v23 = vld [vmem:[#allocation14] sm:$0x1] }
 0x496   :  { %v817_v32 = vsel %vm407_vm0, %v781_v22, %v7426_v9 }
 0x497   :  { %v821_v34 = vsel %vm599_vm8, %v817_v32, %v7446_v16  ;;  %v822_v20 = vsel %vm599_vm8, %v818_v33, %v7447_v31  ;;  %v823_v21 = vsel %vm599_vm8, %v819_v17, %v7451_v30  ;;  %v824_v35 = vsel %vm599_vm8, %v820_v19, %v7452_v29  ;;  %v7697_v33 = vld [vmem:[#allocation15] ss:$8 sps:$4 sm:$0xff]  }
 0x498   :  { %v825_v26 = vpack.c.bf16 %v822_v20, %v821_v34  ;;  %v826_v27 = vpack.c.bf16 %v824_v35, %v823_v21  ;;  %v7699_v34 = vld [vmem:[#allocation15 + $0x4] ss:$8 sps:$4 sm:$0xff]   ;;  %v7702_v20 = vld [vmem:[#allocation15 + $0x14] ss:$8 sps:$4 sm:$0xff]   ;;  %v7700_v21 = vld [vmem:[#allocation15 + $0x10] ss:$8 sps:$4 sm:$0xff]  }
 0x499   :  { %1276 = vmatprep.subr.bf16.mxu0 %v7699_v34  ;;  %v7705_v35 = vld [vmem:[#allocation15 + $0x24] ss:$8 sps:$4 sm:$0xff]  }
 0x49a   :  { %7279 = vmatprep.mubr.bf16.mxu1 %v825_v26  ;;  %1277 = vmatpush1.bf16.msra.mxu0 %v7697_v33  ;;  %v7703_v26 = vld [vmem:[#allocation15 + $0x20] ss:$8 sps:$4 sm:$0xff]  }
 0x49b   :  { %7280 = vmatmul.mubr.bf16.vlgmr.msra.gmra.mrb[0].mxu1 %v826_v27  ;;  %1278 = vmatprep.subr.bf16.mxu0 %v7702_v20  ;;  %v7708_v27 = vld [vmem:[#allocation15 + $0x34] ss:$8 sps:$4 sm:$0xff]  }
 0x49e   :  { %1279 = vmatpush1.bf16.msra.mxu0 %v7700_v21 }
 0x49f   :  { %1280 = vmatprep.subr.bf16.mxu0 %v7705_v35 }
 0x4a2   :  { %1281 = vmatpush1.bf16.msra.mxu0 %v7703_v26 }
 0x4a3   :  { %1282 = vmatprep.subr.bf16.mxu0 %v7708_v27 }
 0x56e   :  { %v8984_v36 = vpop.f32.mrb[0].mxu1 }
 0x56f   :  { %v8986_v37 = vpop.f32.mrb[1].mxu1  ;;  %v951_v42 = vmul.f32 %v8984_v36, %v8984_v36 }
 0x570   :  { %v8988_v38 = vpop.f32.mrb[2].mxu1  ;;  %v949_v40 = vmul.f32 %v8986_v37, %v8986_v37 }
 0x571   :  { %v8990_v39 = vpop.f32.mrb[3].mxu1  ;;  %v952_v43 = vmul.f32 %v8988_v38, %v8988_v38 }
 0x572   :  { %v940_v25 = vadd.f32 %v8990_v39, %v8986_v37  ;;  %v950_v41 = vmul.f32 %v8990_v39, %v8990_v39 }
 0x574   :  { %v941_v10 = vadd.f32 %v8984_v36, %v940_v25  ;;  %v953_v28 = vadd.f32 %v950_v41, %v949_v40  ;;  %v7706_v40 = vld [vmem:[#allocation15 + $0x30] ss:$8 sps:$4 sm:$0xff]   ;;  %v7711_v25 = vld [vmem:[#allocation15 + $0x44] ss:$8 sps:$4 sm:$0xff]   ;;  %v7709_v41 = vld [vmem:[#allocation15 + $0x40] ss:$8 sps:$4 sm:$0xff]  }
 0x575   :  { %1283 = vmatpush1.bf16.msra.mxu0 %v7706_v40 }
 0x576   :  { %v954_v15 = vadd.f32 %v953_v28, %v951_v42  ;;  %v942_v44 = vadd.f32 %v8988_v38, %v941_v10  ;;  %1284 = vmatprep.subr.bf16.mxu0 %v7711_v25  ;;  %v7714_v42 = vld [vmem:[#allocation15 + $0x54] ss:$8 sps:$4 sm:$0xff]   ;;  %v7712_v10 = vld [vmem:[#allocation15 + $0x50] ss:$8 sps:$4 sm:$0xff]   ;;  %v7717_v28 = vld [vmem:[#allocation15 + $0x64] ss:$8 sps:$4 sm:$0xff]  }
 0x578   :  { %v943_v45 = vrot.slane %v942_v44, 4  ;;  %v955_v46 = vadd.f32 %v954_v15, %v952_v43  ;;  %v7715_v43 = vld [vmem:[#allocation15 + $0x60] ss:$8 sps:$4 sm:$0xff]   ;;  %v7720_v15 = vld [vmem:[#allocation15 + $0x74] ss:$8 sps:$4 sm:$0xff]  }
 0x579   :  { %1285 = vmatpush1.bf16.msra.mxu0 %v7709_v41 }
 0x57a   :  { %v944_v47 = vadd.f32 %v943_v45, %v942_v44  ;;  %v956_v48 = vrot.slane %v955_v46, 4  ;;  %1286 = vmatprep.subr.bf16.mxu0 %v7714_v42  ;;  %v7718_v44 = vld [vmem:[#allocation15 + $0x70] ss:$8 sps:$4 sm:$0xff]   ;;  %v7723_v45 = vld [vmem:[#allocation15 + $0x84] ss:$8 sps:$4 sm:$0xff]  }
 0x57c   :  { %v945_v49 = vrot.slane %v944_v47, 2  ;;  %v957_v50 = vadd.f32 %v956_v48, %v955_v46  ;;  %v7721_v46 = vld [vmem:[#allocation15 + $0x80] ss:$8 sps:$4 sm:$0xff]   ;;  %v7724_v48 = vld [vmem:[#allocation15 + $0x90] ss:$8 sps:$4 sm:$0xff]  }
 0x57d   :  { %1287 = vmatpush1.bf16.msra.mxu0 %v7712_v10 }
 0x57e   :  { %v946_v51 = vadd.f32 %v945_v49, %v944_v47  ;;  %v958_v53 = vrot.slane %v957_v50, 2  ;;  %1288 = vmatprep.subr.bf16.mxu0 %v7717_v28  ;;  %v7726_v47 = vld [vmem:[#allocation15 + $0x94] ss:$8 sps:$4 sm:$0xff]  }
 0x580   :  { %v947_v54 = vrot.slane %v946_v51, 1  ;;  %v959_v55 = vadd.f32 %v958_v53, %v957_v50 }
 0x581   :  { %1289 = vmatpush1.bf16.msra.mxu0 %v7715_v43 }
 0x582   :  { %v948_v56 = vadd.f32 %v947_v54, %v946_v51  ;;  %v960_v57 = vrot.slane %v959_v55, 1  ;;  %1290 = vmatprep.subr.bf16.mxu0 %v7720_v15 }
 0x584   :  { %963 = vrot.lane.b32.xlu0 %v948_v56, %s8338_s5  ;;  %v961_v58 = vadd.f32 %v960_v57, %v959_v55 }
 0x585   :  { %1291 = vmatpush1.bf16.msra.mxu0 %v7718_v44 }
 0x586   :  { %968 = vrot.lane.b32.xlu1 %v961_v58, %s8338_s5  ;;  %1292 = vmatprep.subr.bf16.mxu0 %v7723_v45 }
 0x589   :  { %1293 = vmatpush1.bf16.msra.mxu0 %v7721_v46 }
 0x58a   :  { %1294 = vmatprep.subr.bf16.mxu0 %v7726_v47 }
 0x58d   :  { %1295 = vmatpush1.bf16.msra.mxu0 %v7724_v48 }
 0x5f6   :  { %v964_v59 = vpop.permute.xlu0 %963 }
 0x5f7   :  { %v966_v60 = vadd.f32 %v964_v59, %v948_v56 }
 0x5f8   :  { %v969_v61 = vpop.permute.xlu1 %968 }
 0x5f9   :  { %v971_v62 = vadd.f32 %v969_v61, %v961_v58  ;;  %973 = vrot.lane.b32.xlu0 %v966_v60, %s8348_s10  ;;  %v7727_v61 = vld [vmem:[#allocation15 + $0xa0] ss:$8 sps:$4 sm:$0xff]  }
 0x5fb   :  { %978 = vrot.lane.b32.xlu1 %v971_v62, %s8348_s10 }
 0x66b   :  { %v974_v63 = vpop.permute.xlu0 %973 }
 0x66c   :  { %v976_v1 = vadd.f32 %v974_v63, %v966_v60  ;;  %v7729_v60 = vld [vmem:[#allocation15 + $0xa4] ss:$8 sps:$4 sm:$0xff]  }
 0x66d   :  { %v979_v2 = vpop.permute.xlu1 %978  ;;  %1296 = vmatprep.subr.bf16.mxu0 %v7729_v60 }
 0x66e   :  { %v982_v3 = vmul.f32 0.0078125, %v976_v1  ;;  %v981_v8 = vadd.f32 %v979_v2, %v971_v62  ;;  %1297 = vmatpush1.bf16.msra.mxu0 %v7727_v61 }
 0x670   :  { %v984_v12 = vmul.f32 %v982_v3, %v982_v3  ;;  %v983_v13 = vmul.f32 0.0078125, %v981_v8 }
 0x672   :  { %v985_v14 = vsub.f32 %v983_v13, %v984_v12  ;;  %v7730_v13 = vld [vmem:[#allocation15 + $0xb0] ss:$8 sps:$4 sm:$0xff]  }
 0x674   :  { %v986_v4 = vmax.f32 %v985_v14, 0.0  ;;  %v7732_v14 = vld [vmem:[#allocation15 + $0xb4] ss:$8 sps:$4 sm:$0xff]  }
 0x675   :  { %1298 = vmatprep.subr.bf16.mxu0 %v7732_v14 }
 0x676   :  { %v988_v5 = vadd.f32 1e-05, %v986_v4  ;;  %1299 = vmatpush1.bf16.msra.mxu0 %v7730_v13 }
 0x678   :  { %7925 = vrsqrt.f32 %v988_v5 }
 0x682   :  { %v7926_v9 = vpop.eup %7925 }
 0x683   :  { %v990_v22 = vmul.f32 %v7926_v9, %v987_v6 }
 0x685   :  { %v998_v24 = vrot.slane %v990_v22, %v8857_v7  ;;  %v992_v29 = vmul.f32 %v990_v22, %v982_v3 }
 0x687   :  { %999 = vrot.lane.b32.xlu0 %v998_v24, %s8333_s22  ;;  %v993_v30 = vsub.f32 %v991_v23, %v992_v29 }
 0x689   :  { %v1007_v31 = vrot.slane %v993_v30, %v8857_v7 }
 0x68b   :  { %1008 = vrot.lane.b32.xlu1 %v1007_v31, %s8333_s22 }
 0x6f9   :  { %v1000_v16 = vpop.permute.xlu0 %999 }
 0x6fa   :  { %v1002_v19 = vsel %vm407_vm0, %v990_v22, %v1000_v16 }
 0x6fb   :  { %1013 = vrot.lane.b32.xlu0 %v1002_v19, %s8338_s5 }
 0x6fd   :  { %v1009_v17 = vpop.permute.xlu1 %1008 }
 0x6fe   :  { %v1011_v32 = vsel %vm407_vm0, %v993_v30, %v1009_v17 }
 0x6ff   :  { %1018 = vrot.lane.b32.xlu1 %v1011_v32, %s8338_s5 }
 0x76d   :  { %v1014_v49 = vpop.permute.xlu0 %1013 }
 0x76e   :  { %v1016_v50 = vsel %vm544_vm7, %v1002_v19, %v1014_v49 }
 0x76f   :  { %v1025_v51 = vrot.slane %v1016_v50, %v8857_v7 }
 0x771   :  { %v1019_v53 = vpop.permute.xlu1 %1018  ;;  %v1028_v54 = vmul.f32 %v8984_v36, %v1025_v51  ;;  %v1026_v57 = vmul.f32 %v1025_v51, %v8986_v37  ;;  %v1027_v58 = vmul.f32 %v1025_v51, %v8990_v39  ;;  %v1029_v59 = vmul.f32 %v8988_v38, %v1025_v51 }
 0x772   :  { %v1021_v55 = vsel %vm544_vm7, %v1011_v32, %v1019_v53 }
 0x773   :  { %v1033_v56 = vrot.slane %v1021_v55, %v8857_v7 }
 0x775   :  { %v1036_v62 = vadd.f32 %v1033_v56, %v1028_v54  ;;  %v1034_v63 = vadd.f32 %v1033_v56, %v1026_v57  ;;  %v1035_v1 = vadd.f32 %v1033_v56, %v1027_v58  ;;  %v1037_v2 = vadd.f32 %v1033_v56, %v1029_v59 }
 0x777   :  { %v1040_v3 = vmax.f32 %v1036_v62, 0.0  ;;  %v1038_v36 = vmax.f32 %v1034_v63, 0.0  ;;  %v1039_v8 = vmax.f32 %v1035_v1, 0.0  ;;  %v1041_v12 = vmax.f32 %v1037_v2, 0.0 }
 0x779   :  { %v1046_v4 = vrot.slane %v1038_v36, 7  ;;  %v1066_v37 = vrot.slane %v1038_v36, 1  ;;  %v1067_v5 = vrot.slane %v1039_v8, 1  ;;  %v1047_v39 = vrot.slane %v1039_v8, 7 }
 0x77a   :  { %v1069_v6 = vrot.slane %v1040_v3, 1  ;;  %v1049_v38 = vrot.slane %v1040_v3, 7  ;;  %v1071_v9 = vrot.slane %v1041_v12, 1  ;;  %v1051_v22 = vrot.slane %v1041_v12, 7 }
 0x77b   :  { %v7453_v23 = vpack.i.bf16 %v1038_v36, %v1046_v4  ;;  %v1068_v24 = vsel %vm491_vm2, %v1066_v37, %v1067_v5  ;;  %v1048_v29 = vsel %vm478_vm3, %v1046_v4, %v1047_v39 }
 0x77c   :  { %v7458_v30 = vpack.i.bf16 %v1068_v24, %v1039_v8  ;;  %v1070_v31 = vsel %vm491_vm2, %v1067_v5, %v1069_v6  ;;  %v1050_v16 = vsel %vm478_vm3, %v1047_v39, %v1049_v38  ;;  %v1072_v19 = vsel %vm491_vm2, %v1069_v6, %v1071_v9 }
 0x77d   :  { %7454 = vrot.lane.b32.xlu0 %v7453_v23, %s8333_s22  ;;  %v1083_v17 = vsel %vm280_vm1, 0.0, %v1070_v31  ;;  %v7468_v32 = vpack.i.bf16 %v1040_v3, %v1050_v16  ;;  %v7473_v33 = vpack.i.bf16 %v1072_v19, %v1041_v12  ;;  %v1052_v34 = vsel %vm478_vm3, %v1049_v38, %v1051_v22 }
 0x77e   :  { %7459 = vrot.lane.b32.xlu1 %v7458_v30, %s8333_s22  ;;  %v7463_v20 = vpack.i.bf16 %v1048_v29, %v1083_v17  ;;  %v1077_v21 = vsel %vm491_vm2, %v1071_v9, 0.0 }
 0x77f   :  { %v1085_v35 = vsel %vm294_vm4, 0.0, %v1077_v21 }
 0x780   :  { %v7478_v26 = vpack.i.bf16 %v1052_v34, %v1085_v35 }
 0x781   :  { %7464 = vrot.lane.b32.xlu0 %v7463_v20, %s8333_s22 }
 0x782   :  { %7469 = vrot.lane.b32.xlu1 %v7468_v32, %s8333_s22 }
 0x785   :  { %7474 = vrot.lane.b32.xlu0 %v7473_v33, %s8333_s22 }
 0x786   :  { %7479 = vrot.lane.b32.xlu1 %v7478_v26, %s8333_s22 }
 0x7ef   :  { %v7455_v27 = vpop.permute.xlu0 %7454 }
 0x7f0   :  { %v7456_v40 = vunpack.i.l.bf16 %v7455_v27  ;;  %v7460_v25 = vpop.permute.xlu1 %7459  ;;  %v7457_v41 = vunpack.i.h.bf16 %v7455_v27 }
 0x7f1   :  { %v7462_v10 = vunpack.i.h.bf16 %v7460_v25  ;;  %v7461_v15 = vunpack.i.l.bf16 %v7460_v25 }
 0x7f2   :  { %v1065_v42 = vsel %vm478_vm3, 0.0, %v7456_v40 }
 0x7f3   :  { %v1078_v28 = vsel %vm275_vm5, 0.0, %v1065_v42  ;;  %v7465_v43 = vpop.permute.xlu0 %7464  ;;  %v1118_v48 = vsel %vm407_vm0, %v7457_v41, %v7462_v10 }
 0x7f4   :  { %v7467_v44 = vunpack.i.h.bf16 %v7465_v43  ;;  %v7466_v45 = vunpack.i.l.bf16 %v7465_v43  ;;  %v7470_v46 = vpop.permute.xlu1 %7469  ;;  %v1114_v47 = vsel %vm407_vm0, %v1078_v28, %v7457_v41 }
 0x7f5   :  { %v7472_v55 = vunpack.i.h.bf16 %v7470_v46  ;;  %v7471_v56 = vunpack.i.l.bf16 %v7470_v46 }
 0x7f6   :  { %v1115_v49 = vsel %vm407_vm0, %v7467_v44, %v7461_v15  ;;  %v1119_v50 = vsel %vm407_vm0, %v7461_v15, %v7466_v45 }
 0x7f7   :  { %v1122_v51 = vpack.c.bf16 %v1115_v49, %v1114_v47  ;;  %v1123_v53 = vpack.c.bf16 %v1119_v50, %v1118_v48  ;;  %v7475_v54 = vpop.permute.xlu0 %7474  ;;  %v1080_v1 = vsel %vm285_vm6, 0.0, %v7471_v56 }
 0x7f8   :  { %v7477_v57 = vunpack.i.h.bf16 %v7475_v54  ;;  %v7476_v58 = vunpack.i.l.bf16 %v7475_v54  ;;  %v7480_v59 = vpop.permute.xlu1 %7479  ;;  %v1116_v36 = vsel %vm407_vm0, %v1080_v1, %v7472_v55 }
 0x7f9   :  { %v7482_v60 = vunpack.i.h.bf16 %v7480_v59  ;;  %v7481_v61 = vunpack.i.l.bf16 %v7480_v59  ;;  %6659 = vmatprep.mubr.msk.bf16.mxu0 %vm544_vm7, %v1123_v53 }
 0x7fa   :  { %v1120_v62 = vsel %vm407_vm0, %v7472_v55, %v7477_v57  ;;  %1309 = vmatmul.mubr.bf16.vlgmr.msra.gmra.mrb[4].mxu0 %v1122_v51 }
 0x7fb   :  { %v1121_v63 = vsel %vm407_vm0, %v7476_v58, %v7481_v61  ;;  %v1117_v3 = vsel %vm407_vm0, %v7482_v60, %v7476_v58 }
 0x7fc   :  { %v1125_v2 = vpack.c.bf16 %v1121_v63, %v1120_v62  ;;  %v1124_v8 = vpack.c.bf16 %v1117_v3, %v1116_v36 }
 0x7fe   :  { %6660 = vmatprep.mubr.msk.bf16.mxu0 %vm544_vm7, %v1125_v2 }
 0x802   :  { %1319 = vmatmul.mubr.bf16.gmra.mrb[8].mxu0 %v1124_v8 }
 0x8cd   :  { %v9056_v12 = vpop.f32.mrb[4].mxu0 }
 0x8ce   :  { %v9058_v13 = vpop.f32.mrb[5].mxu0  ;;  %v1347_v4 = vmul.f32 %v9056_v12, %v9056_v12 }
 0x8cf   :  { %v9060_v14 = vpop.f32.mrb[6].mxu0  ;;  %v1348_v6 = vmul.f32 %v9058_v13, %v9058_v13 }
 0x8d0   :  { %v1329_v37 = vadd.f32 %v9060_v14, %v9056_v12  ;;  %v1349_v5 = vmul.f32 %v9060_v14, %v9060_v14  ;;  %v9068_v39 = vpop.f32.mrb[7].mxu0 }
 0x8d1   :  { %v1338_v38 = vadd.f32 %v9068_v39, %v9058_v13  ;;  %v1350_v9 = vmul.f32 %v9068_v39, %v9068_v39 }
 0x8d2   :  { %v1355_v22 = vadd.f32 %v1349_v5, %v1347_v4 }
 0x8d3   :  { %v1364_v23 = vadd.f32 %v1350_v9, %v1348_v6 }
 0x8d5   :  { %v9076_v24 = vpop.f32.mrb[8].mxu0 }
 0x8d6   :  { %v1330_v29 = vadd.f32 %v1329_v37, %v9076_v24  ;;  %v1351_v30 = vmul.f32 %v9076_v24, %v9076_v24  ;;  %v9081_v31 = vpop.f32.mrb[9].mxu0 }
 0x8d7   :  { %v1339_v16 = vadd.f32 %v1338_v38, %v9081_v31  ;;  %v1352_v19 = vmul.f32 %v9081_v31, %v9081_v31  ;;  %v9086_v17 = vpop.f32.mrb[10].mxu0 }
 0x8d8   :  { %v1356_v32 = vadd.f32 %v1355_v22, %v1351_v30  ;;  %v1331_v33 = vadd.f32 %v1330_v29, %v9086_v17  ;;  %v1353_v34 = vmul.f32 %v9086_v17, %v9086_v17  ;;  %v9091_v20 = vpop.f32.mrb[11].mxu0  ;;  %v1400_v30 = vld [vmem:[#allocation17] sm:$0x1] }
 0x8d9   :  { %v1365_v21 = vadd.f32 %v1364_v23, %v1352_v19  ;;  %v1340_v35 = vadd.f32 %v1339_v16, %v9091_v20  ;;  %v1354_v26 = vmul.f32 %v9091_v20, %v9091_v20 }
 0x8da   :  { %v1332_v27 = vrot.slane %v1331_v33, 4  ;;  %v1357_v40 = vadd.f32 %v1356_v32, %v1353_v34  ;;  %v1404_v32 = vld [vmem:[#allocation18] sm:$0x1] }
 0x8db   :  { %v1341_v25 = vrot.slane %v1340_v35, 4  ;;  %v1366_v41 = vadd.f32 %v1365_v21, %v1354_v26 }
 0x8dc   :  { %v1333_v42 = vadd.f32 %v1332_v27, %v1331_v33  ;;  %v1358_v10 = vrot.slane %v1357_v40, 4 }
 0x8dd   :  { %v1342_v28 = vadd.f32 %v1341_v25, %v1340_v35  ;;  %v1367_v43 = vrot.slane %v1366_v41, 4 }
 0x8de   :  { %v1334_v15 = vrot.slane %v1333_v42, 2  ;;  %v1359_v44 = vadd.f32 %v1358_v10, %v1357_v40  ;;  %v7736_v10 = vld [vmem:[#allocation20 + $0x8] ss:$16 sps:$4 sm:$0xff]  }
 0x8df   :  { %v1343_v45 = vrot.slane %v1342_v28, 2  ;;  %v1368_v46 = vadd.f32 %v1367_v43, %v1366_v41  ;;  %v7733_v41 = vld [vmem:[#allocation20] ss:$16 sps:$4 sm:$0xff]   ;;  %v7741_v43 = vld [vmem:[#allocation20 + $0x24] ss:$16 sps:$4 sm:$0xff]  }
 0x8e0   :  { %v1335_v47 = vadd.f32 %v1334_v15, %v1333_v42  ;;  %v1360_v48 = vrot.slane %v1359_v44, 2  ;;  %v7735_v42 = vld [vmem:[#allocation20 + $0x4] ss:$16 sps:$4 sm:$0xff]   ;;  %v7744_v15 = vld [vmem:[#allocation20 + $0x2c] ss:$16 sps:$4 sm:$0xff]  }
 0x8e1   :  { %v1344_v49 = vadd.f32 %v1343_v45, %v1342_v28  ;;  %v1369_v50 = vrot.slane %v1368_v46, 2  ;;  %v7738_v28 = vld [vmem:[#allocation20 + $0xc] ss:$16 sps:$4 sm:$0xff]   ;;  %2063 = vmatprep.subr.bf16.mxu1 %v7735_v42  ;;  %v7742_v45 = vld [vmem:[#allocation20 + $0x28] ss:$16 sps:$4 sm:$0xff]  }
 0x8e2   :  { %v1336_v51 = vrot.slane %v1335_v47, 1  ;;  %v1361_v53 = vadd.f32 %v1360_v48, %v1359_v44  ;;  %2169 = vmatprep.subr.bf16.mxu0 %v7738_v28  ;;  %2064 = vmatpush1.bf16.msra.mxu1 %v7733_v41  ;;  %v7739_v44 = vld [vmem:[#allocation20 + $0x20] ss:$16 sps:$4 sm:$0xff]   ;;  %v7810_v41 = vld [vmem:[#allocation20 + $0x18c] ss:$16 sps:$4 sm:$0xff]  }
 0x8e3   :  { %v1345_v54 = vrot.slane %v1344_v49, 1  ;;  %v1370_v55 = vadd.f32 %v1369_v50, %v1368_v46  ;;  %2170 = vmatpush1.bf16.msra.mxu0 %v7736_v10  ;;  %2065 = vmatprep.subr.bf16.mxu1 %v7741_v43  ;;  %v7747_v46 = vld [vmem:[#allocation20 + $0x44] ss:$16 sps:$4 sm:$0xff]   ;;  %v7745_v48 = vld [vmem:[#allocation20 + $0x40] ss:$16 sps:$4 sm:$0xff]  }
 0x8e4   :  { %v1337_v56 = vadd.f32 %v1336_v51, %v1335_v47  ;;  %v1362_v57 = vrot.slane %v1361_v53, 1  ;;  %2171 = vmatprep.subr.bf16.mxu0 %v7744_v15  ;;  %v7750_v47 = vld [vmem:[#allocation20 + $0x4c] ss:$16 sps:$4 sm:$0xff]   ;;  %v7753_v50 = vld [vmem:[#allocation20 + $0x64] ss:$16 sps:$4 sm:$0xff]  }
 0x8e5   :  { %v1346_v58 = vadd.f32 %v1345_v54, %v1344_v49  ;;  %v1371_v59 = vrot.slane %v1370_v55, 1  ;;  %v7748_v49 = vld [vmem:[#allocation20 + $0x48] ss:$16 sps:$4 sm:$0xff]   ;;  %v7756_v51 = vld [vmem:[#allocation20 + $0x6c] ss:$16 sps:$4 sm:$0xff]  }
 0x8e6   :  { %v1363_v60 = vadd.f32 %v1362_v57, %v1361_v53  ;;  %2066 = vmatpush1.bf16.msra.mxu1 %v7739_v44  ;;  %v7751_v53 = vld [vmem:[#allocation20 + $0x60] ss:$16 sps:$4 sm:$0xff]   ;;  %v7754_v54 = vld [vmem:[#allocation20 + $0x68] ss:$16 sps:$4 sm:$0xff]   ;;  %v7813_v44 = vld [vmem:[#allocation20 + $0x1a4] ss:$16 sps:$4 sm:$0xff]  }
 0x8e7   :  { %v1373_v61 = vadd.f32 %v1346_v58, %v1337_v56  ;;  %v1372_v62 = vadd.f32 %v1371_v59, %v1370_v55  ;;  %2172 = vmatpush1.bf16.msra.mxu0 %v7742_v45  ;;  %2067 = vmatprep.subr.bf16.mxu1 %v7747_v46  ;;  %v7759_v55 = vld [vmem:[#allocation20 + $0x84] ss:$16 sps:$4 sm:$0xff]   ;;  %v7762_v56 = vld [vmem:[#allocation20 + $0x8c] ss:$16 sps:$4 sm:$0xff]   ;;  %v7757_v57 = vld [vmem:[#allocation20 + $0x80] ss:$16 sps:$4 sm:$0xff]  }
 0x8e8   :  { %2173 = vmatprep.subr.bf16.mxu0 %v7750_v47  ;;  %v7760_v58 = vld [vmem:[#allocation20 + $0x88] ss:$16 sps:$4 sm:$0xff]   ;;  %v7765_v59 = vld [vmem:[#allocation20 + $0xa4] ss:$16 sps:$4 sm:$0xff]   ;;  %v7805_v42 = vld [vmem:[#allocation20 + $0x180] ss:$16 sps:$4 sm:$0xff]  }
 0x8e9   :  { %1376 = vrot.lane.b32.xlu0 %v1373_v61, %s8338_s5  ;;  %v1374_v63 = vadd.f32 %v1372_v62, %v1363_v60  ;;  %v7768_v60 = vld [vmem:[#allocation20 + $0xac] ss:$16 sps:$4 sm:$0xff]   ;;  %v7766_v62 = vld [vmem:[#allocation20 + $0xa8] ss:$16 sps:$4 sm:$0xff]   ;;  %v7811_v15 = vld [vmem:[#allocation20 + $0x1a0] ss:$16 sps:$4 sm:$0xff]  }
 0x8ea   :  { %2068 = vmatpush1.bf16.msra.mxu1 %v7745_v48  ;;  %v7808_v10 = vld [vmem:[#allocation20 + $0x188] ss:$16 sps:$4 sm:$0xff]   ;;  %v7816_v47 = vld [vmem:[#allocation20 + $0x1ac] ss:$16 sps:$4 sm:$0xff]  }
 0x8eb   :  { %1381 = vrot.lane.b32.xlu1 %v1374_v63, %s8338_s5  ;;  %2174 = vmatpush1.bf16.msra.mxu0 %v7748_v49  ;;  %v7814_v46 = vld [vmem:[#allocation20 + $0x1a8] ss:$16 sps:$4 sm:$0xff]  }
 0x8ec   :  { %2069 = vmatprep.subr.bf16.mxu1 %v7753_v50  ;;  %2175 = vmatprep.subr.bf16.mxu0 %v7756_v51 }
 0x8ee   :  { %2070 = vmatpush1.bf16.msra.mxu1 %v7751_v53 }
 0x8ef   :  { %2176 = vmatpush1.bf16.msra.mxu0 %v7754_v54  ;;  %2071 = vmatprep.subr.bf16.mxu1 %v7759_v55  ;;  %v7819_v55 = vld [vmem:[#allocation20 + $0x1c4] ss:$16 sps:$4 sm:$0xff]  }
 0x8f0   :  { %2177 = vmatprep.subr.bf16.mxu0 %v7762_v56  ;;  %v7822_v56 = vld [vmem:[#allocation20 + $0x1cc] ss:$16 sps:$4 sm:$0xff]  }
 0x8f2   :  { %2072 = vmatpush1.bf16.msra.mxu1 %v7757_v57 }
 0x8f3   :  { %2178 = vmatpush1.bf16.msra.mxu0 %v7760_v58  ;;  %2073 = vmatprep.subr.bf16.mxu1 %v7765_v59  ;;  %v7817_v59 = vld [vmem:[#allocation20 + $0x1c0] ss:$16 sps:$4 sm:$0xff]  }
 0x8f4   :  { %2179 = vmatprep.subr.bf16.mxu0 %v7768_v60  ;;  %v7820_v60 = vld [vmem:[#allocation20 + $0x1c8] ss:$16 sps:$4 sm:$0xff]  }
 0x8f7   :  { %2180 = vmatpush1.bf16.msra.mxu0 %v7766_v62 }
 0x95b   :  { %v1377_v1 = vpop.permute.xlu0 %1376 }
 0x95c   :  { %v1379_v2 = vadd.f32 %v1377_v1, %v1373_v61  ;;  %v7763_v61 = vld [vmem:[#allocation20 + $0xa0] ss:$16 sps:$4 sm:$0xff]   ;;  %v7774_v1 = vld [vmem:[#allocation20 + $0xcc] ss:$16 sps:$4 sm:$0xff]  }
 0x95d   :  { %v1382_v3 = vpop.permute.xlu1 %1381  ;;  %2074 = vmatpush1.bf16.msra.mxu1 %v7763_v61  ;;  %2181 = vmatprep.subr.bf16.mxu0 %v7774_v1 }
 0x95e   :  { %v1384_v36 = vadd.f32 %v1382_v3, %v1374_v63  ;;  %1386 = vrot.lane.b32.xlu0 %v1379_v2, %s8348_s10  ;;  %v7771_v63 = vld [vmem:[#allocation20 + $0xc4] ss:$16 sps:$4 sm:$0xff]   ;;  %v7772_v3 = vld [vmem:[#allocation20 + $0xc8] ss:$16 sps:$4 sm:$0xff]  }
 0x95f   :  { %2075 = vmatprep.subr.bf16.mxu1 %v7771_v63  ;;  %2182 = vmatpush1.bf16.msra.mxu0 %v7772_v3 }
 0x960   :  { %1391 = vrot.lane.b32.xlu1 %v1384_v36, %s8348_s10 }
 0x9d0   :  { %v1387_v8 = vpop.permute.xlu0 %1386 }
 0x9d1   :  { %v1389_v4 = vadd.f32 %v1387_v8, %v1379_v2  ;;  %v7769_v2 = vld [vmem:[#allocation20 + $0xc0] ss:$16 sps:$4 sm:$0xff]   ;;  %v7780_v8 = vld [vmem:[#allocation20 + $0xec] ss:$16 sps:$4 sm:$0xff]  }
 0x9d2   :  { %v1392_v37 = vpop.permute.xlu1 %1391  ;;  %2076 = vmatpush1.bf16.msra.mxu1 %v7769_v2  ;;  %2183 = vmatprep.subr.bf16.mxu0 %v7780_v8 }
 0x9d3   :  { %v1395_v5 = vmul.f32 0.00390625, %v1389_v4  ;;  %v1394_v6 = vadd.f32 %v1392_v37, %v1384_v36  ;;  %v7777_v36 = vld [vmem:[#allocation20 + $0xe4] ss:$16 sps:$4 sm:$0xff]   ;;  %v7775_v4 = vld [vmem:[#allocation20 + $0xe0] ss:$16 sps:$4 sm:$0xff]  }
 0x9d4   :  { %2077 = vmatprep.subr.bf16.mxu1 %v7777_v36  ;;  %v7778_v37 = vld [vmem:[#allocation20 + $0xe8] ss:$16 sps:$4 sm:$0xff]  }
 0x9d5   :  { %v1397_v38 = vmul.f32 %v1395_v5, %v1395_v5  ;;  %v1396_v9 = vmul.f32 0.00390625, %v1394_v6  ;;  %v7786_v6 = vld [vmem:[#allocation20 + $0x10c] ss:$16 sps:$4 sm:$0xff]   ;;  %2184 = vmatpush1.bf16.msra.mxu0 %v7778_v37 }
 0x9d6   :  { %2078 = vmatpush1.bf16.msra.mxu1 %v7775_v4  ;;  %2185 = vmatprep.subr.bf16.mxu0 %v7786_v6 }
 0x9d7   :  { %v1398_v22 = vsub.f32 %v1396_v9, %v1397_v38  ;;  %v7781_v38 = vld [vmem:[#allocation20 + $0x100] ss:$16 sps:$4 sm:$0xff]   ;;  %v7784_v9 = vld [vmem:[#allocation20 + $0x108] ss:$16 sps:$4 sm:$0xff]  }
 0x9d9   :  { %v1399_v23 = vmax.f32 %v1398_v22, 0.0  ;;  %v7789_v22 = vld [vmem:[#allocation20 + $0x124] ss:$16 sps:$4 sm:$0xff]   ;;  %2186 = vmatpush1.bf16.msra.mxu0 %v7784_v9 }
 0x9db   :  { %v1401_v29 = vadd.f32 1e-05, %v1399_v23  ;;  %v7792_v23 = vld [vmem:[#allocation20 + $0x12c] ss:$16 sps:$4 sm:$0xff]  }
 0x9dc   :  { %2187 = vmatprep.subr.bf16.mxu0 %v7792_v23  ;;  %v7826_v23 = vld [vmem:[#allocation20 + $0x1e8] ss:$16 sps:$4 sm:$0xff]  }
 0x9dd   :  { %7927 = vrsqrt.f32 %v1401_v29  ;;  %v7787_v29 = vld [vmem:[#allocation20 + $0x120] ss:$16 sps:$4 sm:$0xff]  }
 0x9e7   :  { %v7928_v16 = vpop.eup %7927 }
 0x9e8   :  { %v1403_v19 = vmul.f32 %v7928_v16, %v1400_v30  ;;  %v7790_v30 = vld [vmem:[#allocation20 + $0x128] ss:$16 sps:$4 sm:$0xff]   ;;  %v7795_v16 = vld [vmem:[#allocation20 + $0x144] ss:$16 sps:$4 sm:$0xff]  }
 0x9e9   :  { %2188 = vmatpush1.bf16.msra.mxu0 %v7790_v30 }
 0x9ea   :  { %v1411_v33 = vrot.slane %v1403_v19, %v8857_v7  ;;  %v1405_v34 = vmul.f32 %v1403_v19, %v1395_v5  ;;  %v7783_v5 = vld [vmem:[#allocation20 + $0x104] ss:$16 sps:$4 sm:$0xff]  }
 0x9eb   :  { %2079 = vmatprep.subr.bf16.mxu1 %v7783_v5  ;;  %v7825_v5 = vld [vmem:[#allocation20 + $0x1e4] ss:$16 sps:$4 sm:$0xff]  }
 0x9ec   :  { %1412 = vrot.lane.b32.xlu0 %v1411_v33, %s8333_s22  ;;  %v1406_v21 = vsub.f32 %v1404_v32, %v1405_v34  ;;  %2080 = vmatpush1.bf16.msra.mxu1 %v7781_v38  ;;  %v7793_v32 = vld [vmem:[#allocation20 + $0x140] ss:$16 sps:$4 sm:$0xff]   ;;  %v7796_v33 = vld [vmem:[#allocation20 + $0x148] ss:$16 sps:$4 sm:$0xff]   ;;  %v7801_v34 = vld [vmem:[#allocation20 + $0x164] ss:$16 sps:$4 sm:$0xff]  }
 0x9ed   :  { %2081 = vmatprep.subr.bf16.mxu1 %v7789_v22 }
 0x9ee   :  { %v1420_v35 = vrot.slane %v1406_v21, %v8857_v7 }
 0x9f0   :  { %1421 = vrot.lane.b32.xlu1 %v1420_v35, %s8333_s22  ;;  %2082 = vmatpush1.bf16.msra.mxu1 %v7787_v29  ;;  %v7799_v35 = vld [vmem:[#allocation20 + $0x160] ss:$16 sps:$4 sm:$0xff]  }
 0x9f1   :  { %2083 = vmatprep.subr.bf16.mxu1 %v7795_v16 }
 0x9f4   :  { %2084 = vmatpush1.bf16.msra.mxu1 %v7793_v32  ;;  %v7828_v32 = vld [vmem:[#allocation20 + $0x1ec] ss:$16 sps:$4 sm:$0xff]  }
 0x9f5   :  { %2085 = vmatprep.subr.bf16.mxu1 %v7801_v34 }
 0x9f8   :  { %2086 = vmatpush1.bf16.msra.mxu1 %v7799_v35 }
 0xa5e   :  { %v1413_v26 = vpop.permute.xlu0 %1412 }
 0xa5f   :  { %v9105_v27 = vsel %vm407_vm0, %v1403_v19, %v1413_v26  ;;  %v7798_v19 = vld [vmem:[#allocation20 + $0x14c] ss:$16 sps:$4 sm:$0xff]   ;;  %v7802_v26 = vld [vmem:[#allocation20 + $0x168] ss:$16 sps:$4 sm:$0xff]  }
 0xa60   :  { %1426 = vrot.lane.b32.xlu0 %v9105_v27, %s8338_s5  ;;  %2189 = vmatprep.subr.bf16.mxu0 %v7798_v19 }
 0xa61   :  { %2190 = vmatpush1.bf16.msra.mxu0 %v7796_v33 }
 0xa62   :  { %v1422_v40 = vpop.permute.xlu1 %1421 }
 0xa63   :  { %v9110_v25 = vsel %vm407_vm0, %v1406_v21, %v1422_v40  ;;  %v7804_v21 = vld [vmem:[#allocation20 + $0x16c] ss:$16 sps:$4 sm:$0xff]   ;;  %v7807_v40 = vld [vmem:[#allocation20 + $0x184] ss:$16 sps:$4 sm:$0xff]  }
 0xa64   :  { %1431 = vrot.lane.b32.xlu1 %v9110_v25, %s8338_s5  ;;  %2191 = vmatprep.subr.bf16.mxu0 %v7804_v21 }
 0xa65   :  { %2192 = vmatpush1.bf16.msra.mxu0 %v7802_v26  ;;  %2087 = vmatprep.subr.bf16.mxu1 %v7807_v40  ;;  %v7831_v26 = vld [vmem:[#allocation20 + $0x204] ss:$16 sps:$4 sm:$0xff]   ;;  %v7834_v40 = vld [vmem:[#allocation20 + $0x20c] ss:$16 sps:$4 sm:$0xff]  }
 0xa66   :  { %2193 = vmatprep.subr.bf16.mxu0 %v7810_v41  ;;  %2088 = vmatpush1.bf16.msra.mxu1 %v7805_v42 }
 0xa67   :  { %2089 = vmatprep.subr.bf16.mxu1 %v7813_v44 }
 0xa69   :  { %2194 = vmatpush1.bf16.msra.mxu0 %v7808_v10 }
 0xa6a   :  { %2195 = vmatprep.subr.bf16.mxu0 %v7816_v47  ;;  %2090 = vmatpush1.bf16.msra.mxu1 %v7811_v15 }
 0xa6b   :  { %2091 = vmatprep.subr.bf16.mxu1 %v7819_v55 }
 0xa6d   :  { %2196 = vmatpush1.bf16.msra.mxu0 %v7814_v46 }
 0xa6e   :  { %2197 = vmatprep.subr.bf16.mxu0 %v7822_v56  ;;  %2092 = vmatpush1.bf16.msra.mxu1 %v7817_v59 }
 0xa6f   :  { %2093 = vmatprep.subr.bf16.mxu1 %v7825_v5 }
 0xa71   :  { %2198 = vmatpush1.bf16.msra.mxu0 %v7820_v60 }
 0xa72   :  { %2199 = vmatprep.subr.bf16.mxu0 %v7828_v32 }
 0xa75   :  { %2200 = vmatpush1.bf16.msra.mxu0 %v7826_v23  ;;  %v7838_v23 = vld [vmem:[#allocation20 + $0x228] ss:$16 sps:$4 sm:$0xff]  }
 0xa76   :  { %2222 = vmatprep.subr.bf16.mxu0 %v7834_v40  ;;  %v7852_v40 = vld [vmem:[#allocation20 + $0x26c] ss:$16 sps:$4 sm:$0xff]  }
 0xad2   :  { %v1427_v28 = vpop.permute.xlu0 %1426 }
 0xad3   :  { %v1429_v43 = vsel %vm544_vm7, %v9105_v27, %v1427_v28 }
 0xad4   :  { %v1438_v45 = vrot.slane %v1429_v43, %v8857_v7 }
 0xad6   :  { %v1432_v48 = vpop.permute.xlu1 %1431  ;;  %v1440_v50 = vmul.f32 %v1438_v45, %v9058_v13  ;;  %v1441_v53 = vmul.f32 %v1438_v45, %v9060_v14  ;;  %v1439_v27 = vmul.f32 %v1438_v45, %v9056_v12  ;;  %v1442_v54 = vmul.f32 %v1438_v45, %v9068_v39 }
 0xad7   :  { %v1434_v49 = vsel %vm544_vm7, %v9110_v25, %v1432_v48  ;;  %v1443_v57 = vmul.f32 %v1438_v45, %v9076_v24  ;;  %v1444_v58 = vmul.f32 %v1438_v45, %v9081_v31  ;;  %v1446_v25 = vmul.f32 %v1438_v45, %v9091_v20  ;;  %v7823_v20 = vld [vmem:[#allocation20 + $0x1e0] ss:$16 sps:$4 sm:$0xff]  }
 0xad8   :  { %v1450_v51 = vrot.slane %v1434_v49, %v8857_v7  ;;  %v1445_v13 = vmul.f32 %v1438_v45, %v9086_v17  ;;  %2094 = vmatpush1.bf16.msra.mxu1 %v7823_v20 }
 0xad9   :  { %2116 = vmatprep.subr.bf16.mxu1 %v7831_v26  ;;  %v7849_v26 = vld [vmem:[#allocation20 + $0x264] ss:$16 sps:$4 sm:$0xff]  }
 0xada   :  { %v1452_v61 = vadd.f32 %v1450_v51, %v1440_v50  ;;  %v1453_v62 = vadd.f32 %v1450_v51, %v1441_v53  ;;  %v1451_v14 = vadd.f32 %v1450_v51, %v1439_v27  ;;  %v1454_v63 = vadd.f32 %v1450_v51, %v1442_v54 }
 0xadb   :  { %v1455_v12 = vadd.f32 %v1450_v51, %v1443_v57  ;;  %v1456_v39 = vadd.f32 %v1450_v51, %v1444_v58  ;;  %v1458_v1 = vadd.f32 %v1450_v51, %v1446_v25  ;;  %v1457_v2 = vadd.f32 %v1450_v51, %v1445_v13 }
 0xadc   :  { %v1460_v3 = vmax.f32 %v1452_v61, 0.0  ;;  %v1461_v24 = vmax.f32 %v1453_v62, 0.0  ;;  %v1459_v36 = vmax.f32 %v1451_v14, 0.0  ;;  %v1462_v31 = vmax.f32 %v1454_v63, 0.0 }
 0xadd   :  { %v1463_v17 = vmax.f32 %v1455_v12, 0.0  ;;  %v1464_v8 = vmax.f32 %v1456_v39, 0.0  ;;  %v1466_v4 = vmax.f32 %v1458_v1, 0.0  ;;  %v1465_v37 = vmax.f32 %v1457_v2, 0.0 }
 0xade   :  { %v1496_v6 = vrot.slane %v1461_v24, 1  ;;  %v7483_v38 = vpack.i.bf16 %v1461_v24, %v1460_v3  ;;  %v1471_v9 = vrot.slane %v1460_v3, 7  ;;  %v1495_v22 = vrot.slane %v1459_v36, 1  ;;  %v7829_v24 = vld [vmem:[#allocation20 + $0x200] ss:$16 sps:$4 sm:$0xff]  }
 0xadf   :  { %v1472_v29 = vrot.slane %v1462_v31, 7  ;;  %v1474_v30 = vrot.slane %v1464_v8, 7  ;;  %v1498_v16 = vrot.slane %v1463_v17, 1  ;;  %v1476_v19 = vrot.slane %v1466_v4, 7 }
 0xae0   :  { %7484 = vrot.lane.b32.xlu1 %v7483_v38, %s8333_s22  ;;  %v7488_v33 = vpack.i.bf16 %v1459_v36, %v1471_v9  ;;  %v7498_v34 = vpack.i.bf16 %v1465_v37, %v1464_v8  ;;  %v1500_v21 = vrot.slane %v1465_v37, 1  ;;  %v1497_v35 = vsel %vm491_vm2, %v1495_v22, %v1496_v6  ;;  %v7832_v36 = vld [vmem:[#allocation20 + $0x208] ss:$16 sps:$4 sm:$0xff]   ;;  %v7840_v37 = vld [vmem:[#allocation20 + $0x22c] ss:$16 sps:$4 sm:$0xff]  }
 0xae1   :  { %v1475_v41 = vsel %vm478_vm3, %v1472_v29, %v1474_v30  ;;  %v1473_v42 = vsel %vm478_vm3, %v1471_v9, %v1472_v29  ;;  %v1477_v10 = vsel %vm478_vm3, %v1474_v30, %v1476_v19  ;;  %v1499_v28 = vsel %vm491_vm2, %v1496_v6, %v1498_v16  ;;  %v7835_v22 = vld [vmem:[#allocation20 + $0x220] ss:$16 sps:$4 sm:$0xff]   ;;  %v7843_v30 = vld [vmem:[#allocation20 + $0x244] ss:$16 sps:$4 sm:$0xff]  }
 0xae2   :  { %7489 = vrot.lane.b32.xlu0 %v7488_v33, %s8333_s22  ;;  %v7503_v43 = vpack.i.bf16 %v1463_v17, %v1475_v41  ;;  %v7493_v15 = vpack.i.bf16 %v1473_v42, %v1462_v31  ;;  %v7508_v44 = vpack.i.bf16 %v1477_v10, %v1466_v4  ;;  %v1501_v45 = vsel %vm491_vm2, %v1498_v16, %v1500_v21  ;;  %v7837_v4 = vld [vmem:[#allocation20 + $0x224] ss:$16 sps:$4 sm:$0xff]   ;;  %v7846_v16 = vld [vmem:[#allocation20 + $0x24c] ss:$16 sps:$4 sm:$0xff]   ;;  %v7847_v10 = vld [vmem:[#allocation20 + $0x260] ss:$16 sps:$4 sm:$0xff]  }
 0xae3   :  { %v1506_v46 = vsel %vm491_vm2, %v1500_v21, 0.0  ;;  %v1512_v47 = vsel %vm280_vm1, 0.0, %v1499_v28  ;;  %v7844_v21 = vld [vmem:[#allocation20 + $0x248] ss:$16 sps:$4 sm:$0xff]  }
 0xae4   :  { %7504 = vrot.lane.b32.xlu1 %v7503_v43, %s8333_s22  ;;  %v1514_v48 = vsel %vm294_vm4, 0.0, %v1506_v46  ;;  %v7513_v49 = vpack.i.bf16 %v1512_v47, %v1497_v35  ;;  %v7850_v28 = vld [vmem:[#allocation20 + $0x268] ss:$16 sps:$4 sm:$0xff]  }
 0xae5   :  { %v7518_v50 = vpack.i.bf16 %v1514_v48, %v1501_v45 }
 0xae6   :  { %7494 = vrot.lane.b32.xlu0 %v7493_v15, %s8333_s22 }
 0xae8   :  { %7509 = vrot.lane.b32.xlu1 %v7508_v44, %s8333_s22  ;;  %v8349_v44 = vmov 0  }
 0xaea   :  { %7499 = vrot.lane.b32.xlu0 %v7498_v34, %s8333_s22  ;;  %v7841_v34 = vld [vmem:[#allocation20 + $0x240] ss:$16 sps:$4 sm:$0xff]  }
 0xaec   :  { %7519 = vrot.lane.b32.xlu1 %v7518_v50, %s8333_s22 }
 0xaee   :  { %7514 = vrot.lane.b32.xlu0 %v7513_v49, %s8333_s22 }
 0xb52   :  { %v9147_v51 = vpop.permute.xlu1 %7484 }
 0xb53   :  { %v7487_v25 = vunpack.i.h.bf16 %v9147_v51  ;;  %v7486_v13 = vunpack.i.l.bf16 %v9147_v51 }
 0xb54   :  { %v7490_v53 = vpop.permute.xlu0 %7489 }
 0xb55   :  { %v7491_v27 = vunpack.i.l.bf16 %v7490_v53  ;;  %v7492_v55 = vunpack.i.h.bf16 %v7490_v53 }
 0xb56   :  { %v7505_v54 = vpop.permute.xlu1 %7504 }
 0xb57   :  { %v1490_v56 = vsel %vm478_vm3, 0.0, %v7491_v27  ;;  %v1531_v63 = vsel %vm407_vm0, %v7492_v55, %v7486_v13  ;;  %v7507_v39 = vunpack.i.h.bf16 %v7505_v54  ;;  %v7506_v31 = vunpack.i.l.bf16 %v7505_v54 }
 0xb58   :  { %v1507_v57 = vsel %vm275_vm5, 0.0, %v1490_v56  ;;  %v9152_v58 = vpop.permute.xlu0 %7494 }
 0xb59   :  { %v7497_v59 = vunpack.i.h.bf16 %v9152_v58  ;;  %v7496_v60 = vunpack.i.l.bf16 %v9152_v58  ;;  %v1563_v62 = vsel %vm407_vm0, %v1507_v57, %v7492_v55  ;;  %v1509_v29 = vsel %vm285_vm6, 0.0, %v7506_v31 }
 0xb5a   :  { %v9158_v61 = vpop.permute.xlu1 %7509  ;;  %v1565_v33 = vsel %vm407_vm0, %v1509_v29, %v7507_v39 }
 0xb5b   :  { %v1564_v14 = vsel %vm407_vm0, %v7497_v59, %v7487_v25  ;;  %v1532_v12 = vsel %vm407_vm0, %v7487_v25, %v7496_v60  ;;  %v7511_v20 = vunpack.i.l.bf16 %v9158_v61  ;;  %v7512_v38 = vunpack.i.h.bf16 %v9158_v61 }
 0xb5c   :  { %v1571_v1 = vpack.c.bf16 %v1564_v14, %v1563_v62  ;;  %v9166_v2 = vpop.permute.xlu0 %7499  ;;  %v1572_v3 = vpack.c.bf16 %v1532_v12, %v1531_v63 }
 0xb5d   :  { %v7502_v17 = vunpack.i.h.bf16 %v9166_v2  ;;  %v7501_v8 = vunpack.i.l.bf16 %v9166_v2 }
 0xb5e   :  { %2095 = vmatprep.mubr.bf16.mxu1 %v1572_v3  ;;  %2201 = vmatprep.mubr.bf16.mxu0 %v1572_v3  ;;  %v7520_v45 = vpop.permute.xlu1 %7519 }
 0xb5f   :  { %2096 = vmatmul.mubr.bf16.vlgmr.msra.gmra.mrb[4].mxu1 %v1571_v1  ;;  %2202 = vmatmul.mubr.bf16.vlgmr.msra.gmra.mrb[12].mxu0 %v1571_v1  ;;  %v1533_v5 = vsel %vm407_vm0, %v7507_v39, %v7501_v8  ;;  %v1534_v6 = vsel %vm407_vm0, %v7502_v17, %v7511_v20  ;;  %v1566_v19 = vsel %vm407_vm0, %v7512_v38, %v7502_v17  ;;  %v7522_v47 = vunpack.i.h.bf16 %v7520_v45 }
 0xb60   :  { %2117 = vmatpush1.bf16.msra.mxu1 %v7829_v24  ;;  %2223 = vmatpush1.bf16.msra.mxu0 %v7832_v36  ;;  %v1575_v9 = vpack.c.bf16 %v1534_v6, %v1533_v5  ;;  %v7515_v32 = vpop.permute.xlu0 %7514  ;;  %v1574_v35 = vpack.c.bf16 %v1566_v19, %v1565_v33  ;;  %v7521_v48 = vunpack.i.l.bf16 %v7520_v45 }
 0xb61   :  { %2118 = vmatprep.subr.bf16.mxu1 %v7837_v4  ;;  %2224 = vmatprep.subr.bf16.mxu0 %v7840_v37  ;;  %v7517_v41 = vunpack.i.h.bf16 %v7515_v32  ;;  %v7516_v42 = vunpack.i.l.bf16 %v7515_v32  ;;  %v1570_v50 = vsel %vm407_vm0, %v7511_v20, %v7522_v47 }
 0xb62   :  { %2105 = vmatprep.mubr.bf16.mxu1 %v1575_v9  ;;  %2211 = vmatprep.mubr.bf16.mxu0 %v1575_v9  ;;  %v1569_v49 = vsel %vm407_vm0, %v7501_v8, %v7521_v48 }
 0xb63   :  { %v1568_v43 = vsel %vm407_vm0, %v7496_v60, %v7517_v41  ;;  %v1567_v15 = vsel %vm407_vm0, %v7486_v13, %v7516_v42  ;;  %v1576_v51 = vpack.c.bf16 %v1570_v50, %v1569_v49 }
 0xb64   :  { %2119 = vmatpush1.bf16.msra.mxu1 %v7835_v22  ;;  %2225 = vmatpush1.bf16.msra.mxu0 %v7838_v23  ;;  %v1573_v46 = vpack.c.bf16 %v1568_v43, %v1567_v15 }
 0xb65   :  { %2120 = vmatprep.subr.bf16.mxu1 %v7843_v30  ;;  %2226 = vmatprep.subr.bf16.mxu0 %v7846_v16 }
 0xb67   :  { %2106 = vmatmul.mubr.bf16.gmra.mrb[8].mxu1 %v1574_v35  ;;  %2212 = vmatmul.mubr.bf16.gmra.mrb[16].mxu0 %v1574_v35 }
 0xb68   :  { %2121 = vmatpush1.bf16.msra.mxu1 %v7841_v34  ;;  %2227 = vmatpush1.bf16.msra.mxu0 %v7844_v21 }
 0xb69   :  { %2122 = vmatprep.subr.bf16.mxu1 %v7849_v26  ;;  %2228 = vmatprep.subr.bf16.mxu0 %v7852_v40 }
 0xb6a   :  { %2148 = vmatprep.mubr.bf16.mxu1 %v8349_v44  ;;  %2254 = vmatprep.mubr.bf16.mxu0 %v8349_v44 }
 0xb6c   :  { %2123 = vmatpush1.bf16.msra.mxu1 %v7847_v10  ;;  %2229 = vmatpush1.bf16.msra.mxu0 %v7850_v28 }
 0xb6f   :  { %6741 = vmatmul.mubr.msk.bf16.vlgmr.msra.gmra.mrb[4].mxu1 %vm544_vm7, %v1573_v46  ;;  %6743 = vmatmul.mubr.msk.bf16.vlgmr.msra.gmra.mrb[12].mxu0 %vm544_vm7, %v1573_v46 }
 0xb70   :  { %2158 = vmatprep.mubr.bf16.mxu1 %v8349_v44  ;;  %2264 = vmatprep.mubr.bf16.mxu0 %v8349_v44 }
 0xb77   :  { %6742 = vmatmul.mubr.msk.bf16.gmra.mrb[8].mxu1 %vm544_vm7, %v1576_v51  ;;  %6744 = vmatmul.mubr.msk.bf16.gmra.mrb[16].mxu0 %vm544_vm7, %v1576_v51 }
 0xc42   :  { %v9196_v53 = vpop.f32.mrb[4].mxu1  ;;  %v9198_v27 = vpop.f32.mrb[12].mxu0 }
 0xc43   :  { %v9200_v54 = vpop.f32.mrb[5].mxu1  ;;  %v9202_v55 = vpop.f32.mrb[13].mxu0  ;;  %v2311_v56 = vmul.f32 %v9196_v53, %v9196_v53  ;;  %v2313_v57 = vmul.f32 %v9198_v27, %v9198_v27 }
 0xc44   :  { %v2312_v58 = vmul.f32 %v9200_v54, %v9200_v54  ;;  %v2314_v25 = vmul.f32 %v9202_v55, %v9202_v55  ;;  %v9212_v13 = vpop.f32.mrb[6].mxu1  ;;  %v9214_v59 = vpop.f32.mrb[14].mxu0 }
 0xc45   :  { %v2275_v60 = vadd.f32 %v9212_v13, %v9196_v53  ;;  %v2315_v61 = vmul.f32 %v9212_v13, %v9212_v13  ;;  %v2293_v62 = vadd.f32 %v9214_v59, %v9198_v27  ;;  %v2317_v14 = vmul.f32 %v9214_v59, %v9214_v59  ;;  %v9224_v63 = vpop.f32.mrb[7].mxu1  ;;  %v9226_v12 = vpop.f32.mrb[15].mxu0 }
 0xc46   :  { %v2284_v39 = vadd.f32 %v9224_v63, %v9200_v54  ;;  %v2316_v1 = vmul.f32 %v9224_v63, %v9224_v63  ;;  %v2302_v2 = vadd.f32 %v9226_v12, %v9202_v55  ;;  %v2318_v3 = vmul.f32 %v9226_v12, %v9226_v12 }
 0xc47   :  { %v2327_v24 = vadd.f32 %v2315_v61, %v2311_v56  ;;  %v2345_v36 = vadd.f32 %v2317_v14, %v2313_v57 }
 0xc48   :  { %v2336_v31 = vadd.f32 %v2316_v1, %v2312_v58  ;;  %v2354_v20 = vadd.f32 %v2318_v3, %v2314_v25 }
 0xc4a   :  { %v9236_v17 = vpop.f32.mrb[8].mxu1  ;;  %v9238_v8 = vpop.f32.mrb[16].mxu0 }
 0xc4b   :  { %v2276_v4 = vadd.f32 %v2275_v60, %v9236_v17  ;;  %v2319_v37 = vmul.f32 %v9236_v17, %v9236_v17  ;;  %v2294_v5 = vadd.f32 %v2293_v62, %v9238_v8  ;;  %v2321_v6 = vmul.f32 %v9238_v8, %v9238_v8  ;;  %v9246_v38 = vpop.f32.mrb[9].mxu1  ;;  %v9248_v9 = vpop.f32.mrb[17].mxu0 }
 0xc4c   :  { %v2285_v22 = vadd.f32 %v2284_v39, %v9246_v38  ;;  %v2320_v23 = vmul.f32 %v9246_v38, %v9246_v38  ;;  %v2303_v29 = vadd.f32 %v2302_v2, %v9248_v9  ;;  %v2322_v30 = vmul.f32 %v9248_v9, %v9248_v9  ;;  %v9256_v16 = vpop.f32.mrb[10].mxu1  ;;  %v9258_v19 = vpop.f32.mrb[18].mxu0 }
 0xc4d   :  { %v2328_v32 = vadd.f32 %v2327_v24, %v2319_v37  ;;  %v2346_v33 = vadd.f32 %v2345_v36, %v2321_v6  ;;  %v2277_v34 = vadd.f32 %v2276_v4, %v9256_v16  ;;  %v2323_v21 = vmul.f32 %v9256_v16, %v9256_v16  ;;  %v9263_v35 = vpop.f32.mrb[11].mxu1  ;;  %v9265_v26 = vpop.f32.mrb[19].mxu0 }
 0xc4e   :  { %v2337_v40 = vadd.f32 %v2336_v31, %v2320_v23  ;;  %v2355_v41 = vadd.f32 %v2354_v20, %v2322_v30  ;;  %v2295_v42 = vadd.f32 %v2294_v5, %v9258_v19  ;;  %v2325_v10 = vmul.f32 %v9258_v19, %v9258_v19 }
 0xc4f   :  { %v2278_v28 = vrot.slane %v2277_v34, 4  ;;  %v2329_v43 = vadd.f32 %v2328_v32, %v2323_v21  ;;  %v2286_v15 = vadd.f32 %v2285_v22, %v9263_v35  ;;  %v2324_v45 = vmul.f32 %v9263_v35, %v9263_v35 }
 0xc50   :  { %v2296_v46 = vrot.slane %v2295_v42, 4  ;;  %v2347_v47 = vadd.f32 %v2346_v33, %v2325_v10  ;;  %v2304_v48 = vadd.f32 %v2303_v29, %v9265_v26  ;;  %v2326_v49 = vmul.f32 %v9265_v26, %v9265_v26 }
 0xc51   :  { %v2279_v50 = vadd.f32 %v2278_v28, %v2277_v34  ;;  %v2330_v51 = vrot.slane %v2329_v43, 4  ;;  %v2287_v56 = vrot.slane %v2286_v15, 4  ;;  %v2338_v57 = vadd.f32 %v2337_v40, %v2324_v45 }
 0xc52   :  { %v2297_v58 = vadd.f32 %v2296_v46, %v2295_v42  ;;  %v2348_v25 = vrot.slane %v2347_v47, 4  ;;  %v2305_v60 = vrot.slane %v2304_v48, 4  ;;  %v2356_v61 = vadd.f32 %v2355_v41, %v2326_v49 }
 0xc53   :  { %v2280_v62 = vrot.slane %v2279_v50, 2  ;;  %v2331_v14 = vadd.f32 %v2330_v51, %v2329_v43  ;;  %v2288_v39 = vadd.f32 %v2287_v56, %v2286_v15  ;;  %v2339_v1 = vrot.slane %v2338_v57, 4 }
 0xc54   :  { %v2298_v2 = vrot.slane %v2297_v58, 2  ;;  %v2349_v3 = vadd.f32 %v2348_v25, %v2347_v47  ;;  %v2306_v24 = vadd.f32 %v2305_v60, %v2304_v48  ;;  %v2357_v36 = vrot.slane %v2356_v61, 4 }
 0xc55   :  { %v2289_v31 = vrot.slane %v2288_v39, 2  ;;  %v2340_v20 = vadd.f32 %v2339_v1, %v2338_v57  ;;  %v2281_v4 = vadd.f32 %v2280_v62, %v2279_v50  ;;  %v2332_v37 = vrot.slane %v2331_v14, 2 }
 0xc56   :  { %v2307_v5 = vrot.slane %v2306_v24, 2  ;;  %v2358_v6 = vadd.f32 %v2357_v36, %v2356_v61  ;;  %v2299_v22 = vadd.f32 %v2298_v2, %v2297_v58  ;;  %v2350_v23 = vrot.slane %v2349_v3, 2 }
 0xc57   :  { %v2282_v29 = vrot.slane %v2281_v4, 1  ;;  %v2290_v30 = vadd.f32 %v2289_v31, %v2288_v39  ;;  %v2333_v32 = vadd.f32 %v2332_v37, %v2331_v14  ;;  %v2341_v33 = vrot.slane %v2340_v20, 2 }
 0xc58   :  { %v2300_v34 = vrot.slane %v2299_v22, 1  ;;  %v2308_v21 = vadd.f32 %v2307_v5, %v2306_v24  ;;  %v2351_v40 = vadd.f32 %v2350_v23, %v2349_v3  ;;  %v2359_v41 = vrot.slane %v2358_v6, 2 }
 0xc59   :  { %v2283_v42 = vadd.f32 %v2282_v29, %v2281_v4  ;;  %v2291_v10 = vrot.slane %v2290_v30, 1  ;;  %v2334_v28 = vrot.slane %v2333_v32, 1  ;;  %v2342_v43 = vadd.f32 %v2341_v33, %v2340_v20 }
 0xc5a   :  { %v2301_v15 = vadd.f32 %v2300_v34, %v2299_v22  ;;  %v2309_v45 = vrot.slane %v2308_v21, 1  ;;  %v2352_v46 = vrot.slane %v2351_v40, 1  ;;  %v2360_v47 = vadd.f32 %v2359_v41, %v2358_v6 }
 0xc5b   :  { %v2292_v48 = vadd.f32 %v2291_v10, %v2290_v30  ;;  %v2335_v49 = vadd.f32 %v2334_v28, %v2333_v32  ;;  %v2343_v50 = vrot.slane %v2342_v43, 1  ;;  %v2394_v32 = vld [vmem:[#allocation21] sm:$0x1] }
 0xc5c   :  { %v2310_v51 = vadd.f32 %v2309_v45, %v2308_v21  ;;  %v2363_v56 = vadd.f32 %v2301_v15, %v2283_v42  ;;  %v2353_v57 = vadd.f32 %v2352_v46, %v2351_v40  ;;  %v2361_v58 = vrot.slane %v2360_v47, 1  ;;  %v2398_v21 = vld [vmem:[#allocation23] sm:$0x1]  ;;  %v2639_v46 = vld [vmem:[#allocation24] sm:$0xff] }
 0xc5d   :  { %v2344_v25 = vadd.f32 %v2343_v50, %v2342_v43 }
 0xc5e   :  { %v2364_v60 = vadd.f32 %v2310_v51, %v2292_v48  ;;  %v2362_v61 = vadd.f32 %v2361_v58, %v2360_v47  ;;  %v2365_v62 = vadd.f32 %v2353_v57, %v2335_v49  ;;  %v2643_v47 = vld [vmem:[#allocation24 + $0x20] sm:$0xff]  ;;  %v2640_v48 = vld [vmem:[#allocation24 + $0x8] sm:$0xff] }
 0xc5f   :  { %v6745_v49 = vcombine.low %v2639_v46, %v2643_v47  ;;  %v6746_v50 = vcombine.high %v2639_v46, %v2643_v47  ;;  %v2644_v51 = vld [vmem:[#allocation24 + $0x28] sm:$0xff]  ;;  %v2651_v57 = vld [vmem:[#allocation24 + $0x60] sm:$0xff] }
 0xc60   :  { %v2367_v14 = vadd.f32 %v2364_v60, %v2363_v56  ;;  %v2366_v39 = vadd.f32 %v2362_v61, %v2344_v25  ;;  %v2647_v56 = vld [vmem:[#allocation24 + $0x40] sm:$0xff]  ;;  %v6747_v58 = vcombine.low %v2640_v48, %v2644_v51  ;;  %v6748_v25 = vcombine.high %v2640_v48, %v2644_v51  ;;  %v2648_v61 = vld [vmem:[#allocation24 + $0x48] sm:$0xff] }
 0xc61   :  { %v6754_v60 = vcombine.high %v2647_v56, %v2651_v57  ;;  %4373 = vmatprep.subr.bf16.mxu1 %v6746_v50  ;;  %v2680_v46 = vld [vmem:[#allocation24 + $0x148] sm:$0xff] }
 0xc62   :  { %2370 = vrot.lane.b32.xlu0 %v2367_v14, %s8338_s5  ;;  %v2368_v1 = vadd.f32 %v2366_v39, %v2365_v62  ;;  %v2652_v62 = vld [vmem:[#allocation24 + $0x68] sm:$0xff]  ;;  %4532 = vmatprep.subr.bf16.mxu0 %v6748_v25 }
 0xc63   :  { %v6756_v39 = vcombine.high %v2648_v61, %v2652_v62  ;;  %4374 = vmatpush1.bf16.msra.mxu1 %v6745_v49  ;;  %4533 = vmatpush1.bf16.msra.mxu0 %v6747_v58  ;;  %v2684_v47 = vld [vmem:[#allocation24 + $0x168] sm:$0xff] }
 0xc64   :  { %2375 = vrot.lane.b32.xlu1 %v2368_v1, %s8338_s5  ;;  %4375 = vmatprep.subr.bf16.mxu1 %v6754_v60  ;;  %v6788_v51 = vcombine.high %v2680_v46, %v2684_v47  ;;  %v2688_v58 = vld [vmem:[#allocation24 + $0x188] sm:$0xff] }
 0xc65   :  { %4534 = vmatprep.subr.bf16.mxu0 %v6756_v39  ;;  %v2692_v25 = vld [vmem:[#allocation24 + $0x1a8] sm:$0xff]  ;;  %v2695_v39 = vld [vmem:[#allocation24 + $0x1c0] sm:$0xff] }
 0xcd4   :  { %v2371_v2 = vpop.permute.xlu0 %2370 }
 0xcd5   :  { %v2373_v3 = vadd.f32 %v2371_v2, %v2367_v14  ;;  %v2655_v14 = vld [vmem:[#allocation24 + $0x80] sm:$0xff]  ;;  %v2656_v2 = vld [vmem:[#allocation24 + $0x88] sm:$0xff] }
 0xcd6   :  { %v2376_v24 = vpop.permute.xlu1 %2375 }
 0xcd7   :  { %v2378_v36 = vadd.f32 %v2376_v24, %v2368_v1  ;;  %2380 = vrot.lane.b32.xlu0 %v2373_v3, %s8348_s10  ;;  %v2659_v1 = vld [vmem:[#allocation24 + $0xa0] sm:$0xff]  ;;  %v6753_v24 = vcombine.low %v2647_v56, %v2651_v57 }
 0xcd8   :  { %v2687_v56 = vld [vmem:[#allocation24 + $0x180] sm:$0xff] }
 0xcd9   :  { %2385 = vrot.lane.b32.xlu1 %v2378_v36, %s8348_s10  ;;  %4376 = vmatpush1.bf16.msra.mxu1 %v6753_v24  ;;  %v2691_v57 = vld [vmem:[#allocation24 + $0x1a0] sm:$0xff] }
 0xcda   :  { %v6793_v24 = vcombine.low %v2687_v56, %v2691_v57 }
 0xd49   :  { %v2381_v31 = vpop.permute.xlu0 %2380 }
 0xd4a   :  { %v2383_v20 = vadd.f32 %v2381_v31, %v2373_v3  ;;  %v2660_v3 = vld [vmem:[#allocation24 + $0xa8] sm:$0xff]  ;;  %v6762_v31 = vcombine.high %v2655_v14, %v2659_v1 }
 0xd4b   :  { %v2386_v4 = vpop.permute.xlu1 %2385 }
 0xd4c   :  { %v2389_v37 = vmul.f32 0.001953125, %v2383_v20  ;;  %v2388_v5 = vadd.f32 %v2386_v4, %v2378_v36  ;;  %v6755_v36 = vcombine.low %v2648_v61, %v2652_v62  ;;  %v6764_v20 = vcombine.high %v2656_v2, %v2660_v3  ;;  %v2663_v4 = vld [vmem:[#allocation24 + $0xc0] sm:$0xff]  ;;  %4377 = vmatprep.subr.bf16.mxu1 %v6762_v31 }
 0xd4d   :  { %v6787_v61 = vcombine.low %v2680_v46, %v2684_v47  ;;  %v6794_v62 = vcombine.high %v2687_v56, %v2691_v57  ;;  %v2720_v46 = vld [vmem:[#allocation24 + $0x288] sm:$0xff]  ;;  %v2727_v56 = vld [vmem:[#allocation24 + $0x2c0] sm:$0xff] }
 0xd4e   :  { %v2391_v6 = vmul.f32 %v2389_v37, %v2389_v37  ;;  %v2390_v22 = vmul.f32 0.001953125, %v2388_v5  ;;  %v2664_v5 = vld [vmem:[#allocation24 + $0xc8] sm:$0xff]  ;;  %4535 = vmatpush1.bf16.msra.mxu0 %v6755_v36  ;;  %v6795_v36 = vcombine.low %v2688_v58, %v2692_v25  ;;  %v2731_v57 = vld [vmem:[#allocation24 + $0x2e0] sm:$0xff] }
 0xd4f   :  { %4536 = vmatprep.subr.bf16.mxu0 %v6764_v20  ;;  %v2724_v47 = vld [vmem:[#allocation24 + $0x2a8] sm:$0xff] }
 0xd50   :  { %v2392_v23 = vsub.f32 %v2390_v22, %v2391_v6  ;;  %v2668_v6 = vld [vmem:[#allocation24 + $0xe8] sm:$0xff]  ;;  %v6761_v22 = vcombine.low %v2655_v14, %v2659_v1  ;;  %v6796_v14 = vcombine.high %v2688_v58, %v2692_v25  ;;  %v2699_v1 = vld [vmem:[#allocation24 + $0x1e0] sm:$0xff] }
 0xd51   :  { %v6802_v31 = vcombine.high %v2695_v39, %v2699_v1  ;;  %v2728_v58 = vld [vmem:[#allocation24 + $0x2c8] sm:$0xff] }
 0xd52   :  { %v2393_v29 = vmax.f32 %v2392_v23, 0.0  ;;  %v6763_v23 = vcombine.low %v2656_v2, %v2660_v3  ;;  %4378 = vmatpush1.bf16.msra.mxu1 %v6761_v22  ;;  %v2696_v2 = vld [vmem:[#allocation24 + $0x1c8] sm:$0xff]  ;;  %v6801_v22 = vcombine.low %v2695_v39, %v2699_v1  ;;  %v2735_v39 = vld [vmem:[#allocation24 + $0x300] sm:$0xff] }
 0xd53   :  { %v2700_v3 = vld [vmem:[#allocation24 + $0x1e8] sm:$0xff]  ;;  %v2739_v1 = vld [vmem:[#allocation24 + $0x320] sm:$0xff] }
 0xd54   :  { %v2395_v30 = vadd.f32 1e-05, %v2393_v29  ;;  %4537 = vmatpush1.bf16.msra.mxu0 %v6763_v23  ;;  %v6804_v20 = vcombine.high %v2696_v2, %v2700_v3  ;;  %v6803_v23 = vcombine.low %v2696_v2, %v2700_v3  ;;  %v2732_v25 = vld [vmem:[#allocation24 + $0x2e8] sm:$0xff] }
 0xd55   :  { %v2736_v2 = vld [vmem:[#allocation24 + $0x308] sm:$0xff] }
 0xd56   :  { %7929 = vrsqrt.f32 %v2395_v30  ;;  %v6772_v30 = vcombine.high %v2664_v5, %v2668_v6  ;;  %v2740_v3 = vld [vmem:[#allocation24 + $0x328] sm:$0xff] }
 0xd58   :  { %4538 = vmatprep.subr.bf16.mxu0 %v6772_v30 }
 0xd60   :  { %v7930_v33 = vpop.eup %7929 }
 0xd61   :  { %v2397_v34 = vmul.f32 %v7930_v33, %v2394_v32  ;;  %v2671_v32 = vld [vmem:[#allocation24 + $0x100] sm:$0xff] }
 0xd62   :  { %v2675_v33 = vld [vmem:[#allocation24 + $0x120] sm:$0xff] }
 0xd63   :  { %v2405_v40 = vrot.slane %v2397_v34, %v8857_v7  ;;  %v2399_v41 = vmul.f32 %v2397_v34, %v2389_v37  ;;  %v2667_v37 = vld [vmem:[#allocation24 + $0xe0] sm:$0xff]  ;;  %v6777_v48 = vcombine.low %v2671_v32, %v2675_v33 }
 0xd64   :  { %v6770_v29 = vcombine.high %v2663_v4, %v2667_v37 }
 0xd65   :  { %2406 = vrot.lane.b32.xlu0 %v2405_v40, %s8333_s22  ;;  %v2400_v42 = vsub.f32 %v2398_v21, %v2399_v41  ;;  %v2676_v21 = vld [vmem:[#allocation24 + $0x128] sm:$0xff]  ;;  %v6769_v40 = vcombine.low %v2663_v4, %v2667_v37  ;;  %v6771_v41 = vcombine.low %v2664_v5, %v2668_v6  ;;  %v2703_v4 = vld [vmem:[#allocation24 + $0x200] sm:$0xff] }
 0xd66   :  { %4379 = vmatprep.subr.bf16.mxu1 %v6770_v29  ;;  %v2707_v37 = vld [vmem:[#allocation24 + $0x220] sm:$0xff]  ;;  %v2704_v5 = vld [vmem:[#allocation24 + $0x208] sm:$0xff] }
 0xd67   :  { %v2414_v10 = vrot.slane %v2400_v42, %v8857_v7  ;;  %4380 = vmatpush1.bf16.msra.mxu1 %v6769_v40  ;;  %4539 = vmatpush1.bf16.msra.mxu0 %v6771_v41  ;;  %v2708_v6 = vld [vmem:[#allocation24 + $0x228] sm:$0xff]  ;;  %v6810_v29 = vcombine.high %v2703_v4, %v2707_v37  ;;  %v6809_v40 = vcombine.low %v2703_v4, %v2707_v37  ;;  %v2743_v4 = vld [vmem:[#allocation24 + $0x340] sm:$0xff] }
 0xd68   :  { %v6812_v30 = vcombine.high %v2704_v5, %v2708_v6  ;;  %v6811_v41 = vcombine.low %v2704_v5, %v2708_v6  ;;  %v2747_v37 = vld [vmem:[#allocation24 + $0x360] sm:$0xff]  ;;  %v2744_v5 = vld [vmem:[#allocation24 + $0x348] sm:$0xff] }
 0xd69   :  { %2415 = vrot.lane.b32.xlu1 %v2414_v10, %s8333_s22  ;;  %v2748_v6 = vld [vmem:[#allocation24 + $0x368] sm:$0xff] }
 0xdd7   :  { %v2407_v28 = vpop.permute.xlu0 %2406 }
 0xdd8   :  { %v9285_v43 = vsel %vm407_vm0, %v2397_v34, %v2407_v28  ;;  %v2672_v34 = vld [vmem:[#allocation24 + $0x108] sm:$0xff]  ;;  %v2679_v28 = vld [vmem:[#allocation24 + $0x140] sm:$0xff] }
 0xdd9   :  { %2420 = vrot.lane.b32.xlu0 %v9285_v43, %s8338_s5  ;;  %v6780_v10 = vcombine.high %v2672_v34, %v2676_v21  ;;  %v6779_v49 = vcombine.low %v2672_v34, %v2676_v21  ;;  %v2712_v34 = vld [vmem:[#allocation24 + $0x248] sm:$0xff] }
 0xdda   :  { %v2716_v21 = vld [vmem:[#allocation24 + $0x268] sm:$0xff] }
 0xddb   :  { %v2416_v15 = vpop.permute.xlu1 %2415  ;;  %4540 = vmatprep.subr.bf16.mxu0 %v6780_v10  ;;  %v6820_v10 = vcombine.high %v2712_v34, %v2716_v21 }
 0xddc   :  { %v9290_v45 = vsel %vm407_vm0, %v2400_v42, %v2416_v15  ;;  %v6778_v42 = vcombine.high %v2671_v32, %v2675_v33  ;;  %v2683_v15 = vld [vmem:[#allocation24 + $0x160] sm:$0xff]  ;;  %4541 = vmatpush1.bf16.msra.mxu0 %v6779_v49  ;;  %v6819_v49 = vcombine.low %v2712_v34, %v2716_v21 }
 0xddd   :  { %2425 = vrot.lane.b32.xlu1 %v9290_v45, %s8338_s5  ;;  %v6786_v50 = vcombine.high %v2679_v28, %v2683_v15  ;;  %v6785_v60 = vcombine.low %v2679_v28, %v2683_v15  ;;  %4542 = vmatprep.subr.bf16.mxu0 %v6788_v51  ;;  %v2711_v32 = vld [vmem:[#allocation24 + $0x240] sm:$0xff]  ;;  %v6828_v51 = vcombine.high %v2720_v46, %v2724_v47 }
 0xdde   :  { %4381 = vmatprep.subr.bf16.mxu1 %v6778_v42  ;;  %v2715_v33 = vld [vmem:[#allocation24 + $0x260] sm:$0xff] }
 0xddf   :  { %4382 = vmatpush1.bf16.msra.mxu1 %v6777_v48  ;;  %v6818_v42 = vcombine.high %v2711_v32, %v2715_v33  ;;  %v2719_v28 = vld [vmem:[#allocation24 + $0x280] sm:$0xff]  ;;  %v6817_v48 = vcombine.low %v2711_v32, %v2715_v33  ;;  %v6849_v32 = vcombine.low %v2743_v4, %v2747_v37  ;;  %v6851_v33 = vcombine.low %v2744_v5, %v2748_v6 }
 0xde0   :  { %4383 = vmatprep.subr.bf16.mxu1 %v6786_v50  ;;  %4543 = vmatpush1.bf16.msra.mxu0 %v6787_v61  ;;  %v2723_v15 = vld [vmem:[#allocation24 + $0x2a0] sm:$0xff]  ;;  %v6827_v61 = vcombine.low %v2720_v46, %v2724_v47 }
 0xde1   :  { %4544 = vmatprep.subr.bf16.mxu0 %v6796_v14  ;;  %v6826_v50 = vcombine.high %v2719_v28, %v2723_v15  ;;  %v6836_v14 = vcombine.high %v2728_v58, %v2732_v25 }
 0xde3   :  { %4384 = vmatpush1.bf16.msra.mxu1 %v6785_v60  ;;  %v6825_v60 = vcombine.low %v2719_v28, %v2723_v15 }
 0xde4   :  { %4385 = vmatprep.subr.bf16.mxu1 %v6794_v62  ;;  %4545 = vmatpush1.bf16.msra.mxu0 %v6795_v36  ;;  %v6834_v62 = vcombine.high %v2727_v56, %v2731_v57  ;;  %v6835_v36 = vcombine.low %v2728_v58, %v2732_v25 }
 0xde5   :  { %4546 = vmatprep.subr.bf16.mxu0 %v6804_v20  ;;  %v6844_v20 = vcombine.high %v2736_v2, %v2740_v3 }
 0xde7   :  { %4386 = vmatpush1.bf16.msra.mxu1 %v6793_v24  ;;  %v6833_v24 = vcombine.low %v2727_v56, %v2731_v57 }
 0xde8   :  { %4387 = vmatprep.subr.bf16.mxu1 %v6802_v31  ;;  %4547 = vmatpush1.bf16.msra.mxu0 %v6803_v23  ;;  %v6842_v31 = vcombine.high %v2735_v39, %v2739_v1  ;;  %v6843_v23 = vcombine.low %v2736_v2, %v2740_v3 }
 0xde9   :  { %4548 = vmatprep.subr.bf16.mxu0 %v6812_v30  ;;  %v6852_v30 = vcombine.high %v2744_v5, %v2748_v6 }
 0xdeb   :  { %4388 = vmatpush1.bf16.msra.mxu1 %v6801_v22  ;;  %v6841_v22 = vcombine.low %v2735_v39, %v2739_v1 }
 0xdec   :  { %4389 = vmatprep.subr.bf16.mxu1 %v6810_v29  ;;  %4549 = vmatpush1.bf16.msra.mxu0 %v6811_v41  ;;  %v6850_v29 = vcombine.high %v2743_v4, %v2747_v37 }
 0xded   :  { %4550 = vmatprep.subr.bf16.mxu0 %v6820_v10 }
 0xdef   :  { %4390 = vmatpush1.bf16.msra.mxu1 %v6809_v40 }
 0xdf0   :  { %4391 = vmatprep.subr.bf16.mxu1 %v6818_v42  ;;  %4551 = vmatpush1.bf16.msra.mxu0 %v6819_v49 }
 0xdf1   :  { %4552 = vmatprep.subr.bf16.mxu0 %v6828_v51 }
 0xdf3   :  { %4392 = vmatpush1.bf16.msra.mxu1 %v6817_v48 }
 0xdf4   :  { %4393 = vmatprep.subr.bf16.mxu1 %v6826_v50  ;;  %4553 = vmatpush1.bf16.msra.mxu0 %v6827_v61 }
 0xdf5   :  { %4554 = vmatprep.subr.bf16.mxu0 %v6836_v14 }
 0xdf7   :  { %4394 = vmatpush1.bf16.msra.mxu1 %v6825_v60 }
 0xdf8   :  { %4395 = vmatprep.subr.bf16.mxu1 %v6834_v62  ;;  %4555 = vmatpush1.bf16.msra.mxu0 %v6835_v36 }
 0xdf9   :  { %4556 = vmatprep.subr.bf16.mxu0 %v6844_v20 }
 0xdfb   :  { %4396 = vmatpush1.bf16.msra.mxu1 %v6833_v24 }
 0xdfc   :  { %4397 = vmatprep.subr.bf16.mxu1 %v6842_v31  ;;  %4557 = vmatpush1.bf16.msra.mxu0 %v6843_v23 }
 0xdfd   :  { %4558 = vmatprep.subr.bf16.mxu0 %v6852_v30 }
 0xdff   :  { %4398 = vmatpush1.bf16.msra.mxu1 %v6841_v22 }
 0xe00   :  { %4399 = vmatprep.subr.bf16.mxu1 %v6850_v29  ;;  %4559 = vmatpush1.bf16.msra.mxu0 %v6851_v33 }
 0xe03   :  { %4400 = vmatpush1.bf16.msra.mxu1 %v6849_v32 }
 0xe4b   :  { %v2421_v34 = vpop.permute.xlu0 %2420 }
 0xe4c   :  { %v2423_v21 = vsel %vm544_vm7, %v9285_v43, %v2421_v34 }
 0xe4d   :  { %v2432_v40 = vrot.slane %v2423_v21, %v8857_v7 }
 0xe4f   :  { %v2426_v41 = vpop.permute.xlu1 %2425  ;;  %v2434_v42 = vmul.f32 %v2432_v40, %v9200_v54  ;;  %v2437_v10 = vmul.f32 %v2432_v40, %v9212_v13  ;;  %v2433_v28 = vmul.f32 %v2432_v40, %v9196_v53  ;;  %v2436_v15 = vmul.f32 %v2432_v40, %v9202_v55 }
 0xe50   :  { %v2428_v46 = vsel %vm544_vm7, %v9290_v45, %v2426_v41  ;;  %v2440_v47 = vmul.f32 %v2432_v40, %v9226_v12  ;;  %v2441_v48 = vmul.f32 %v2432_v40, %v9236_v17  ;;  %v2444_v43 = vmul.f32 %v2432_v40, %v9248_v9 }
 0xe51   :  { %v9307_v49 = vrot.slane %v2428_v46, %v8857_v7  ;;  %v2438_v54 = vmul.f32 %v2432_v40, %v9224_v63  ;;  %v2446_v13 = vmul.f32 %v2432_v40, %v9263_v35  ;;  %v2448_v53 = vmul.f32 %v2432_v40, %v9265_v26 }
 0xe52   :  { %v2442_v55 = vmul.f32 %v2432_v40, %v9246_v38  ;;  %v2445_v50 = vmul.f32 %v2432_v40, %v9256_v16  ;;  %v2439_v45 = vmul.f32 %v2432_v40, %v9214_v59  ;;  %v2435_v12 = vmul.f32 %v2432_v40, %v9198_v27 }
 0xe53   :  { %v2454_v17 = vadd.f32 %v9307_v49, %v2434_v42  ;;  %v2457_v9 = vadd.f32 %v9307_v49, %v2437_v10  ;;  %v2453_v51 = vadd.f32 %v9307_v49, %v2433_v28  ;;  %v2456_v63 = vadd.f32 %v9307_v49, %v2436_v15 }
 0xe54   :  { %v2460_v35 = vadd.f32 %v9307_v49, %v2440_v47  ;;  %v2461_v26 = vadd.f32 %v9307_v49, %v2441_v48  ;;  %v9323_v38 = vadd.f32 %v9307_v49, %v2444_v43  ;;  %v2458_v16 = vadd.f32 %v9307_v49, %v2438_v54 }
 0xe55   :  { %v2470_v59 = vmax.f32 %v2454_v17, 0.0  ;;  %v2473_v56 = vmax.f32 %v2457_v9, 0.0  ;;  %v2469_v27 = vmax.f32 %v2453_v51, 0.0  ;;  %v2472_v57 = vmax.f32 %v2456_v63, 0.0  ;;  %v2759_v63 = vld [vmem:[#allocation24 + $0x3c0] sm:$0xff] }
 0xe56   :  { %v2476_v58 = vmax.f32 %v2460_v35, 0.0  ;;  %v2477_v25 = vmax.f32 %v2461_v26, 0.0  ;;  %v2480_v60 = vmax.f32 %v9323_v38, 0.0  ;;  %v2474_v61 = vmax.f32 %v2458_v16, 0.0  ;;  %v2763_v35 = vld [vmem:[#allocation24 + $0x3e0] sm:$0xff]  ;;  %v2760_v26 = vld [vmem:[#allocation24 + $0x3c8] sm:$0xff] }
 0xe57   :  { %v2514_v62 = vrot.slane %v2473_v56, 1  ;;  %v7523_v14 = vpack.i.bf16 %v2473_v56, %v2470_v59  ;;  %v2489_v39 = vrot.slane %v2472_v57, 7  ;;  %v2513_v1 = vrot.slane %v2469_v27, 1 }
 0xe58   :  { %v2490_v2 = vrot.slane %v2476_v58, 7  ;;  %v2492_v3 = vrot.slane %v2480_v60, 7  ;;  %v2516_v24 = vrot.slane %v2477_v25, 1  ;;  %v2466_v36 = vadd.f32 %v9307_v49, %v2446_v13  ;;  %v2751_v13 = vld [vmem:[#allocation24 + $0x380] sm:$0xff] }
 0xe59   :  { %7524 = vrot.lane.b32.xlu1 %v7523_v14, %s8333_s22  ;;  %v7528_v31 = vpack.i.bf16 %v2469_v27, %v2489_v39  ;;  %v2468_v20 = vadd.f32 %v9307_v49, %v2448_v53  ;;  %v2462_v4 = vadd.f32 %v9307_v49, %v2442_v55  ;;  %v2465_v37 = vadd.f32 %v9307_v49, %v2445_v50  ;;  %v2755_v53 = vld [vmem:[#allocation24 + $0x3a0] sm:$0xff]  ;;  %v2764_v27 = vld [vmem:[#allocation24 + $0x3e8] sm:$0xff] }
 0xe5a   :  { %v2493_v5 = vsel %vm478_vm3, %v2490_v2, %v2492_v3  ;;  %v2491_v6 = vsel %vm478_vm3, %v2489_v39, %v2490_v2  ;;  %v2482_v22 = vmax.f32 %v2466_v36, 0.0  ;;  %v2459_v23 = vadd.f32 %v9307_v49, %v2439_v45  ;;  %v2756_v45 = vld [vmem:[#allocation24 + $0x3a8] sm:$0xff] }
 0xe5b   :  { %7529 = vrot.lane.b32.xlu0 %v7528_v31, %s8333_s22  ;;  %v7543_v29 = vpack.i.bf16 %v2477_v25, %v2493_v5  ;;  %v7533_v30 = vpack.i.bf16 %v2491_v6, %v2474_v61  ;;  %v2484_v32 = vmax.f32 %v2468_v20, 0.0  ;;  %v2478_v33 = vmax.f32 %v2462_v4, 0.0  ;;  %v9357_v25 = vld [vmem:[#allocation24 + $0x420] sm:$0xff]  ;;  %v9362_v39 = vld [vmem:[#allocation24 + $0x408] sm:$0xff] }
 0xe5c   :  { %v2481_v34 = vmax.f32 %v2465_v37, 0.0  ;;  %v2475_v21 = vmax.f32 %v2459_v23, 0.0  ;;  %v2455_v41 = vadd.f32 %v9307_v49, %v2435_v12  ;;  %v2447_v42 = vmul.f32 %v2432_v40, %v9258_v19 }
 0xe5d   :  { %7544 = vrot.lane.b32.xlu1 %v7543_v29, %s8333_s22  ;;  %v2494_v10 = vrot.slane %v2484_v32, 7  ;;  %v2443_v28 = vmul.f32 %v2432_v40, %v9238_v8  ;;  %v9343_v15 = vsel %vm491_vm2, %v2513_v1, %v2514_v62  ;;  %v2517_v46 = vsel %vm491_vm2, %v2514_v62, %v2516_v24  ;;  %v2752_v40 = vld [vmem:[#allocation24 + $0x388] sm:$0xff] }
 0xe5e   :  { %v7538_v47 = vpack.i.bf16 %v2481_v34, %v2478_v33  ;;  %v7558_v48 = vpack.i.bf16 %v2476_v58, %v2475_v21  ;;  %v2471_v43 = vmax.f32 %v2455_v41, 0.0  ;;  %v2467_v54 = vadd.f32 %v9307_v49, %v2447_v42  ;;  %v9355_v58 = vld [vmem:[#allocation24 + $0x400] sm:$0xff]  ;;  %v9364_v1 = vld [vmem:[#allocation24 + $0x428] sm:$0xff] }
 0xe5f   :  { %7534 = vrot.lane.b32.xlu0 %v7533_v30, %s8333_s22  ;;  %v2495_v19 = vsel %vm478_vm3, %v2492_v3, %v2494_v10  ;;  %v2463_v55 = vadd.f32 %v9307_v49, %v2443_v28  ;;  %v2518_v50 = vrot.slane %v2481_v34, 1  ;;  %v2530_v8 = vsel %vm280_vm1, 0.0, %v2517_v46  ;;  %v9388_v33 = vld [vmem:[#allocation24 + $0x440] sm:$0xff]  ;;  %v2776_v46 = vld [vmem:[#allocation24 + $0x448] sm:$0xff] }
 0xe60   :  { %v7548_v12 = vpack.i.bf16 %v2495_v19, %v2482_v22  ;;  %v7553_v17 = vpack.i.bf16 %v2472_v57, %v2471_v43  ;;  %v2483_v9 = vmax.f32 %v2467_v54, 0.0  ;;  %v7573_v51 = vpack.i.bf16 %v2530_v8, %v9343_v15  ;;  %v9390_v34 = vld [vmem:[#allocation24 + $0x460] sm:$0xff] }
 0xe61   :  { %v2479_v16 = vmax.f32 %v2463_v55, 0.0  ;;  %v2519_v59 = vsel %vm491_vm2, %v2516_v24, %v2518_v50  ;;  %v2524_v56 = vsel %vm491_vm2, %v2518_v50, 0.0  ;;  %v6857_v49 = vcombine.low %v2751_v13, %v2755_v53 }
 0xe62   :  { %7549 = vrot.lane.b32.xlu1 %v7548_v12, %s8333_s22  ;;  %v7568_v57 = vpack.i.bf16 %v2484_v32, %v2483_v9  ;;  %v2532_v61 = vsel %vm294_vm4, 0.0, %v2524_v56  ;;  %v6858_v62 = vcombine.high %v2751_v13, %v2755_v53  ;;  %v6859_v14 = vcombine.low %v2752_v40, %v2756_v45 }
 0xe63   :  { %7539 = vrot.lane.b32.xlu0 %v7538_v47, %s8333_s22  ;;  %v7563_v2 = vpack.i.bf16 %v2480_v60, %v2479_v16  ;;  %v7578_v3 = vpack.i.bf16 %v2532_v61, %v2519_v59  ;;  %v6860_v24 = vcombine.high %v2752_v40, %v2756_v45  ;;  %v6866_v36 = vcombine.high %v2759_v63, %v2763_v35  ;;  %v2780_v47 = vld [vmem:[#allocation24 + $0x468] sm:$0xff] }
 0xe64   :  { %4401 = vmatprep.subr.bf16.mxu1 %v6858_v62  ;;  %v6868_v31 = vcombine.high %v2760_v26, %v2764_v27  ;;  %v6873_v20 = vcombine.low %v9355_v58, %v9357_v25  ;;  %v6865_v4 = vcombine.low %v2759_v63, %v2763_v35  ;;  %v6875_v37 = vcombine.low %v9362_v39, %v9364_v1  ;;  %v9415_v63 = vld [vmem:[#allocation24 + $0x480] sm:$0xff]  ;;  %v2784_v16 = vld [vmem:[#allocation24 + $0x488] sm:$0xff] }
 0xe65   :  { %4560 = vmatprep.subr.bf16.mxu0 %v6860_v24  ;;  %4402 = vmatpush1.bf16.msra.mxu1 %v6857_v49  ;;  %v6867_v5 = vcombine.low %v2760_v26, %v2764_v27  ;;  %v6874_v38 = vcombine.high %v9355_v58, %v9357_v25  ;;  %v6876_v60 = vcombine.high %v9362_v39, %v9364_v1  ;;  %v2787_v35 = vld [vmem:[#allocation24 + $0x4a0] sm:$0xff]  ;;  %v2788_v59 = vld [vmem:[#allocation24 + $0x4a8] sm:$0xff] }
 0xe66   :  { %7559 = vrot.lane.b32.xlu1 %v7558_v48, %s8333_s22  ;;  %4561 = vmatpush1.bf16.msra.mxu0 %v6859_v14  ;;  %v6882_v48 = vcombine.high %v9388_v33, %v9390_v34  ;;  %v6884_v45 = vcombine.high %v2776_v46, %v2780_v47  ;;  %v6881_v26 = vcombine.low %v9388_v33, %v9390_v34  ;;  %v2791_v39 = vld [vmem:[#allocation24 + $0x4c0] sm:$0xff] }
 0xe67   :  { %7554 = vrot.lane.b32.xlu0 %v7553_v17, %s8333_s22  ;;  %4403 = vmatprep.subr.bf16.mxu1 %v6866_v36 }
 0xe68   :  { %4562 = vmatprep.subr.bf16.mxu0 %v6868_v31 }
 0xe69   :  { %4404 = vmatpush1.bf16.msra.mxu1 %v6865_v4  ;;  %v6892_v4 = vcombine.high %v2784_v16, %v2788_v59 }
 0xe6a   :  { %7569 = vrot.lane.b32.xlu1 %v7568_v57, %s8333_s22  ;;  %4563 = vmatpush1.bf16.msra.mxu0 %v6867_v5  ;;  %v6883_v57 = vcombine.low %v2776_v46, %v2780_v47  ;;  %v6889_v5 = vcombine.low %v9415_v63, %v2787_v35  ;;  %v2800_v46 = vld [vmem:[#allocation24 + $0x508] sm:$0xff] }
 0xe6b   :  { %7564 = vrot.lane.b32.xlu0 %v7563_v2, %s8333_s22  ;;  %4426 = vmatprep.subr.bf16.mxu1 %v6874_v38  ;;  %v6891_v38 = vcombine.low %v2784_v16, %v2788_v59  ;;  %v2804_v47 = vld [vmem:[#allocation24 + $0x528] sm:$0xff] }
 0xe6c   :  { %4585 = vmatprep.subr.bf16.mxu0 %v6876_v60  ;;  %v2795_v60 = vld [vmem:[#allocation24 + $0x4e0] sm:$0xff] }
 0xe6e   :  { %7579 = vrot.lane.b32.xlu1 %v7578_v3, %s8333_s22  ;;  %v6890_v3 = vcombine.high %v9415_v63, %v2787_v35  ;;  %v2808_v63 = vld [vmem:[#allocation24 + $0x548] sm:$0xff] }
 0xe6f   :  { %7574 = vrot.lane.b32.xlu0 %v7573_v51, %s8333_s22  ;;  %v2812_v35 = vld [vmem:[#allocation24 + $0x568] sm:$0xff] }
 0xecb   :  { %v9383_v6 = vpop.permute.xlu1 %7524 }
 0xecc   :  { %v7527_v42 = vunpack.i.h.bf16 %v9383_v6  ;;  %v7526_v10 = vunpack.i.l.bf16 %v9383_v6  ;;  %v2792_v6 = vld [vmem:[#allocation24 + $0x4c8] sm:$0xff] }
 0xecd   :  { %v7530_v22 = vpop.permute.xlu0 %7529 }
 0xece   :  { %v7531_v23 = vunpack.i.l.bf16 %v7530_v22  ;;  %v7532_v30 = vunpack.i.h.bf16 %v7530_v22  ;;  %v2796_v22 = vld [vmem:[#allocation24 + $0x4e8] sm:$0xff] }
 0xecf   :  { %v9385_v29 = vpop.permute.xlu1 %7544 }
 0xed0   :  { %v2508_v32 = vsel %vm478_vm3, 0.0, %v7531_v23  ;;  %v2573_v43 = vsel %vm407_vm0, %v7532_v30, %v7526_v10  ;;  %v7547_v55 = vunpack.i.h.bf16 %v9385_v29  ;;  %v7546_v12 = vunpack.i.l.bf16 %v9385_v29 }
 0xed1   :  { %v2525_v21 = vsel %vm275_vm5, 0.0, %v2508_v32  ;;  %v7535_v41 = vpop.permute.xlu0 %7534 }
 0xed2   :  { %v7537_v28 = vunpack.i.h.bf16 %v7535_v41  ;;  %v7536_v15 = vunpack.i.l.bf16 %v7535_v41  ;;  %v2621_v54 = vsel %vm407_vm0, %v2525_v21, %v7532_v30  ;;  %v2527_v24 = vsel %vm285_vm6, 0.0, %v7546_v12  ;;  %v2799_v41 = vld [vmem:[#allocation24 + $0x500] sm:$0xff] }
 0xed3   :  { %v2623_v23 = vsel %vm407_vm0, %v2527_v24, %v7547_v55 }
 0xed4   :  { %v2622_v13 = vsel %vm407_vm0, %v7537_v28, %v7527_v42  ;;  %v2576_v53 = vsel %vm407_vm0, %v7527_v42, %v7536_v15  ;;  %v9402_v19 = vpop.permute.xlu1 %7549  ;;  %v6900_v28 = vcombine.high %v2792_v6, %v2796_v22 }
 0xed5   :  { %v9405_v50 = vpack.c.bf16 %v2622_v13, %v2621_v54  ;;  %v9407_v8 = vpack.c.bf16 %v2576_v53, %v2573_v43  ;;  %v9409_v40 = vpop.permute.xlu0 %7539  ;;  %v7551_v17 = vunpack.i.l.bf16 %v9402_v19  ;;  %v7552_v61 = vunpack.i.h.bf16 %v9402_v19 }
 0xed6   :  { %v7542_v9 = vunpack.i.h.bf16 %v9409_v40  ;;  %v7541_v51 = vunpack.i.l.bf16 %v9409_v40  ;;  %v6897_v19 = vcombine.low %v2791_v39, %v2795_v60 }
 0xed7   :  { %4405 = vmatprep.mubr.bf16.mxu1 %v9407_v8  ;;  %4564 = vmatprep.mubr.bf16.mxu0 %v9407_v8 }
 0xed8   :  { %v2582_v56 = vsel %vm407_vm0, %v7542_v9, %v7551_v17  ;;  %v2579_v49 = vsel %vm407_vm0, %v7547_v55, %v7541_v51  ;;  %v9423_v27 = vpop.permute.xlu1 %7559  ;;  %4406 = vmatmul.mubr.bf16.vlgmr.msra.gmra.mrb[12].mxu1 %v9405_v50  ;;  %4565 = vmatmul.mubr.bf16.vlgmr.msra.gmra.mrb[20].mxu0 %v9405_v50  ;;  %v2624_v58 = vsel %vm407_vm0, %v7552_v61, %v7542_v9  ;;  %v2807_v9 = vld [vmem:[#allocation24 + $0x540] sm:$0xff] }
 0xed9   :  { %v9428_v62 = vpack.c.bf16 %v2582_v56, %v2579_v49  ;;  %v7561_v14 = vunpack.i.l.bf16 %v9423_v27  ;;  %4427 = vmatpush1.bf16.msra.mxu1 %v6873_v20  ;;  %4586 = vmatpush1.bf16.msra.mxu0 %v6875_v37  ;;  %v9437_v2 = vpop.permute.xlu0 %7554  ;;  %v7562_v25 = vunpack.i.h.bf16 %v9423_v27  ;;  %v9460_v34 = vpack.c.bf16 %v2624_v58, %v2623_v23  ;;  %v2815_v61 = vld [vmem:[#allocation24 + $0x580] sm:$0xff]  ;;  %v2832_v23 = vld [vmem:[#allocation24 + $0x608] sm:$0xff] }
 0xeda   :  { %v7557_v36 = vunpack.i.h.bf16 %v9437_v2  ;;  %v7556_v31 = vunpack.i.l.bf16 %v9437_v2  ;;  %4428 = vmatprep.subr.bf16.mxu1 %v6882_v48  ;;  %4587 = vmatprep.subr.bf16.mxu0 %v6884_v45  ;;  %v6899_v55 = vcombine.low %v2792_v6, %v2796_v22  ;;  %v6907_v49 = vcombine.low %v2800_v46, %v2804_v47  ;;  %v2816_v2 = vld [vmem:[#allocation24 + $0x588] sm:$0xff]  ;;  %v2823_v58 = vld [vmem:[#allocation24 + $0x5c0] sm:$0xff] }
 0xedb   :  { %4415 = vmatprep.mubr.bf16.mxu1 %v9428_v62  ;;  %4574 = vmatprep.mubr.bf16.mxu0 %v9428_v62  ;;  %v2577_v1 = vsel %vm407_vm0, %v7536_v15, %v7561_v14  ;;  %v2578_v42 = vsel %vm407_vm0, %v7561_v14, %v7562_v25  ;;  %v2803_v15 = vld [vmem:[#allocation24 + $0x520] sm:$0xff] }
 0xedc   :  { %v2574_v20 = vsel %vm407_vm0, %v7526_v10, %v7556_v31  ;;  %v9450_v37 = vpop.permute.xlu1 %7569  ;;  %v2575_v29 = vsel %vm407_vm0, %v7556_v31, %v7557_v36  ;;  %v6898_v10 = vcombine.high %v2791_v39, %v2795_v60  ;;  %v6906_v12 = vcombine.high %v2799_v41, %v2803_v15  ;;  %v2819_v14 = vld [vmem:[#allocation24 + $0x5a0] sm:$0xff]  ;;  %v2824_v39 = vld [vmem:[#allocation24 + $0x5c8] sm:$0xff] }
 0xedd   :  { %v9455_v30 = vpack.c.bf16 %v2577_v1, %v2574_v20  ;;  %v7571_v32 = vunpack.i.l.bf16 %v9450_v37  ;;  %4429 = vmatpush1.bf16.msra.mxu1 %v6881_v26  ;;  %4588 = vmatpush1.bf16.msra.mxu0 %v6883_v57  ;;  %v9458_v33 = vpop.permute.xlu0 %7564  ;;  %v9464_v48 = vpack.c.bf16 %v2578_v42, %v2575_v29  ;;  %v6905_v56 = vcombine.low %v2799_v41, %v2803_v15  ;;  %v2828_v1 = vld [vmem:[#allocation24 + $0x5e8] sm:$0xff]  ;;  %v2831_v6 = vld [vmem:[#allocation24 + $0x600] sm:$0xff] }
 0xede   :  { %v7566_v21 = vunpack.i.l.bf16 %v9458_v33  ;;  %4430 = vmatprep.subr.bf16.mxu1 %v6890_v3  ;;  %4589 = vmatprep.subr.bf16.mxu0 %v6892_v4  ;;  %v6916_v57 = vcombine.high %v2808_v63, %v2812_v35  ;;  %v2820_v3 = vld [vmem:[#allocation24 + $0x5a8] sm:$0xff]  ;;  %v6915_v31 = vcombine.low %v2808_v63, %v2812_v35  ;;  %v6921_v20 = vcombine.low %v2815_v61, %v2819_v14  ;;  %v2835_v22 = vld [vmem:[#allocation24 + $0x620] sm:$0xff] }
 0xedf   :  { %v2583_v43 = vsel %vm407_vm0, %v7551_v17, %v7571_v32  ;;  %v6908_v17 = vcombine.high %v2800_v46, %v2804_v47  ;;  %v6924_v4 = vcombine.high %v2816_v2, %v2820_v3  ;;  %v6932_v60 = vcombine.high %v2824_v39, %v2828_v1  ;;  %v2836_v29 = vld [vmem:[#allocation24 + $0x628] sm:$0xff]  ;;  %v2839_v15 = vld [vmem:[#allocation24 + $0x640] sm:$0xff] }
 0xee0   :  { %v2580_v54 = vsel %vm407_vm0, %v7541_v51, %v7566_v21  ;;  %4416 = vmatmul.mubr.bf16.gmra.mrb[16].mxu1 %v9460_v34  ;;  %4575 = vmatmul.mubr.bf16.gmra.mrb[24].mxu0 %v9460_v34  ;;  %v2811_v51 = vld [vmem:[#allocation24 + $0x560] sm:$0xff]  ;;  %v6931_v42 = vcombine.low %v2824_v39, %v2828_v1  ;;  %v2840_v47 = vld [vmem:[#allocation24 + $0x648] sm:$0xff] }
 0xee1   :  { %v9474_v13 = vpack.c.bf16 %v2583_v43, %v2580_v54  ;;  %4431 = vmatpush1.bf16.msra.mxu1 %v6889_v5  ;;  %4590 = vmatpush1.bf16.msra.mxu0 %v6891_v38  ;;  %v7575_v53 = vpop.permute.xlu0 %7574  ;;  %v6914_v27 = vcombine.high %v2807_v9, %v2811_v51  ;;  %v6913_v24 = vcombine.low %v2807_v9, %v2811_v51  ;;  %v2843_v46 = vld [vmem:[#allocation24 + $0x660] sm:$0xff]  ;;  %v2844_v43 = vld [vmem:[#allocation24 + $0x668] sm:$0xff] }
 0xee2   :  { %4458 = vmatprep.mubr.bf16.mxu1 %v9464_v48  ;;  %4617 = vmatprep.mubr.bf16.mxu0 %v9464_v48  ;;  %v7577_v40 = vunpack.i.h.bf16 %v7575_v53  ;;  %v7576_v45 = vunpack.i.l.bf16 %v7575_v53  ;;  %v6923_v5 = vcombine.low %v2816_v2, %v2820_v3  ;;  %v6937_v54 = vcombine.low %v2831_v6, %v2835_v22  ;;  %v2863_v2 = vld [vmem:[#allocation24 + $0x700] sm:$0xff] }
 0xee3   :  { %4432 = vmatprep.subr.bf16.mxu1 %v6898_v10  ;;  %4591 = vmatprep.subr.bf16.mxu0 %v6900_v28  ;;  %v6938_v10 = vcombine.high %v2831_v6, %v2835_v22  ;;  %v6940_v28 = vcombine.high %v2832_v23, %v2836_v29  ;;  %v6939_v53 = vcombine.low %v2832_v23, %v2836_v29  ;;  %v2867_v3 = vld [vmem:[#allocation24 + $0x720] sm:$0xff] }
 0xee4   :  { %v2626_v26 = vsel %vm407_vm0, %v7562_v25, %v7577_v40  ;;  %v2625_v16 = vsel %vm407_vm0, %v7557_v36, %v7576_v45  ;;  %v6922_v36 = vcombine.high %v2815_v61, %v2819_v14  ;;  %v2827_v25 = vld [vmem:[#allocation24 + $0x5e0] sm:$0xff]  ;;  %v6945_v9 = vcombine.low %v2839_v15, %v2843_v46 }
 0xee5   :  { %v9480_v59 = vpack.c.bf16 %v2626_v26, %v2625_v16  ;;  %4433 = vmatpush1.bf16.msra.mxu1 %v6897_v19  ;;  %4592 = vmatpush1.bf16.msra.mxu0 %v6899_v55  ;;  %v6930_v38 = vcombine.high %v2823_v58, %v2827_v25  ;;  %v6929_v41 = vcombine.low %v2823_v58, %v2827_v25  ;;  %v2847_v40 = vld [vmem:[#allocation24 + $0x680] sm:$0xff] }
 0xee6   :  { %4434 = vmatprep.subr.bf16.mxu1 %v6906_v12  ;;  %4593 = vmatprep.subr.bf16.mxu0 %v6908_v17  ;;  %v6946_v19 = vcombine.high %v2839_v15, %v2843_v46  ;;  %v6948_v55 = vcombine.high %v2840_v47, %v2844_v43  ;;  %v2851_v45 = vld [vmem:[#allocation24 + $0x6a0] sm:$0xff]  ;;  %v2848_v12 = vld [vmem:[#allocation24 + $0x688] sm:$0xff]  ;;  %v6947_v51 = vcombine.low %v2840_v47, %v2844_v43 }
 0xee7   :  { %v2852_v17 = vld [vmem:[#allocation24 + $0x6a8] sm:$0xff]  ;;  %v6954_v63 = vcombine.high %v2847_v40, %v2851_v45  ;;  %v2855_v26 = vld [vmem:[#allocation24 + $0x6c0] sm:$0xff]  ;;  %v6970_v58 = vcombine.high %v2863_v2, %v2867_v3 }
 0xee8   :  { %v6956_v35 = vcombine.high %v2848_v12, %v2852_v17  ;;  %v2859_v16 = vld [vmem:[#allocation24 + $0x6e0] sm:$0xff] }
 0xee9   :  { %4435 = vmatpush1.bf16.msra.mxu1 %v6905_v56  ;;  %4594 = vmatpush1.bf16.msra.mxu0 %v6907_v49  ;;  %v2856_v56 = vld [vmem:[#allocation24 + $0x6c8] sm:$0xff]  ;;  %v6962_v61 = vcombine.high %v2855_v26, %v2859_v16  ;;  %v2871_v39 = vld [vmem:[#allocation24 + $0x740] sm:$0xff] }
 0xeea   :  { %4436 = vmatprep.subr.bf16.mxu1 %v6914_v27  ;;  %4595 = vmatprep.subr.bf16.mxu0 %v6916_v57  ;;  %v2860_v49 = vld [vmem:[#allocation24 + $0x6e8] sm:$0xff]  ;;  %v6953_v27 = vcombine.low %v2847_v40, %v2851_v45  ;;  %v6955_v57 = vcombine.low %v2848_v12, %v2852_v17  ;;  %v2875_v1 = vld [vmem:[#allocation24 + $0x760] sm:$0xff] }
 0xeeb   :  { %v6964_v14 = vcombine.high %v2856_v56, %v2860_v49  ;;  %v6978_v6 = vcombine.high %v2871_v39, %v2875_v1  ;;  %v2879_v23 = vld [vmem:[#allocation24 + $0x780] sm:$0xff] }
 0xeec   :  { %v2883_v29 = vld [vmem:[#allocation24 + $0x7a0] sm:$0xff] }
 0xeed   :  { %4437 = vmatpush1.bf16.msra.mxu1 %v6913_v24  ;;  %4596 = vmatpush1.bf16.msra.mxu0 %v6915_v31  ;;  %v2864_v24 = vld [vmem:[#allocation24 + $0x708] sm:$0xff]  ;;  %v6986_v15 = vcombine.high %v2879_v23, %v2883_v29  ;;  %v2887_v47 = vld [vmem:[#allocation24 + $0x7c0] sm:$0xff] }
 0xeee   :  { %4438 = vmatprep.subr.bf16.mxu1 %v6922_v36  ;;  %4597 = vmatprep.subr.bf16.mxu0 %v6924_v4  ;;  %v2868_v31 = vld [vmem:[#allocation24 + $0x728] sm:$0xff]  ;;  %v6961_v36 = vcombine.low %v2855_v26, %v2859_v16  ;;  %v6963_v4 = vcombine.low %v2856_v56, %v2860_v49  ;;  %v2891_v43 = vld [vmem:[#allocation24 + $0x7e0] sm:$0xff]  ;;  %v7572_v16 = vunpack.i.h.bf16 %v9450_v37 }
 0xeef   :  { %v6972_v25 = vcombine.high %v2864_v24, %v2868_v31  ;;  %v6994_v40 = vcombine.high %v2887_v47, %v2891_v43  ;;  %v2895_v12 = vld [vmem:[#allocation24 + $0x800] sm:$0xff] }
 0xef0   :  { %v2899_v17 = vld [vmem:[#allocation24 + $0x820] sm:$0xff] }
 0xef1   :  { %4439 = vmatpush1.bf16.msra.mxu1 %v6921_v20  ;;  %4598 = vmatpush1.bf16.msra.mxu0 %v6923_v5  ;;  %v2872_v20 = vld [vmem:[#allocation24 + $0x748] sm:$0xff]  ;;  %v7002_v56 = vcombine.high %v2895_v12, %v2899_v17 }
 0xef2   :  { %4440 = vmatprep.subr.bf16.mxu1 %v6930_v38  ;;  %4599 = vmatprep.subr.bf16.mxu0 %v6932_v60  ;;  %v2876_v5 = vld [vmem:[#allocation24 + $0x768] sm:$0xff]  ;;  %v6969_v38 = vcombine.low %v2863_v2, %v2867_v3  ;;  %v6971_v60 = vcombine.low %v2864_v24, %v2868_v31  ;;  %v7001_v3 = vcombine.low %v2895_v12, %v2899_v17  ;;  %v2650_v12 = vld [vmem:[#allocation24 + $0x58] sm:$0xff] }
 0xef3   :  { %v6980_v22 = vcombine.high %v2872_v20, %v2876_v5  ;;  %v2908_v2 = vld [vmem:[#allocation24 + $0x868] sm:$0xff]  ;;  %v2584_v24 = vsel %vm407_vm0, %v7571_v32, %v7572_v16  ;;  %v2654_v17 = vld [vmem:[#allocation24 + $0x78] sm:$0xff] }
 0xef5   :  { %4441 = vmatpush1.bf16.msra.mxu1 %v6929_v41  ;;  %4600 = vmatpush1.bf16.msra.mxu0 %v6931_v42  ;;  %v2880_v41 = vld [vmem:[#allocation24 + $0x788] sm:$0xff] }
 0xef6   :  { %4442 = vmatprep.subr.bf16.mxu1 %v6938_v10  ;;  %4601 = vmatprep.subr.bf16.mxu0 %v6940_v28  ;;  %v2884_v42 = vld [vmem:[#allocation24 + $0x7a8] sm:$0xff]  ;;  %v6977_v10 = vcombine.low %v2871_v39, %v2875_v1  ;;  %v6979_v28 = vcombine.low %v2872_v20, %v2876_v5 }
 0xef7   :  { %v6988_v46 = vcombine.high %v2880_v41, %v2884_v42  ;;  %v2912_v39 = vld [vmem:[#allocation24 + $0x888] sm:$0xff] }
 0xef8   :  { %v2916_v1 = vld [vmem:[#allocation24 + $0x8a8] sm:$0xff] }
 0xef9   :  { %4443 = vmatpush1.bf16.msra.mxu1 %v6937_v54  ;;  %4602 = vmatpush1.bf16.msra.mxu0 %v6939_v53  ;;  %v2888_v54 = vld [vmem:[#allocation24 + $0x7c8] sm:$0xff] }
 0xefa   :  { %4444 = vmatprep.subr.bf16.mxu1 %v6946_v19  ;;  %4603 = vmatprep.subr.bf16.mxu0 %v6948_v55  ;;  %v2892_v53 = vld [vmem:[#allocation24 + $0x7e8] sm:$0xff]  ;;  %v6985_v19 = vcombine.low %v2879_v23, %v2883_v29  ;;  %v6987_v55 = vcombine.low %v2880_v41, %v2884_v42  ;;  %v7019_v41 = vcombine.low %v2912_v39, %v2916_v1 }
 0xefb   :  { %v6996_v45 = vcombine.high %v2888_v54, %v2892_v53  ;;  %v6995_v26 = vcombine.low %v2888_v54, %v2892_v53  ;;  %v2924_v23 = vld [vmem:[#allocation24 + $0x8e8] sm:$0xff] }
 0xefd   :  { %4445 = vmatpush1.bf16.msra.mxu1 %v6945_v9  ;;  %4604 = vmatpush1.bf16.msra.mxu0 %v6947_v51  ;;  %v2896_v9 = vld [vmem:[#allocation24 + $0x808] sm:$0xff] }
 0xefe   :  { %4446 = vmatprep.subr.bf16.mxu1 %v6954_v63  ;;  %4605 = vmatprep.subr.bf16.mxu0 %v6956_v35  ;;  %v2900_v51 = vld [vmem:[#allocation24 + $0x828] sm:$0xff]  ;;  %v7567_v63 = vunpack.i.h.bf16 %v9458_v33  ;;  %v6993_v35 = vcombine.low %v2887_v47, %v2891_v43  ;;  %v2646_v47 = vld [vmem:[#allocation24 + $0x38] sm:$0xff] }
 0xeff   :  { %v7004_v49 = vcombine.high %v2896_v9, %v2900_v51  ;;  %v7003_v31 = vcombine.low %v2896_v9, %v2900_v51 }
 0xf01   :  { %4447 = vmatpush1.bf16.msra.mxu1 %v6953_v27  ;;  %4606 = vmatpush1.bf16.msra.mxu0 %v6955_v57  ;;  %v2903_v27 = vld [vmem:[#allocation24 + $0x840] sm:$0xff]  ;;  %v2581_v57 = vsel %vm407_vm0, %v7566_v21, %v7567_v63 }
 0xf02   :  { %4448 = vmatprep.subr.bf16.mxu1 %v6962_v61  ;;  %4607 = vmatprep.subr.bf16.mxu0 %v6964_v14  ;;  %v2907_v61 = vld [vmem:[#allocation24 + $0x860] sm:$0xff]  ;;  %v2904_v14 = vld [vmem:[#allocation24 + $0x848] sm:$0xff] }
 0xf03   :  { %v2911_v21 = vld [vmem:[#allocation24 + $0x880] sm:$0xff]  ;;  %v7009_v20 = vcombine.low %v2903_v27, %v2907_v61  ;;  %v7011_v32 = vcombine.low %v2904_v14, %v2908_v2 }
 0xf05   :  { %4449 = vmatpush1.bf16.msra.mxu1 %v6961_v36  ;;  %4608 = vmatpush1.bf16.msra.mxu0 %v6963_v4  ;;  %v9494_v36 = vpack.c.bf16 %v2584_v24, %v2581_v57  ;;  %v7010_v4 = vcombine.high %v2903_v27, %v2907_v61  ;;  %v2657_v27 = vld [vmem:[#allocation24 + $0x90] sm:$0xff]  ;;  %v2658_v61 = vld [vmem:[#allocation24 + $0x98] sm:$0xff] }
 0xf06   :  { %4450 = vmatprep.subr.bf16.mxu1 %v6970_v58  ;;  %4609 = vmatprep.subr.bf16.mxu0 %v6972_v25  ;;  %v7012_v58 = vcombine.high %v2904_v14, %v2908_v2  ;;  %v2915_v25 = vld [vmem:[#allocation24 + $0x8a0] sm:$0xff]  ;;  %v2661_v57 = vld [vmem:[#allocation24 + $0xb0] sm:$0xff]  ;;  %v2662_v14 = vld [vmem:[#allocation24 + $0xb8] sm:$0xff] }
 0xf07   :  { %v7018_v5 = vcombine.high %v2911_v21, %v2915_v25  ;;  %v7017_v29 = vcombine.low %v2911_v21, %v2915_v25  ;;  %v6766_v24 = vcombine.high %v2657_v27, %v2661_v57  ;;  %v2665_v21 = vld [vmem:[#allocation24 + $0xd0] sm:$0xff]  ;;  %v6767_v33 = vcombine.low %v2658_v61, %v2662_v14 }
 0xf08   :  { %v2669_v25 = vld [vmem:[#allocation24 + $0xf0] sm:$0xff] }
 0xf09   :  { %4451 = vmatpush1.bf16.msra.mxu1 %v6969_v38  ;;  %4610 = vmatpush1.bf16.msra.mxu0 %v6971_v60  ;;  %v7020_v38 = vcombine.high %v2912_v39, %v2916_v1  ;;  %v2919_v60 = vld [vmem:[#allocation24 + $0x8c0] sm:$0xff]  ;;  %v6765_v39 = vcombine.low %v2657_v27, %v2661_v57  ;;  %v2666_v1 = vld [vmem:[#allocation24 + $0xd8] sm:$0xff]  ;;  %v6774_v37 = vcombine.high %v2665_v21, %v2669_v25  ;;  %v2705_v57 = vld [vmem:[#allocation24 + $0x210] sm:$0xff] }
 0xf0a   :  { %4452 = vmatprep.subr.bf16.mxu1 %v6978_v6  ;;  %4611 = vmatprep.subr.bf16.mxu0 %v6980_v22  ;;  %v2923_v6 = vld [vmem:[#allocation24 + $0x8e0] sm:$0xff]  ;;  %v2920_v22 = vld [vmem:[#allocation24 + $0x8c8] sm:$0xff] }
 0xf0b   :  { %v7026_v42 = vcombine.high %v2919_v60, %v2923_v6  ;;  %v7025_v43 = vcombine.low %v2919_v60, %v2923_v6  ;;  %v7027_v54 = vcombine.low %v2920_v22, %v2924_v23  ;;  %v2678_v60 = vld [vmem:[#allocation24 + $0x138] sm:$0xff]  ;;  %v6773_v6 = vcombine.low %v2665_v21, %v2669_v25  ;;  %v2717_v21 = vld [vmem:[#allocation24 + $0x270] sm:$0xff] }
 0xf0c   :  { %v2714_v25 = vld [vmem:[#allocation24 + $0x258] sm:$0xff] }
 0xf0d   :  { %4453 = vmatpush1.bf16.msra.mxu1 %v6977_v10  ;;  %4612 = vmatpush1.bf16.msra.mxu0 %v6979_v28  ;;  %v7028_v10 = vcombine.high %v2920_v22, %v2924_v23  ;;  %v2641_v28 = vld [vmem:[#allocation24 + $0x10] sm:$0xff] }
 0xf0e   :  { %4454 = vmatprep.subr.bf16.mxu1 %v6986_v15  ;;  %4613 = vmatprep.subr.bf16.mxu0 %v6988_v46  ;;  %v2645_v15 = vld [vmem:[#allocation24 + $0x30] sm:$0xff]  ;;  %v2642_v46 = vld [vmem:[#allocation24 + $0x18] sm:$0xff] }
 0xf0f   :  { %v6750_v53 = vcombine.high %v2641_v28, %v2645_v15  ;;  %v6749_v9 = vcombine.low %v2641_v28, %v2645_v15  ;;  %v6751_v51 = vcombine.low %v2642_v46, %v2646_v47  ;;  %v2686_v28 = vld [vmem:[#allocation24 + $0x178] sm:$0xff] }
 0xf11   :  { %4455 = vmatpush1.bf16.msra.mxu1 %v6985_v19  ;;  %4614 = vmatpush1.bf16.msra.mxu0 %v6987_v55  ;;  %v6752_v19 = vcombine.high %v2642_v46, %v2646_v47  ;;  %v2649_v55 = vld [vmem:[#allocation24 + $0x50] sm:$0xff] }
 0xf12   :  { %4456 = vmatprep.subr.bf16.mxu1 %v6994_v40  ;;  %4615 = vmatprep.subr.bf16.mxu0 %v6996_v45  ;;  %v2653_v40 = vld [vmem:[#allocation24 + $0x70] sm:$0xff]  ;;  %v7580_v45 = vpop.permute.xlu1 %7579 }
 0xf13   :  { %v6757_v2 = vcombine.low %v2649_v55, %v2653_v40 }
 0xf15   :  { %4457 = vmatpush1.bf16.msra.mxu1 %v6993_v35  ;;  %4616 = vmatpush1.bf16.msra.mxu0 %v6995_v26  ;;  %v6758_v35 = vcombine.high %v2649_v55, %v2653_v40  ;;  %v7582_v26 = vunpack.i.h.bf16 %v7580_v45  ;;  %v2694_v55 = vld [vmem:[#allocation24 + $0x1b8] sm:$0xff] }
 0xf16   :  { %4479 = vmatprep.subr.bf16.mxu1 %v7002_v56  ;;  %4638 = vmatprep.subr.bf16.mxu0 %v7004_v49  ;;  %v7581_v56 = vunpack.i.l.bf16 %v7580_v45  ;;  %v6760_v49 = vcombine.high %v2650_v12, %v2654_v17 }
 0xf18   :  { %4459 = vmatmul.mubr.bf16.vlgmr.msra.gmra.mrb[12].mxu1 %v9455_v30  ;;  %4618 = vmatmul.mubr.bf16.vlgmr.msra.gmra.mrb[20].mxu0 %v9455_v30 }
 0xf19   :  { %4468 = vmatprep.mubr.bf16.mxu1 %v9494_v36  ;;  %4480 = vmatpush1.bf16.msra.mxu1 %v7001_v3  ;;  %v6759_v3 = vcombine.low %v2650_v12, %v2654_v17  ;;  %v2697_v17 = vld [vmem:[#allocation24 + $0x1d0] sm:$0xff] }
 0xf1a   :  { %4627 = vmatprep.mubr.bf16.mxu0 %v9494_v36  ;;  %4639 = vmatpush1.bf16.msra.mxu0 %v7003_v31  ;;  %v2627_v31 = vsel %vm407_vm0, %v7567_v63, %v7581_v56  ;;  %v2673_v63 = vld [vmem:[#allocation24 + $0x110] sm:$0xff] }
 0xf1b   :  { %4481 = vmatprep.subr.bf16.mxu1 %v7010_v4  ;;  %4640 = vmatprep.subr.bf16.mxu0 %v7012_v58  ;;  %v2628_v4 = vsel %vm407_vm0, %v7572_v16, %v7582_v26  ;;  %v6768_v58 = vcombine.high %v2658_v61, %v2662_v14  ;;  %v2677_v16 = vld [vmem:[#allocation24 + $0x130] sm:$0xff]  ;;  %v2706_v14 = vld [vmem:[#allocation24 + $0x218] sm:$0xff] }
 0xf1c   :  { %v6782_v23 = vcombine.high %v2673_v63, %v2677_v16  ;;  %v6781_v15 = vcombine.low %v2673_v63, %v2677_v16  ;;  %v2709_v61 = vld [vmem:[#allocation24 + $0x230] sm:$0xff] }
 0xf1d   :  { %4482 = vmatpush1.bf16.msra.mxu1 %v7009_v20  ;;  %v2670_v20 = vld [vmem:[#allocation24 + $0xf8] sm:$0xff]  ;;  %v2721_v63 = vld [vmem:[#allocation24 + $0x290] sm:$0xff] }
 0xf1e   :  { %4641 = vmatpush1.bf16.msra.mxu0 %v7011_v32  ;;  %4483 = vmatprep.subr.bf16.mxu1 %v7018_v5  ;;  %v9516_v32 = vpack.c.bf16 %v2628_v4, %v2627_v31  ;;  %v6776_v5 = vcombine.high %v2666_v1, %v2670_v20  ;;  %v6775_v22 = vcombine.low %v2666_v1, %v2670_v20  ;;  %v2725_v16 = vld [vmem:[#allocation24 + $0x2b0] sm:$0xff] }
 0xf1f   :  { %4642 = vmatprep.subr.bf16.mxu0 %v7020_v38  ;;  %v2674_v38 = vld [vmem:[#allocation24 + $0x118] sm:$0xff]  ;;  %v6814_v31 = vcombine.high %v2705_v57, %v2709_v61  ;;  %v6813_v1 = vcombine.low %v2705_v57, %v2709_v61  ;;  %v2757_v57 = vld [vmem:[#allocation24 + $0x3b0] sm:$0xff] }
 0xf20   :  { %4469 = vmatmul.mubr.bf16.gmra.mrb[16].mxu1 %v9474_v13  ;;  %4628 = vmatmul.mubr.bf16.gmra.mrb[24].mxu0 %v9474_v13  ;;  %v6783_v46 = vcombine.low %v2674_v38, %v2678_v60  ;;  %v2754_v61 = vld [vmem:[#allocation24 + $0x398] sm:$0xff] }
 0xf21   :  { %4484 = vmatpush1.bf16.msra.mxu1 %v7017_v29  ;;  %4511 = vmatprep.mubr.bf16.mxu1 %v8349_v44  ;;  %v6784_v29 = vcombine.high %v2674_v38, %v2678_v60  ;;  %v2726_v38 = vld [vmem:[#allocation24 + $0x2b8] sm:$0xff] }
 0xf22   :  { %4643 = vmatpush1.bf16.msra.mxu0 %v7019_v41  ;;  %4485 = vmatprep.subr.bf16.mxu1 %v7026_v42  ;;  %v2681_v41 = vld [vmem:[#allocation24 + $0x150] sm:$0xff] }
 0xf23   :  { %4644 = vmatprep.subr.bf16.mxu0 %v7028_v10  ;;  %4670 = vmatprep.mubr.bf16.mxu0 %v8349_v44  ;;  %v2685_v42 = vld [vmem:[#allocation24 + $0x170] sm:$0xff]  ;;  %v2682_v10 = vld [vmem:[#allocation24 + $0x158] sm:$0xff] }
 0xf24   :  { %v6790_v47 = vcombine.high %v2681_v41, %v2685_v42  ;;  %v6791_v40 = vcombine.low %v2682_v10, %v2686_v28 }
 0xf25   :  { %4486 = vmatpush1.bf16.msra.mxu1 %v7025_v43  ;;  %v6792_v43 = vcombine.high %v2682_v10, %v2686_v28  ;;  %v2734_v10 = vld [vmem:[#allocation24 + $0x2f8] sm:$0xff]  ;;  %v6829_v28 = vcombine.low %v2721_v63, %v2725_v16 }
 0xf26   :  { %4645 = vmatpush1.bf16.msra.mxu0 %v7027_v54  ;;  %4691 = vmatprep.subr.bf16.mxu1 %v6750_v53  ;;  %v2689_v54 = vld [vmem:[#allocation24 + $0x190] sm:$0xff] }
 0xf27   :  { %4850 = vmatprep.subr.bf16.mxu0 %v6752_v19  ;;  %v2693_v53 = vld [vmem:[#allocation24 + $0x1b0] sm:$0xff]  ;;  %v2690_v19 = vld [vmem:[#allocation24 + $0x198] sm:$0xff] }
 0xf28   :  { %7033 = vmatmul.mubr.msk.bf16.vlgmr.msra.gmra.mrb[12].mxu1 %vm544_vm7, %v9480_v59  ;;  %v6798_v45 = vcombine.high %v2689_v54, %v2693_v53  ;;  %v6800_v12 = vcombine.high %v2690_v19, %v2694_v55  ;;  %v6797_v26 = vcombine.low %v2689_v54, %v2693_v53  ;;  %v6799_v56 = vcombine.low %v2690_v19, %v2694_v55  ;;  %v2741_v54 = vld [vmem:[#allocation24 + $0x330] sm:$0xff]  ;;  %v2738_v53 = vld [vmem:[#allocation24 + $0x318] sm:$0xff] }
 0xf29   :  { %7035 = vmatmul.mubr.msk.bf16.vlgmr.msra.gmra.mrb[20].mxu0 %vm544_vm7, %v9480_v59  ;;  %4692 = vmatpush1.bf16.msra.mxu1 %v6749_v9  ;;  %v2701_v9 = vld [vmem:[#allocation24 + $0x1f0] sm:$0xff]  ;;  %v2742_v19 = vld [vmem:[#allocation24 + $0x338] sm:$0xff] }
 0xf2a   :  { %4851 = vmatpush1.bf16.msra.mxu0 %v6751_v51  ;;  %4693 = vmatprep.subr.bf16.mxu1 %v6758_v35  ;;  %v2698_v51 = vld [vmem:[#allocation24 + $0x1d8] sm:$0xff] }
 0xf2b   :  { %4852 = vmatprep.subr.bf16.mxu0 %v6760_v49  ;;  %4521 = vmatprep.mubr.bf16.mxu1 %v8349_v44  ;;  %v2702_v35 = vld [vmem:[#allocation24 + $0x1f8] sm:$0xff]  ;;  %v6806_v49 = vcombine.high %v2697_v17, %v2701_v9 }
 0xf2c   :  { %4680 = vmatprep.mubr.bf16.mxu0 %v8349_v44  ;;  %v6808_v27 = vcombine.high %v2698_v51, %v2702_v35 }
 0xf2d   :  { %4694 = vmatpush1.bf16.msra.mxu1 %v6757_v2  ;;  %v2710_v2 = vld [vmem:[#allocation24 + $0x238] sm:$0xff] }
 0xf2e   :  { %4853 = vmatpush1.bf16.msra.mxu0 %v6759_v3  ;;  %4695 = vmatprep.subr.bf16.mxu1 %v6766_v24  ;;  %v6805_v3 = vcombine.low %v2697_v17, %v2701_v9  ;;  %v6807_v24 = vcombine.low %v2698_v51, %v2702_v35  ;;  %v6816_v4 = vcombine.high %v2706_v14, %v2710_v2  ;;  %v2749_v17 = vld [vmem:[#allocation24 + $0x370] sm:$0xff]  ;;  %v2746_v9 = vld [vmem:[#allocation24 + $0x358] sm:$0xff] }
 0xf2f   :  { %4854 = vmatprep.subr.bf16.mxu0 %v6768_v58  ;;  %v2713_v58 = vld [vmem:[#allocation24 + $0x250] sm:$0xff]  ;;  %v6815_v20 = vcombine.low %v2706_v14, %v2710_v2  ;;  %v2750_v51 = vld [vmem:[#allocation24 + $0x378] sm:$0xff] }
 0xf30   :  { %7034 = vmatmul.mubr.msk.bf16.gmra.mrb[16].mxu1 %vm544_vm7, %v9516_v32  ;;  %v6821_v60 = vcombine.low %v2713_v58, %v2717_v21  ;;  %v2758_v14 = vld [vmem:[#allocation24 + $0x3b8] sm:$0xff] }
 0xf31   :  { %7036 = vmatmul.mubr.msk.bf16.gmra.mrb[24].mxu0 %vm544_vm7, %v9516_v32  ;;  %4696 = vmatpush1.bf16.msra.mxu1 %v6765_v39  ;;  %v2718_v39 = vld [vmem:[#allocation24 + $0x278] sm:$0xff] }
 0xf32   :  { %4723 = vmatprep.mubr.bf16.mxu1 %v9407_v8  ;;  %4855 = vmatpush1.bf16.msra.mxu0 %v6767_v33  ;;  %v6822_v33 = vcombine.high %v2713_v58, %v2717_v21  ;;  %v2765_v58 = vld [vmem:[#allocation24 + $0x3f0] sm:$0xff]  ;;  %v2762_v21 = vld [vmem:[#allocation24 + $0x3d8] sm:$0xff] }
 0xf33   :  { %4882 = vmatprep.mubr.bf16.mxu0 %v9407_v8  ;;  %4697 = vmatprep.subr.bf16.mxu1 %v6774_v37  ;;  %v6789_v8 = vcombine.low %v2681_v41, %v2685_v42  ;;  %v6824_v37 = vcombine.high %v2714_v25, %v2718_v39  ;;  %v2733_v41 = vld [vmem:[#allocation24 + $0x2f0] sm:$0xff]  ;;  %v2730_v42 = vld [vmem:[#allocation24 + $0x2d8] sm:$0xff] }
 0xf34   :  { %4856 = vmatprep.subr.bf16.mxu0 %v6776_v5  ;;  %v2722_v5 = vld [vmem:[#allocation24 + $0x298] sm:$0xff] }
 0xf35   :  { %4698 = vmatpush1.bf16.msra.mxu1 %v6773_v6  ;;  %v6823_v6 = vcombine.low %v2714_v25, %v2718_v39  ;;  %v2766_v25 = vld [vmem:[#allocation24 + $0x3f8] sm:$0xff] }
 0xf36   :  { %4857 = vmatpush1.bf16.msra.mxu0 %v6775_v22  ;;  %4699 = vmatprep.subr.bf16.mxu1 %v6782_v23  ;;  %v6830_v22 = vcombine.high %v2721_v63, %v2725_v16  ;;  %v6832_v23 = vcombine.high %v2722_v5, %v2726_v38  ;;  %v2773_v63 = vld [vmem:[#allocation24 + $0x430] sm:$0xff]  ;;  %v2770_v16 = vld [vmem:[#allocation24 + $0x418] sm:$0xff] }
 0xf37   :  { %4858 = vmatprep.subr.bf16.mxu0 %v6784_v29  ;;  %v2729_v29 = vld [vmem:[#allocation24 + $0x2d0] sm:$0xff] }
 0xf38   :  { %v6837_v55 = vcombine.low %v2729_v29, %v2733_v41 }
 0xf39   :  { %4700 = vmatpush1.bf16.msra.mxu1 %v6781_v15  ;;  %v6831_v15 = vcombine.low %v2722_v5, %v2726_v38  ;;  %v2774_v5 = vld [vmem:[#allocation24 + $0x438] sm:$0xff] }
 0xf3a   :  { %4859 = vmatpush1.bf16.msra.mxu0 %v6783_v46  ;;  %4701 = vmatprep.subr.bf16.mxu1 %v6790_v47  ;;  %v6838_v46 = vcombine.high %v2729_v29, %v2733_v41  ;;  %v6840_v47 = vcombine.high %v2730_v42, %v2734_v10  ;;  %v2781_v29 = vld [vmem:[#allocation24 + $0x470] sm:$0xff]  ;;  %v2778_v41 = vld [vmem:[#allocation24 + $0x458] sm:$0xff] }
 0xf3b   :  { %4860 = vmatprep.subr.bf16.mxu0 %v6792_v43  ;;  %v2737_v43 = vld [vmem:[#allocation24 + $0x310] sm:$0xff] }
 0xf3c   :  { %v6845_v35 = vcombine.low %v2737_v43, %v2741_v54 }
 0xf3d   :  { %4702 = vmatpush1.bf16.msra.mxu1 %v6789_v8  ;;  %v6839_v8 = vcombine.low %v2730_v42, %v2734_v10  ;;  %v2782_v42 = vld [vmem:[#allocation24 + $0x478] sm:$0xff] }
 0xf3e   :  { %4861 = vmatpush1.bf16.msra.mxu0 %v6791_v40  ;;  %4703 = vmatprep.subr.bf16.mxu1 %v6798_v45  ;;  %v6846_v40 = vcombine.high %v2737_v43, %v2741_v54  ;;  %v6848_v45 = vcombine.high %v2738_v53, %v2742_v19  ;;  %v2789_v43 = vld [vmem:[#allocation24 + $0x4b0] sm:$0xff]  ;;  %v2786_v54 = vld [vmem:[#allocation24 + $0x498] sm:$0xff] }
 0xf3f   :  { %4862 = vmatprep.subr.bf16.mxu0 %v6800_v12  ;;  %v2745_v12 = vld [vmem:[#allocation24 + $0x350] sm:$0xff] }
 0xf40   :  { %v6853_v2 = vcombine.low %v2745_v12, %v2749_v17 }
 0xf41   :  { %4704 = vmatpush1.bf16.msra.mxu1 %v6797_v26  ;;  %v6847_v26 = vcombine.low %v2738_v53, %v2742_v19  ;;  %v2790_v53 = vld [vmem:[#allocation24 + $0x4b8] sm:$0xff] }
 0xf42   :  { %4863 = vmatpush1.bf16.msra.mxu0 %v6799_v56  ;;  %4705 = vmatprep.subr.bf16.mxu1 %v6806_v49  ;;  %v6854_v56 = vcombine.high %v2745_v12, %v2749_v17  ;;  %v6856_v49 = vcombine.high %v2746_v9, %v2750_v51  ;;  %v2797_v12 = vld [vmem:[#allocation24 + $0x4f0] sm:$0xff]  ;;  %v2794_v17 = vld [vmem:[#allocation24 + $0x4d8] sm:$0xff] }
 0xf43   :  { %4864 = vmatprep.subr.bf16.mxu0 %v6808_v27  ;;  %v2753_v27 = vld [vmem:[#allocation24 + $0x390] sm:$0xff] }
 0xf44   :  { %v6861_v39 = vcombine.low %v2753_v27, %v2757_v57 }
 0xf45   :  { %4706 = vmatpush1.bf16.msra.mxu1 %v6805_v3  ;;  %v6855_v3 = vcombine.low %v2746_v9, %v2750_v51  ;;  %v2798_v9 = vld [vmem:[#allocation24 + $0x4f8] sm:$0xff]  ;;  %v6895_v51 = vcombine.low %v2786_v54, %v2790_v53 }
 0xf46   :  { %4865 = vmatpush1.bf16.msra.mxu0 %v6807_v24  ;;  %4707 = vmatprep.subr.bf16.mxu1 %v6814_v31  ;;  %v6862_v24 = vcombine.high %v2753_v27, %v2757_v57  ;;  %v6864_v31 = vcombine.high %v2754_v61, %v2758_v14  ;;  %v2806_v27 = vld [vmem:[#allocation24 + $0x538] sm:$0xff] }
 0xf47   :  { %4866 = vmatprep.subr.bf16.mxu0 %v6816_v4  ;;  %v2761_v4 = vld [vmem:[#allocation24 + $0x3d0] sm:$0xff] }
 0xf48   :  { %v6869_v38 = vcombine.low %v2761_v4, %v2765_v58 }
 0xf49   :  { %4708 = vmatpush1.bf16.msra.mxu1 %v6813_v1  ;;  %v6863_v1 = vcombine.low %v2754_v61, %v2758_v14  ;;  %v6903_v61 = vcombine.low %v2794_v17, %v2798_v9 }
 0xf4a   :  { %4867 = vmatpush1.bf16.msra.mxu0 %v6815_v20  ;;  %4709 = vmatprep.subr.bf16.mxu1 %v6822_v33  ;;  %v6870_v20 = vcombine.high %v2761_v4, %v2765_v58  ;;  %v6872_v33 = vcombine.high %v2762_v21, %v2766_v25  ;;  %v2814_v4 = vld [vmem:[#allocation24 + $0x578] sm:$0xff] }
 0xf4b   :  { %4868 = vmatprep.subr.bf16.mxu0 %v6824_v37  ;;  %v2769_v37 = vld [vmem:[#allocation24 + $0x410] sm:$0xff] }
 0xf4c   :  { %v6877_v10 = vcombine.low %v2769_v37, %v2773_v63 }
 0xf4d   :  { %4710 = vmatpush1.bf16.msra.mxu1 %v6821_v60  ;;  %v6871_v60 = vcombine.low %v2762_v21, %v2766_v25 }
 0xf4e   :  { %4869 = vmatpush1.bf16.msra.mxu0 %v6823_v6  ;;  %4711 = vmatprep.subr.bf16.mxu1 %v6830_v22  ;;  %v6878_v6 = vcombine.high %v2769_v37, %v2773_v63  ;;  %v6880_v22 = vcombine.high %v2770_v16, %v2774_v5 }
 0xf4f   :  { %4870 = vmatprep.subr.bf16.mxu0 %v6832_v23  ;;  %v2777_v23 = vld [vmem:[#allocation24 + $0x450] sm:$0xff] }
 0xf50   :  { %v6885_v19 = vcombine.low %v2777_v23, %v2781_v29 }
 0xf51   :  { %4712 = vmatpush1.bf16.msra.mxu1 %v6829_v28  ;;  %v6879_v28 = vcombine.low %v2770_v16, %v2774_v5  ;;  %v2825_v5 = vld [vmem:[#allocation24 + $0x5d0] sm:$0xff] }
 0xf52   :  { %4871 = vmatpush1.bf16.msra.mxu0 %v6831_v15  ;;  %4713 = vmatprep.subr.bf16.mxu1 %v6838_v46  ;;  %v6886_v15 = vcombine.high %v2777_v23, %v2781_v29  ;;  %v6888_v46 = vcombine.high %v2778_v41, %v2782_v42 }
 0xf53   :  { %4872 = vmatprep.subr.bf16.mxu0 %v6840_v47  ;;  %v2785_v47 = vld [vmem:[#allocation24 + $0x490] sm:$0xff] }
 0xf55   :  { %4714 = vmatpush1.bf16.msra.mxu1 %v6837_v55  ;;  %v6887_v55 = vcombine.low %v2778_v41, %v2782_v42  ;;  %v2833_v42 = vld [vmem:[#allocation24 + $0x610] sm:$0xff] }
 0xf56   :  { %4873 = vmatpush1.bf16.msra.mxu0 %v6839_v8  ;;  %4715 = vmatprep.subr.bf16.mxu1 %v6846_v40  ;;  %v6894_v8 = vcombine.high %v2785_v47, %v2789_v43  ;;  %v6896_v40 = vcombine.high %v2786_v54, %v2790_v53  ;;  %v2841_v53 = vld [vmem:[#allocation24 + $0x650] sm:$0xff] }
 0xf57   :  { %4874 = vmatprep.subr.bf16.mxu0 %v6848_v45  ;;  %v2793_v45 = vld [vmem:[#allocation24 + $0x4d0] sm:$0xff] }
 0xf58   :  { %v6901_v57 = vcombine.low %v2793_v45, %v2797_v12 }
 0xf59   :  { %4716 = vmatpush1.bf16.msra.mxu1 %v6845_v35  ;;  %v6902_v35 = vcombine.high %v2793_v45, %v2797_v12 }
 0xf5a   :  { %4875 = vmatpush1.bf16.msra.mxu0 %v6847_v26  ;;  %4717 = vmatprep.subr.bf16.mxu1 %v6854_v56  ;;  %v2801_v26 = vld [vmem:[#allocation24 + $0x510] sm:$0xff] }
 0xf5b   :  { %4876 = vmatprep.subr.bf16.mxu0 %v6856_v49  ;;  %v2805_v56 = vld [vmem:[#allocation24 + $0x530] sm:$0xff]  ;;  %v2802_v49 = vld [vmem:[#allocation24 + $0x518] sm:$0xff] }
 0xf5c   :  { %v6910_v14 = vcombine.high %v2801_v26, %v2805_v56  ;;  %v6911_v58 = vcombine.low %v2802_v49, %v2806_v27 }
 0xf5d   :  { %4718 = vmatpush1.bf16.msra.mxu1 %v6853_v2  ;;  %v6912_v2 = vcombine.high %v2802_v49, %v2806_v27  ;;  %v2857_v27 = vld [vmem:[#allocation24 + $0x6d0] sm:$0xff] }
 0xf5e   :  { %4877 = vmatpush1.bf16.msra.mxu0 %v6855_v3  ;;  %4719 = vmatprep.subr.bf16.mxu1 %v6862_v24  ;;  %v2809_v3 = vld [vmem:[#allocation24 + $0x550] sm:$0xff] }
 0xf5f   :  { %4878 = vmatprep.subr.bf16.mxu0 %v6864_v31  ;;  %v2813_v24 = vld [vmem:[#allocation24 + $0x570] sm:$0xff]  ;;  %v2810_v31 = vld [vmem:[#allocation24 + $0x558] sm:$0xff] }
 0xf60   :  { %v6918_v21 = vcombine.high %v2809_v3, %v2813_v24  ;;  %v6920_v25 = vcombine.high %v2810_v31, %v2814_v4  ;;  %v6919_v37 = vcombine.low %v2810_v31, %v2814_v4  ;;  %v2865_v4 = vld [vmem:[#allocation24 + $0x710] sm:$0xff] }
 0xf61   :  { %4720 = vmatpush1.bf16.msra.mxu1 %v6861_v39  ;;  %v2821_v39 = vld [vmem:[#allocation24 + $0x5b0] sm:$0xff] }
 0xf62   :  { %4879 = vmatpush1.bf16.msra.mxu0 %v6863_v1  ;;  %4721 = vmatprep.subr.bf16.mxu1 %v6870_v20  ;;  %v2818_v1 = vld [vmem:[#allocation24 + $0x598] sm:$0xff] }
 0xf63   :  { %4880 = vmatprep.subr.bf16.mxu0 %v6872_v33  ;;  %v2822_v20 = vld [vmem:[#allocation24 + $0x5b8] sm:$0xff]  ;;  %v6917_v33 = vcombine.low %v2809_v3, %v2813_v24 }
 0xf64   :  { %v6928_v16 = vcombine.high %v2818_v1, %v2822_v20  ;;  %v6927_v23 = vcombine.low %v2818_v1, %v2822_v20  ;;  %v2873_v20 = vld [vmem:[#allocation24 + $0x750] sm:$0xff] }
 0xf65   :  { %4722 = vmatpush1.bf16.msra.mxu1 %v6869_v38  ;;  %v2829_v38 = vld [vmem:[#allocation24 + $0x5f0] sm:$0xff] }
 0xf66   :  { %4881 = vmatpush1.bf16.msra.mxu0 %v6871_v60  ;;  %4744 = vmatprep.subr.bf16.mxu1 %v6878_v6  ;;  %v2826_v60 = vld [vmem:[#allocation24 + $0x5d8] sm:$0xff]  ;;  %v6934_v29 = vcombine.high %v2825_v5, %v2829_v38 }
 0xf67   :  { %4903 = vmatprep.subr.bf16.mxu0 %v6880_v22  ;;  %v2830_v6 = vld [vmem:[#allocation24 + $0x5f8] sm:$0xff] }
 0xf68   :  { %4724 = vmatmul.mubr.bf16.vlgmr.msra.gmra.mrb[20].mxu1 %v9405_v50  ;;  %v6936_v41 = vcombine.high %v2826_v60, %v2830_v6 }
 0xf69   :  { %4883 = vmatmul.mubr.bf16.vlgmr.msra.gmra.mrb[28].mxu0 %v9405_v50  ;;  %4733 = vmatprep.mubr.bf16.mxu1 %v9428_v62  ;;  %v6893_v50 = vcombine.low %v2785_v47, %v2789_v43  ;;  %v6935_v47 = vcombine.low %v2826_v60, %v2830_v6  ;;  %v2881_v6 = vld [vmem:[#allocation24 + $0x790] sm:$0xff] }
 0xf6a   :  { %4745 = vmatpush1.bf16.msra.mxu1 %v6877_v10  ;;  %4892 = vmatprep.mubr.bf16.mxu0 %v9428_v62  ;;  %v6904_v62 = vcombine.high %v2794_v17, %v2798_v9  ;;  %v2837_v10 = vld [vmem:[#allocation24 + $0x630] sm:$0xff] }
 0xf6b   :  { %4904 = vmatpush1.bf16.msra.mxu0 %v6879_v28  ;;  %4746 = vmatprep.subr.bf16.mxu1 %v6886_v15  ;;  %v2834_v28 = vld [vmem:[#allocation24 + $0x618] sm:$0xff]  ;;  %v6942_v43 = vcombine.high %v2833_v42, %v2837_v10  ;;  %v2849_v9 = vld [vmem:[#allocation24 + $0x690] sm:$0xff] }
 0xf6c   :  { %4905 = vmatprep.subr.bf16.mxu0 %v6888_v46  ;;  %v2838_v15 = vld [vmem:[#allocation24 + $0x638] sm:$0xff]  ;;  %v6933_v46 = vcombine.low %v2825_v5, %v2829_v38 }
 0xf6d   :  { %v6944_v54 = vcombine.high %v2834_v28, %v2838_v15  ;;  %v6943_v45 = vcombine.low %v2834_v28, %v2838_v15  ;;  %v2889_v15 = vld [vmem:[#allocation24 + $0x7d0] sm:$0xff] }
 0xf6e   :  { %4747 = vmatpush1.bf16.msra.mxu1 %v6885_v19  ;;  %v2845_v19 = vld [vmem:[#allocation24 + $0x670] sm:$0xff] }
 0xf6f   :  { %4906 = vmatpush1.bf16.msra.mxu0 %v6887_v55  ;;  %4748 = vmatprep.subr.bf16.mxu1 %v6894_v8  ;;  %v2842_v55 = vld [vmem:[#allocation24 + $0x658] sm:$0xff]  ;;  %v6950_v12 = vcombine.high %v2841_v53, %v2845_v19 }
 0xf70   :  { %4734 = vmatmul.mubr.bf16.gmra.mrb[24].mxu1 %v9460_v34  ;;  %4907 = vmatprep.subr.bf16.mxu0 %v6896_v40  ;;  %v2846_v8 = vld [vmem:[#allocation24 + $0x678] sm:$0xff]  ;;  %v6941_v40 = vcombine.low %v2833_v42, %v2837_v10 }
 0xf71   :  { %4893 = vmatmul.mubr.bf16.gmra.mrb[32].mxu0 %v9460_v34  ;;  %4776 = vmatprep.mubr.bf16.mxu1 %v9464_v48  ;;  %v6909_v34 = vcombine.low %v2801_v26, %v2805_v56  ;;  %v6952_v17 = vcombine.high %v2842_v55, %v2846_v8  ;;  %v6951_v26 = vcombine.low %v2842_v55, %v2846_v8  ;;  %v2897_v8 = vld [vmem:[#allocation24 + $0x810] sm:$0xff] }
 0xf72   :  { %4749 = vmatpush1.bf16.msra.mxu1 %v6893_v50  ;;  %4935 = vmatprep.mubr.bf16.mxu0 %v9464_v48  ;;  %v2817_v48 = vld [vmem:[#allocation24 + $0x590] sm:$0xff] }
 0xf73   :  { %4908 = vmatpush1.bf16.msra.mxu0 %v6895_v51  ;;  %4750 = vmatprep.subr.bf16.mxu1 %v6902_v35  ;;  %v6926_v63 = vcombine.high %v2817_v48, %v2821_v39  ;;  %v6925_v22 = vcombine.low %v2817_v48, %v2821_v39  ;;  %v2853_v50 = vld [vmem:[#allocation24 + $0x6b0] sm:$0xff]  ;;  %v2850_v51 = vld [vmem:[#allocation24 + $0x698] sm:$0xff] }
 0xf74   :  { %4909 = vmatprep.subr.bf16.mxu0 %v6904_v62  ;;  %v2854_v35 = vld [vmem:[#allocation24 + $0x6b8] sm:$0xff]  ;;  %v6949_v62 = vcombine.low %v2841_v53, %v2845_v19  ;;  %v6958_v56 = vcombine.high %v2849_v9, %v2853_v50 }
 0xf75   :  { %v6960_v49 = vcombine.high %v2850_v51, %v2854_v35  ;;  %v6959_v3 = vcombine.low %v2850_v51, %v2854_v35  ;;  %v2905_v35 = vld [vmem:[#allocation24 + $0x850] sm:$0xff] }
 0xf76   :  { %4751 = vmatpush1.bf16.msra.mxu1 %v6901_v57  ;;  %v2861_v57 = vld [vmem:[#allocation24 + $0x6f0] sm:$0xff] }
 0xf77   :  { %4910 = vmatpush1.bf16.msra.mxu0 %v6903_v61  ;;  %4752 = vmatprep.subr.bf16.mxu1 %v6910_v14  ;;  %v2858_v61 = vld [vmem:[#allocation24 + $0x6d8] sm:$0xff]  ;;  %v6966_v24 = vcombine.high %v2857_v27, %v2861_v57 }
 0xf78   :  { %4911 = vmatprep.subr.bf16.mxu0 %v6912_v2  ;;  %v2862_v14 = vld [vmem:[#allocation24 + $0x6f8] sm:$0xff]  ;;  %v6957_v2 = vcombine.low %v2849_v9, %v2853_v50 }
 0xf79   :  { %v6968_v31 = vcombine.high %v2858_v61, %v2862_v14  ;;  %v6967_v48 = vcombine.low %v2858_v61, %v2862_v14  ;;  %v2913_v14 = vld [vmem:[#allocation24 + $0x890] sm:$0xff] }
 0xf7a   :  { %4753 = vmatpush1.bf16.msra.mxu1 %v6909_v34  ;;  %v2869_v34 = vld [vmem:[#allocation24 + $0x730] sm:$0xff] }
 0xf7b   :  { %4912 = vmatpush1.bf16.msra.mxu0 %v6911_v58  ;;  %4754 = vmatprep.subr.bf16.mxu1 %v6918_v21  ;;  %v2866_v58 = vld [vmem:[#allocation24 + $0x718] sm:$0xff]  ;;  %v6974_v39 = vcombine.high %v2865_v4, %v2869_v34 }
 0xf7c   :  { %4913 = vmatprep.subr.bf16.mxu0 %v6920_v25  ;;  %v2870_v21 = vld [vmem:[#allocation24 + $0x738] sm:$0xff]  ;;  %v6965_v25 = vcombine.low %v2857_v27, %v2861_v57 }
 0xf7d   :  { %v6976_v1 = vcombine.high %v2866_v58, %v2870_v21  ;;  %v6975_v5 = vcombine.low %v2866_v58, %v2870_v21  ;;  %v2921_v21 = vld [vmem:[#allocation24 + $0x8d0] sm:$0xff] }
 0xf7e   :  { %4755 = vmatpush1.bf16.msra.mxu1 %v6917_v33  ;;  %v2877_v33 = vld [vmem:[#allocation24 + $0x770] sm:$0xff] }
 0xf7f   :  { %4914 = vmatpush1.bf16.msra.mxu0 %v6919_v37  ;;  %4756 = vmatprep.subr.bf16.mxu1 %v6926_v63  ;;  %v2874_v37 = vld [vmem:[#allocation24 + $0x758] sm:$0xff]  ;;  %v6982_v38 = vcombine.high %v2873_v20, %v2877_v33 }
 0xf80   :  { %4915 = vmatprep.subr.bf16.mxu0 %v6928_v16  ;;  %v2878_v63 = vld [vmem:[#allocation24 + $0x778] sm:$0xff]  ;;  %v6973_v16 = vcombine.low %v2865_v4, %v2869_v34 }
 0xf81   :  { %v6984_v60 = vcombine.high %v2874_v37, %v2878_v63  ;;  %v6983_v42 = vcombine.low %v2874_v37, %v2878_v63 }
 0xf82   :  { %4757 = vmatpush1.bf16.msra.mxu1 %v6925_v22  ;;  %v2885_v22 = vld [vmem:[#allocation24 + $0x7b0] sm:$0xff] }
 0xf83   :  { %4916 = vmatpush1.bf16.msra.mxu0 %v6927_v23  ;;  %4758 = vmatprep.subr.bf16.mxu1 %v6934_v29  ;;  %v2882_v23 = vld [vmem:[#allocation24 + $0x798] sm:$0xff]  ;;  %v6990_v10 = vcombine.high %v2881_v6, %v2885_v22 }
 0xf84   :  { %4917 = vmatprep.subr.bf16.mxu0 %v6936_v41  ;;  %v2886_v29 = vld [vmem:[#allocation24 + $0x7b8] sm:$0xff]  ;;  %v6981_v41 = vcombine.low %v2873_v20, %v2877_v33 }
 0xf85   :  { %v6992_v28 = vcombine.high %v2882_v23, %v2886_v29  ;;  %v6991_v53 = vcombine.low %v2882_v23, %v2886_v29 }
 0xf86   :  { %4759 = vmatpush1.bf16.msra.mxu1 %v6933_v46  ;;  %v2893_v46 = vld [vmem:[#allocation24 + $0x7f0] sm:$0xff] }
 0xf87   :  { %4918 = vmatpush1.bf16.msra.mxu0 %v6935_v47  ;;  %4760 = vmatprep.subr.bf16.mxu1 %v6942_v43  ;;  %v2890_v47 = vld [vmem:[#allocation24 + $0x7d8] sm:$0xff]  ;;  %v6998_v19 = vcombine.high %v2889_v15, %v2893_v46 }
 0xf88   :  { %4919 = vmatprep.subr.bf16.mxu0 %v6944_v54  ;;  %v2894_v43 = vld [vmem:[#allocation24 + $0x7f8] sm:$0xff]  ;;  %v6989_v54 = vcombine.low %v2881_v6, %v2885_v22 }
 0xf89   :  { %v7000_v55 = vcombine.high %v2890_v47, %v2894_v43  ;;  %v6999_v9 = vcombine.low %v2890_v47, %v2894_v43 }
 0xf8a   :  { %4761 = vmatpush1.bf16.msra.mxu1 %v6941_v40  ;;  %v2901_v40 = vld [vmem:[#allocation24 + $0x830] sm:$0xff] }
 0xf8b   :  { %4920 = vmatpush1.bf16.msra.mxu0 %v6943_v45  ;;  %4762 = vmatprep.subr.bf16.mxu1 %v6950_v12  ;;  %v2898_v45 = vld [vmem:[#allocation24 + $0x818] sm:$0xff]  ;;  %v7006_v50 = vcombine.high %v2897_v8, %v2901_v40 }
 0xf8c   :  { %4921 = vmatprep.subr.bf16.mxu0 %v6952_v17  ;;  %v2902_v12 = vld [vmem:[#allocation24 + $0x838] sm:$0xff]  ;;  %v6997_v17 = vcombine.low %v2889_v15, %v2893_v46 }
 0xf8d   :  { %v7008_v51 = vcombine.high %v2898_v45, %v2902_v12  ;;  %v7007_v27 = vcombine.low %v2898_v45, %v2902_v12 }
 0xf8e   :  { %4763 = vmatpush1.bf16.msra.mxu1 %v6949_v62  ;;  %v2909_v62 = vld [vmem:[#allocation24 + $0x870] sm:$0xff] }
 0xf8f   :  { %4922 = vmatpush1.bf16.msra.mxu0 %v6951_v26  ;;  %4764 = vmatprep.subr.bf16.mxu1 %v6958_v56  ;;  %v2906_v26 = vld [vmem:[#allocation24 + $0x858] sm:$0xff]  ;;  %v7014_v57 = vcombine.high %v2905_v35, %v2909_v62 }
 0xf90   :  { %4923 = vmatprep.subr.bf16.mxu0 %v6960_v49  ;;  %v2910_v56 = vld [vmem:[#allocation24 + $0x878] sm:$0xff]  ;;  %v7005_v49 = vcombine.low %v2897_v8, %v2901_v40 }
 0xf91   :  { %v7016_v61 = vcombine.high %v2906_v26, %v2910_v56  ;;  %v7015_v4 = vcombine.low %v2906_v26, %v2910_v56 }
 0xf92   :  { %4765 = vmatpush1.bf16.msra.mxu1 %v6957_v2  ;;  %v2917_v2 = vld [vmem:[#allocation24 + $0x8b0] sm:$0xff] }
 0xf93   :  { %4924 = vmatpush1.bf16.msra.mxu0 %v6959_v3  ;;  %4766 = vmatprep.subr.bf16.mxu1 %v6966_v24  ;;  %v2914_v3 = vld [vmem:[#allocation24 + $0x898] sm:$0xff]  ;;  %v7022_v34 = vcombine.high %v2913_v14, %v2917_v2 }
 0xf94   :  { %4925 = vmatprep.subr.bf16.mxu0 %v6968_v31  ;;  %v2918_v24 = vld [vmem:[#allocation24 + $0x8b8] sm:$0xff]  ;;  %v7013_v31 = vcombine.low %v2905_v35, %v2909_v62 }
 0xf95   :  { %v7024_v58 = vcombine.high %v2914_v3, %v2918_v24 }
 0xf96   :  { %4767 = vmatpush1.bf16.msra.mxu1 %v6965_v25  ;;  %v2925_v25 = vld [vmem:[#allocation24 + $0x8f0] sm:$0xff] }
 0xf97   :  { %4926 = vmatpush1.bf16.msra.mxu0 %v6967_v48  ;;  %4768 = vmatprep.subr.bf16.mxu1 %v6974_v39  ;;  %v2922_v48 = vld [vmem:[#allocation24 + $0x8d8] sm:$0xff]  ;;  %v7030_v20 = vcombine.high %v2921_v21, %v2925_v25  ;;  %v7029_v33 = vcombine.low %v2921_v21, %v2925_v25 }
 0xf98   :  { %4927 = vmatprep.subr.bf16.mxu0 %v6976_v1  ;;  %v2926_v39 = vld [vmem:[#allocation24 + $0x8f8] sm:$0xff]  ;;  %v7023_v1 = vcombine.low %v2914_v3, %v2918_v24 }
 0xf99   :  { %v7031_v37 = vcombine.low %v2922_v48, %v2926_v39 }
 0xf9a   :  { %4769 = vmatpush1.bf16.msra.mxu1 %v6973_v16 }
 0xf9b   :  { %4928 = vmatpush1.bf16.msra.mxu0 %v6975_v5  ;;  %4770 = vmatprep.subr.bf16.mxu1 %v6982_v38 }
 0xf9c   :  { %4929 = vmatprep.subr.bf16.mxu0 %v6984_v60 }
 0xf9e   :  { %4771 = vmatpush1.bf16.msra.mxu1 %v6981_v41 }
 0xf9f   :  { %4930 = vmatpush1.bf16.msra.mxu0 %v6983_v42  ;;  %4772 = vmatprep.subr.bf16.mxu1 %v6990_v10 }
 0xfa0   :  { %4931 = vmatprep.subr.bf16.mxu0 %v6992_v28 }
 0xfa2   :  { %4773 = vmatpush1.bf16.msra.mxu1 %v6989_v54 }
 0xfa3   :  { %4932 = vmatpush1.bf16.msra.mxu0 %v6991_v53  ;;  %4774 = vmatprep.subr.bf16.mxu1 %v6998_v19 }
 0xfa4   :  { %4933 = vmatprep.subr.bf16.mxu0 %v7000_v55 }
 0xfa6   :  { %4775 = vmatpush1.bf16.msra.mxu1 %v6997_v17 }
 0xfa7   :  { %4934 = vmatpush1.bf16.msra.mxu0 %v6999_v9  ;;  %4797 = vmatprep.subr.bf16.mxu1 %v7006_v50 }
 0xfa8   :  { %4956 = vmatprep.subr.bf16.mxu0 %v7008_v51 }
 0xfa9   :  { %4777 = vmatmul.mubr.bf16.vlgmr.msra.gmra.mrb[20].mxu1 %v9455_v30 }
 0xfaa   :  { %4936 = vmatmul.mubr.bf16.vlgmr.msra.gmra.mrb[28].mxu0 %v9455_v30  ;;  %4786 = vmatprep.mubr.bf16.mxu1 %v9494_v36  ;;  %v7021_v30 = vcombine.low %v2913_v14, %v2917_v2 }
 0xfab   :  { %4798 = vmatpush1.bf16.msra.mxu1 %v7005_v49  ;;  %4945 = vmatprep.mubr.bf16.mxu0 %v9494_v36  ;;  %v7032_v36 = vcombine.high %v2922_v48, %v2926_v39 }
 0xfac   :  { %4957 = vmatpush1.bf16.msra.mxu0 %v7007_v27  ;;  %4799 = vmatprep.subr.bf16.mxu1 %v7014_v57 }
 0xfad   :  { %4958 = vmatprep.subr.bf16.mxu0 %v7016_v61 }
 0xfaf   :  { %4800 = vmatpush1.bf16.msra.mxu1 %v7013_v31 }
 0xfb0   :  { %4959 = vmatpush1.bf16.msra.mxu0 %v7015_v4  ;;  %4801 = vmatprep.subr.bf16.mxu1 %v7022_v34 }
 0xfb1   :  { %4787 = vmatmul.mubr.bf16.gmra.mrb[24].mxu1 %v9474_v13  ;;  %4960 = vmatprep.subr.bf16.mxu0 %v7024_v58 }
 0xfb2   :  { %4946 = vmatmul.mubr.bf16.gmra.mrb[32].mxu0 %v9474_v13  ;;  %4829 = vmatprep.mubr.bf16.mxu1 %v8349_v44 }
 0xfb3   :  { %4802 = vmatpush1.bf16.msra.mxu1 %v7021_v30  ;;  %4988 = vmatprep.mubr.bf16.mxu0 %v8349_v44 }
 0xfb4   :  { %4961 = vmatpush1.bf16.msra.mxu0 %v7023_v1  ;;  %4803 = vmatprep.subr.bf16.mxu1 %v7030_v20 }
 0xfb5   :  { %4962 = vmatprep.subr.bf16.mxu0 %v7032_v36 }
 0xfb7   :  { %4804 = vmatpush1.bf16.msra.mxu1 %v7029_v33 }
 0xfb8   :  { %4963 = vmatpush1.bf16.msra.mxu0 %v7031_v37 }
 0xfba   :  { %7037 = vmatmul.mubr.msk.bf16.vlgmr.msra.gmra.mrb[20].mxu1 %vm544_vm7, %v9480_v59 }
 0xfbb   :  { %7039 = vmatmul.mubr.msk.bf16.vlgmr.msra.gmra.mrb[28].mxu0 %vm544_vm7, %v9480_v59  ;;  %4839 = vmatprep.mubr.bf16.mxu1 %v8349_v44 }
 0xfbc   :  { %4998 = vmatprep.mubr.bf16.mxu0 %v8349_v44 }
 0xfc2   :  { %7038 = vmatmul.mubr.msk.bf16.gmra.mrb[24].mxu1 %vm544_vm7, %v9516_v32 }
 0xfc3   :  { %7040 = vmatmul.mubr.msk.bf16.gmra.mrb[32].mxu0 %vm544_vm7, %v9516_v32 }
 0xffb   :  { %v9550_v13 = vpop.f32.mrb[12].mxu1 }
 0xffc   :  { %v9552_v63 = vpop.f32.mrb[20].mxu0  ;;  %v9554_v16 = vpop.f32.mrb[13].mxu1  ;;  %v5081_v5 = vmul.f32 %v9550_v13, %v9550_v13 }
 0xffd   :  { %v9558_v59 = vpop.f32.mrb[21].mxu0  ;;  %v9560_v38 = vpop.f32.mrb[14].mxu1  ;;  %v5083_v44 = vmul.f32 %v9552_v63, %v9552_v63  ;;  %v5082_v60 = vmul.f32 %v9554_v16, %v9554_v16 }
 0xffe   :  { %v5009_v32 = vadd.f32 %v9560_v38, %v9550_v13  ;;  %v5089_v6 = vmul.f32 %v9560_v38, %v9560_v38  ;;  %v9570_v22 = vpop.f32.mrb[22].mxu0  ;;  %v9572_v23 = vpop.f32.mrb[15].mxu1  ;;  %v5084_v15 = vmul.f32 %v9558_v59, %v9558_v59 }
 0xfff   :  { %v5027_v29 = vadd.f32 %v9570_v22, %v9552_v63  ;;  %v5091_v41 = vmul.f32 %v9570_v22, %v9570_v22  ;;  %v5018_v42 = vadd.f32 %v9572_v23, %v9554_v16  ;;  %v5090_v10 = vmul.f32 %v9572_v23, %v9572_v23  ;;  %v9582_v28 = vpop.f32.mrb[23].mxu0 }
0x1000   :  { %v5113_v46 = vadd.f32 %v5089_v6, %v5081_v5  ;;  %v5036_v47 = vadd.f32 %v9582_v28, %v9558_v59  ;;  %v5092_v43 = vmul.f32 %v9582_v28, %v9582_v28 }
0x1001   :  { %v5131_v54 = vadd.f32 %v5091_v41, %v5083_v44  ;;  %v5122_v53 = vadd.f32 %v5090_v10, %v5082_v60 }
0x1002   :  { %v5140_v19 = vadd.f32 %v5092_v43, %v5084_v15 }
0x1003   :  { %v9590_v55 = vpop.f32.mrb[16].mxu1 }
0x1004   :  { %v5010_v8 = vadd.f32 %v5009_v32, %v9590_v55  ;;  %v5097_v40 = vmul.f32 %v9590_v55, %v9590_v55  ;;  %v9595_v45 = vpop.f32.mrb[24].mxu0  ;;  %v9597_v12 = vpop.f32.mrb[17].mxu1 }
0x1005   :  { %v5028_v17 = vadd.f32 %v5027_v29, %v9595_v45  ;;  %v5099_v9 = vmul.f32 %v9595_v45, %v9595_v45  ;;  %v5019_v50 = vadd.f32 %v5018_v42, %v9597_v12  ;;  %v5098_v51 = vmul.f32 %v9597_v12, %v9597_v12  ;;  %v9605_v35 = vpop.f32.mrb[25].mxu0  ;;  %v9607_v62 = vpop.f32.mrb[18].mxu1 }
0x1006   :  { %10464 = vst [vmem:[#allocation43_spill] sm:$0xff] %v9607_v62  ;;  %v5114_v26 = vadd.f32 %v5113_v46, %v5097_v40  ;;  %v5037_v56 = vadd.f32 %v5036_v47, %v9605_v35  ;;  %v5100_v49 = vmul.f32 %v9605_v35, %v9605_v35  ;;  %v5011_v27 = vadd.f32 %v5010_v8, %v9607_v62  ;;  %v9613_v57 = vpop.f32.mrb[26].mxu0  ;;  %v9615_v61 = vpop.f32.mrb[19].mxu1 }
0x1007   :  { %10465 = vst [vmem:[#allocation44_spill] sm:$0xff] %v9613_v57  ;;  %10466 = vst [vmem:[#allocation45_spill] sm:$0xff] %v9615_v61  ;;  %v5132_v14 = vadd.f32 %v5131_v54, %v5099_v9  ;;  %v5123_v2 = vadd.f32 %v5122_v53, %v5098_v51  ;;  %v5105_v3 = vmul.f32 %v9607_v62, %v9607_v62  ;;  %v9620_v31 = vpop.f32.mrb[27].mxu0 }
0x1008   :  { %v5029_v24 = vadd.f32 %v5028_v17, %v9613_v57  ;;  %10467 = vst [vmem:[#allocation46_spill] sm:$0xff] %v9620_v31  ;;  %v5141_v4 = vadd.f32 %v5140_v19, %v5100_v49  ;;  %v5107_v34 = vmul.f32 %v9613_v57, %v9613_v57  ;;  %v5020_v58 = vadd.f32 %v5019_v50, %v9615_v61 }
0x1009   :  { %v5115_v21 = vadd.f32 %v5114_v26, %v5105_v3  ;;  %v5106_v25 = vmul.f32 %v9615_v61, %v9615_v61  ;;  %v5038_v48 = vadd.f32 %v5037_v56, %v9620_v31  ;;  %v5108_v30 = vmul.f32 %v9620_v31, %v9620_v31 }
0x100a   :  { %v5133_v39 = vadd.f32 %v5132_v14, %v5107_v34  ;;  %v5012_v36 = vrot.slane %v5011_v27, 4  ;;  %v5030_v37 = vrot.slane %v5029_v24, 4  ;;  %v5021_v5 = vrot.slane %v5020_v58, 4 }
0x100b   :  { %v5124_v1 = vadd.f32 %v5123_v2, %v5106_v25  ;;  %v5142_v20 = vadd.f32 %v5141_v4, %v5108_v30  ;;  %v5116_v33 = vrot.slane %v5115_v21, 4  ;;  %v5039_v44 = vrot.slane %v5038_v48, 4 }
0x100c   :  { %v5134_v60 = vrot.slane %v5133_v39, 4  ;;  %v5013_v32 = vadd.f32 %v5012_v36, %v5011_v27  ;;  %v5031_v29 = vadd.f32 %v5030_v37, %v5029_v24  ;;  %v5022_v41 = vadd.f32 %v5021_v5, %v5020_v58 }
0x100d   :  { %v5117_v6 = vadd.f32 %v5116_v33, %v5115_v21  ;;  %v5040_v42 = vadd.f32 %v5039_v44, %v5038_v48  ;;  %v5125_v15 = vrot.slane %v5124_v1, 4  ;;  %v5143_v46 = vrot.slane %v5142_v20, 4 }
0x100e   :  { %v5135_v10 = vadd.f32 %v5134_v60, %v5133_v39  ;;  %v5014_v47 = vrot.slane %v5013_v32, 2  ;;  %v5032_v54 = vrot.slane %v5031_v29, 2  ;;  %v5023_v53 = vrot.slane %v5022_v41, 2 }
0x100f   :  { %v5118_v43 = vrot.slane %v5117_v6, 2  ;;  %v5041_v19 = vrot.slane %v5040_v42, 2  ;;  %v5126_v40 = vadd.f32 %v5125_v15, %v5124_v1  ;;  %v5144_v17 = vadd.f32 %v5143_v46, %v5142_v20 }
0x1010   :  { %v5136_v8 = vrot.slane %v5135_v10, 2  ;;  %v5015_v9 = vadd.f32 %v5014_v47, %v5013_v32  ;;  %v5033_v50 = vadd.f32 %v5032_v54, %v5031_v29  ;;  %v5024_v51 = vadd.f32 %v5023_v53, %v5022_v41 }
0x1011   :  { %v5042_v26 = vadd.f32 %v5041_v19, %v5040_v42  ;;  %v5119_v56 = vadd.f32 %v5118_v43, %v5117_v6  ;;  %v5127_v49 = vrot.slane %v5126_v40, 2  ;;  %v5145_v27 = vrot.slane %v5144_v17, 2 }
0x1012   :  { %v5137_v14 = vadd.f32 %v5136_v8, %v5135_v10  ;;  %v5016_v3 = vrot.slane %v5015_v9, 1  ;;  %v5025_v34 = vrot.slane %v5024_v51, 1  ;;  %v5034_v58 = vrot.slane %v5033_v50, 1 }
0x1013   :  { %v5043_v21 = vrot.slane %v5042_v26, 1  ;;  %v5120_v25 = vrot.slane %v5119_v56, 1  ;;  %v9642_v1 = vadd.f32 %v5127_v49, %v5126_v40  ;;  %v9644_v36 = vadd.f32 %v5145_v27, %v5144_v17 }
0x1014   :  { %v5138_v20 = vrot.slane %v5137_v14, 1  ;;  %v9674_v8 = vadd.f32 %v5016_v3, %v5015_v9  ;;  %v9676_v40 = vadd.f32 %v5034_v58, %v5033_v50  ;;  %v9680_v49 = vadd.f32 %v5025_v34, %v5024_v51 }
0x1015   :  { %v9682_v27 = vadd.f32 %v5043_v21, %v5042_v26 }
0x1016   :  { %v9694_v50 = vadd.f32 %v5138_v20, %v5137_v14 }
0x108d   :  { %v9630_v2 = vpop.f32.mrb[20].mxu1 }
0x108e   :  { %v9632_v24 = vpop.f32.mrb[28].mxu0  ;;  %v9634_v4 = vpop.f32.mrb[21].mxu1  ;;  %v5085_v48 = vmul.f32 %v9630_v2, %v9630_v2 }
0x108f   :  { %v9638_v39 = vpop.f32.mrb[29].mxu0  ;;  %v9640_v30 = vpop.f32.mrb[22].mxu1  ;;  %v5087_v33 = vmul.f32 %v9632_v24, %v9632_v24  ;;  %v5086_v37 = vmul.f32 %v9634_v4, %v9634_v4 }
0x1090   :  { %v5045_v5 = vadd.f32 %v9640_v30, %v9630_v2  ;;  %v5093_v44 = vmul.f32 %v9640_v30, %v9640_v30  ;;  %v9654_v60 = vpop.f32.mrb[30].mxu0  ;;  %v9656_v32 = vpop.f32.mrb[23].mxu1  ;;  %v5088_v15 = vmul.f32 %v9638_v39, %v9638_v39 }
0x1091   :  { %v5063_v6 = vadd.f32 %v9654_v60, %v9632_v24  ;;  %v5095_v29 = vmul.f32 %v9654_v60, %v9654_v60  ;;  %v5054_v41 = vadd.f32 %v9656_v32, %v9634_v4  ;;  %v5094_v42 = vmul.f32 %v9656_v32, %v9656_v32  ;;  %v9666_v10 = vpop.f32.mrb[31].mxu0 }
0x1092   :  { %v5149_v46 = vadd.f32 %v5093_v44, %v5085_v48  ;;  %v5072_v47 = vadd.f32 %v9666_v10, %v9638_v39  ;;  %v5096_v43 = vmul.f32 %v9666_v10, %v9666_v10  ;;  %v9684_v48 = vadd.f32 %v5120_v25, %v5119_v56 }
0x1093   :  { %v5167_v54 = vadd.f32 %v5095_v29, %v5087_v33  ;;  %v5158_v53 = vadd.f32 %v5094_v42, %v5086_v37 }
0x1094   :  { %v5176_v19 = vadd.f32 %v5096_v43, %v5088_v15 }
0x1095   :  { %v9678_v17 = vpop.f32.mrb[24].mxu1 }
0x1096   :  { %v5046_v52 = vadd.f32 %v5045_v5, %v9678_v17  ;;  %v5101_v33 = vmul.f32 %v9678_v17, %v9678_v17  ;;  %v9690_v37 = vpop.f32.mrb[32].mxu0  ;;  %v9692_v9 = vpop.f32.mrb[25].mxu1 }
0x1097   :  { %10468 = vst [vmem:[#allocation47_spill] sm:$0xff] %v9690_v37  ;;  %10469 = vst [vmem:[#allocation48_spill] sm:$0xff] %v9692_v9  ;;  %v5064_v26 = vadd.f32 %v5063_v6, %v9690_v37  ;;  %v5103_v56 = vmul.f32 %v9690_v37, %v9690_v37  ;;  %v5055_v3 = vadd.f32 %v5054_v41, %v9692_v9  ;;  %v9703_v58 = vpop.f32.mrb[33].mxu0  ;;  %v9705_v21 = vpop.f32.mrb[26].mxu1 }
0x1098   :  { %v5102_v34 = vmul.f32 %v9692_v9, %v9692_v9  ;;  %10470 = vst [vmem:[#allocation49_spill] sm:$0xff] %v9703_v58  ;;  %10471 = vst [vmem:[#allocation50_spill] sm:$0xff] %v9705_v21  ;;  %v5150_v25 = vadd.f32 %v5149_v46, %v5101_v33  ;;  %v5073_v14 = vadd.f32 %v5072_v47, %v9703_v58  ;;  %v9711_v6 = vpop.f32.mrb[34].mxu0  ;;  %v9713_v29 = vpop.f32.mrb[27].mxu1 }
0x1099   :  { %v5104_v20 = vmul.f32 %v9703_v58, %v9703_v58  ;;  %v5047_v5 = vadd.f32 %v5046_v52, %v9705_v21  ;;  %10472 = vst [vmem:[#allocation51_spill] sm:$0xff] %v9711_v6  ;;  %10473 = vst [vmem:[#allocation52_spill] sm:$0xff] %v9713_v29  ;;  %v5168_v41 = vadd.f32 %v5167_v54, %v5103_v56  ;;  %v9718_v51 = vpop.f32.mrb[35].mxu0 }
0x109a   :  { %v5159_v42 = vadd.f32 %v5158_v53, %v5102_v34  ;;  %v5109_v15 = vmul.f32 %v9705_v21, %v9705_v21  ;;  %v5065_v43 = vadd.f32 %v5064_v26, %v9711_v6  ;;  %10474 = vst [vmem:[#allocation53_spill] sm:$0xff] %v9718_v51  ;;  %v5111_v33 = vmul.f32 %v9711_v6, %v9711_v6 }
0x109b   :  { %v5177_v46 = vadd.f32 %v5176_v19, %v5104_v20  ;;  %v5048_v47 = vrot.slane %v5047_v5, 4  ;;  %v5056_v52 = vadd.f32 %v5055_v3, %v9713_v29  ;;  %v5110_v54 = vmul.f32 %v9713_v29, %v9713_v29 }
0x109c   :  { %v5151_v44 = vadd.f32 %v5150_v25, %v5109_v15  ;;  %v5066_v0 = vrot.slane %v5065_v43, 4  ;;  %v5074_v53 = vadd.f32 %v5073_v14, %v9718_v51  ;;  %v5169_v34 = vadd.f32 %v5168_v41, %v5111_v33 }
0x109d   :  { %v5049_v56 = vadd.f32 %v5048_v47, %v5047_v5  ;;  %v5057_v11 = vrot.slane %v5056_v52, 4  ;;  %v5112_v26 = vmul.f32 %v9718_v51, %v9718_v51  ;;  %v5160_v18 = vadd.f32 %v5159_v42, %v5110_v54 }
0x109e   :  { %v5152_v19 = vrot.slane %v5151_v44, 4  ;;  %v5067_v20 = vadd.f32 %v5066_v0, %v5065_v43  ;;  %v5075_v21 = vrot.slane %v5074_v53, 4  ;;  %v5170_v31 = vrot.slane %v5169_v34, 4 }
0x109f   :  { %v5050_v6 = vrot.slane %v5049_v56, 2  ;;  %v5058_v3 = vadd.f32 %v5057_v11, %v5056_v52  ;;  %v5178_v25 = vadd.f32 %v5177_v46, %v5112_v26  ;;  %v5161_v61 = vrot.slane %v5160_v18, 4 }
0x10a0   :  { %v5153_v15 = vadd.f32 %v5152_v19, %v5151_v44  ;;  %v5068_v57 = vrot.slane %v5067_v20, 2  ;;  %v5076_v29 = vadd.f32 %v5075_v21, %v5074_v53  ;;  %v5171_v14 = vadd.f32 %v5170_v31, %v5169_v34 }
0x10a1   :  { %v5051_v62 = vadd.f32 %v5050_v6, %v5049_v56  ;;  %v5059_v5 = vrot.slane %v5058_v3, 2  ;;  %v5179_v41 = vrot.slane %v5178_v25, 4  ;;  %v5162_v58 = vadd.f32 %v5161_v61, %v5160_v18 }
0x10a2   :  { %v5154_v47 = vrot.slane %v5153_v15, 2  ;;  %v5069_v33 = vadd.f32 %v5068_v57, %v5067_v20  ;;  %v5077_v51 = vrot.slane %v5076_v29, 2  ;;  %v5172_v37 = vrot.slane %v5171_v14, 2 }
0x10a3   :  { %v5060_v0 = vadd.f32 %v5059_v5, %v5058_v3  ;;  %v5180_v42 = vadd.f32 %v5179_v41, %v5178_v25  ;;  %v5052_v43 = vrot.slane %v5051_v62, 1  ;;  %v5163_v54 = vrot.slane %v5162_v58, 2 }
0x10a4   :  { %v5078_v9 = vadd.f32 %v5077_v51, %v5076_v29  ;;  %v5070_v11 = vrot.slane %v5069_v33, 1  ;;  %v5155_v46 = vadd.f32 %v5154_v47, %v5153_v15  ;;  %v5173_v21 = vadd.f32 %v5172_v37, %v5171_v14 }
0x10a5   :  { %v5181_v44 = vrot.slane %v5180_v42, 2  ;;  %v5053_v52 = vadd.f32 %v5052_v43, %v5051_v62  ;;  %v5061_v26 = vrot.slane %v5060_v0, 1  ;;  %v5164_v56 = vadd.f32 %v5163_v54, %v5162_v58 }
0x10a6   :  { %v5071_v6 = vadd.f32 %v5070_v11, %v5069_v33  ;;  %v5079_v31 = vrot.slane %v5078_v9, 1  ;;  %v5156_v53 = vrot.slane %v5155_v46, 1  ;;  %v5174_v57 = vrot.slane %v5173_v21, 1 }
0x10a7   :  { %v5062_v34 = vadd.f32 %v5061_v26, %v5060_v0  ;;  %v5185_v18 = vadd.f32 %v5053_v52, %v9674_v8  ;;  %v5182_v61 = vadd.f32 %v5181_v44, %v5180_v42  ;;  %v5165_v51 = vrot.slane %v5164_v56, 1 }
0x10a8   :  { %v5080_v19 = vadd.f32 %v5079_v31, %v5078_v9  ;;  %v5187_v20 = vadd.f32 %v5071_v6, %v9676_v40  ;;  %v5157_v3 = vadd.f32 %v5156_v53, %v5155_v46  ;;  %v10475_v62 = vrot.slane %v9642_v1, 1 }
0x10a9   :  { %v5186_v29 = vadd.f32 %v5062_v34, %v9680_v49  ;;  %v5175_v25 = vadd.f32 %v5174_v57, %v5173_v21  ;;  %v5183_v15 = vrot.slane %v5182_v61, 1  ;;  %v5166_v5 = vadd.f32 %v5165_v51, %v5164_v56  ;;  %v5224_v34 = vld [vmem:[#allocation26] sm:$0x1] }
0x10aa   :  { %v5130_v37 = vadd.f32 %v10475_v62, %v9642_v1  ;;  %v5188_v58 = vadd.f32 %v5080_v19, %v9682_v27  ;;  %v5193_v14 = vadd.f32 %v5187_v20, %v5185_v18  ;;  %v5189_v8 = vadd.f32 %v5157_v3, %v9684_v48 }
0x10ab   :  { %v10476_v9 = vrot.slane %v9644_v36, 1  ;;  %v5184_v41 = vadd.f32 %v5183_v15, %v5182_v61  ;;  %v5191_v47 = vadd.f32 %v5175_v25, %v9694_v50  ;;  %v5228_v61 = vld [vmem:[#allocation27] sm:$0x1]  ;;  %v7853_v15 = vld [vmem:[%s10427_s19 + $0x40] sm:$0xff]  }
0x10ac   :  { %v5194_v49 = vadd.f32 %v5188_v58, %v5186_v29  ;;  %v5190_v33 = vadd.f32 %v5166_v5, %v5130_v37  ;;  %v7854_v58 = vld [vmem:[%s10427_s19] sm:$0xff]   ;;  %7129 = vmatprep.subr.bf16.mxu1 %v7853_v15  ;;  %v7856_v5 = vld [vmem:[%s10427_s19 + $0x8] sm:$0xff]   ;;  %v10487_v15 = vld [vmem:[#allocation51_spill] sm:$0xff] }
0x10ad   :  { %v5148_v40 = vadd.f32 %v10476_v9, %v9644_v36  ;;  %v5195_v42 = vadd.f32 %v5191_v47, %v5189_v8  ;;  %7130 = vmatpush3.bf16.msra.mxu1 %v7854_v58  ;;  %v7863_v8 = vld [vmem:[%s10427_s19 + $0x140] sm:$0xff]   ;;  %v7859_v47 = vld [vmem:[%s10427_s19 + $0x58] sm:$0xff]  }
0x10ae   :  { %v5197_v1 = vadd.f32 %v5194_v49, %v5193_v14  ;;  %v7855_v14 = vld [vmem:[%s10427_s19 + $0x48] sm:$0xff]   ;;  %v7864_v9 = vld [vmem:[%s10427_s19 + $0x100] sm:$0xff]   ;;  %7185 = vmatprep.subr.bf16.mxu0 %v7863_v8  ;;  %v7860_v49 = vld [vmem:[%s10427_s19 + $0x18] sm:$0xff]  }
0x10af   :  { %v5192_v0 = vadd.f32 %v5184_v41, %v5148_v40  ;;  %7131 = vmatprep.subr.bf16.mxu1 %v7855_v14  ;;  %v7857_v40 = vld [vmem:[%s10427_s19 + $0x50] sm:$0xff]   ;;  %7186 = vmatpush3.bf16.msra.mxu0 %v7864_v9 }
0x10b0   :  { %5200 = vrot.lane.b32.xlu0 %v5197_v1, %s8338_s5  ;;  %v7858_v41 = vld [vmem:[%s10427_s19 + $0x10] sm:$0xff]  }
0x10b1   :  { %v5196_v43 = vadd.f32 %v5192_v0, %v5190_v33  ;;  %7132 = vmatpush3.bf16.msra.mxu1 %v7856_v5  ;;  %v7861_v33 = vld [vmem:[%s10427_s19 + $0x60] sm:$0xff]   ;;  %v7869_v14 = vld [vmem:[%s10427_s19 + $0x70] sm:$0xff]  }
0x10b2   :  { %7133 = vmatprep.subr.bf16.mxu1 %v7857_v40  ;;  %v7862_v0 = vld [vmem:[%s10427_s19 + $0x20] sm:$0xff]   ;;  %v7870_v40 = vld [vmem:[%s10427_s19 + $0x30] sm:$0xff]  }
0x10b3   :  { %v5198_v27 = vadd.f32 %v5196_v43, %v5195_v42  ;;  %v7865_v42 = vld [vmem:[%s10427_s19 + $0x68] sm:$0xff]  }
0x10b5   :  { %5205 = vrot.lane.b32.xlu1 %v5198_v27, %s8338_s5  ;;  %7134 = vmatpush3.bf16.msra.mxu1 %v7858_v41  ;;  %v7871_v41 = vld [vmem:[%s10427_s19 + $0x150] sm:$0xff]  }
0x10b6   :  { %7135 = vmatprep.subr.bf16.mxu1 %v7859_v47  ;;  %v7872_v47 = vld [vmem:[%s10427_s19 + $0x110] sm:$0xff]  }
0x10b9   :  { %7136 = vmatpush3.bf16.msra.mxu1 %v7860_v49 }
0x10ba   :  { %7137 = vmatprep.subr.bf16.mxu1 %v7861_v33 }
0x10bd   :  { %7138 = vmatpush3.bf16.msra.mxu1 %v7862_v0 }
0x10be   :  { %7139 = vmatprep.subr.bf16.mxu1 %v7865_v42 }
0x1122   :  { %v5201_v54 = vpop.permute.xlu0 %5200 }
0x1123   :  { %v5203_v48 = vadd.f32 %v5201_v54, %v5197_v1 }
0x1125   :  { %5210 = vrot.lane.b32.xlu0 %v5203_v48, %s8348_s10 }
0x1127   :  { %v5206_v11 = vpop.permute.xlu1 %5205 }
0x1128   :  { %v5208_v36 = vadd.f32 %v5206_v11, %v5198_v27 }
0x112a   :  { %5215 = vrot.lane.b32.xlu1 %v5208_v36, %s8348_s10 }
0x1197   :  { %v5211_v50 = vpop.permute.xlu0 %5210 }
0x1198   :  { %v5213_v46 = vadd.f32 %v5211_v50, %v5203_v48 }
0x119a   :  { %v5219_v44 = vmul.f32 0.0009765625, %v5213_v46 }
0x119c   :  { %v5216_v52 = vpop.permute.xlu1 %5215  ;;  %v5221_v21 = vmul.f32 %v5219_v44, %v5219_v44 }
0x119d   :  { %v5218_v26 = vadd.f32 %v5216_v52, %v5208_v36 }
0x119f   :  { %v5220_v6 = vmul.f32 0.0009765625, %v5218_v26 }
0x11a1   :  { %v5222_v31 = vsub.f32 %v5220_v6, %v5221_v21 }
0x11a3   :  { %v5223_v53 = vmax.f32 %v5222_v31, 0.0  ;;  %v10477_v31 = vld [vmem:[#allocation48_spill] sm:$0xff] }
0x11a5   :  { %v5225_v56 = vadd.f32 1e-05, %v5223_v53 }
0x11a7   :  { %7931 = vrsqrt.f32 %v5225_v56 }
0x11b1   :  { %v7932_v18 = vpop.eup %7931 }
0x11b2   :  { %v5227_v57 = vmul.f32 %v7932_v18, %v5224_v34 }
0x11b4   :  { %v5235_v19 = vrot.slane %v5227_v57, %v8857_v7  ;;  %v5229_v20 = vmul.f32 %v5227_v57, %v5219_v44 }
0x11b6   :  { %5236 = vrot.lane.b32.xlu0 %v5235_v19, %s8333_s22  ;;  %v5230_v3 = vsub.f32 %v5228_v61, %v5229_v20  ;;  %v10483_v61 = vld [vmem:[#allocation53_spill] sm:$0xff] }
0x11b8   :  { %v5244_v51 = vrot.slane %v5230_v3, %v8857_v7 }
0x11ba   :  { %5245 = vrot.lane.b32.xlu1 %v5244_v51, %s8333_s22 }
0x1228   :  { %v5237_v29 = vpop.permute.xlu0 %5236 }
0x1229   :  { %v5239_v62 = vsel %vm407_vm0, %v5227_v57, %v5237_v29  ;;  %v10482_v57 = vld [vmem:[#allocation44_spill] sm:$0xff]  ;;  %v10485_v29 = vld [vmem:[#allocation50_spill] sm:$0xff] }
0x122a   :  { %5250 = vrot.lane.b32.xlu0 %v5239_v62, %s8338_s5 }
0x122c   :  { %v5246_v37 = vpop.permute.xlu1 %5245 }
0x122d   :  { %v5248_v25 = vsel %vm407_vm0, %v5230_v3, %v5246_v37  ;;  %v10484_v3 = vld [vmem:[#allocation46_spill] sm:$0xff]  ;;  %v10486_v37 = vld [vmem:[#allocation52_spill] sm:$0xff] }
0x122e   :  { %5255 = vrot.lane.b32.xlu1 %v5248_v25, %s8338_s5 }
0x129c   :  { %v5251_v1 = vpop.permute.xlu0 %5250 }
0x129d   :  { %v5253_v43 = vsel %vm544_vm7, %v5239_v62, %v5251_v1 }
0x129e   :  { %v5262_v27 = vrot.slane %v5253_v43, %v8857_v7 }
0x12a0   :  { %v5263_v54 = vmul.f32 %v5262_v27, %v9550_v13  ;;  %v5264_v48 = vmul.f32 %v5262_v27, %v9554_v16  ;;  %v9796_v11 = vmul.f32 %v5262_v27, %v9552_v63  ;;  %v9799_v36 = vmul.f32 %v5262_v27, %v9558_v59 }
0x12a1   :  { %v9802_v50 = vmul.f32 %v5262_v27, %v9630_v2  ;;  %v9805_v46 = vmul.f32 %v5262_v27, %v9634_v4  ;;  %v9808_v44 = vmul.f32 %v5262_v27, %v9632_v24  ;;  %v5270_v52 = vmul.f32 %v5262_v27, %v9638_v39  ;;  %v5256_v24 = vpop.permute.xlu1 %5255 }
0x12a2   :  { %v5271_v13 = vmul.f32 %v5262_v27, %v9560_v38  ;;  %v9813_v16 = vmul.f32 %v5262_v27, %v9572_v23  ;;  %v9816_v63 = vmul.f32 %v5262_v27, %v9570_v22  ;;  %v9819_v59 = vmul.f32 %v5262_v27, %v9582_v28  ;;  %v7866_v38 = vld [vmem:[%s10427_s19 + $0x28] sm:$0xff]  }
0x12a3   :  { %v9822_v2 = vmul.f32 %v5262_v27, %v9640_v30  ;;  %v9825_v4 = vmul.f32 %v5262_v27, %v9656_v32  ;;  %v7867_v23 = vld [vmem:[%s10427_s19 + $0x148] sm:$0xff]   ;;  %v9837_v28 = vmul.f32 %v5262_v27, %v9654_v60  ;;  %v5278_v39 = vmul.f32 %v5262_v27, %v9666_v10  ;;  %7140 = vmatpush3.bf16.msra.mxu1 %v7866_v38  ;;  %v10478_v60 = vld [vmem:[#allocation47_spill] sm:$0xff] }
0x12a4   :  { %v7868_v22 = vld [vmem:[%s10427_s19 + $0x108] sm:$0xff]   ;;  %v5279_v30 = vmul.f32 %v5262_v27, %v9590_v55  ;;  %v9842_v32 = vmul.f32 %v5262_v27, %v9597_v12  ;;  %v9845_v26 = vmul.f32 %v5262_v27, %v9595_v45  ;;  %v9848_v21 = vmul.f32 %v5262_v27, %v9605_v35  ;;  %v10480_v12 = vld [vmem:[#allocation43_spill] sm:$0xff]  ;;  %7187 = vmatprep.subr.bf16.mxu0 %v7867_v23 }
0x12a5   :  { %v9851_v6 = vmul.f32 %v5262_v27, %v9678_v17  ;;  %v9854_v53 = vmul.f32 %v5262_v27, %v10477_v31  ;;  %v9857_v10 = vmul.f32 %v5262_v27, %v10478_v60  ;;  %v10479_v55 = vld [vmem:[#allocation49_spill] sm:$0xff]  ;;  %v9861_v34 = vmul.f32 %v5262_v27, %v10480_v12  ;;  %7188 = vmatpush3.bf16.msra.mxu0 %v7868_v22  ;;  %v7875_v22 = vld [vmem:[%s10427_s19 + $0x158] sm:$0xff]  }
0x12a6   :  { %v5286_v56 = vmul.f32 %v5262_v27, %v10479_v55  ;;  %v5258_v45 = vsel %vm544_vm7, %v5248_v25, %v5256_v24  ;;  %v10481_v35 = vld [vmem:[#allocation45_spill] sm:$0xff]  ;;  %v9866_v17 = vmul.f32 %v5262_v27, %v10482_v57  ;;  %v5294_v19 = vmul.f32 %v5262_v27, %v10483_v61  ;;  %7141 = vmatprep.subr.bf16.mxu1 %v7869_v14  ;;  %v7877_v57 = vld [vmem:[%s10427_s19 + $0xc0] sm:$0xff]  }
0x12a7   :  { %v5288_v18 = vmul.f32 %v5262_v27, %v10481_v35  ;;  %v9870_v20 = vrot.slane %v5258_v45, %v8857_v7  ;;  %v9873_v51 = vmul.f32 %v5262_v27, %v10484_v3  ;;  %v9876_v62 = vmul.f32 %v5262_v27, %v10485_v29  ;;  %7142 = vmatpush3.bf16.msra.mxu1 %v7870_v40 }
0x12a8   :  { %v9879_v25 = vmul.f32 %v5262_v27, %v10486_v37  ;;  %v9882_v58 = vmul.f32 %v5262_v27, %v10487_v15  ;;  %7189 = vmatprep.subr.bf16.mxu0 %v7871_v41 }
0x12a9   :  { %v9888_v7 = vadd.f32 %v9870_v20, %v5270_v52  ;;  %v9891_v5 = vadd.f32 %v9870_v20, %v5278_v39  ;;  %v9894_v8 = vadd.f32 %v9870_v20, %v5286_v56  ;;  %v9897_v9 = vadd.f32 %v9870_v20, %v5294_v19  ;;  %7190 = vmatpush3.bf16.msra.mxu0 %v7872_v47  ;;  %v7876_v39 = vld [vmem:[%s10427_s19 + $0x118] sm:$0xff]  }
0x12aa   :  { %v5300_v49 = vadd.f32 %v9870_v20, %v5264_v48  ;;  %v5307_v33 = vadd.f32 %v9870_v20, %v5271_v13  ;;  %v5299_v0 = vadd.f32 %v9870_v20, %v5263_v54  ;;  %v5315_v42 = vadd.f32 %v9870_v20, %v5279_v30  ;;  %v7873_v48 = vld [vmem:[%s10427_s19 + $0x78] sm:$0xff]   ;;  %7191 = vmatprep.subr.bf16.mxu0 %v7875_v22 }
0x12ab   :  { %v5346_v1 = vmax.f32 %v9891_v5, 0.0  ;;  %v5354_v43 = vmax.f32 %v9894_v8, 0.0  ;;  %v5362_v27 = vmax.f32 %v9897_v9, 0.0  ;;  %v5338_v52 = vmax.f32 %v9888_v7, 0.0  ;;  %v7874_v54 = vld [vmem:[%s10427_s19 + $0x38] sm:$0xff]   ;;  %7143 = vmatprep.subr.bf16.mxu1 %v7873_v48 }
0x12ac   :  { %v5332_v13 = vmax.f32 %v5300_v49, 0.0  ;;  %v5339_v24 = vmax.f32 %v5307_v33, 0.0  ;;  %v5331_v38 = vmax.f32 %v5299_v0, 0.0  ;;  %v5347_v23 = vmax.f32 %v5315_v42, 0.0  ;;  %7144 = vmatpush3.bf16.msra.mxu1 %v7874_v54  ;;  %v7879_v49 = vld [vmem:[%s10427_s19 + $0x160] sm:$0xff]   ;;  %v7892_v7 = vld [vmem:[%s10427_s19 + $0x138] sm:$0xff]  }
0x12ad   :  { %v5367_v30 = vrot.slane %v5338_v52, 7  ;;  %v5368_v31 = vrot.slane %v5346_v1, 7  ;;  %v5370_v60 = vrot.slane %v5354_v43, 7  ;;  %v5308_v55 = vadd.f32 %v9870_v20, %v9813_v16  ;;  %7192 = vmatpush3.bf16.msra.mxu0 %v7876_v39  ;;  %7157 = vmatprep.subr.bf16.mxu1 %v7877_v57 }
0x12ae   :  { %v9936_v56 = vrot.slane %v5339_v24, 1  ;;  %v7583_v12 = vpack.i.bf16 %v5339_v24, %v5332_v13  ;;  %v9938_v45 = vrot.slane %v5331_v38, 1  ;;  %v9940_v35 = vrot.slane %v5347_v23, 1  ;;  %7193 = vmatprep.subr.bf16.mxu0 %v7879_v49  ;;  %v7883_v13 = vld [vmem:[%s10427_s19 + $0x168] sm:$0xff]  }
0x12af   :  { %v7588_v61 = vpack.i.bf16 %v5331_v38, %v5367_v30  ;;  %v5371_v19 = vsel %vm478_vm3, %v5368_v31, %v5370_v60  ;;  %v5340_v3 = vmax.f32 %v5308_v55, 0.0  ;;  %v5369_v29 = vsel %vm478_vm3, %v5367_v30, %v5368_v31 }
0x12b0   :  { %7584 = vrot.lane.b32.xlu1 %v7583_v12, %s8333_s22  ;;  %v7603_v16 = vpack.i.bf16 %v5347_v23, %v5371_v19  ;;  %v5324_v37 = vadd.f32 %v9870_v20, %v5288_v18  ;;  %v5372_v15 = vrot.slane %v5362_v27, 7  ;;  %v5316_v14 = vadd.f32 %v9870_v20, %v9842_v32  ;;  %v7880_v32 = vld [vmem:[%s10427_s19 + $0x120] sm:$0xff]  }
0x12b1   :  { %7589 = vrot.lane.b32.xlu0 %v7588_v61, %s8333_s22  ;;  %v7593_v40 = vpack.i.bf16 %v5369_v29, %v5340_v3  ;;  %v9956_v41 = vadd.f32 %v9870_v20, %v9861_v34  ;;  %v5309_v47 = vadd.f32 %v9870_v20, %v9816_v63  ;;  %v5310_v18 = vadd.f32 %v9870_v20, %v9819_v59 }
0x12b2   :  { %v5356_v33 = vmax.f32 %v5324_v37, 0.0  ;;  %v5373_v0 = vsel %vm478_vm3, %v5370_v60, %v5372_v15  ;;  %v5348_v42 = vmax.f32 %v5316_v14, 0.0  ;;  %v5301_v34 = vadd.f32 %v9870_v20, %v9796_v11  ;;  %7194 = vmatpush3.bf16.msra.mxu0 %v7880_v32 }
0x12b3   :  { %v5355_v63 = vmax.f32 %v9956_v41, 0.0  ;;  %v5341_v48 = vmax.f32 %v5309_v47, 0.0  ;;  %v5342_v59 = vmax.f32 %v5310_v18, 0.0  ;;  %v5302_v54 = vadd.f32 %v9870_v20, %v9799_v36  ;;  %v7884_v36 = vld [vmem:[%s10427_s19 + $0x128] sm:$0xff]   ;;  %7195 = vmatprep.subr.bf16.mxu0 %v7883_v13  ;;  %v7888_v47 = vld [vmem:[%s10427_s19 + $0x130] sm:$0xff]  }
0x12b4   :  { %7604 = vrot.lane.b32.xlu1 %v7603_v16, %s8333_s22  ;;  %v7608_v24 = vpack.i.bf16 %v5373_v0, %v5356_v33  ;;  %v5333_v38 = vmax.f32 %v5301_v34, 0.0  ;;  %v5325_v11 = vadd.f32 %v9870_v20, %v9866_v17  ;;  %v5326_v23 = vadd.f32 %v9870_v20, %v9873_v51 }
0x12b5   :  { %7594 = vrot.lane.b32.xlu0 %v7593_v40, %s8333_s22  ;;  %v7598_v22 = vpack.i.bf16 %v5355_v63, %v5348_v42  ;;  %v7618_v39 = vpack.i.bf16 %v5342_v59, %v5341_v48  ;;  %v5334_v30 = vmax.f32 %v5302_v54, 0.0  ;;  %v5317_v31 = vadd.f32 %v9870_v20, %v9845_v26  ;;  %v7891_v48 = vld [vmem:[%s10427_s19 + $0x178] sm:$0xff]  }
0x12b6   :  { %v5357_v17 = vmax.f32 %v5325_v11, 0.0  ;;  %v5358_v60 = vmax.f32 %v5326_v23, 0.0  ;;  %v5318_v51 = vadd.f32 %v9870_v20, %v9848_v21  ;;  %v5311_v55 = vadd.f32 %v9870_v20, %v9822_v2  ;;  %7196 = vmatpush3.bf16.msra.mxu0 %v7884_v36 }
0x12b7   :  { %v7613_v12 = vpack.i.bf16 %v5334_v30, %v5333_v38  ;;  %v5349_v57 = vmax.f32 %v5317_v31, 0.0  ;;  %v5312_v61 = vadd.f32 %v9870_v20, %v9825_v4  ;;  %v5303_v19 = vadd.f32 %v9870_v20, %v9802_v50  ;;  %v7887_v50 = vld [vmem:[%s10427_s19 + $0x170] sm:$0xff]   ;;  %v10490_v30 = vld [vmem:[#allocation39_spill] sm:$0xff] }
0x12b8   :  { %7609 = vrot.lane.b32.xlu1 %v7608_v24, %s8333_s22  ;;  %v7628_v26 = vpack.i.bf16 %v5358_v60, %v5357_v17  ;;  %v5350_v3 = vmax.f32 %v5318_v51, 0.0  ;;  %v5343_v29 = vmax.f32 %v5311_v55, 0.0  ;;  %v5304_v16 = vadd.f32 %v9870_v20, %v9805_v46  ;;  %7197 = vmatprep.subr.bf16.mxu0 %v7887_v50 }
0x12b9   :  { %7599 = vrot.lane.b32.xlu0 %v7598_v22, %s8333_s22  ;;  %v5344_v2 = vmax.f32 %v5312_v61, 0.0  ;;  %v5335_v21 = vmax.f32 %v5303_v19, 0.0  ;;  %v5313_v37 = vadd.f32 %v9870_v20, %v9837_v28  ;;  %v5305_v4 = vadd.f32 %v9870_v20, %v9808_v44 }
0x12ba   :  { %v7623_v15 = vpack.i.bf16 %v5350_v3, %v5349_v57  ;;  %v5336_v14 = vmax.f32 %v5304_v16, 0.0  ;;  %v5327_v46 = vadd.f32 %v9870_v20, %v9876_v62  ;;  %v5328_v40 = vadd.f32 %v9870_v20, %v9879_v25  ;;  %7198 = vmatpush3.bf16.msra.mxu0 %v7888_v47 }
0x12bb   :  { %v7638_v28 = vpack.i.bf16 %v5344_v2, %v5343_v29  ;;  %v5345_v18 = vmax.f32 %v5313_v37, 0.0  ;;  %v5337_v49 = vmax.f32 %v5305_v4, 0.0  ;;  %v5319_v44 = vadd.f32 %v9870_v20, %v9851_v6  ;;  %7199 = vmatprep.subr.bf16.mxu0 %v7891_v48  ;;  %v7878_v37 = vld [vmem:[%s10427_s19 + $0x80] sm:$0xff]  }
0x12bc   :  { %7619 = vrot.lane.b32.xlu1 %v7618_v39, %s8333_s22  ;;  %v7633_v32 = vpack.i.bf16 %v5336_v14, %v5335_v21  ;;  %v5359_v33 = vmax.f32 %v5327_v46, 0.0  ;;  %v5360_v0 = vmax.f32 %v5328_v40, 0.0  ;;  %v5320_v62 = vadd.f32 %v9870_v20, %v9854_v53  ;;  %v7881_v46 = vld [vmem:[%s10427_s19 + $0xc8] sm:$0xff]  }
0x12bd   :  { %7614 = vrot.lane.b32.xlu0 %v7613_v12, %s8333_s22  ;;  %v7648_v25 = vpack.i.bf16 %v5346_v1, %v5345_v18  ;;  %v7643_v42 = vpack.i.bf16 %v5338_v52, %v5337_v49  ;;  %v5351_v34 = vmax.f32 %v5319_v44, 0.0  ;;  %v5329_v6 = vadd.f32 %v9870_v20, %v9882_v58 }
0x12be   :  { %v7658_v59 = vpack.i.bf16 %v5360_v0, %v5359_v33  ;;  %v5352_v54 = vmax.f32 %v5320_v62, 0.0  ;;  %v5321_v53 = vadd.f32 %v9870_v20, %v9857_v10  ;;  %v5396_v5 = vrot.slane %v5355_v63, 1  ;;  %v10047_v10 = vld [vmem:[%s10427_s19 + $0x200] sm:$0xff]   ;;  %7200 = vmatpush3.bf16.msra.mxu0 %v7892_v7  ;;  %v7882_v0 = vld [vmem:[%s10427_s19 + $0x88] sm:$0xff]   ;;  %v7886_v7 = vld [vmem:[%s10427_s19 + $0x90] sm:$0xff]  }
0x12bf   :  { %v5361_v1 = vmax.f32 %v5329_v6, 0.0  ;;  %v5393_v58 = vsel %vm491_vm2, %v9938_v45, %v9936_v56  ;;  %v5395_v52 = vsel %vm491_vm2, %v9936_v56, %v9940_v35  ;;  %7283 = vmatprep.subr.bf16.mxu0 %v10047_v10  ;;  %v7885_v6 = vld [vmem:[%s10427_s19 + $0xd0] sm:$0xff]   ;;  %v7890_v45 = vld [vmem:[%s10427_s19 + $0x98] sm:$0xff]  }
0x12c0   :  { %7629 = vrot.lane.b32.xlu1 %v7628_v26, %s8333_s22  ;;  %v7653_v20 = vpack.i.bf16 %v5352_v54, %v5351_v34  ;;  %v5353_v41 = vmax.f32 %v5321_v53, 0.0  ;;  %v5397_v63 = vsel %vm491_vm2, %v9940_v35, %v5396_v5  ;;  %v5402_v13 = vsel %vm491_vm2, %v5396_v5, 0.0 }
0x12c1   :  { %7624 = vrot.lane.b32.xlu0 %v7623_v15, %s8333_s22  ;;  %v7668_v56 = vpack.i.bf16 %v5362_v27, %v5361_v1  ;;  %v5410_v24 = vsel %vm294_vm4, 0.0, %v5402_v13  ;;  %v5408_v11 = vsel %vm280_vm1, 0.0, %v5395_v52  ;;  %v7889_v52 = vld [vmem:[%s10427_s19 + $0xd8] sm:$0xff]  }
0x12c2   :  { %v7663_v23 = vpack.i.bf16 %v5354_v43, %v5353_v41  ;;  %v7678_v35 = vpack.i.bf16 %v5410_v24, %v5397_v63  ;;  %v7673_v36 = vpack.i.bf16 %v5408_v11, %v5393_v58  ;;  %v7893_v11 = vld [vmem:[%s10427_s19 + $0xe0] sm:$0xff]  }
0x12c4   :  { %7639 = vrot.lane.b32.xlu1 %v7638_v28, %s8333_s22 }
0x12c5   :  { %7634 = vrot.lane.b32.xlu0 %v7633_v32, %s8333_s22 }
0x12c8   :  { %7649 = vrot.lane.b32.xlu1 %v7648_v25, %s8333_s22 }
0x12c9   :  { %7644 = vrot.lane.b32.xlu0 %v7643_v42, %s8333_s22 }
0x12cc   :  { %7659 = vrot.lane.b32.xlu1 %v7658_v59, %s8333_s22 }
0x12cd   :  { %7654 = vrot.lane.b32.xlu0 %v7653_v20, %s8333_s22 }
0x12d0   :  { %7669 = vrot.lane.b32.xlu1 %v7668_v56, %s8333_s22 }
0x12d1   :  { %7664 = vrot.lane.b32.xlu0 %v7663_v23, %s8333_s22 }
0x12d4   :  { %7679 = vrot.lane.b32.xlu1 %v7678_v35, %s8333_s22 }
0x12d5   :  { %7674 = vrot.lane.b32.xlu0 %v7673_v36, %s8333_s22 }
0x1322   :  { %v10073_v8 = vpop.permute.xlu1 %7584 }
0x1323   :  { %v7590_v9 = vpop.permute.xlu0 %7589  ;;  %v7587_v60 = vunpack.i.h.bf16 %v10073_v8  ;;  %v7586_v51 = vunpack.i.l.bf16 %v10073_v8 }
0x1324   :  { %v7591_v43 = vunpack.i.l.bf16 %v7590_v9  ;;  %v7592_v27 = vunpack.i.h.bf16 %v7590_v9 }
0x1326   :  { %v5386_v22 = vsel %vm478_vm3, 0.0, %v7591_v43  ;;  %v7605_v39 = vpop.permute.xlu1 %7604  ;;  %v5499_v26 = vsel %vm407_vm0, %v7592_v27, %v7586_v51 }
0x1327   :  { %v5403_v31 = vsel %vm275_vm5, 0.0, %v5386_v22  ;;  %v10078_v17 = vpop.permute.xlu0 %7594  ;;  %v7606_v29 = vunpack.i.l.bf16 %v7605_v39  ;;  %v7607_v4 = vunpack.i.h.bf16 %v7605_v39 }
0x1328   :  { %v7597_v55 = vunpack.i.h.bf16 %v10078_v17  ;;  %v7596_v12 = vunpack.i.l.bf16 %v10078_v17  ;;  %v5579_v57 = vsel %vm407_vm0, %v5403_v31, %v7592_v27  ;;  %v7894_v31 = vld [vmem:[%s10427_s19 + $0xa0] sm:$0xff]  }
0x1329   :  { %v5405_v49 = vsel %vm285_vm6, 0.0, %v7606_v29  ;;  %v7897_v29 = vld [vmem:[%s10427_s19 + $0xa8] sm:$0xff]  }
0x132a   :  { %v5580_v61 = vsel %vm407_vm0, %v7597_v55, %v7587_v60  ;;  %v10086_v19 = vpop.permute.xlu1 %7609  ;;  %v5506_v3 = vsel %vm407_vm0, %v7587_v60, %v7596_v12  ;;  %v5581_v5 = vsel %vm407_vm0, %v5405_v49, %v7607_v4  ;;  %v7896_v60 = vld [vmem:[%s10427_s19 + $0xe8] sm:$0xff]  }
0x132b   :  { %v5587_v16 = vpack.c.bf16 %v5580_v61, %v5579_v57  ;;  %v10094_v2 = vpop.permute.xlu0 %7599  ;;  %v5588_v21 = vpack.c.bf16 %v5506_v3, %v5499_v26  ;;  %v7611_v50 = vunpack.i.l.bf16 %v10086_v19  ;;  %v7612_v44 = vunpack.i.h.bf16 %v10086_v19  ;;  %v7898_v55 = vld [vmem:[%s10427_s19 + $0x208] sm:$0xff]   ;;  %v7912_v19 = vld [vmem:[%s10427_s19 + $0x198] sm:$0xff]  }
0x132c   :  { %v7602_v15 = vunpack.i.h.bf16 %v10094_v2  ;;  %v7601_v14 = vunpack.i.l.bf16 %v10094_v2  ;;  %v7911_v2 = vld [vmem:[%s10427_s19 + $0x1d8] sm:$0xff]  }
0x132d   :  { %6187 = vmatprep.mubr.bf16.mxu1 %v5588_v21 }
0x132e   :  { %v10105_v40 = vpop.permute.xlu1 %7619  ;;  %6188 = vmatmul.mubr.bf16.vlgmr.msra.gmra.mrb[28].mxu1 %v5587_v16  ;;  %v5513_v47 = vsel %vm407_vm0, %v7607_v4, %v7601_v14  ;;  %v5520_v28 = vsel %vm407_vm0, %v7602_v15, %v7611_v50  ;;  %v5582_v48 = vsel %vm407_vm0, %v7612_v44, %v7602_v15  ;;  %v7899_v15 = vld [vmem:[%s10427_s19 + $0xf0] sm:$0xff]  }
0x132f   :  { %7158 = vmatpush3.bf16.msra.mxu1 %v7878_v37  ;;  %v10116_v32 = vpop.permute.xlu0 %7614  ;;  %v5597_v33 = vpack.c.bf16 %v5520_v28, %v5513_v47  ;;  %v7622_v62 = vunpack.i.h.bf16 %v10105_v40  ;;  %v7621_v25 = vunpack.i.l.bf16 %v10105_v40  ;;  %v5596_v1 = vpack.c.bf16 %v5582_v48, %v5581_v5  ;;  %v7907_v40 = vld [vmem:[%s10427_s19 + $0x1c8] sm:$0xff]  }
0x1330   :  { %v7617_v42 = vunpack.i.h.bf16 %v10116_v32  ;;  %v7616_v34 = vunpack.i.l.bf16 %v10116_v32  ;;  %7159 = vmatprep.subr.bf16.mxu1 %v7881_v46  ;;  %v7906_v32 = vld [vmem:[%s10427_s19 + $0x180] sm:$0xff]  }
0x1331   :  { %6195 = vmatprep.mubr.bf16.mxu1 %v5597_v33  ;;  %v5508_v58 = vsel %vm407_vm0, %v7621_v25, %v7622_v62  ;;  %v5507_v8 = vsel %vm407_vm0, %v7596_v12, %v7621_v25  ;;  %v7908_v25 = vld [vmem:[%s10427_s19 + $0x188] sm:$0xff]  }
0x1332   :  { %v10129_v59 = vpop.permute.xlu1 %7629  ;;  %v5501_v54 = vsel %vm407_vm0, %v7616_v34, %v7617_v42 }
0x1333   :  { %7160 = vmatpush3.bf16.msra.mxu1 %v7882_v0  ;;  %v10134_v53 = vpop.permute.xlu0 %7624  ;;  %v5590_v20 = vpack.c.bf16 %v5508_v58, %v5501_v54  ;;  %v7632_v16 = vunpack.i.h.bf16 %v10129_v59  ;;  %v7900_v0 = vld [vmem:[%s10427_s19 + $0xb0] sm:$0xff]   ;;  %v7631_v48 = vunpack.i.l.bf16 %v10129_v59 }
0x1334   :  { %7161 = vmatprep.subr.bf16.mxu1 %v7885_v6  ;;  %v7627_v21 = vunpack.i.h.bf16 %v10134_v53  ;;  %v7904_v6 = vld [vmem:[%s10427_s19 + $0x218] sm:$0xff]   ;;  %v7626_v54 = vunpack.i.l.bf16 %v10134_v53 }
0x1336   :  { %v10146_v41 = vpop.permute.xlu1 %7639  ;;  %6196 = vmatmul.mubr.bf16.gmra.mrb[32].mxu1 %v5596_v1 }
0x1337   :  { %v7642_v63 = vunpack.i.h.bf16 %v10146_v41  ;;  %v7641_v13 = vunpack.i.l.bf16 %v10146_v41  ;;  %7162 = vmatpush3.bf16.msra.mxu1 %v7886_v7  ;;  %v10150_v56 = vpop.permute.xlu0 %7634  ;;  %6236 = vmatprep.mubr.bf16.mxu1 %v5590_v20 }
0x1338   :  { %v7637_v24 = vunpack.i.h.bf16 %v10150_v56  ;;  %v7636_v38 = vunpack.i.l.bf16 %v10150_v56  ;;  %7163 = vmatprep.subr.bf16.mxu1 %v7889_v52 }
0x1339   :  { %v5509_v23 = vsel %vm407_vm0, %v7622_v62, %v7641_v13  ;;  %v5510_v43 = vsel %vm407_vm0, %v7641_v13, %v7642_v63  ;;  %v7903_v13 = vld [vmem:[%s10427_s19 + $0xb8] sm:$0xff]  }
0x133a   :  { %v5502_v35 = vsel %vm407_vm0, %v7617_v42, %v7636_v38  ;;  %v10162_v36 = vpop.permute.xlu1 %7649  ;;  %v5503_v9 = vsel %vm407_vm0, %v7636_v38, %v7637_v24  ;;  %v7902_v42 = vld [vmem:[%s10427_s19 + $0xf8] sm:$0xff]  }
0x133b   :  { %v5591_v27 = vpack.c.bf16 %v5509_v23, %v5502_v35  ;;  %7164 = vmatpush3.bf16.msra.mxu1 %v7890_v45  ;;  %v10170_v22 = vpop.permute.xlu0 %7644  ;;  %v5592_v39 = vpack.c.bf16 %v5510_v43, %v5503_v9  ;;  %v7652_v45 = vunpack.i.h.bf16 %v10162_v36  ;;  %v5500_v23 = vsel %vm407_vm0, %v7586_v51, %v7616_v34 }
0x133c   :  { %7165 = vmatprep.subr.bf16.mxu1 %v7893_v11  ;;  %v7647_v59 = vunpack.i.h.bf16 %v10170_v22  ;;  %v7905_v11 = vld [vmem:[%s10427_s19 + $0x1c0] sm:$0xff]   ;;  %v5589_v34 = vpack.c.bf16 %v5507_v8, %v5500_v23  ;;  %v7646_v12 = vunpack.i.l.bf16 %v10170_v22  ;;  %v5514_v22 = vsel %vm407_vm0, %v7601_v14, %v7626_v54 }
0x133d   :  { %6285 = vmatprep.mubr.bf16.mxu0 %v5592_v39  ;;  %v5515_v39 = vsel %vm407_vm0, %v7626_v54, %v7627_v21 }
0x133e   :  { %v10181_v57 = vpop.permute.xlu1 %7659  ;;  %6286 = vmatmul.mubr.bf16.vlgmr.msra.gmra.mrb[36].mxu0 %v5591_v27 }
0x133f   :  { %v7662_v61 = vunpack.i.h.bf16 %v10181_v57  ;;  %v7661_v26 = vunpack.i.l.bf16 %v10181_v57  ;;  %7166 = vmatpush3.bf16.msra.mxu1 %v7894_v31  ;;  %v10185_v3 = vpop.permute.xlu0 %7654  ;;  %7284 = vmatpush3.bf16.msra.mxu0 %v10047_v10  ;;  %v7901_v10 = vld [vmem:[%s10427_s19 + $0x210] sm:$0xff]  }
0x1340   :  { %v7657_v37 = vunpack.i.h.bf16 %v10185_v3  ;;  %v7656_v4 = vunpack.i.l.bf16 %v10185_v3  ;;  %7167 = vmatprep.subr.bf16.mxu1 %v7896_v60  ;;  %7285 = vmatprep.subr.bf16.mxu0 %v7898_v55  ;;  %v5522_v60 = vsel %vm407_vm0, %v7631_v48, %v7632_v16 }
0x1341   :  { %v5524_v28 = vsel %vm407_vm0, %v7661_v26, %v7662_v61  ;;  %v5523_v49 = vsel %vm407_vm0, %v7632_v16, %v7661_v26  ;;  %v5599_v17 = vpack.c.bf16 %v5522_v60, %v5515_v39  ;;  %v7909_v26 = vld [vmem:[%s10427_s19 + $0x1d0] sm:$0xff]   ;;  %v5521_v16 = vsel %vm407_vm0, %v7611_v50, %v7631_v48  ;;  %v7913_v50 = vld [vmem:[%s10427_s19 + $0x1e0] sm:$0xff]  }
0x1342   :  { %v10201_v46 = vpop.permute.xlu1 %7669  ;;  %v5517_v47 = vsel %vm407_vm0, %v7656_v4, %v7657_v37  ;;  %v5516_v18 = vsel %vm407_vm0, %v7627_v21, %v7656_v4  ;;  %v5598_v21 = vpack.c.bf16 %v5521_v16, %v5514_v22 }
0x1343   :  { %7168 = vmatpush3.bf16.msra.mxu1 %v7897_v29  ;;  %v10211_v44 = vpop.permute.xlu0 %7664  ;;  %7286 = vmatpush3.bf16.msra.mxu0 %v7898_v55  ;;  %v5601_v33 = vpack.c.bf16 %v5524_v28, %v5517_v47  ;;  %v5600_v62 = vpack.c.bf16 %v5523_v49, %v5516_v18  ;;  %v7672_v7 = vunpack.i.h.bf16 %v10201_v46  ;;  %v7651_v55 = vunpack.i.l.bf16 %v10162_v36  ;;  %v7910_v36 = vld [vmem:[%s10427_s19 + $0x190] sm:$0xff]   ;;  %v7916_v47 = vld [vmem:[%s10427_s19 + $0x1a8] sm:$0xff]   ;;  %v7919_v49 = vld [vmem:[%s10427_s19 + $0x1f8] sm:$0xff]  }
0x1344   :  { %7169 = vmatprep.subr.bf16.mxu1 %v7899_v15  ;;  %7287 = vmatprep.subr.bf16.mxu0 %v7901_v10  ;;  %v7667_v1 = vunpack.i.h.bf16 %v10211_v44  ;;  %v5505_v29 = vsel %vm407_vm0, %v7646_v12, %v7647_v59  ;;  %v7914_v15 = vld [vmem:[%s10427_s19 + $0x1a0] sm:$0xff]   ;;  %v7917_v28 = vld [vmem:[%s10427_s19 + $0x1f0] sm:$0xff]  }
0x1345   :  { %6293 = vmatprep.mubr.bf16.mxu0 %v5601_v33  ;;  %v5512_v4 = vsel %vm407_vm0, %v7651_v55, %v7652_v45  ;;  %v7918_v18 = vld [vmem:[%s10427_s19 + $0x1b0] sm:$0xff]   ;;  %v7666_v33 = vunpack.i.l.bf16 %v10211_v44  ;;  %v5511_v48 = vsel %vm407_vm0, %v7642_v63, %v7651_v55 }
0x1346   :  { %v7680_v5 = vpop.permute.xlu1 %7679  ;;  %6294 = vmatmul.mubr.bf16.gmra.mrb[40].mxu0 %v5600_v62  ;;  %v5594_v14 = vpack.c.bf16 %v5512_v4, %v5505_v29  ;;  %v7671_v62 = vunpack.i.l.bf16 %v10201_v46 }
0x1347   :  { %v7682_v58 = vunpack.i.h.bf16 %v7680_v5  ;;  %v7681_v52 = vunpack.i.l.bf16 %v7680_v5  ;;  %7170 = vmatpush3.bf16.msra.mxu1 %v7900_v0  ;;  %7288 = vmatpush3.bf16.msra.mxu0 %v7901_v10  ;;  %v7675_v20 = vpop.permute.xlu0 %7674  ;;  %v7915_v10 = vld [vmem:[%s10427_s19 + $0x1e8] sm:$0xff]   ;;  %v7920_v0 = vld [vmem:[%s10427_s19 + $0x1b8] sm:$0xff]   ;;  %v5518_v56 = vsel %vm407_vm0, %v7657_v37, %v7666_v33 }
0x1348   :  { %v7677_v53 = vunpack.i.h.bf16 %v7675_v20  ;;  %v7676_v38 = vunpack.i.l.bf16 %v7675_v20  ;;  %7171 = vmatprep.subr.bf16.mxu1 %v7902_v42  ;;  %7289 = vmatprep.subr.bf16.mxu0 %v7904_v6  ;;  %v5504_v42 = vsel %vm407_vm0, %v7637_v24, %v7646_v12  ;;  %v5526_v5 = vsel %vm407_vm0, %v7671_v62, %v7672_v7 }
0x1349   :  { %v5585_v35 = vsel %vm407_vm0, %v7667_v1, %v7681_v52  ;;  %v5586_v9 = vsel %vm407_vm0, %v7672_v7, %v7682_v58  ;;  %v5593_v54 = vpack.c.bf16 %v5511_v48, %v5504_v42  ;;  %v5525_v24 = vsel %vm407_vm0, %v7662_v61, %v7671_v62 }
0x134a   :  { %v5584_v43 = vsel %vm407_vm0, %v7652_v45, %v7677_v53  ;;  %v5583_v27 = vsel %vm407_vm0, %v7647_v59, %v7676_v38  ;;  %v5604_v31 = vpack.c.bf16 %v5586_v9, %v5585_v35  ;;  %v5602_v41 = vpack.c.bf16 %v5525_v24, %v5518_v56 }
0x134b   :  { %v5595_v51 = vpack.c.bf16 %v5584_v43, %v5583_v27  ;;  %7172 = vmatpush3.bf16.msra.mxu1 %v7903_v13  ;;  %7290 = vmatpush3.bf16.msra.mxu0 %v7904_v6  ;;  %v5519_v6 = vsel %vm407_vm0, %v7666_v33, %v7667_v1 }
0x134c   :  { %7213 = vmatprep.subr.bf16.mxu1 %v7905_v11  ;;  %v5603_v58 = vpack.c.bf16 %v5526_v5, %v5519_v6 }
0x134d   :  { %7291 = vmatprep.mubr.msk.bf16.mxu0 %vm544_vm7, %v5595_v51 }
0x134e   :  { %6237 = vmatmul.mubr.bf16.vlgmr.msra.gmra.mrb[36].mxu1 %v5589_v34  ;;  %7292 = vmatmul.mubr.msk.bf16.vlgmr.msra.gmra.mrb[44].mxu0 %vm544_vm7, %v5604_v31 }
0x134f   :  { %6244 = vmatprep.mubr.bf16.mxu1 %v5599_v17  ;;  %7214 = vmatpush3.bf16.msra.mxu1 %v7906_v32 }
0x1350   :  { %7215 = vmatprep.subr.bf16.mxu1 %v7907_v40 }
0x1353   :  { %7216 = vmatpush3.bf16.msra.mxu1 %v7908_v25 }
0x1354   :  { %7217 = vmatprep.subr.bf16.mxu1 %v7909_v26 }
0x1356   :  { %6245 = vmatmul.mubr.bf16.gmra.mrb[40].mxu1 %v5598_v21 }
0x1357   :  { %7218 = vmatpush3.bf16.msra.mxu1 %v7910_v36  ;;  %6334 = vmatprep.mubr.bf16.mxu1 %v5594_v14 }
0x1358   :  { %7219 = vmatprep.subr.bf16.mxu1 %v7911_v2 }
0x135b   :  { %7220 = vmatpush3.bf16.msra.mxu1 %v7912_v19 }
0x135c   :  { %7221 = vmatprep.subr.bf16.mxu1 %v7913_v50 }
0x135f   :  { %7222 = vmatpush3.bf16.msra.mxu1 %v7914_v15 }
0x1360   :  { %7223 = vmatprep.subr.bf16.mxu1 %v7915_v10 }
0x1363   :  { %7224 = vmatpush3.bf16.msra.mxu1 %v7916_v47 }
0x1364   :  { %7225 = vmatprep.subr.bf16.mxu1 %v7917_v28 }
0x1367   :  { %7226 = vmatpush3.bf16.msra.mxu1 %v7918_v18 }
0x1368   :  { %7227 = vmatprep.subr.bf16.mxu1 %v7919_v49 }
0x136b   :  { %7228 = vmatpush3.bf16.msra.mxu1 %v7920_v0 }
0x136e   :  { %6335 = vmatmul.mubr.bf16.vlgmr.msra.gmra.mrb[44].mxu1 %v5593_v54 }
0x136f   :  { %6342 = vmatprep.mubr.bf16.mxu1 %v5603_v58 }
0x1376   :  { %6343 = vmatmul.mubr.bf16.gmra.mrb[48].mxu1 %v5602_v41 }
0x1401   :  { %v7145_v63 = vpop.f32.mrb[28].mxu1 }
0x1402   :  { %v7146_v44 = vpop.f32.mrb[29].mxu1 }
0x1403   :  { %v7147_v1 = vadd.f32 %v7146_v44, %v7145_v63  ;;  %v7148_v52 = vpop.f32.mrb[30].mxu1 }
0x1404   :  { %v7149_v46 = vpop.f32.mrb[31].mxu1 }
0x1405   :  { %v7150_v20 = vadd.f32 %v7149_v46, %v7148_v52 }
0x1409   :  { %v7151_v7 = vpop.f32.mrb[32].mxu1 }
0x140a   :  { %v7152_v13 = vpop.f32.mrb[33].mxu1 }
0x140b   :  { %v7153_v45 = vadd.f32 %v7152_v13, %v7151_v7  ;;  %v7154_v59 = vpop.f32.mrb[34].mxu1 }
0x140c   :  { %v7155_v53 = vpop.f32.mrb[35].mxu1 }
0x140d   :  { %v7156_v3 = vadd.f32 %v7155_v53, %v7154_v59 }
0x1411   :  { %v7201_v38 = vpop.f32.mrb[36].mxu0 }
0x1412   :  { %v7202_v37 = vpop.f32.mrb[37].mxu0 }
0x1413   :  { %v7203_v11 = vadd.f32 %v7202_v37, %v7201_v38  ;;  %v7204_v57 = vpop.f32.mrb[38].mxu0 }
0x1414   :  { %v7205_v23 = vpop.f32.mrb[39].mxu0 }
0x1415   :  { %v7206_v61 = vadd.f32 %v7205_v23, %v7204_v57 }
0x1419   :  { %v7207_v35 = vpop.f32.mrb[40].mxu0 }
0x141a   :  { %v7208_v9 = vpop.f32.mrb[41].mxu0 }
0x141b   :  { %v7209_v43 = vadd.f32 %v7208_v9, %v7207_v35  ;;  %v7210_v27 = vpop.f32.mrb[42].mxu0 }
0x141c   :  { %v7211_v39 = vpop.f32.mrb[43].mxu0 }
0x141d   :  { %v7212_v8 = vadd.f32 %v7211_v39, %v7210_v27 }
0x1421   :  { %v7173_v51 = vpop.f32.mrb[36].mxu1  ;;  %v7293_v32 = vpop.f32.mrb[44].mxu0 }
0x1422   :  { %v7174_v34 = vpop.f32.mrb[37].mxu1  ;;  %v6385_v31 = vpop.f32.mrb[45].mxu0 }
0x1423   :  { %v7175_v60 = vadd.f32 %v7174_v34, %v7173_v51  ;;  %v7176_v40 = vpop.f32.mrb[38].mxu1  ;;  %v7294_v17 = vpop.f32.mrb[46].mxu0 }
0x1424   :  { %v7177_v12 = vpop.f32.mrb[39].mxu1  ;;  %v6388_v25 = vpop.f32.mrb[47].mxu0 }
0x1425   :  { %v6239_v55 = vadd.f32 %v7175_v60, %v7147_v1  ;;  %v7178_v26 = vadd.f32 %v7177_v12, %v7176_v40  ;;  %v8350_v12 = vmov 1983009808  }
0x1427   :  { %v6242_v22 = vadd.f32 %v7178_v26, %v7150_v20  ;;  %v6288_v29 = vadd.f32 %v7203_v11, %v6239_v55 }
0x1429   :  { %v7179_v16 = vpop.f32.mrb[40].mxu1  ;;  %v6291_v36 = vadd.f32 %v7206_v61, %v6242_v22 }
0x142a   :  { %v7180_v21 = vpop.f32.mrb[41].mxu1 }
0x142b   :  { %v7181_v4 = vadd.f32 %v7180_v21, %v7179_v16  ;;  %v7182_v2 = vpop.f32.mrb[42].mxu1 }
0x142c   :  { %v7183_v14 = vpop.f32.mrb[43].mxu1 }
0x142d   :  { %v6247_v19 = vadd.f32 %v7181_v4, %v7153_v45  ;;  %v7184_v50 = vadd.f32 %v7183_v14, %v7182_v2 }
0x142f   :  { %v6250_v15 = vadd.f32 %v7184_v50, %v7156_v3  ;;  %v6296_v10 = vadd.f32 %v7209_v43, %v6247_v19 }
0x1431   :  { %v6299_v47 = vadd.f32 %v7212_v8, %v6250_v15 }
0x1441   :  { %v7229_v28 = vpop.f32.mrb[44].mxu1 }
0x1442   :  { %v7230_v18 = vpop.f32.mrb[45].mxu1 }
0x1443   :  { %v7231_v49 = vadd.f32 %v7230_v18, %v7229_v28  ;;  %v7232_v33 = vpop.f32.mrb[46].mxu1 }
0x1444   :  { %v7233_v0 = vpop.f32.mrb[47].mxu1 }
0x1445   :  { %v6337_v62 = vadd.f32 %v7231_v49, %v6288_v29  ;;  %v7234_v42 = vadd.f32 %v7233_v0, %v7232_v33 }
0x1447   :  { %v6386_v6 = vadd.f32 %v6385_v31, %v6337_v62  ;;  %v6340_v48 = vadd.f32 %v7234_v42, %v6291_v36 }
0x1449   :  { %7933 = vtanh.f32 %v6386_v6  ;;  %v6389_v54 = vadd.f32 %v6388_v25, %v6340_v48  ;;  %v7235_v5 = vpop.f32.mrb[48].mxu1  ;;  %v6555_v25 = vunpack.c.l.s4 %v8350_v12 }
0x144a   :  { %v7236_v58 = vpop.f32.mrb[49].mxu1 }
0x144b   :  { %v7237_v56 = vadd.f32 %v7236_v58, %v7235_v5  ;;  %v7238_v24 = vpop.f32.mrb[50].mxu1  ;;  %7935 = vtanh.f32 %v6389_v54  ;;  %v6556_v4 = vunpack.c.0.s8 %v6555_v25 }
0x144c   :  { %v7239_v41 = vpop.f32.mrb[51].mxu1 }
0x144d   :  { %v6345_v63 = vadd.f32 %v7237_v56, %v6296_v10  ;;  %v7240_v44 = vadd.f32 %v7239_v41, %v7238_v24  ;;  %v6559_v42 = vsub.s32 %v6556_v4, %v10490_v30 }
0x144f   :  { %v6394_v1 = vadd.f32 %v7293_v32, %v6345_v63  ;;  %v6348_v52 = vadd.f32 %v7240_v44, %v6299_v47 }
0x1451   :  { %v6397_v46 = vadd.f32 %v7294_v17, %v6348_v52  ;;  %7937 = vtanh.f32 %v6394_v1 }
0x1453   :  { %v10331_v20 = vpop.eup %7933  ;;  %7939 = vtanh.f32 %v6397_v46 }
0x1454   :  { %v6411_v7 = vrot.slane %v10331_v20, 3  ;;  %v6405_v13 = vrot.slane %v10331_v20, 1  ;;  %v6423_v45 = vrot.slane %v10331_v20, 7  ;;  %v6417_v59 = vrot.slane %v10331_v20, 5 }
0x1455   :  { %v10339_v53 = vpop.eup %7935  ;;  %v6409_v29 = vrot.slane %v10331_v20, 2  ;;  %v6421_v49 = vrot.slane %v10331_v20, 6  ;;  %v6415_v33 = vrot.slane %v10331_v20, 4 }
0x1456   :  { %6412 = vrot.lane.b32.xlu1 %v6411_v7, %s8338_s5  ;;  %6406 = vrot.lane.b32.xlu0 %v6405_v13, %s8338_s5  ;;  %v6434_v3 = vrot.slane %v10339_v53, 3  ;;  %v6428_v38 = vrot.slane %v10339_v53, 1  ;;  %v6446_v8 = vrot.slane %v10339_v53, 7  ;;  %v6440_v51 = vrot.slane %v10339_v53, 5 }
0x1457   :  { %v6432_v46 = vrot.slane %v10339_v53, 2 }
0x145a   :  { %6424 = vrot.lane.b32.xlu1 %v6423_v45, %s8338_s5  ;;  %6418 = vrot.lane.b32.xlu0 %v6417_v59, %s8338_s5 }
0x145b   :  { %v7938_v37 = vpop.eup %7937 }
0x145c   :  { %v6465_v11 = vrot.slane %v7938_v37, 3  ;;  %v6459_v57 = vrot.slane %v7938_v37, 1  ;;  %v6477_v23 = vrot.slane %v7938_v37, 7  ;;  %v6471_v61 = vrot.slane %v7938_v37, 5 }
0x145d   :  { %v10349_v35 = vpop.eup %7939  ;;  %v6463_v55 = vrot.slane %v7938_v37, 2  ;;  %v6475_v50 = vrot.slane %v7938_v37, 6  ;;  %v6469_v15 = vrot.slane %v7938_v37, 4 }
0x145e   :  { %6435 = vrot.lane.b32.xlu1 %v6434_v3, %s8338_s5  ;;  %6429 = vrot.lane.b32.xlu0 %v6428_v38, %s8338_s5  ;;  %v6488_v9 = vrot.slane %v10349_v35, 3  ;;  %v6482_v43 = vrot.slane %v10349_v35, 1  ;;  %v6500_v27 = vrot.slane %v10349_v35, 7  ;;  %v6494_v39 = vrot.slane %v10349_v35, 5 }
0x145f   :  { %v6486_v56 = vrot.slane %v10349_v35, 2  ;;  %v6498_v59 = vrot.slane %v10349_v35, 6  ;;  %v6492_v3 = vrot.slane %v10349_v35, 4 }
0x1462   :  { %6466 = vrot.lane.b32.xlu1 %v6465_v11, %s8338_s5  ;;  %6460 = vrot.lane.b32.xlu0 %v6459_v57, %s8338_s5 }
0x1466   :  { %6478 = vrot.lane.b32.xlu1 %v6477_v23, %s8338_s5  ;;  %6472 = vrot.lane.b32.xlu0 %v6471_v61, %s8338_s5 }
0x146a   :  { %6489 = vrot.lane.b32.xlu1 %v6488_v9, %s8338_s5  ;;  %6483 = vrot.lane.b32.xlu0 %v6482_v43, %s8338_s5 }
0x146e   :  { %6501 = vrot.lane.b32.xlu1 %v6500_v27, %s8338_s5  ;;  %6495 = vrot.lane.b32.xlu0 %v6494_v39, %s8338_s5  ;;  %v6438_v39 = vrot.slane %v10339_v53, 4 }
0x1472   :  { %6447 = vrot.lane.b32.xlu1 %v6446_v8, %s8338_s5  ;;  %6441 = vrot.lane.b32.xlu0 %v6440_v51, %s8338_s5 }
0x14c8   :  { %v6413_v32 = vpop.permute.xlu1 %6412  ;;  %v6407_v34 = vpop.permute.xlu0 %6406 }
0x14c9   :  { %v6451_v14 = vsel %vm544_vm7, %v6409_v29, %v6413_v32  ;;  %v6450_v19 = vsel %vm544_vm7, %v10331_v20, %v6407_v34 }
0x14cc   :  { %v6425_v31 = vpop.permute.xlu1 %6424  ;;  %v6419_v60 = vpop.permute.xlu0 %6418 }
0x14cd   :  { %v6453_v54 = vsel %vm544_vm7, %v6421_v49, %v6425_v31  ;;  %v6452_v5 = vsel %vm544_vm7, %v6415_v33, %v6419_v60 }
0x14d0   :  { %v6436_v40 = vpop.permute.xlu1 %6435  ;;  %v6430_v17 = vpop.permute.xlu0 %6429 }
0x14d1   :  { %v6455_v38 = vsel %vm544_vm7, %v6432_v46, %v6436_v40  ;;  %v6454_v57 = vsel %vm544_vm7, %v10339_v53, %v6430_v17 }
0x14d4   :  { %v6467_v26 = vpop.permute.xlu1 %6466  ;;  %v6461_v22 = vpop.permute.xlu0 %6460 }
0x14d5   :  { %v6505_v16 = vsel %vm544_vm7, %v6463_v55, %v6467_v26  ;;  %v6504_v36 = vsel %vm544_vm7, %v7938_v37, %v6461_v22 }
0x14d6   :  { %v6521_v21 = vrot.slane %v6505_v16, 7  ;;  %v6520_v2 = vrot.slane %v6504_v36, 7 }
0x14d8   :  { %v6537_v10 = vsel %vm478_vm3, %v6451_v14, %v6521_v21  ;;  %v6536_v47 = vsel %vm478_vm3, %v6450_v19, %v6520_v2  ;;  %v6479_v28 = vpop.permute.xlu1 %6478  ;;  %v6473_v18 = vpop.permute.xlu0 %6472 }
0x14d9   :  { %v6507_v0 = vsel %vm544_vm7, %v6475_v50, %v6479_v28  ;;  %v6506_v62 = vsel %vm544_vm7, %v6469_v15, %v6473_v18  ;;  %v6552_v58 = vcombine.low %v6536_v47, %v6537_v10 }
0x14da   :  { %v6523_v6 = vrot.slane %v6507_v0, 7  ;;  %v6522_v48 = vrot.slane %v6506_v62, 7 }
0x14db   :  { %v6560_v13 = vrot.slane %v6552_v58, %v6559_v42 }
0x14dc   :  { %v6539_v24 = vsel %vm478_vm3, %v6453_v54, %v6523_v6  ;;  %v6538_v41 = vsel %vm478_vm3, %v6452_v5, %v6522_v48  ;;  %v6490_v63 = vpop.permute.xlu1 %6489  ;;  %v6484_v44 = vpop.permute.xlu0 %6483 }
0x14dd   :  { %v6553_v1 = vcombine.low %v6538_v41, %v6539_v24  ;;  %v6509_v52 = vsel %vm544_vm7, %v6486_v56, %v6490_v63  ;;  %v6508_v30 = vsel %vm544_vm7, %v10349_v35, %v6484_v44  ;;  %v6444_v35 = vrot.slane %v10339_v53, 6 }
0x14de   :  { %v6525_v20 = vrot.slane %v6509_v52, 7  ;;  %v6524_v7 = vrot.slane %v6508_v30, 7 }
0x14df   :  { %v6567_v45 = vrot.slane %v6553_v1, %v6559_v42 }
0x14e0   :  { %v6502_v37 = vpop.permute.xlu1 %6501  ;;  %v6496_v11 = vpop.permute.xlu0 %6495  ;;  %v6541_v43 = vsel %vm478_vm3, %v6455_v38, %v6525_v20  ;;  %v6540_v27 = vsel %vm478_vm3, %v6454_v57, %v6524_v7 }
0x14e1   :  { %v6568_v23 = vcombine.low %v6560_v13, %v6567_v45  ;;  %v6511_v61 = vsel %vm544_vm7, %v6498_v59, %v6502_v37  ;;  %v6510_v9 = vsel %vm544_vm7, %v6492_v3, %v6496_v11  ;;  %v6569_v31 = vcombine.low %v6540_v27, %v6541_v43 }
0x14e2   :  { %v6527_v8 = vrot.slane %v6511_v61, 7  ;;  %v6526_v51 = vrot.slane %v6510_v9, 7 }
0x14e3   :  { %6588 = vst [vmem:[%s10428_s20] sm:$0xff] %v6568_v23  ;;  %v6577_v55 = vrot.slane %v6569_v31, %v6559_v42 }
0x14e4   :  { %v6448_v32 = vpop.permute.xlu1 %6447  ;;  %v6442_v34 = vpop.permute.xlu0 %6441 }
0x14e5   :  { %v6457_v60 = vsel %vm544_vm7, %v6444_v35, %v6448_v32  ;;  %v6456_v40 = vsel %vm544_vm7, %v6438_v39, %v6442_v34 }
0x14e6   :  { %v6543_v17 = vsel %vm478_vm3, %v6457_v60, %v6527_v8  ;;  %v6542_v12 = vsel %vm478_vm3, %v6456_v40, %v6526_v51 }
0x14e7   :  { %v6570_v25 = vcombine.low %v6542_v12, %v6543_v17 }
0x14e9   :  { %v6584_v26 = vrot.slane %v6570_v25, %v6559_v42 }
0x14eb   :  { %v6585_v22 = vcombine.low %v6577_v55, %v6584_v26 }
0x14ed   :  { %6589 = vst [vmem:[%s10428_s20 + $0x8] sm:$0xff] %v6585_v22 }
0x14ee   :  { %6594 = vsyncpa [#allocation3], 1 }
0x14ef   :  { %6595 = vsyncpa [#allocation7], 1 }
0x14f0   :  { %6596 = vsyncpa [#allocation10], 1 }
0x14f1   :  { %6597 = vsyncpa [#allocation13], 1 }
0x14f2   :  { %6598 = vsyncpa [#allocation16], 1 }
0x14f3   :  { %6599 = vsyncpa [#allocation19], 1 }
0x14f4   :  { %6600 = vsyncpa [#allocation22], 1 }
0x14f5   :  { %6601 = vsyncpa [#allocation25], 1 }
0x14f6   :  { %6602 = vsyncpa [#allocation28], 1 }
0x14f7   :  { %6603 = vsyncpa [#allocation4], 1 }

</bundles_post_ra>
